<compile_context>
chip_gen: v7x
topology: tpu7x:2x2x1
jax: 0.10.0
libtpu: 0.0.40
codegen_flags: <defaults>
</compile_context>

<pallas_src>
import jax
import jax.numpy as jnp
import numpy as np
from jax.experimental import pallas as pl
from jax.experimental.pallas import tpu as pltpu


# Shared raster geometry (per image): row r = y * 32 + x, y in [0,30), x in [0,32).
_YP, _XP = 30, 32
_RASTER = _YP * _XP            # 960 conv1 raster rows kept in VMEM scratch
_A2_ROWS = 24 * _XP            # 768 conv2 raster rows actually computed
_CHUNK2 = 384                  # conv2 accumulator chunk (rows)
_POOL_ROWS = 728               # pool pre-max rows (max read row 726+33 < 768)
_K1 = 10                       # 9 conv1 taps + 1 ones column (bias folded in)


# ----------------------------------------------------------------------------
# Pallas kernels
# ----------------------------------------------------------------------------
def _conv_pool_kernel(cols_ref, w1_ref, w2_ref, b2_ref, out_ref,
                      a1_ref, a2_ref, m_ref):
    """Fused conv1+ReLU -> conv2+ReLU -> 2x2 maxpool for a block of images."""
    nb = cols_ref.shape[0] // _RASTER          # images per grid step (static)
    w1 = w1_ref[...]                           # (10, 32) bf16, bias row folded in
    w2 = w2_ref[...]                           # (9, 32, 64) bf16, hoisted
    b2w = jnp.broadcast_to(b2_ref[...], (_CHUNK2, 64))   # hoisted bias broadcast

    for b in range(nb):
        base1 = b * _RASTER
        base2 = b * _A2_ROWS

        # ---- conv1 + ReLU: one (960,10)@(10,32) bf16 matmul (f32 accumulate).
        y1 = jnp.dot(cols_ref[pl.ds(base1, _RASTER), :], w1,
                     preferred_element_type=jnp.float32)
        a1_ref[pl.ds(base1, _RASTER), :] = (
            jnp.maximum(y1, 0.0).astype(a1_ref.dtype))

        # ---- conv2 + ReLU as 9 shifted matmuls per 384-row chunk.
        # Raster row r is (y, x) = (r // 32, r % 32); kernel offset (ki, kj)
        # is a flat row shift of ki*32 + kj.  Rows with x >= 24 are junk but
        # are never read by the pooling stage below.
        for c0 in range(0, _A2_ROWS, _CHUNK2):
            acc = b2w
            for k in range(9):
                ki, kj = divmod(k, 3)
                lhs = a1_ref[pl.ds(base1 + c0 + ki * _XP + kj, _CHUNK2), :]
                acc = acc + jnp.dot(lhs, w2[k],
                                    preferred_element_type=jnp.float32)
            a2_ref[pl.ds(base2 + c0, _CHUNK2), :] = jnp.maximum(acc, 0.0)

        # ---- 2x2 max pool: m[r] = max(a2[r], a2[r+1], a2[r+32], a2[r+33]),
        # done with 4 shifted full-width reads + 3 maxes, then one stride-2 row
        # select per pooled output row (12 total).
        m_ref[...] = jnp.maximum(
            jnp.maximum(a2_ref[pl.ds(base2 + 0, _POOL_ROWS), :],
                        a2_ref[pl.ds(base2 + 1, _POOL_ROWS), :]),
            jnp.maximum(a2_ref[pl.ds(base2 + _XP, _POOL_ROWS), :],
                        a2_ref[pl.ds(base2 + _XP + 1, _POOL_ROWS), :]))
        for py in range(12):
            out_ref[pl.ds(b * 144 + py * 12, 12), :] = (
                m_ref[pl.ds(2 * py * _XP, 12, stride=2), :]
                .astype(out_ref.dtype))


def _fc_kernel(x_ref, w1_ref, b1_ref, w2_ref, b2_ref, o_ref):
    """Fused fc1 (bf16 in/weights, f32 accumulation) + ReLU + fc2."""
    h = jnp.dot(x_ref[...], w1_ref[...],
                preferred_element_type=jnp.float32)            # (TB, 128)
    h = jnp.maximum(h + b1_ref[...], 0.0)
    o_ref[...] = (jnp.dot(h, w2_ref[...], preferred_element_type=jnp.float32)
                  + b2_ref[...]).astype(o_ref.dtype)


# ----------------------------------------------------------------------------
# Block-size pickers (static, shape-dependent)
# ----------------------------------------------------------------------------
def _pick_batch_block(n, target=8):
    """Largest divisor of n <= target that keeps the grid length >= 2."""
    best = 1
    for cand in range(2, min(n, target) + 1):
        if n % cand == 0 and n // cand >= 2:
            best = cand
    return best


def _pick_fc_block(n, target=256):
    """Largest multiple-of-8 divisor of n <= target with grid >= 2, else n."""
    best = None
    cand = 8
    while cand <= min(n, target):
        if n % cand == 0 and n // cand >= 2:
            best = cand
        cand += 8
    return best if best is not None else n


# ----------------------------------------------------------------------------
# pallas_call wrappers
# ----------------------------------------------------------------------------
def conv_pool(cols1, w1, w2, b2, n, nb):
    return pl.pallas_call(
        _conv_pool_kernel,
        out_shape=jax.ShapeDtypeStruct((n * 144, 64), jnp.bfloat16),
        grid_spec=pltpu.PrefetchScalarGridSpec(
            num_scalar_prefetch=0,
            grid=(n // nb,),
            in_specs=[
                pl.BlockSpec((nb * _RASTER, _K1), lambda i: (i, 0)),
                pl.BlockSpec((_K1, 32), lambda i: (0, 0)),
                pl.BlockSpec((9, 32, 64), lambda i: (0, 0, 0)),
                pl.BlockSpec((1, 64), lambda i: (0, 0)),
            ],
            out_specs=pl.BlockSpec((nb * 144, 64), lambda i: (i, 0)),
            scratch_shapes=[
                pltpu.VMEM((nb * _RASTER, 32), jnp.bfloat16),   # conv1 act
                pltpu.VMEM((nb * _A2_ROWS, 64), jnp.float32),   # conv2 act
                pltpu.VMEM((_POOL_ROWS, 64), jnp.float32),      # pool pre-max
            ],
        ),
        compiler_params=pltpu.CompilerParams(
            dimension_semantics=("parallel",)),
    )(cols1, w1, w2, b2)


def fc_fused(flat, w1, b1, w2, b2, tb):
    n = flat.shape[0]
    return pl.pallas_call(
        _fc_kernel,
        out_shape=jax.ShapeDtypeStruct((n, 10), jnp.float32),
        grid_spec=pltpu.PrefetchScalarGridSpec(
            num_scalar_prefetch=0,
            grid=(n // tb,),
            in_specs=[
                pl.BlockSpec((tb, 9216), lambda i: (i, 0)),
                pl.BlockSpec((9216, 128), lambda i: (0, 0)),
                pl.BlockSpec((1, 128), lambda i: (0, 0)),
                pl.BlockSpec((128, 10), lambda i: (0, 0)),
                pl.BlockSpec((1, 10), lambda i: (0, 0)),
            ],
            out_specs=pl.BlockSpec((tb, 10), lambda i: (i, 0)),
        ),
        compiler_params=pltpu.CompilerParams(
            dimension_semantics=("parallel",),
            vmem_limit_bytes=32 * 1024 * 1024),
    )(flat, w1, b1, w2, b2)


# ----------------------------------------------------------------------------
# Parameter preparation (one-time) and forward pass
# ----------------------------------------------------------------------------
def prepare_params(params):
    """One-time repack of torch-layout params into kernel-friendly layouts."""
    w1 = jnp.transpose(params["conv1_w"], (2, 3, 1, 0)).reshape(9, 32)
    # Fold conv1 bias into the matmul as a 10th row (cols1 gets a ones column).
    w1 = jnp.concatenate([w1, params["conv1_b"].reshape(1, 32)],
                         axis=0).astype(jnp.bfloat16)
    w2 = jnp.transpose(params["conv2_w"], (2, 3, 1, 0)).reshape(9, 32, 64)
    w2 = w2.astype(jnp.bfloat16)
    b2 = params["conv2_b"].reshape(1, 64)
    # fc1 rows permuted from torch's NCHW flatten (c*144 + py*12 + px) to the
    # (py*12 + px)*64 + c order emitted by the conv/pool kernel; bf16 halves
    # the dominant weight stream (accumulation stays f32).
    fc1 = params["fc1_w"].reshape(128, 64, 12, 12)
    fc1 = jnp.transpose(fc1, (2, 3, 1, 0)).reshape(9216, 128)
    fc1 = fc1.astype(jnp.bfloat16)
    return {
        "w1": w1, "w2": w2, "b2": b2,
        "fc1_w": fc1, "fc1_b": params["fc1_b"].reshape(1, 128),
        "fc2_w": params["fc2_w"].T, "fc2_b": params["fc2_b"].reshape(1, 10),
    }


def net_x_forward(fp, x_nchw):
    n = x_nchw.shape[0]
    xs = x_nchw.reshape(n, 28, 28)                   # C == 1

    # conv1 im2col on the zero-padded raster (y < 30, x < 32), built in bf16
    # with a ones column so the conv1 bias rides along in the matmul.
    # TODO(synk): fold this im2col into the Pallas kernel (DMA the raw padded
    # image and form the taps via shifted VMEM reads) to drop the 9x-expanded
    # HBM round trip; kept host-side for simplicity.
    xpad = jnp.pad(xs, ((0, 0), (0, 4), (0, 6)))     # (n, 32, 34), zero pad
    taps = [xpad[:, i:i + _YP, j:j + _XP] for i in range(3) for j in range(3)]
    taps.append(jnp.ones_like(taps[0]))
    cols1 = jnp.stack(taps, axis=-1).reshape(n * _RASTER, _K1)
    cols1 = cols1.astype(jnp.bfloat16)

    nb = _pick_batch_block(n, 8)
    pooled = conv_pool(cols1, fp["w1"], fp["w2"], fp["b2"], n, nb)
    flat = pooled.reshape(n, 9216)                   # NHWC flatten, bf16

    # dropout1 / dropout2: identity (eval-mode semantics).
    # TODO(synk): training-mode dropout masks not implemented (inference kernel).
    tb = _pick_fc_block(n, 256)
    logits = fc_fused(flat, fp["fc1_w"], fp["fc1_b"], fp["fc2_w"], fp["fc2_b"], tb)

    # F.log_softmax is computed into a dead variable by the torch module; it
    # returns x.squeeze() (raw fc2 logits), so we match that.
    return jnp.squeeze(logits)


# ----------------------------------------------------------------------------
# Parameter init and pure-JAX reference
# ----------------------------------------------------------------------------
def init_params(key):
    ks = jax.random.split(key, 8)

    def u(k, shape, fan_in):
        bound = 1.0 / float(np.sqrt(fan_in))
        return jax.random.uniform(k, shape, jnp.float32, -bound, bound)

    return {
        "conv1_w": u(ks[0], (32, 1, 3, 3), 1 * 3 * 3),
        "conv1_b": u(ks[1], (32,), 1 * 3 * 3),
        "conv2_w": u(ks[2], (64, 32, 3, 3), 32 * 3 * 3),
        "conv2_b": u(ks[3], (64,), 32 * 3 * 3),
        "fc1_w": u(ks[4], (128, 9216), 9216),
        "fc1_b": u(ks[5], (128,), 9216),
        "fc2_w": u(ks[6], (10, 128), 128),
        "fc2_b": u(ks[7], (10,), 128),
    }


def reference_forward(params, x_nchw):
    """Pure-JAX reference (no Pallas) for a correctness sanity check."""
    y = jax.lax.conv_general_dilated(
        x_nchw, params["conv1_w"], (1, 1), "VALID",
        dimension_numbers=("NCHW", "OIHW", "NCHW"))
    y = jax.nn.relu(y + params["conv1_b"][None, :, None, None])
    y = jax.lax.conv_general_dilated(
        y, params["conv2_w"], (1, 1), "VALID",
        dimension_numbers=("NCHW", "OIHW", "NCHW"))
    y = jax.nn.relu(y + params["conv2_b"][None, :, None, None])
    N, C, H, W = y.shape
    y = y.reshape(N, C, H // 2, 2, W // 2, 2).max(axis=(3, 5))
    y = y.reshape(N, -1)
    y = jax.nn.relu(y @ params["fc1_w"].T + params["fc1_b"])
    y = y @ params["fc2_w"].T + params["fc2_b"]
    return jnp.squeeze(y)


if __name__ == "__main__":
    key = jax.random.PRNGKey(0)
    pkey, xkey = jax.random.split(key)
    params = init_params(pkey)
    fparams = prepare_params(params)       # one-time weight repack
    # Net_X implies 1x28x28 inputs (9216 = 64 * 12 * 12); batch = 2.
    x = jax.random.normal(xkey, (2, 1, 28, 28), dtype=jnp.float32)

    fwd = jax.jit(net_x_forward)
    out = jax.block_until_ready(fwd(fparams, x))
    assert out.shape == (2, 10), out.shape

    ref = jax.block_until_ready(jax.jit(reference_forward)(params, x))
    np.testing.assert_allclose(np.asarray(out), np.asarray(ref),
                               rtol=2e-2, atol=2e-2)
    print("KERNEL_OK")
</pallas_src>

<mosaic_0001>
module attributes {stable_mosaic.version = 11 : i64} {
  func.func @_conv_pool_kernel(%arg0: i32, %arg1: memref<960x10xbf16, #tpu.memory_space<vmem>>, %arg2: memref<10x32xbf16, #tpu.memory_space<vmem>>, %arg3: memref<9x32x64xbf16, #tpu.memory_space<vmem>>, %arg4: memref<1x64xf32, #tpu.memory_space<vmem>>, %arg5: memref<144x64xbf16, #tpu.memory_space<vmem>>, %arg6: memref<960x32xbf16, #tpu.memory_space<vmem>>, %arg7: memref<768x64xf32, #tpu.memory_space<vmem>>, %arg8: memref<728x64xf32, #tpu.memory_space<vmem>>) attributes {dimension_semantics = [#tpu.dimension_semantics<parallel>], iteration_bounds = array<i64: 2>, scalar_prefetch = 0 : i64, scratch_operands = 3 : i64, tpu.core_type = #tpu.core_type<tc>, window_params = [{transform_indices = @transform_0, window_bounds = array<i64: 960, 10>}, {pipeline_mode = #tpu.pipeline_mode<synchronous>, transform_indices = @transform_1, window_bounds = array<i64: 10, 32>}, {pipeline_mode = #tpu.pipeline_mode<synchronous>, transform_indices = @transform_2, window_bounds = array<i64: 9, 32, 64>}, {pipeline_mode = #tpu.pipeline_mode<synchronous>, transform_indices = @transform_3, window_bounds = array<i64: 1, 64>}, {transform_indices = @transform_4, window_bounds = array<i64: 144, 64>}]} {
    %c0 = arith.constant 0 : index
    %c0_0 = arith.constant 0 : index
    %0 = vector.load %arg2[%c0, %c0_0] : memref<10x32xbf16, #tpu.memory_space<vmem>>, vector<10x32xbf16>
    %c0_1 = arith.constant 0 : index
    %c0_2 = arith.constant 0 : index
    %c0_3 = arith.constant 0 : index
    %1 = vector.load %arg3[%c0_1, %c0_2, %c0_3] : memref<9x32x64xbf16, #tpu.memory_space<vmem>>, vector<9x32x64xbf16>
    %c0_4 = arith.constant 0 : index
    %c0_5 = arith.constant 0 : index
    %2 = vector.load %arg4[%c0_4, %c0_5] : memref<1x64xf32, #tpu.memory_space<vmem>>, vector<1x64xf32>
    %3 = vector.shape_cast %2 : vector<1x64xf32> to vector<1x64xf32>
    %4 = vector.broadcast %3 : vector<1x64xf32> to vector<384x64xf32>
    %c0_6 = arith.constant 0 : index
    %c0_7 = arith.constant 0 : index
    %5 = vector.load %arg1[%c0_6, %c0_7] : memref<960x10xbf16, #tpu.memory_space<vmem>>, vector<960x10xbf16>
    %cst = arith.constant dense<0.000000e+00> : vector<960x32xf32>
    %6 = tpu.matmul %5, %0, %cst {dimension_numbers = #tpu.dot_dimension_numbers<[1], [0], [0], [1], [0, 0, 1, 1], [], []>} : vector<960x10xbf16>, vector<10x32xbf16>, vector<960x32xf32> -> vector<960x32xf32>
    %cst_8 = arith.constant 0.000000e+00 : f32
    %7 = vector.broadcast %cst_8 : f32 to vector<960x32xf32>
    %8 = arith.maximumf %6, %7 : vector<960x32xf32>
    %9 = arith.truncf %8 : vector<960x32xf32> to vector<960x32xbf16>
    %c0_9 = arith.constant 0 : index
    %c0_10 = arith.constant 0 : index
    %10 = vector.load %arg6[%c0_9, %c0_10] : memref<960x32xbf16, #tpu.memory_space<vmem>>, vector<960x32xbf16>
    tpu.vector_store %arg6[%c0_9, %c0_10], %9 {strides = array<i32>} : memref<960x32xbf16, #tpu.memory_space<vmem>>, vector<960x32xbf16>,
    %c0_11 = arith.constant 0 : index
    %c0_12 = arith.constant 0 : index
    %11 = vector.load %arg6[%c0_11, %c0_12] : memref<960x32xbf16, #tpu.memory_space<vmem>>, vector<384x32xbf16>
    %12 = vector.extract_strided_slice %1 {offsets = [0, 0, 0], sizes = [1, 32, 64], strides = [1, 1, 1]} : vector<9x32x64xbf16> to vector<1x32x64xbf16>
    %13 = vector.shape_cast %12 : vector<1x32x64xbf16> to vector<32x64xbf16>
    %cst_13 = arith.constant dense<0.000000e+00> : vector<384x64xf32>
    %14 = tpu.matmul %11, %13, %cst_13 {dimension_numbers = #tpu.dot_dimension_numbers<[1], [0], [0], [1], [0, 0, 1, 1], [], []>} : vector<384x32xbf16>, vector<32x64xbf16>, vector<384x64xf32> -> vector<384x64xf32>
    %15 = arith.addf %4, %14 : vector<384x64xf32>
    %c1 = arith.constant 1 : index
    %c0_14 = arith.constant 0 : index
    %16 = vector.load %arg6[%c1, %c0_14] : memref<960x32xbf16, #tpu.memory_space<vmem>>, vector<384x32xbf16>
    %17 = vector.extract_strided_slice %1 {offsets = [1, 0, 0], sizes = [1, 32, 64], strides = [1, 1, 1]} : vector<9x32x64xbf16> to vector<1x32x64xbf16>
    %18 = vector.shape_cast %17 : vector<1x32x64xbf16> to vector<32x64xbf16>
    %cst_15 = arith.constant dense<0.000000e+00> : vector<384x64xf32>
    %19 = tpu.matmul %16, %18, %cst_15 {dimension_numbers = #tpu.dot_dimension_numbers<[1], [0], [0], [1], [0, 0, 1, 1], [], []>} : vector<384x32xbf16>, vector<32x64xbf16>, vector<384x64xf32> -> vector<384x64xf32>
    %20 = arith.addf %15, %19 : vector<384x64xf32>
    %c2 = arith.constant 2 : index
    %c0_16 = arith.constant 0 : index
    %21 = vector.load %arg6[%c2, %c0_16] : memref<960x32xbf16, #tpu.memory_space<vmem>>, vector<384x32xbf16>
    %22 = vector.extract_strided_slice %1 {offsets = [2, 0, 0], sizes = [1, 32, 64], strides = [1, 1, 1]} : vector<9x32x64xbf16> to vector<1x32x64xbf16>
    %23 = vector.shape_cast %22 : vector<1x32x64xbf16> to vector<32x64xbf16>
    %cst_17 = arith.constant dense<0.000000e+00> : vector<384x64xf32>
    %24 = tpu.matmul %21, %23, %cst_17 {dimension_numbers = #tpu.dot_dimension_numbers<[1], [0], [0], [1], [0, 0, 1, 1], [], []>} : vector<384x32xbf16>, vector<32x64xbf16>, vector<384x64xf32> -> vector<384x64xf32>
    %25 = arith.addf %20, %24 : vector<384x64xf32>
    %c32 = arith.constant 32 : index
    %c0_18 = arith.constant 0 : index
    %26 = vector.load %arg6[%c32, %c0_18] : memref<960x32xbf16, #tpu.memory_space<vmem>>, vector<384x32xbf16>
    %27 = vector.extract_strided_slice %1 {offsets = [3, 0, 0], sizes = [1, 32, 64], strides = [1, 1, 1]} : vector<9x32x64xbf16> to vector<1x32x64xbf16>
    %28 = vector.shape_cast %27 : vector<1x32x64xbf16> to vector<32x64xbf16>
    %cst_19 = arith.constant dense<0.000000e+00> : vector<384x64xf32>
    %29 = tpu.matmul %26, %28, %cst_19 {dimension_numbers = #tpu.dot_dimension_numbers<[1], [0], [0], [1], [0, 0, 1, 1], [], []>} : vector<384x32xbf16>, vector<32x64xbf16>, vector<384x64xf32> -> vector<384x64xf32>
    %30 = arith.addf %25, %29 : vector<384x64xf32>
    %c33 = arith.constant 33 : index
    %c0_20 = arith.constant 0 : index
    %31 = vector.load %arg6[%c33, %c0_20] : memref<960x32xbf16, #tpu.memory_space<vmem>>, vector<384x32xbf16>
    %32 = vector.extract_strided_slice %1 {offsets = [4, 0, 0], sizes = [1, 32, 64], strides = [1, 1, 1]} : vector<9x32x64xbf16> to vector<1x32x64xbf16>
    %33 = vector.shape_cast %32 : vector<1x32x64xbf16> to vector<32x64xbf16>
    %cst_21 = arith.constant dense<0.000000e+00> : vector<384x64xf32>
    %34 = tpu.matmul %31, %33, %cst_21 {dimension_numbers = #tpu.dot_dimension_numbers<[1], [0], [0], [1], [0, 0, 1, 1], [], []>} : vector<384x32xbf16>, vector<32x64xbf16>, vector<384x64xf32> -> vector<384x64xf32>
    %35 = arith.addf %30, %34 : vector<384x64xf32>
    %c34 = arith.constant 34 : index
    %c0_22 = arith.constant 0 : index
    %36 = vector.load %arg6[%c34, %c0_22] : memref<960x32xbf16, #tpu.memory_space<vmem>>, vector<384x32xbf16>
    %37 = vector.extract_strided_slice %1 {offsets = [5, 0, 0], sizes = [1, 32, 64], strides = [1, 1, 1]} : vector<9x32x64xbf16> to vector<1x32x64xbf16>
    %38 = vector.shape_cast %37 : vector<1x32x64xbf16> to vector<32x64xbf16>
    %cst_23 = arith.constant dense<0.000000e+00> : vector<384x64xf32>
    %39 = tpu.matmul %36, %38, %cst_23 {dimension_numbers = #tpu.dot_dimension_numbers<[1], [0], [0], [1], [0, 0, 1, 1], [], []>} : vector<384x32xbf16>, vector<32x64xbf16>, vector<384x64xf32> -> vector<384x64xf32>
    %40 = arith.addf %35, %39 : vector<384x64xf32>
    %c64 = arith.constant 64 : index
    %c0_24 = arith.constant 0 : index
    %41 = vector.load %arg6[%c64, %c0_24] : memref<960x32xbf16, #tpu.memory_space<vmem>>, vector<384x32xbf16>
    %42 = vector.extract_strided_slice %1 {offsets = [6, 0, 0], sizes = [1, 32, 64], strides = [1, 1, 1]} : vector<9x32x64xbf16> to vector<1x32x64xbf16>
    %43 = vector.shape_cast %42 : vector<1x32x64xbf16> to vector<32x64xbf16>
    %cst_25 = arith.constant dense<0.000000e+00> : vector<384x64xf32>
    %44 = tpu.matmul %41, %43, %cst_25 {dimension_numbers = #tpu.dot_dimension_numbers<[1], [0], [0], [1], [0, 0, 1, 1], [], []>} : vector<384x32xbf16>, vector<32x64xbf16>, vector<384x64xf32> -> vector<384x64xf32>
    %45 = arith.addf %40, %44 : vector<384x64xf32>
    %c65 = arith.constant 65 : index
    %c0_26 = arith.constant 0 : index
    %46 = vector.load %arg6[%c65, %c0_26] : memref<960x32xbf16, #tpu.memory_space<vmem>>, vector<384x32xbf16>
    %47 = vector.extract_strided_slice %1 {offsets = [7, 0, 0], sizes = [1, 32, 64], strides = [1, 1, 1]} : vector<9x32x64xbf16> to vector<1x32x64xbf16>
    %48 = vector.shape_cast %47 : vector<1x32x64xbf16> to vector<32x64xbf16>
    %cst_27 = arith.constant dense<0.000000e+00> : vector<384x64xf32>
    %49 = tpu.matmul %46, %48, %cst_27 {dimension_numbers = #tpu.dot_dimension_numbers<[1], [0], [0], [1], [0, 0, 1, 1], [], []>} : vector<384x32xbf16>, vector<32x64xbf16>, vector<384x64xf32> -> vector<384x64xf32>
    %50 = arith.addf %45, %49 : vector<384x64xf32>
    %c66 = arith.constant 66 : index
    %c0_28 = arith.constant 0 : index
    %51 = vector.load %arg6[%c66, %c0_28] : memref<960x32xbf16, #tpu.memory_space<vmem>>, vector<384x32xbf16>
    %52 = vector.extract_strided_slice %1 {offsets = [8, 0, 0], sizes = [1, 32, 64], strides = [1, 1, 1]} : vector<9x32x64xbf16> to vector<1x32x64xbf16>
    %53 = vector.shape_cast %52 : vector<1x32x64xbf16> to vector<32x64xbf16>
    %cst_29 = arith.constant dense<0.000000e+00> : vector<384x64xf32>
    %54 = tpu.matmul %51, %53, %cst_29 {dimension_numbers = #tpu.dot_dimension_numbers<[1], [0], [0], [1], [0, 0, 1, 1], [], []>} : vector<384x32xbf16>, vector<32x64xbf16>, vector<384x64xf32> -> vector<384x64xf32>
    %55 = arith.addf %50, %54 : vector<384x64xf32>
    %cst_30 = arith.constant 0.000000e+00 : f32
    %56 = vector.broadcast %cst_30 : f32 to vector<384x64xf32>
    %57 = arith.maximumf %55, %56 : vector<384x64xf32>
    %c0_31 = arith.constant 0 : index
    %c0_32 = arith.constant 0 : index
    %58 = vector.load %arg7[%c0_31, %c0_32] : memref<768x64xf32, #tpu.memory_space<vmem>>, vector<384x64xf32>
    tpu.vector_store %arg7[%c0_31, %c0_32], %57 {strides = array<i32>} : memref<768x64xf32, #tpu.memory_space<vmem>>, vector<384x64xf32>,
    %c384 = arith.constant 384 : index
    %c0_33 = arith.constant 0 : index
    %59 = vector.load %arg6[%c384, %c0_33] : memref<960x32xbf16, #tpu.memory_space<vmem>>, vector<384x32xbf16>
    %60 = vector.extract_strided_slice %1 {offsets = [0, 0, 0], sizes = [1, 32, 64], strides = [1, 1, 1]} : vector<9x32x64xbf16> to vector<1x32x64xbf16>
    %61 = vector.shape_cast %60 : vector<1x32x64xbf16> to vector<32x64xbf16>
    %cst_34 = arith.constant dense<0.000000e+00> : vector<384x64xf32>
    %62 = tpu.matmul %59, %61, %cst_34 {dimension_numbers = #tpu.dot_dimension_numbers<[1], [0], [0], [1], [0, 0, 1, 1], [], []>} : vector<384x32xbf16>, vector<32x64xbf16>, vector<384x64xf32> -> vector<384x64xf32>
    %63 = arith.addf %4, %62 : vector<384x64xf32>
    %c385 = arith.constant 385 : index
    %c0_35 = arith.constant 0 : index
    %64 = vector.load %arg6[%c385, %c0_35] : memref<960x32xbf16, #tpu.memory_space<vmem>>, vector<384x32xbf16>
    %65 = vector.extract_strided_slice %1 {offsets = [1, 0, 0], sizes = [1, 32, 64], strides = [1, 1, 1]} : vector<9x32x64xbf16> to vector<1x32x64xbf16>
    %66 = vector.shape_cast %65 : vector<1x32x64xbf16> to vector<32x64xbf16>
    %cst_36 = arith.constant dense<0.000000e+00> : vector<384x64xf32>
    %67 = tpu.matmul %64, %66, %cst_36 {dimension_numbers = #tpu.dot_dimension_numbers<[1], [0], [0], [1], [0, 0, 1, 1], [], []>} : vector<384x32xbf16>, vector<32x64xbf16>, vector<384x64xf32> -> vector<384x64xf32>
    %68 = arith.addf %63, %67 : vector<384x64xf32>
    %c386 = arith.constant 386 : index
    %c0_37 = arith.constant 0 : index
    %69 = vector.load %arg6[%c386, %c0_37] : memref<960x32xbf16, #tpu.memory_space<vmem>>, vector<384x32xbf16>
    %70 = vector.extract_strided_slice %1 {offsets = [2, 0, 0], sizes = [1, 32, 64], strides = [1, 1, 1]} : vector<9x32x64xbf16> to vector<1x32x64xbf16>
    %71 = vector.shape_cast %70 : vector<1x32x64xbf16> to vector<32x64xbf16>
    %cst_38 = arith.constant dense<0.000000e+00> : vector<384x64xf32>
    %72 = tpu.matmul %69, %71, %cst_38 {dimension_numbers = #tpu.dot_dimension_numbers<[1], [0], [0], [1], [0, 0, 1, 1], [], []>} : vector<384x32xbf16>, vector<32x64xbf16>, vector<384x64xf32> -> vector<384x64xf32>
    %73 = arith.addf %68, %72 : vector<384x64xf32>
    %c416 = arith.constant 416 : index
    %c0_39 = arith.constant 0 : index
    %74 = vector.load %arg6[%c416, %c0_39] : memref<960x32xbf16, #tpu.memory_space<vmem>>, vector<384x32xbf16>
    %75 = vector.extract_strided_slice %1 {offsets = [3, 0, 0], sizes = [1, 32, 64], strides = [1, 1, 1]} : vector<9x32x64xbf16> to vector<1x32x64xbf16>
    %76 = vector.shape_cast %75 : vector<1x32x64xbf16> to vector<32x64xbf16>
    %cst_40 = arith.constant dense<0.000000e+00> : vector<384x64xf32>
    %77 = tpu.matmul %74, %76, %cst_40 {dimension_numbers = #tpu.dot_dimension_numbers<[1], [0], [0], [1], [0, 0, 1, 1], [], []>} : vector<384x32xbf16>, vector<32x64xbf16>, vector<384x64xf32> -> vector<384x64xf32>
    %78 = arith.addf %73, %77 : vector<384x64xf32>
    %c417 = arith.constant 417 : index
    %c0_41 = arith.constant 0 : index
    %79 = vector.load %arg6[%c417, %c0_41] : memref<960x32xbf16, #tpu.memory_space<vmem>>, vector<384x32xbf16>
    %80 = vector.extract_strided_slice %1 {offsets = [4, 0, 0], sizes = [1, 32, 64], strides = [1, 1, 1]} : vector<9x32x64xbf16> to vector<1x32x64xbf16>
    %81 = vector.shape_cast %80 : vector<1x32x64xbf16> to vector<32x64xbf16>
    %cst_42 = arith.constant dense<0.000000e+00> : vector<384x64xf32>
    %82 = tpu.matmul %79, %81, %cst_42 {dimension_numbers = #tpu.dot_dimension_numbers<[1], [0], [0], [1], [0, 0, 1, 1], [], []>} : vector<384x32xbf16>, vector<32x64xbf16>, vector<384x64xf32> -> vector<384x64xf32>
    %83 = arith.addf %78, %82 : vector<384x64xf32>
    %c418 = arith.constant 418 : index
    %c0_43 = arith.constant 0 : index
    %84 = vector.load %arg6[%c418, %c0_43] : memref<960x32xbf16, #tpu.memory_space<vmem>>, vector<384x32xbf16>
    %85 = vector.extract_strided_slice %1 {offsets = [5, 0, 0], sizes = [1, 32, 64], strides = [1, 1, 1]} : vector<9x32x64xbf16> to vector<1x32x64xbf16>
    %86 = vector.shape_cast %85 : vector<1x32x64xbf16> to vector<32x64xbf16>
    %cst_44 = arith.constant dense<0.000000e+00> : vector<384x64xf32>
    %87 = tpu.matmul %84, %86, %cst_44 {dimension_numbers = #tpu.dot_dimension_numbers<[1], [0], [0], [1], [0, 0, 1, 1], [], []>} : vector<384x32xbf16>, vector<32x64xbf16>, vector<384x64xf32> -> vector<384x64xf32>
    %88 = arith.addf %83, %87 : vector<384x64xf32>
    %c448 = arith.constant 448 : index
    %c0_45 = arith.constant 0 : index
    %89 = vector.load %arg6[%c448, %c0_45] : memref<960x32xbf16, #tpu.memory_space<vmem>>, vector<384x32xbf16>
    %90 = vector.extract_strided_slice %1 {offsets = [6, 0, 0], sizes = [1, 32, 64], strides = [1, 1, 1]} : vector<9x32x64xbf16> to vector<1x32x64xbf16>
    %91 = vector.shape_cast %90 : vector<1x32x64xbf16> to vector<32x64xbf16>
    %cst_46 = arith.constant dense<0.000000e+00> : vector<384x64xf32>
    %92 = tpu.matmul %89, %91, %cst_46 {dimension_numbers = #tpu.dot_dimension_numbers<[1], [0], [0], [1], [0, 0, 1, 1], [], []>} : vector<384x32xbf16>, vector<32x64xbf16>, vector<384x64xf32> -> vector<384x64xf32>
    %93 = arith.addf %88, %92 : vector<384x64xf32>
    %c449 = arith.constant 449 : index
    %c0_47 = arith.constant 0 : index
    %94 = vector.load %arg6[%c449, %c0_47] : memref<960x32xbf16, #tpu.memory_space<vmem>>, vector<384x32xbf16>
    %95 = vector.extract_strided_slice %1 {offsets = [7, 0, 0], sizes = [1, 32, 64], strides = [1, 1, 1]} : vector<9x32x64xbf16> to vector<1x32x64xbf16>
    %96 = vector.shape_cast %95 : vector<1x32x64xbf16> to vector<32x64xbf16>
    %cst_48 = arith.constant dense<0.000000e+00> : vector<384x64xf32>
    %97 = tpu.matmul %94, %96, %cst_48 {dimension_numbers = #tpu.dot_dimension_numbers<[1], [0], [0], [1], [0, 0, 1, 1], [], []>} : vector<384x32xbf16>, vector<32x64xbf16>, vector<384x64xf32> -> vector<384x64xf32>
    %98 = arith.addf %93, %97 : vector<384x64xf32>
    %c450 = arith.constant 450 : index
    %c0_49 = arith.constant 0 : index
    %99 = vector.load %arg6[%c450, %c0_49] : memref<960x32xbf16, #tpu.memory_space<vmem>>, vector<384x32xbf16>
    %100 = vector.extract_strided_slice %1 {offsets = [8, 0, 0], sizes = [1, 32, 64], strides = [1, 1, 1]} : vector<9x32x64xbf16> to vector<1x32x64xbf16>
    %101 = vector.shape_cast %100 : vector<1x32x64xbf16> to vector<32x64xbf16>
    %cst_50 = arith.constant dense<0.000000e+00> : vector<384x64xf32>
    %102 = tpu.matmul %99, %101, %cst_50 {dimension_numbers = #tpu.dot_dimension_numbers<[1], [0], [0], [1], [0, 0, 1, 1], [], []>} : vector<384x32xbf16>, vector<32x64xbf16>, vector<384x64xf32> -> vector<384x64xf32>
    %103 = arith.addf %98, %102 : vector<384x64xf32>
    %cst_51 = arith.constant 0.000000e+00 : f32
    %104 = vector.broadcast %cst_51 : f32 to vector<384x64xf32>
    %105 = arith.maximumf %103, %104 : vector<384x64xf32>
    %c384_52 = arith.constant 384 : index
    %c0_53 = arith.constant 0 : index
    %106 = vector.load %arg7[%c384_52, %c0_53] : memref<768x64xf32, #tpu.memory_space<vmem>>, vector<384x64xf32>
    tpu.vector_store %arg7[%c384_52, %c0_53], %105 {strides = array<i32>} : memref<768x64xf32, #tpu.memory_space<vmem>>, vector<384x64xf32>,
    %c0_54 = arith.constant 0 : index
    %c0_55 = arith.constant 0 : index
    %107 = vector.load %arg7[%c0_54, %c0_55] : memref<768x64xf32, #tpu.memory_space<vmem>>, vector<728x64xf32>
    %c1_56 = arith.constant 1 : index
    %c0_57 = arith.constant 0 : index
    %108 = vector.load %arg7[%c1_56, %c0_57] : memref<768x64xf32, #tpu.memory_space<vmem>>, vector<728x64xf32>
    %109 = arith.maximumf %107, %108 : vector<728x64xf32>
    %c32_58 = arith.constant 32 : index
    %c0_59 = arith.constant 0 : index
    %110 = vector.load %arg7[%c32_58, %c0_59] : memref<768x64xf32, #tpu.memory_space<vmem>>, vector<728x64xf32>
    %c33_60 = arith.constant 33 : index
    %c0_61 = arith.constant 0 : index
    %111 = vector.load %arg7[%c33_60, %c0_61] : memref<768x64xf32, #tpu.memory_space<vmem>>, vector<728x64xf32>
    %112 = arith.maximumf %110, %111 : vector<728x64xf32>
    %113 = arith.maximumf %109, %112 : vector<728x64xf32>
    %c0_62 = arith.constant 0 : index
    %c0_63 = arith.constant 0 : index
    %114 = vector.load %arg8[%c0_62, %c0_63] : memref<728x64xf32, #tpu.memory_space<vmem>>, vector<728x64xf32>
    tpu.vector_store %arg8[%c0_62, %c0_63], %113 {strides = array<i32>} : memref<728x64xf32, #tpu.memory_space<vmem>>, vector<728x64xf32>,
    %c0_64 = arith.constant 0 : index
    %c0_65 = arith.constant 0 : index
    %115 = tpu.strided_load %arg8[%c0_64, %c0_65] {strides = array<i32: 2, 1>} : memref<728x64xf32, #tpu.memory_space<vmem>>, vector<12x64xf32>
    %116 = arith.truncf %115 : vector<12x64xf32> to vector<12x64xbf16>
    %c0_66 = arith.constant 0 : index
    %c0_67 = arith.constant 0 : index
    %117 = vector.load %arg5[%c0_66, %c0_67] : memref<144x64xbf16, #tpu.memory_space<vmem>>, vector<12x64xbf16>
    tpu.vector_store %arg5[%c0_66, %c0_67], %116 {strides = array<i32>} : memref<144x64xbf16, #tpu.memory_space<vmem>>, vector<12x64xbf16>,
    %c64_68 = arith.constant 64 : index
    %c0_69 = arith.constant 0 : index
    %118 = tpu.strided_load %arg8[%c64_68, %c0_69] {strides = array<i32: 2, 1>} : memref<728x64xf32, #tpu.memory_space<vmem>>, vector<12x64xf32>
    %119 = arith.truncf %118 : vector<12x64xf32> to vector<12x64xbf16>
    %c12 = arith.constant 12 : index
    %c0_70 = arith.constant 0 : index
    %120 = vector.load %arg5[%c12, %c0_70] : memref<144x64xbf16, #tpu.memory_space<vmem>>, vector<12x64xbf16>
    tpu.vector_store %arg5[%c12, %c0_70], %119 {strides = array<i32>} : memref<144x64xbf16, #tpu.memory_space<vmem>>, vector<12x64xbf16>,
    %c128 = arith.constant 128 : index
    %c0_71 = arith.constant 0 : index
    %121 = tpu.strided_load %arg8[%c128, %c0_71] {strides = array<i32: 2, 1>} : memref<728x64xf32, #tpu.memory_space<vmem>>, vector<12x64xf32>
    %122 = arith.truncf %121 : vector<12x64xf32> to vector<12x64xbf16>
    %c24 = arith.constant 24 : index
    %c0_72 = arith.constant 0 : index
    %123 = vector.load %arg5[%c24, %c0_72] : memref<144x64xbf16, #tpu.memory_space<vmem>>, vector<12x64xbf16>
    tpu.vector_store %arg5[%c24, %c0_72], %122 {strides = array<i32>} : memref<144x64xbf16, #tpu.memory_space<vmem>>, vector<12x64xbf16>,
    %c192 = arith.constant 192 : index
    %c0_73 = arith.constant 0 : index
    %124 = tpu.strided_load %arg8[%c192, %c0_73] {strides = array<i32: 2, 1>} : memref<728x64xf32, #tpu.memory_space<vmem>>, vector<12x64xf32>
    %125 = arith.truncf %124 : vector<12x64xf32> to vector<12x64xbf16>
    %c36 = arith.constant 36 : index
    %c0_74 = arith.constant 0 : index
    %126 = vector.load %arg5[%c36, %c0_74] : memref<144x64xbf16, #tpu.memory_space<vmem>>, vector<12x64xbf16>
    tpu.vector_store %arg5[%c36, %c0_74], %125 {strides = array<i32>} : memref<144x64xbf16, #tpu.memory_space<vmem>>, vector<12x64xbf16>,
    %c256 = arith.constant 256 : index
    %c0_75 = arith.constant 0 : index
    %127 = tpu.strided_load %arg8[%c256, %c0_75] {strides = array<i32: 2, 1>} : memref<728x64xf32, #tpu.memory_space<vmem>>, vector<12x64xf32>
    %128 = arith.truncf %127 : vector<12x64xf32> to vector<12x64xbf16>
    %c48 = arith.constant 48 : index
    %c0_76 = arith.constant 0 : index
    %129 = vector.load %arg5[%c48, %c0_76] : memref<144x64xbf16, #tpu.memory_space<vmem>>, vector<12x64xbf16>
    tpu.vector_store %arg5[%c48, %c0_76], %128 {strides = array<i32>} : memref<144x64xbf16, #tpu.memory_space<vmem>>, vector<12x64xbf16>,
    %c320 = arith.constant 320 : index
    %c0_77 = arith.constant 0 : index
    %130 = tpu.strided_load %arg8[%c320, %c0_77] {strides = array<i32: 2, 1>} : memref<728x64xf32, #tpu.memory_space<vmem>>, vector<12x64xf32>
    %131 = arith.truncf %130 : vector<12x64xf32> to vector<12x64xbf16>
    %c60 = arith.constant 60 : index
    %c0_78 = arith.constant 0 : index
    %132 = vector.load %arg5[%c60, %c0_78] : memref<144x64xbf16, #tpu.memory_space<vmem>>, vector<12x64xbf16>
    tpu.vector_store %arg5[%c60, %c0_78], %131 {strides = array<i32>} : memref<144x64xbf16, #tpu.memory_space<vmem>>, vector<12x64xbf16>,
    %c384_79 = arith.constant 384 : index
    %c0_80 = arith.constant 0 : index
    %133 = tpu.strided_load %arg8[%c384_79, %c0_80] {strides = array<i32: 2, 1>} : memref<728x64xf32, #tpu.memory_space<vmem>>, vector<12x64xf32>
    %134 = arith.truncf %133 : vector<12x64xf32> to vector<12x64xbf16>
    %c72 = arith.constant 72 : index
    %c0_81 = arith.constant 0 : index
    %135 = vector.load %arg5[%c72, %c0_81] : memref<144x64xbf16, #tpu.memory_space<vmem>>, vector<12x64xbf16>
    tpu.vector_store %arg5[%c72, %c0_81], %134 {strides = array<i32>} : memref<144x64xbf16, #tpu.memory_space<vmem>>, vector<12x64xbf16>,
    %c448_82 = arith.constant 448 : index
    %c0_83 = arith.constant 0 : index
    %136 = tpu.strided_load %arg8[%c448_82, %c0_83] {strides = array<i32: 2, 1>} : memref<728x64xf32, #tpu.memory_space<vmem>>, vector<12x64xf32>
    %137 = arith.truncf %136 : vector<12x64xf32> to vector<12x64xbf16>
    %c84 = arith.constant 84 : index
    %c0_84 = arith.constant 0 : index
    %138 = vector.load %arg5[%c84, %c0_84] : memref<144x64xbf16, #tpu.memory_space<vmem>>, vector<12x64xbf16>
    tpu.vector_store %arg5[%c84, %c0_84], %137 {strides = array<i32>} : memref<144x64xbf16, #tpu.memory_space<vmem>>, vector<12x64xbf16>,
    %c512 = arith.constant 512 : index
    %c0_85 = arith.constant 0 : index
    %139 = tpu.strided_load %arg8[%c512, %c0_85] {strides = array<i32: 2, 1>} : memref<728x64xf32, #tpu.memory_space<vmem>>, vector<12x64xf32>
    %140 = arith.truncf %139 : vector<12x64xf32> to vector<12x64xbf16>
    %c96 = arith.constant 96 : index
    %c0_86 = arith.constant 0 : index
    %141 = vector.load %arg5[%c96, %c0_86] : memref<144x64xbf16, #tpu.memory_space<vmem>>, vector<12x64xbf16>
    tpu.vector_store %arg5[%c96, %c0_86], %140 {strides = array<i32>} : memref<144x64xbf16, #tpu.memory_space<vmem>>, vector<12x64xbf16>,
    %c576 = arith.constant 576 : index
    %c0_87 = arith.constant 0 : index
    %142 = tpu.strided_load %arg8[%c576, %c0_87] {strides = array<i32: 2, 1>} : memref<728x64xf32, #tpu.memory_space<vmem>>, vector<12x64xf32>
    %143 = arith.truncf %142 : vector<12x64xf32> to vector<12x64xbf16>
    %c108 = arith.constant 108 : index
    %c0_88 = arith.constant 0 : index
    %144 = vector.load %arg5[%c108, %c0_88] : memref<144x64xbf16, #tpu.memory_space<vmem>>, vector<12x64xbf16>
    tpu.vector_store %arg5[%c108, %c0_88], %143 {strides = array<i32>} : memref<144x64xbf16, #tpu.memory_space<vmem>>, vector<12x64xbf16>,
    %c640 = arith.constant 640 : index
    %c0_89 = arith.constant 0 : index
    %145 = tpu.strided_load %arg8[%c640, %c0_89] {strides = array<i32: 2, 1>} : memref<728x64xf32, #tpu.memory_space<vmem>>, vector<12x64xf32>
    %146 = arith.truncf %145 : vector<12x64xf32> to vector<12x64xbf16>
    %c120 = arith.constant 120 : index
    %c0_90 = arith.constant 0 : index
    %147 = vector.load %arg5[%c120, %c0_90] : memref<144x64xbf16, #tpu.memory_space<vmem>>, vector<12x64xbf16>
    tpu.vector_store %arg5[%c120, %c0_90], %146 {strides = array<i32>} : memref<144x64xbf16, #tpu.memory_space<vmem>>, vector<12x64xbf16>,
    %c704 = arith.constant 704 : index
    %c0_91 = arith.constant 0 : index
    %148 = tpu.strided_load %arg8[%c704, %c0_91] {strides = array<i32: 2, 1>} : memref<728x64xf32, #tpu.memory_space<vmem>>, vector<12x64xf32>
    %149 = arith.truncf %148 : vector<12x64xf32> to vector<12x64xbf16>
    %c132 = arith.constant 132 : index
    %c0_92 = arith.constant 0 : index
    %150 = vector.load %arg5[%c132, %c0_92] : memref<144x64xbf16, #tpu.memory_space<vmem>>, vector<12x64xbf16>
    tpu.vector_store %arg5[%c132, %c0_92], %149 {strides = array<i32>} : memref<144x64xbf16, #tpu.memory_space<vmem>>, vector<12x64xbf16>,
    return
  }
  func.func @transform_0(%arg0: i32) -> (i32, i32) {
    %c0_i32 = arith.constant 0 : i32
    %c0_i32_0 = arith.constant 0 : i32
    return %arg0, %c0_i32 : i32, i32
  }
  func.func @transform_1(%arg0: i32) -> (i32, i32) {
    %c0_i32 = arith.constant 0 : i32
    %c0_i32_0 = arith.constant 0 : i32
    %c0_i32_1 = arith.constant 0 : i32
    return %c0_i32, %c0_i32_0 : i32, i32
  }
  func.func @transform_2(%arg0: i32) -> (i32, i32, i32) {
    %c0_i32 = arith.constant 0 : i32
    %c0_i32_0 = arith.constant 0 : i32
    %c0_i32_1 = arith.constant 0 : i32
    %c0_i32_2 = arith.constant 0 : i32
    return %c0_i32, %c0_i32_0, %c0_i32_1 : i32, i32, i32
  }
  func.func @transform_3(%arg0: i32) -> (i32, i32) {
    %c0_i32 = arith.constant 0 : i32
    %c0_i32_0 = arith.constant 0 : i32
    %c0_i32_1 = arith.constant 0 : i32
    return %c0_i32, %c0_i32_0 : i32, i32
  }
  func.func @transform_4(%arg0: i32) -> (i32, i32) {
    %c0_i32 = arith.constant 0 : i32
    %c0_i32_0 = arith.constant 0 : i32
    return %arg0, %c0_i32 : i32, i32
  }
}

module attributes {stable_mosaic.version = 11 : i64} {
  func.func @_fc_kernel(%arg0: i32, %arg1: memref<2x9216xbf16, #tpu.memory_space<vmem>>, %arg2: memref<9216x128xbf16, #tpu.memory_space<vmem>>, %arg3: memref<1x128xf32, #tpu.memory_space<vmem>>, %arg4: memref<128x10xf32, #tpu.memory_space<vmem>>, %arg5: memref<1x10xf32, #tpu.memory_space<vmem>>, %arg6: memref<2x10xf32, #tpu.memory_space<vmem>>) attributes {dimension_semantics = [#tpu.dimension_semantics<parallel>], iteration_bounds = array<i64: 1>, scalar_prefetch = 0 : i64, scratch_operands = 0 : i64, tpu.core_type = #tpu.core_type<tc>, window_params = [{transform_indices = @transform_0, window_bounds = array<i64: 2, 9216>}, {pipeline_mode = #tpu.pipeline_mode<synchronous>, transform_indices = @transform_1, window_bounds = array<i64: 9216, 128>}, {pipeline_mode = #tpu.pipeline_mode<synchronous>, transform_indices = @transform_2, window_bounds = array<i64: 1, 128>}, {pipeline_mode = #tpu.pipeline_mode<synchronous>, transform_indices = @transform_3, window_bounds = array<i64: 128, 10>}, {pipeline_mode = #tpu.pipeline_mode<synchronous>, transform_indices = @transform_4, window_bounds = array<i64: 1, 10>}, {transform_indices = @transform_5, window_bounds = array<i64: 2, 10>}]} {
    %c0 = arith.constant 0 : index
    %c0_0 = arith.constant 0 : index
    %0 = vector.load %arg1[%c0, %c0_0] : memref<2x9216xbf16, #tpu.memory_space<vmem>>, vector<2x9216xbf16>
    %c0_1 = arith.constant 0 : index
    %c0_2 = arith.constant 0 : index
    %1 = vector.load %arg2[%c0_1, %c0_2] : memref<9216x128xbf16, #tpu.memory_space<vmem>>, vector<9216x128xbf16>
    %cst = arith.constant dense<0.000000e+00> : vector<2x128xf32>
    %2 = tpu.matmul %0, %1, %cst {dimension_numbers = #tpu.dot_dimension_numbers<[1], [0], [0], [1], [0, 0, 1, 1], [], []>} : vector<2x9216xbf16>, vector<9216x128xbf16>, vector<2x128xf32> -> vector<2x128xf32>
    %c0_3 = arith.constant 0 : index
    %c0_4 = arith.constant 0 : index
    %3 = vector.load %arg3[%c0_3, %c0_4] : memref<1x128xf32, #tpu.memory_space<vmem>>, vector<1x128xf32>
    %4 = vector.broadcast %3 : vector<1x128xf32> to vector<2x128xf32>
    %5 = arith.addf %2, %4 : vector<2x128xf32>
    %cst_5 = arith.constant 0.000000e+00 : f32
    %6 = vector.broadcast %cst_5 : f32 to vector<2x128xf32>
    %7 = arith.maximumf %5, %6 : vector<2x128xf32>
    %c0_6 = arith.constant 0 : index
    %c0_7 = arith.constant 0 : index
    %8 = vector.load %arg4[%c0_6, %c0_7] : memref<128x10xf32, #tpu.memory_space<vmem>>, vector<128x10xf32>
    %cst_8 = arith.constant dense<0.000000e+00> : vector<2x10xf32>
    %9 = tpu.matmul %7, %8, %cst_8 {dimension_numbers = #tpu.dot_dimension_numbers<[1], [0], [0], [1], [0, 0, 1, 1], [], []>} : vector<2x128xf32>, vector<128x10xf32>, vector<2x10xf32> -> vector<2x10xf32>
    %c0_9 = arith.constant 0 : index
    %c0_10 = arith.constant 0 : index
    %10 = vector.load %arg5[%c0_9, %c0_10] : memref<1x10xf32, #tpu.memory_space<vmem>>, vector<1x10xf32>
    %11 = vector.broadcast %10 : vector<1x10xf32> to vector<2x10xf32>
    %12 = arith.addf %9, %11 : vector<2x10xf32>
    %c0_11 = arith.constant 0 : index
    %c0_12 = arith.constant 0 : index
    %13 = vector.load %arg6[%c0_11, %c0_12] : memref<2x10xf32, #tpu.memory_space<vmem>>, vector<2x10xf32>
    tpu.vector_store %arg6[%c0_11, %c0_12], %12 {strides = array<i32>} : memref<2x10xf32, #tpu.memory_space<vmem>>, vector<2x10xf32>,
    return
  }
  func.func @transform_0(%arg0: i32) -> (i32, i32) {
    %c0_i32 = arith.constant 0 : i32
    %c0_i32_0 = arith.constant 0 : i32
    return %arg0, %c0_i32 : i32, i32
  }
  func.func @transform_1(%arg0: i32) -> (i32, i32) {
    %c0_i32 = arith.constant 0 : i32
    %c0_i32_0 = arith.constant 0 : i32
    %c0_i32_1 = arith.constant 0 : i32
    return %c0_i32, %c0_i32_0 : i32, i32
  }
  func.func @transform_2(%arg0: i32) -> (i32, i32) {
    %c0_i32 = arith.constant 0 : i32
    %c0_i32_0 = arith.constant 0 : i32
    %c0_i32_1 = arith.constant 0 : i32
    return %c0_i32, %c0_i32_0 : i32, i32
  }
  func.func @transform_3(%arg0: i32) -> (i32, i32) {
    %c0_i32 = arith.constant 0 : i32
    %c0_i32_0 = arith.constant 0 : i32
    %c0_i32_1 = arith.constant 0 : i32
    return %c0_i32, %c0_i32_0 : i32, i32
  }
  func.func @transform_4(%arg0: i32) -> (i32, i32) {
    %c0_i32 = arith.constant 0 : i32
    %c0_i32_0 = arith.constant 0 : i32
    %c0_i32_1 = arith.constant 0 : i32
    return %c0_i32, %c0_i32_0 : i32, i32
  }
  func.func @transform_5(%arg0: i32) -> (i32, i32) {
    %c0_i32 = arith.constant 0 : i32
    %c0_i32_0 = arith.constant 0 : i32
    return %arg0, %c0_i32 : i32, i32
  }
}

</mosaic_0001>

<bundles_post_ra>
// kernel: net_x_forward.3
= control target key start
LH: loop header
LB: loop body
LE: loop exit
PB: predicated region body
PF: predicated region fallthrough
CT: control target
= control target key end

     0   :  { %v1203_v28 = vlaneseq  ;;  %v8778_v36 = vmov 1966171168   ;;  %s10765_s0 = inlined_call_operand.vmem [shape: bf16[2,9216], index: 0, kind: input, shape index: {}]   ;;  %s10766_s1 = inlined_call_operand.vmem [shape: bf16[9216,128], index: 1, kind: input, shape index: {}]   ;;  %s10767_s2 = inlined_call_operand.vmem [shape: f32[1,128], index: 2, kind: input, shape index: {}]   ;;  %s10768_s3 = inlined_call_operand.vmem [shape: f32[128,10], index: 3, kind: input, shape index: {}]   ;;  %s10769_s4 = inlined_call_operand.vmem [shape: f32[1,10], index: 4, kind: input, shape index: {}]   ;;  %s10770_s5 = inlined_call_operand.hbm [shape: f32[2,10], index: 5, kind: output, shape index: {}]  }
   0x1   :  { %v8169_v0 = vld [vmem:[%s10766_s1 + $0x40] sm:$0xff]   ;;  %v8173_v4 = vld [vmem:[%s10766_s1 + $0x48] sm:$0xff]   ;;  %v8177_v8 = vld [vmem:[%s10766_s1 + $0x50] sm:$0xff]   ;;  %v1201_v37 = vunpack.c.l.s4 %v8778_v36 }
   0x2   :  { %v8170_v1 = vld [vmem:[%s10766_s1 + $0xc0] sm:$0xff]   ;;  %7296 = vmatprep.subr.bf16.mxu0 %v8169_v0  ;;  %v8174_v5 = vld [vmem:[%s10766_s1 + $0xc8] sm:$0xff]   ;;  %v8178_v9 = vld [vmem:[%s10766_s1 + $0xd0] sm:$0xff]   ;;  %v1204_v33 = vshrl.u32 %v1203_v28, 7 }
   0x3   :  { %v8171_v2 = vld [vmem:[%s10766_s1] sm:$0xff]   ;;  %7318 = vmatprep.subr.bf16.mxu1 %v8170_v1  ;;  %v8175_v6 = vld [vmem:[%s10766_s1 + $0x8] sm:$0xff]   ;;  %v8179_v10 = vld [vmem:[%s10766_s1 + $0x10] sm:$0xff]   ;;  %v1202_v40 = vunpack.c.0.s8 %v1201_v37 }
   0x4   :  { %v8172_v3 = vld [vmem:[%s10766_s1 + $0x80] sm:$0xff]   ;;  %7297 = vmatpush3.bf16.msra.mxu0 %v8171_v2  ;;  %v8176_v7 = vld [vmem:[%s10766_s1 + $0x88] sm:$0xff]   ;;  %v8180_v11 = vld [vmem:[%s10766_s1 + $0x90] sm:$0xff]  }
   0x5   :  { %7319 = vmatpush3.bf16.msra.mxu1 %v8172_v3  ;;  %7298 = vmatprep.subr.bf16.mxu0 %v8173_v4  ;;  %v8181_v12 = vld [vmem:[%s10766_s1 + $0x58] sm:$0xff]   ;;  %v8185_v16 = vld [vmem:[%s10766_s1 + $0x60] sm:$0xff]   ;;  %v8189_v20 = vld [vmem:[%s10766_s1 + $0x68] sm:$0xff]   ;;  %v8918_v41 = vsub.s32 %v1202_v40, %v1204_v33 }
   0x6   :  { %7320 = vmatprep.subr.bf16.mxu1 %v8174_v5  ;;  %v8182_v13 = vld [vmem:[%s10766_s1 + $0xd8] sm:$0xff]   ;;  %v8186_v17 = vld [vmem:[%s10766_s1 + $0xe0] sm:$0xff]   ;;  %v8190_v21 = vld [vmem:[%s10766_s1 + $0xe8] sm:$0xff]  }
   0x7   :  { %v8183_v14 = vld [vmem:[%s10766_s1 + $0x18] sm:$0xff]   ;;  %v8187_v18 = vld [vmem:[%s10766_s1 + $0x20] sm:$0xff]   ;;  %v8191_v22 = vld [vmem:[%s10766_s1 + $0x28] sm:$0xff]  }
   0x8   :  { %7299 = vmatpush3.bf16.msra.mxu0 %v8175_v6  ;;  %v8184_v15 = vld [vmem:[%s10766_s1 + $0x98] sm:$0xff]   ;;  %v8188_v19 = vld [vmem:[%s10766_s1 + $0xa0] sm:$0xff]   ;;  %v8192_v23 = vld [vmem:[%s10766_s1 + $0xa8] sm:$0xff]  }
   0x9   :  { %7321 = vmatpush3.bf16.msra.mxu1 %v8176_v7  ;;  %7300 = vmatprep.subr.bf16.mxu0 %v8177_v8  ;;  %v8193_v24 = vld [vmem:[%s10766_s1 + $0x70] sm:$0xff]   ;;  %v8197_v29 = vld [vmem:[%s10766_s1 + $0x78] sm:$0xff]   ;;  %v22_v34 = vld [vmem:[%s10765_s0] sm:$0xff] }
   0xa   :  { %7322 = vmatprep.subr.bf16.mxu1 %v8178_v9  ;;  %v8194_v25 = vld [vmem:[%s10766_s1 + $0xf0] sm:$0xff]   ;;  %v8198_v30 = vld [vmem:[%s10766_s1 + $0xf8] sm:$0xff]   ;;  %v8202_v35 = vld [vmem:[%s10766_s1 + $0x140] sm:$0xff]   ;;  %v1199_v39 = vcombine.high %v22_v34, %v22_v34  ;;  %v1206_v42 = vrot.slane %v22_v34, %v8918_v41 }
   0xb   :  { %v8195_v26 = vld [vmem:[%s10766_s1 + $0x30] sm:$0xff]   ;;  %v8199_v31 = vld [vmem:[%s10766_s1 + $0x38] sm:$0xff]   ;;  %v8203_v38 = vld [vmem:[%s10766_s1 + $0x1c0] sm:$0xff]  }
   0xc   :  { %7301 = vmatpush3.bf16.msra.mxu0 %v8179_v10  ;;  %v8196_v27 = vld [vmem:[%s10766_s1 + $0xb0] sm:$0xff]   ;;  %v8200_v32 = vld [vmem:[%s10766_s1 + $0xb8] sm:$0xff]   ;;  %v8922_v43 = vrot.slane %v1199_v39, %v8918_v41  ;;  %v1214_v44 = vcombine.high %v1206_v42, %v1206_v42  ;;  %v1222_v45 = vrot.slane %v1206_v42, %v8918_v41  ;;  %v8204_v47 = vld [vmem:[%s10766_s1 + $0x100] sm:$0xff]  }
   0xd   :  { %7323 = vmatpush3.bf16.msra.mxu1 %v8180_v11  ;;  %7302 = vmatprep.subr.bf16.mxu0 %v8181_v12  ;;  %v8205_v49 = vld [vmem:[%s10766_s1 + $0x180] sm:$0xff]   ;;  %v8206_v52 = vld [vmem:[%s10766_s1 + $0x148] sm:$0xff]   ;;  %v8210_v58 = vld [vmem:[%s10766_s1 + $0x150] sm:$0xff]  }
   0xe   :  { %7324 = vmatprep.subr.bf16.mxu1 %v8182_v13  ;;  %v1215_v46 = vcombine.high %v8922_v43, %v8922_v43  ;;  %v1236_v48 = vrot.slane %v1214_v44, %v8918_v41  ;;  %v1244_v51 = vcombine.high %v1222_v45, %v1222_v45  ;;  %v8207_v54 = vld [vmem:[%s10766_s1 + $0x1c8] sm:$0xff]   ;;  %v8211_v59 = vld [vmem:[%s10766_s1 + $0x1d0] sm:$0xff]   ;;  %v8214_v62 = vld [vmem:[%s10766_s1 + $0x158] sm:$0xff]  }
   0xf   :  { %v8208_v55 = vld [vmem:[%s10766_s1 + $0x108] sm:$0xff]   ;;  %v8212_v60 = vld [vmem:[%s10766_s1 + $0x110] sm:$0xff]   ;;  %v8215_v63 = vld [vmem:[%s10766_s1 + $0x1d8] sm:$0xff]  }
  0x10   :  { %7303 = vmatpush3.bf16.msra.mxu0 %v8183_v14  ;;  %v1243_v50 = vrot.slane %v1215_v46, %v8918_v41  ;;  %5200 = vmatprep.mubr.bf16.mxu0 %v1236_v48  ;;  %v1246_v53 = vcombine.high %v1236_v48, %v1236_v48  ;;  %v8209_v57 = vld [vmem:[%s10766_s1 + $0x188] sm:$0xff]   ;;  %v8213_v61 = vld [vmem:[%s10766_s1 + $0x190] sm:$0xff]   ;;  %v8216_v0 = vld [vmem:[%s10766_s1 + $0x118] sm:$0xff]  }
  0x11   :  { %7325 = vmatpush3.bf16.msra.mxu1 %v8184_v15  ;;  %7304 = vmatprep.subr.bf16.mxu0 %v8185_v16  ;;  %v8217_v1 = vld [vmem:[%s10766_s1 + $0x198] sm:$0xff]   ;;  %v8218_v2 = vld [vmem:[%s10766_s1 + $0x160] sm:$0xff]   ;;  %v8222_v6 = vld [vmem:[%s10766_s1 + $0x168] sm:$0xff]  }
  0x12   :  { %7326 = vmatprep.subr.bf16.mxu1 %v8186_v17  ;;  %v1247_v56 = vcombine.high %v1243_v50, %v1243_v50  ;;  %5240 = vmatprep.mubr.bf16.mxu1 %v1246_v53  ;;  %v8219_v3 = vld [vmem:[%s10766_s1 + $0x1e0] sm:$0xff]   ;;  %v8223_v7 = vld [vmem:[%s10766_s1 + $0x1e8] sm:$0xff]   ;;  %v8226_v10 = vld [vmem:[%s10766_s1 + $0x170] sm:$0xff]  }
  0x13   :  { %v8220_v4 = vld [vmem:[%s10766_s1 + $0x120] sm:$0xff]   ;;  %v8224_v8 = vld [vmem:[%s10766_s1 + $0x128] sm:$0xff]   ;;  %v8227_v11 = vld [vmem:[%s10766_s1 + $0x1f0] sm:$0xff]  }
  0x14   :  { %7305 = vmatpush3.bf16.msra.mxu0 %v8187_v18  ;;  %v8221_v5 = vld [vmem:[%s10766_s1 + $0x1a0] sm:$0xff]   ;;  %v8225_v9 = vld [vmem:[%s10766_s1 + $0x1a8] sm:$0xff]   ;;  %v8228_v12 = vld [vmem:[%s10766_s1 + $0x130] sm:$0xff]   ;;  %v1229_v18 = vrot.slane %v8922_v43, %v8918_v41 }
  0x15   :  { %7327 = vmatpush3.bf16.msra.mxu1 %v8188_v19  ;;  %7306 = vmatprep.subr.bf16.mxu0 %v8189_v20  ;;  %v8229_v13 = vld [vmem:[%s10766_s1 + $0x1b0] sm:$0xff]   ;;  %v8230_v14 = vld [vmem:[%s10766_s1 + $0x178] sm:$0xff]   ;;  %v8234_v19 = vld [vmem:[%s10766_s1 + $0x240] sm:$0xff]  }
  0x16   :  { %7328 = vmatprep.subr.bf16.mxu1 %v8190_v21  ;;  %v8231_v15 = vld [vmem:[%s10766_s1 + $0x1f8] sm:$0xff]   ;;  %v8235_v20 = vld [vmem:[%s10766_s1 + $0x2c0] sm:$0xff]   ;;  %v8242_v28 = vld [vmem:[%s10766_s1 + $0x250] sm:$0xff]  }
  0x17   :  { %v8232_v16 = vld [vmem:[%s10766_s1 + $0x138] sm:$0xff]   ;;  %v8236_v21 = vld [vmem:[%s10766_s1 + $0x200] sm:$0xff]   ;;  %v8254_v40 = vld [vmem:[%s10766_s1 + $0x268] sm:$0xff]  }
  0x18   :  { %7307 = vmatpush3.bf16.msra.mxu0 %v8191_v22  ;;  %v8233_v17 = vld [vmem:[%s10766_s1 + $0x1b8] sm:$0xff]   ;;  %v8237_v22 = vld [vmem:[%s10766_s1 + $0x280] sm:$0xff]   ;;  %v8255_v42 = vld [vmem:[%s10766_s1 + $0x2e8] sm:$0xff]  }
  0x19   :  { %7329 = vmatpush3.bf16.msra.mxu1 %v8192_v23  ;;  %7308 = vmatprep.subr.bf16.mxu0 %v8193_v24  ;;  %v1245_v23 = vcombine.high %v1229_v18, %v1229_v18  ;;  %v8238_v24 = vld [vmem:[%s10766_s1 + $0x248] sm:$0xff]   ;;  %v8247_v33 = vld [vmem:[%s10766_s1 + $0x2d8] sm:$0xff]   ;;  %v8250_v36 = vld [vmem:[%s10766_s1 + $0x260] sm:$0xff]  }
  0x1a   :  { %7330 = vmatprep.subr.bf16.mxu1 %v8194_v25  ;;  %v8239_v25 = vld [vmem:[%s10766_s1 + $0x2c8] sm:$0xff]   ;;  %v8248_v34 = vld [vmem:[%s10766_s1 + $0x218] sm:$0xff]   ;;  %v8251_v37 = vld [vmem:[%s10766_s1 + $0x2e0] sm:$0xff]  }
  0x1b   :  { %v8253_v39 = vld [vmem:[%s10766_s1 + $0x2a0] sm:$0xff]   ;;  %v8256_v43 = vld [vmem:[%s10766_s1 + $0x228] sm:$0xff]  }
  0x1c   :  { %7309 = vmatpush3.bf16.msra.mxu0 %v8195_v26  ;;  %v8240_v26 = vld [vmem:[%s10766_s1 + $0x208] sm:$0xff]  }
  0x1d   :  { %7331 = vmatpush3.bf16.msra.mxu1 %v8196_v27  ;;  %7310 = vmatprep.subr.bf16.mxu0 %v8197_v29  ;;  %v8241_v27 = vld [vmem:[%s10766_s1 + $0x288] sm:$0xff]   ;;  %v8243_v29 = vld [vmem:[%s10766_s1 + $0x2d0] sm:$0xff]  }
  0x1e   :  { %7332 = vmatprep.subr.bf16.mxu1 %v8198_v30  ;;  %v8244_v30 = vld [vmem:[%s10766_s1 + $0x210] sm:$0xff]   ;;  %v8257_v44 = vld [vmem:[%s10766_s1 + $0x2a8] sm:$0xff]  }
  0x1f   :  { %v23_v46 = vld [vmem:[%s10765_s0 + $0x8] sm:$0xff] }
  0x20   :  { %7311 = vmatpush3.bf16.msra.mxu0 %v8199_v31  ;;  %v8245_v31 = vld [vmem:[%s10766_s1 + $0x290] sm:$0xff]   ;;  %v1255_v48 = vrot.slane %v23_v46, %v8918_v41 }
  0x21   :  { %7333 = vmatpush3.bf16.msra.mxu1 %v8200_v32  ;;  %7340 = vmatprep.subr.bf16.mxu0 %v8202_v35  ;;  %v8246_v32 = vld [vmem:[%s10766_s1 + $0x258] sm:$0xff]  }
  0x22   :  { %7362 = vmatprep.subr.bf16.mxu1 %v8203_v38  ;;  %v8249_v35 = vld [vmem:[%s10766_s1 + $0x298] sm:$0xff]   ;;  %v8252_v38 = vld [vmem:[%s10766_s1 + $0x220] sm:$0xff]  }
  0x23   :  { %5201 = vmatmul.mubr.bf16.vlgmr.msra.gmra.mrb[0].mxu0 %v1222_v45  ;;  %v8258_v45 = vld [vmem:[%s10766_s1 + $0x270] sm:$0xff]  }
  0x24   :  { %7341 = vmatpush3.bf16.msra.mxu0 %v8204_v47  ;;  %5241 = vmatmul.mubr.bf16.vlgmr.msra.gmra.mrb[0].mxu1 %v1244_v51  ;;  %v8259_v47 = vld [vmem:[%s10766_s1 + $0x2f0] sm:$0xff]  }
  0x25   :  { %7342 = vmatprep.subr.bf16.mxu0 %v8206_v52  ;;  %7363 = vmatpush3.bf16.msra.mxu1 %v8205_v49  ;;  %v1248_v49 = vcombine.high %v23_v46, %v23_v46  ;;  %v8261_v51 = vld [vmem:[%s10766_s1 + $0x2b0] sm:$0xff]   ;;  %v1263_v52 = vcombine.high %v1255_v48, %v1255_v48 }
  0x26   :  { %5280 = vmatprep.mubr.bf16.mxu0 %v1243_v50  ;;  %7364 = vmatprep.subr.bf16.mxu1 %v8207_v54  ;;  %v8260_v50 = vld [vmem:[%s10766_s1 + $0x230] sm:$0xff]   ;;  %v8262_v54 = vld [vmem:[%s10766_s1 + $0x278] sm:$0xff]  }
  0x27   :  { %5320 = vmatprep.mubr.bf16.mxu1 %v1247_v56  ;;  %v9110_v53 = vrot.slane %v1248_v49, %v8918_v41  ;;  %v1285_v56 = vrot.slane %v1263_v52, %v8918_v41  ;;  %v8309_v46 = vld [vmem:[%s10766_s1 + $0x410] sm:$0xff]   ;;  %v8312_v49 = vld [vmem:[%s10766_s1 + $0x4d8] sm:$0xff]   ;;  %v8315_v52 = vld [vmem:[%s10766_s1 + $0x460] sm:$0xff]  }
  0x28   :  { %7343 = vmatpush3.bf16.msra.mxu0 %v8208_v55  ;;  %v8263_v55 = vld [vmem:[%s10766_s1 + $0x2f8] sm:$0xff]  }
  0x29   :  { %7344 = vmatprep.subr.bf16.mxu0 %v8210_v58  ;;  %7365 = vmatpush3.bf16.msra.mxu1 %v8209_v57  ;;  %v1264_v57 = vcombine.high %v9110_v53, %v9110_v53  ;;  %v8264_v58 = vld [vmem:[%s10766_s1 + $0x238] sm:$0xff]  }
  0x2a   :  { %7366 = vmatprep.subr.bf16.mxu1 %v8211_v59  ;;  %v8265_v59 = vld [vmem:[%s10766_s1 + $0x2b8] sm:$0xff]  }
  0x2c   :  { %7345 = vmatpush3.bf16.msra.mxu0 %v8212_v60  ;;  %v1295_v60 = vcombine.high %v1285_v56, %v1285_v56 }
  0x2d   :  { %7346 = vmatprep.subr.bf16.mxu0 %v8214_v62  ;;  %7367 = vmatpush3.bf16.msra.mxu1 %v8213_v61  ;;  %v1271_v61 = vrot.slane %v1255_v48, %v8918_v41  ;;  %v8266_v62 = vld [vmem:[%s10766_s1 + $0x340] sm:$0xff]   ;;  %v8311_v48 = vld [vmem:[%s10766_s1 + $0x458] sm:$0xff]  }
  0x2e   :  { %7368 = vmatprep.subr.bf16.mxu1 %v8215_v63  ;;  %v8267_v63 = vld [vmem:[%s10766_s1 + $0x3c0] sm:$0xff]  }
  0x30   :  { %7347 = vmatpush3.bf16.msra.mxu0 %v8216_v0  ;;  %v1292_v0 = vrot.slane %v1264_v57, %v8918_v41  ;;  %v8320_v57 = vld [vmem:[%s10766_s1 + $0x4e8] sm:$0xff]  }
  0x31   :  { %7348 = vmatprep.subr.bf16.mxu0 %v8218_v2  ;;  %7369 = vmatpush3.bf16.msra.mxu1 %v8217_v1  ;;  %v8268_v1 = vld [vmem:[%s10766_s1 + $0x300] sm:$0xff]  }
  0x32   :  { %7370 = vmatprep.subr.bf16.mxu1 %v8219_v3  ;;  %v8269_v2 = vld [vmem:[%s10766_s1 + $0x380] sm:$0xff]   ;;  %v1293_v3 = vcombine.high %v1271_v61, %v1271_v61 }
  0x34   :  { %7349 = vmatpush3.bf16.msra.mxu0 %v8220_v4  ;;  %v8270_v4 = vld [vmem:[%s10766_s1 + $0x348] sm:$0xff]  }
  0x35   :  { %7350 = vmatprep.subr.bf16.mxu0 %v8222_v6  ;;  %7371 = vmatpush3.bf16.msra.mxu1 %v8221_v5  ;;  %v8271_v5 = vld [vmem:[%s10766_s1 + $0x3c8] sm:$0xff]   ;;  %v1296_v6 = vcombine.high %v1292_v0, %v1292_v0 }
  0x36   :  { %7372 = vmatprep.subr.bf16.mxu1 %v8223_v7  ;;  %v8272_v7 = vld [vmem:[%s10766_s1 + $0x308] sm:$0xff]  }
  0x38   :  { %7351 = vmatpush3.bf16.msra.mxu0 %v8224_v8  ;;  %v8273_v8 = vld [vmem:[%s10766_s1 + $0x388] sm:$0xff]  }
  0x39   :  { %7352 = vmatprep.subr.bf16.mxu0 %v8226_v10  ;;  %7373 = vmatpush3.bf16.msra.mxu1 %v8225_v9  ;;  %v8274_v9 = vld [vmem:[%s10766_s1 + $0x350] sm:$0xff]  }
  0x3a   :  { %7374 = vmatprep.subr.bf16.mxu1 %v8227_v11  ;;  %v8275_v10 = vld [vmem:[%s10766_s1 + $0x3d0] sm:$0xff]  }
  0x3b   :  { %v8276_v11 = vld [vmem:[%s10766_s1 + $0x310] sm:$0xff]  }
  0x3c   :  { %7353 = vmatpush3.bf16.msra.mxu0 %v8228_v12  ;;  %v8277_v12 = vld [vmem:[%s10766_s1 + $0x390] sm:$0xff]  }
  0x3d   :  { %7354 = vmatprep.subr.bf16.mxu0 %v8230_v14  ;;  %7375 = vmatpush3.bf16.msra.mxu1 %v8229_v13  ;;  %v8278_v13 = vld [vmem:[%s10766_s1 + $0x358] sm:$0xff]  }
  0x3e   :  { %7376 = vmatprep.subr.bf16.mxu1 %v8231_v15  ;;  %v8279_v14 = vld [vmem:[%s10766_s1 + $0x3d8] sm:$0xff]  }
  0x3f   :  { %v8280_v15 = vld [vmem:[%s10766_s1 + $0x318] sm:$0xff]  }
  0x40   :  { %7355 = vmatpush3.bf16.msra.mxu0 %v8232_v16  ;;  %v8281_v16 = vld [vmem:[%s10766_s1 + $0x398] sm:$0xff]  }
  0x41   :  { %7384 = vmatprep.subr.bf16.mxu0 %v8234_v19  ;;  %7377 = vmatpush3.bf16.msra.mxu1 %v8233_v17  ;;  %v8282_v17 = vld [vmem:[%s10766_s1 + $0x360] sm:$0xff]  }
  0x42   :  { %7406 = vmatprep.subr.bf16.mxu1 %v8235_v20  ;;  %v8284_v19 = vld [vmem:[%s10766_s1 + $0x320] sm:$0xff]  }
  0x43   :  { %5281 = vmatmul.mubr.bf16.vlgmr.msra.gmra.mrb[4].mxu0 %v1229_v18  ;;  %v8283_v18 = vld [vmem:[%s10766_s1 + $0x3e0] sm:$0xff]  }
  0x44   :  { %7385 = vmatpush3.bf16.msra.mxu0 %v8236_v21  ;;  %5321 = vmatmul.mubr.bf16.vlgmr.msra.gmra.mrb[4].mxu1 %v1245_v23  ;;  %v8285_v20 = vld [vmem:[%s10766_s1 + $0x3a0] sm:$0xff]   ;;  %v8286_v21 = vld [vmem:[%s10766_s1 + $0x368] sm:$0xff]  }
  0x45   :  { %7386 = vmatprep.subr.bf16.mxu0 %v8238_v24  ;;  %7407 = vmatpush3.bf16.msra.mxu1 %v8237_v22  ;;  %v8287_v22 = vld [vmem:[%s10766_s1 + $0x3e8] sm:$0xff]  }
  0x46   :  { %7408 = vmatprep.subr.bf16.mxu1 %v8239_v25  ;;  %5360 = vmatprep.mubr.bf16.mxu0 %v1285_v56  ;;  %v8288_v23 = vld [vmem:[%s10766_s1 + $0x328] sm:$0xff]   ;;  %v8290_v25 = vld [vmem:[%s10766_s1 + $0x370] sm:$0xff]  }
  0x47   :  { %5400 = vmatprep.mubr.bf16.mxu1 %v1295_v60  ;;  %v8289_v24 = vld [vmem:[%s10766_s1 + $0x3a8] sm:$0xff]   ;;  %v8323_v60 = vld [vmem:[%s10766_s1 + $0x470] sm:$0xff]  }
  0x48   :  { %7387 = vmatpush3.bf16.msra.mxu0 %v8240_v26  ;;  %v8291_v26 = vld [vmem:[%s10766_s1 + $0x3f0] sm:$0xff]   ;;  %v8319_v56 = vld [vmem:[%s10766_s1 + $0x468] sm:$0xff]  }
  0x49   :  { %7388 = vmatprep.subr.bf16.mxu0 %v8242_v28  ;;  %7409 = vmatpush3.bf16.msra.mxu1 %v8241_v27  ;;  %v8292_v27 = vld [vmem:[%s10766_s1 + $0x330] sm:$0xff]  }
  0x4a   :  { %7410 = vmatprep.subr.bf16.mxu1 %v8243_v29  ;;  %v8293_v28 = vld [vmem:[%s10766_s1 + $0x3b0] sm:$0xff]   ;;  %v8294_v29 = vld [vmem:[%s10766_s1 + $0x378] sm:$0xff]  }
  0x4c   :  { %7389 = vmatpush3.bf16.msra.mxu0 %v8244_v30  ;;  %v8295_v30 = vld [vmem:[%s10766_s1 + $0x3f8] sm:$0xff]  }
  0x4d   :  { %7390 = vmatprep.subr.bf16.mxu0 %v8246_v32  ;;  %7411 = vmatpush3.bf16.msra.mxu1 %v8245_v31  ;;  %v8296_v31 = vld [vmem:[%s10766_s1 + $0x338] sm:$0xff]  }
  0x4e   :  { %7412 = vmatprep.subr.bf16.mxu1 %v8247_v33  ;;  %v8297_v32 = vld [vmem:[%s10766_s1 + $0x3b8] sm:$0xff]   ;;  %v1278_v33 = vrot.slane %v9110_v53, %v8918_v41  ;;  %v8316_v53 = vld [vmem:[%s10766_s1 + $0x4e0] sm:$0xff]  }
  0x50   :  { %7391 = vmatpush3.bf16.msra.mxu0 %v8248_v34  ;;  %v8299_v34 = vld [vmem:[%s10766_s1 + $0x440] sm:$0xff]  }
  0x51   :  { %7392 = vmatprep.subr.bf16.mxu0 %v8250_v36  ;;  %7413 = vmatpush3.bf16.msra.mxu1 %v8249_v35  ;;  %v8300_v35 = vld [vmem:[%s10766_s1 + $0x4c0] sm:$0xff]  }
  0x52   :  { %7414 = vmatprep.subr.bf16.mxu1 %v8251_v37  ;;  %v8301_v36 = vld [vmem:[%s10766_s1 + $0x400] sm:$0xff]  }
  0x53   :  { %v8302_v37 = vld [vmem:[%s10766_s1 + $0x480] sm:$0xff]  }
  0x54   :  { %7393 = vmatpush3.bf16.msra.mxu0 %v8252_v38  ;;  %v1294_v38 = vcombine.high %v1278_v33, %v1278_v33 }
  0x55   :  { %7394 = vmatprep.subr.bf16.mxu0 %v8254_v40  ;;  %7415 = vmatpush3.bf16.msra.mxu1 %v8253_v39  ;;  %v8303_v39 = vld [vmem:[%s10766_s1 + $0x448] sm:$0xff]  }
  0x56   :  { %7416 = vmatprep.subr.bf16.mxu1 %v8255_v42  ;;  %v8304_v40 = vld [vmem:[%s10766_s1 + $0x4c8] sm:$0xff]  }
  0x57   :  { %v8305_v42 = vld [vmem:[%s10766_s1 + $0x408] sm:$0xff]  }
  0x58   :  { %7395 = vmatpush3.bf16.msra.mxu0 %v8256_v43  ;;  %v8306_v43 = vld [vmem:[%s10766_s1 + $0x488] sm:$0xff]  }
  0x59   :  { %7396 = vmatprep.subr.bf16.mxu0 %v8258_v45  ;;  %7417 = vmatpush3.bf16.msra.mxu1 %v8257_v44  ;;  %v8307_v44 = vld [vmem:[%s10766_s1 + $0x450] sm:$0xff]  }
  0x5a   :  { %7418 = vmatprep.subr.bf16.mxu1 %v8259_v47  ;;  %v8308_v45 = vld [vmem:[%s10766_s1 + $0x4d0] sm:$0xff]  }
  0x5b   :  { %v8310_v47 = vld [vmem:[%s10766_s1 + $0x490] sm:$0xff]  }
  0x5c   :  { %7397 = vmatpush3.bf16.msra.mxu0 %v8260_v50  ;;  %v8313_v50 = vld [vmem:[%s10766_s1 + $0x418] sm:$0xff]  }
  0x5d   :  { %7398 = vmatprep.subr.bf16.mxu0 %v8262_v54  ;;  %7419 = vmatpush3.bf16.msra.mxu1 %v8261_v51  ;;  %v8314_v51 = vld [vmem:[%s10766_s1 + $0x498] sm:$0xff]   ;;  %v8317_v54 = vld [vmem:[%s10766_s1 + $0x420] sm:$0xff]  }
  0x5e   :  { %7420 = vmatprep.subr.bf16.mxu1 %v8263_v55  ;;  %v8318_v55 = vld [vmem:[%s10766_s1 + $0x4a0] sm:$0xff]  }
  0x60   :  { %7399 = vmatpush3.bf16.msra.mxu0 %v8264_v58  ;;  %v8321_v58 = vld [vmem:[%s10766_s1 + $0x428] sm:$0xff]  }
  0x61   :  { %7428 = vmatprep.subr.bf16.mxu0 %v8266_v62  ;;  %7421 = vmatpush3.bf16.msra.mxu1 %v8265_v59  ;;  %v8322_v59 = vld [vmem:[%s10766_s1 + $0x4a8] sm:$0xff]   ;;  %v8324_v62 = vld [vmem:[%s10766_s1 + $0x4f0] sm:$0xff]  }
  0x62   :  { %7450 = vmatprep.subr.bf16.mxu1 %v8267_v63 }
  0x63   :  { %5361 = vmatmul.mubr.bf16.vlgmr.msra.gmra.mrb[8].mxu0 %v1271_v61  ;;  %v24_v61 = vld [vmem:[%s10765_s0 + $0x10] sm:$0xff] }
  0x64   :  { %7429 = vmatpush3.bf16.msra.mxu0 %v8268_v1  ;;  %5440 = vmatprep.mubr.bf16.mxu0 %v1292_v0  ;;  %v1304_v63 = vrot.slane %v24_v61, %v8918_v41  ;;  %v1297_v0 = vcombine.high %v24_v61, %v24_v61  ;;  %v8325_v1 = vld [vmem:[%s10766_s1 + $0x430] sm:$0xff]  }
  0x65   :  { %5401 = vmatmul.mubr.bf16.vlgmr.msra.gmra.mrb[8].mxu1 %v1293_v3  ;;  %7430 = vmatprep.subr.bf16.mxu0 %v8270_v4  ;;  %v8374_v61 = vld [vmem:[%s10766_s1 + $0x610] sm:$0xff]  }
  0x66   :  { %7451 = vmatpush3.bf16.msra.mxu1 %v8269_v2  ;;  %5480 = vmatprep.mubr.bf16.mxu1 %v1296_v6  ;;  %v8326_v2 = vld [vmem:[%s10766_s1 + $0x4b0] sm:$0xff]   ;;  %v1312_v3 = vcombine.high %v1304_v63, %v1304_v63  ;;  %v9316_v4 = vrot.slane %v1297_v0, %v8918_v41  ;;  %v8328_v6 = vld [vmem:[%s10766_s1 + $0x4f8] sm:$0xff]  }
  0x67   :  { %7452 = vmatprep.subr.bf16.mxu1 %v8271_v5  ;;  %v8327_v5 = vld [vmem:[%s10766_s1 + $0x478] sm:$0xff]  }
  0x68   :  { %7431 = vmatpush3.bf16.msra.mxu0 %v8272_v7  ;;  %v1334_v7 = vrot.slane %v1312_v3, %v8918_v41  ;;  %v8377_v0 = vld [vmem:[%s10766_s1 + $0x6d8] sm:$0xff]   ;;  %v8380_v3 = vld [vmem:[%s10766_s1 + $0x660] sm:$0xff]  }
  0x69   :  { %7432 = vmatprep.subr.bf16.mxu0 %v8274_v9  ;;  %v8329_v9 = vld [vmem:[%s10766_s1 + $0x438] sm:$0xff]  }
  0x6a   :  { %7453 = vmatpush3.bf16.msra.mxu1 %v8273_v8  ;;  %v1313_v8 = vcombine.high %v9316_v4, %v9316_v4 }
  0x6b   :  { %7454 = vmatprep.subr.bf16.mxu1 %v8275_v10  ;;  %v8330_v10 = vld [vmem:[%s10766_s1 + $0x4b8] sm:$0xff]  }
  0x6c   :  { %7433 = vmatpush3.bf16.msra.mxu0 %v8276_v11  ;;  %v1344_v11 = vcombine.high %v1334_v7, %v1334_v7 }
  0x6d   :  { %7434 = vmatprep.subr.bf16.mxu0 %v8278_v13  ;;  %v8331_v13 = vld [vmem:[%s10766_s1 + $0x540] sm:$0xff]  }
  0x6e   :  { %7455 = vmatpush3.bf16.msra.mxu1 %v8277_v12  ;;  %v1320_v12 = vrot.slane %v1304_v63, %v8918_v41  ;;  %v8376_v63 = vld [vmem:[%s10766_s1 + $0x658] sm:$0xff]  }
  0x6f   :  { %7456 = vmatprep.subr.bf16.mxu1 %v8279_v14  ;;  %v8332_v14 = vld [vmem:[%s10766_s1 + $0x5c0] sm:$0xff]  }
  0x70   :  { %7435 = vmatpush3.bf16.msra.mxu0 %v8280_v15  ;;  %v1341_v15 = vrot.slane %v1313_v8, %v8918_v41  ;;  %v8385_v8 = vld [vmem:[%s10766_s1 + $0x6e8] sm:$0xff]  }
  0x71   :  { %7436 = vmatprep.subr.bf16.mxu0 %v8282_v17  ;;  %v8334_v17 = vld [vmem:[%s10766_s1 + $0x580] sm:$0xff]  }
  0x72   :  { %7457 = vmatpush3.bf16.msra.mxu1 %v8281_v16  ;;  %v8333_v16 = vld [vmem:[%s10766_s1 + $0x500] sm:$0xff]  }
  0x73   :  { %7458 = vmatprep.subr.bf16.mxu1 %v8283_v18  ;;  %v1342_v18 = vcombine.high %v1320_v12, %v1320_v12 }
  0x74   :  { %7437 = vmatpush3.bf16.msra.mxu0 %v8284_v19  ;;  %v8335_v19 = vld [vmem:[%s10766_s1 + $0x548] sm:$0xff]  }
  0x75   :  { %7438 = vmatprep.subr.bf16.mxu0 %v8286_v21  ;;  %v1345_v21 = vcombine.high %v1341_v15, %v1341_v15 }
  0x76   :  { %7459 = vmatpush3.bf16.msra.mxu1 %v8285_v20  ;;  %v8336_v20 = vld [vmem:[%s10766_s1 + $0x5c8] sm:$0xff]  }
  0x77   :  { %7460 = vmatprep.subr.bf16.mxu1 %v8287_v22  ;;  %v8337_v22 = vld [vmem:[%s10766_s1 + $0x508] sm:$0xff]  }
  0x78   :  { %7439 = vmatpush3.bf16.msra.mxu0 %v8288_v23  ;;  %v8338_v23 = vld [vmem:[%s10766_s1 + $0x588] sm:$0xff]  }
  0x79   :  { %7440 = vmatprep.subr.bf16.mxu0 %v8290_v25  ;;  %v8340_v25 = vld [vmem:[%s10766_s1 + $0x5d0] sm:$0xff]  }
  0x7a   :  { %7461 = vmatpush3.bf16.msra.mxu1 %v8289_v24  ;;  %v8339_v24 = vld [vmem:[%s10766_s1 + $0x550] sm:$0xff]  }
  0x7b   :  { %7462 = vmatprep.subr.bf16.mxu1 %v8291_v26  ;;  %v8341_v26 = vld [vmem:[%s10766_s1 + $0x510] sm:$0xff]  }
  0x7c   :  { %7441 = vmatpush3.bf16.msra.mxu0 %v8292_v27  ;;  %v8342_v27 = vld [vmem:[%s10766_s1 + $0x590] sm:$0xff]  }
  0x7d   :  { %7442 = vmatprep.subr.bf16.mxu0 %v8294_v29  ;;  %v8344_v29 = vld [vmem:[%s10766_s1 + $0x5d8] sm:$0xff]  }
  0x7e   :  { %7463 = vmatpush3.bf16.msra.mxu1 %v8293_v28  ;;  %v8343_v28 = vld [vmem:[%s10766_s1 + $0x558] sm:$0xff]  }
  0x7f   :  { %7464 = vmatprep.subr.bf16.mxu1 %v8295_v30  ;;  %v8345_v30 = vld [vmem:[%s10766_s1 + $0x518] sm:$0xff]  }
  0x80   :  { %7443 = vmatpush3.bf16.msra.mxu0 %v8296_v31  ;;  %v8346_v31 = vld [vmem:[%s10766_s1 + $0x598] sm:$0xff]  }
  0x81   :  { %7472 = vmatprep.subr.bf16.mxu0 %v8299_v34  ;;  %v8349_v34 = vld [vmem:[%s10766_s1 + $0x520] sm:$0xff]  }
  0x82   :  { %7465 = vmatpush3.bf16.msra.mxu1 %v8297_v32  ;;  %v8347_v32 = vld [vmem:[%s10766_s1 + $0x560] sm:$0xff]  }
  0x83   :  { %5441 = vmatmul.mubr.bf16.vlgmr.msra.gmra.mrb[12].mxu0 %v1278_v33  ;;  %7494 = vmatprep.subr.bf16.mxu1 %v8300_v35  ;;  %v8348_v33 = vld [vmem:[%s10766_s1 + $0x5e0] sm:$0xff]  }
  0x84   :  { %7473 = vmatpush3.bf16.msra.mxu0 %v8301_v36  ;;  %5520 = vmatprep.mubr.bf16.mxu0 %v1334_v7  ;;  %v8350_v35 = vld [vmem:[%s10766_s1 + $0x5a0] sm:$0xff]   ;;  %v8351_v36 = vld [vmem:[%s10766_s1 + $0x568] sm:$0xff]  }
  0x85   :  { %5481 = vmatmul.mubr.bf16.vlgmr.msra.gmra.mrb[12].mxu1 %v1294_v38  ;;  %7474 = vmatprep.subr.bf16.mxu0 %v8303_v39  ;;  %v8353_v38 = vld [vmem:[%s10766_s1 + $0x528] sm:$0xff]  }
  0x86   :  { %7495 = vmatpush3.bf16.msra.mxu1 %v8302_v37  ;;  %5560 = vmatprep.mubr.bf16.mxu1 %v1344_v11  ;;  %v8352_v37 = vld [vmem:[%s10766_s1 + $0x5e8] sm:$0xff]   ;;  %v8388_v11 = vld [vmem:[%s10766_s1 + $0x670] sm:$0xff]  }
  0x87   :  { %7496 = vmatprep.subr.bf16.mxu1 %v8304_v40  ;;  %v8354_v39 = vld [vmem:[%s10766_s1 + $0x5a8] sm:$0xff]   ;;  %v8355_v40 = vld [vmem:[%s10766_s1 + $0x570] sm:$0xff]  }
  0x88   :  { %7475 = vmatpush3.bf16.msra.mxu0 %v8305_v42  ;;  %v8356_v42 = vld [vmem:[%s10766_s1 + $0x5f0] sm:$0xff]   ;;  %v8384_v7 = vld [vmem:[%s10766_s1 + $0x668] sm:$0xff]  }
  0x89   :  { %7476 = vmatprep.subr.bf16.mxu0 %v8307_v44  ;;  %v8358_v44 = vld [vmem:[%s10766_s1 + $0x5b0] sm:$0xff]  }
  0x8a   :  { %7497 = vmatpush3.bf16.msra.mxu1 %v8306_v43  ;;  %v8357_v43 = vld [vmem:[%s10766_s1 + $0x530] sm:$0xff]  }
  0x8b   :  { %7498 = vmatprep.subr.bf16.mxu1 %v8308_v45  ;;  %v8359_v45 = vld [vmem:[%s10766_s1 + $0x578] sm:$0xff]  }
  0x8c   :  { %7477 = vmatpush3.bf16.msra.mxu0 %v8309_v46  ;;  %v8360_v46 = vld [vmem:[%s10766_s1 + $0x5f8] sm:$0xff]  }
  0x8d   :  { %7478 = vmatprep.subr.bf16.mxu0 %v8311_v48  ;;  %v8362_v48 = vld [vmem:[%s10766_s1 + $0x5b8] sm:$0xff]  }
  0x8e   :  { %7499 = vmatpush3.bf16.msra.mxu1 %v8310_v47  ;;  %v8361_v47 = vld [vmem:[%s10766_s1 + $0x538] sm:$0xff]  }
  0x8f   :  { %7500 = vmatprep.subr.bf16.mxu1 %v8312_v49  ;;  %v1327_v49 = vrot.slane %v9316_v4, %v8918_v41  ;;  %v8381_v4 = vld [vmem:[%s10766_s1 + $0x6e0] sm:$0xff]  }
  0x90   :  { %7479 = vmatpush3.bf16.msra.mxu0 %v8313_v50  ;;  %v8364_v50 = vld [vmem:[%s10766_s1 + $0x640] sm:$0xff]  }
  0x91   :  { %7480 = vmatprep.subr.bf16.mxu0 %v8315_v52  ;;  %v8366_v52 = vld [vmem:[%s10766_s1 + $0x600] sm:$0xff]  }
  0x92   :  { %7501 = vmatpush3.bf16.msra.mxu1 %v8314_v51  ;;  %v8365_v51 = vld [vmem:[%s10766_s1 + $0x6c0] sm:$0xff]  }
  0x93   :  { %7502 = vmatprep.subr.bf16.mxu1 %v8316_v53  ;;  %v8367_v53 = vld [vmem:[%s10766_s1 + $0x680] sm:$0xff]  }
  0x94   :  { %7481 = vmatpush3.bf16.msra.mxu0 %v8317_v54  ;;  %v1343_v54 = vcombine.high %v1327_v49, %v1327_v49 }
  0x95   :  { %7482 = vmatprep.subr.bf16.mxu0 %v8319_v56  ;;  %v8369_v56 = vld [vmem:[%s10766_s1 + $0x6c8] sm:$0xff]  }
  0x96   :  { %7503 = vmatpush3.bf16.msra.mxu1 %v8318_v55  ;;  %v8368_v55 = vld [vmem:[%s10766_s1 + $0x648] sm:$0xff]  }
  0x97   :  { %7504 = vmatprep.subr.bf16.mxu1 %v8320_v57  ;;  %v8370_v57 = vld [vmem:[%s10766_s1 + $0x608] sm:$0xff]  }
  0x98   :  { %7483 = vmatpush3.bf16.msra.mxu0 %v8321_v58  ;;  %v8371_v58 = vld [vmem:[%s10766_s1 + $0x688] sm:$0xff]  }
  0x99   :  { %7484 = vmatprep.subr.bf16.mxu0 %v8323_v60  ;;  %v8373_v60 = vld [vmem:[%s10766_s1 + $0x6d0] sm:$0xff]  }
  0x9a   :  { %7505 = vmatpush3.bf16.msra.mxu1 %v8322_v59  ;;  %v8372_v59 = vld [vmem:[%s10766_s1 + $0x650] sm:$0xff]  }
  0x9b   :  { %7506 = vmatprep.subr.bf16.mxu1 %v8324_v62  ;;  %v8375_v62 = vld [vmem:[%s10766_s1 + $0x690] sm:$0xff]  }
  0x9c   :  { %7485 = vmatpush3.bf16.msra.mxu0 %v8325_v1  ;;  %v8378_v1 = vld [vmem:[%s10766_s1 + $0x618] sm:$0xff]  }
  0x9d   :  { %7486 = vmatprep.subr.bf16.mxu0 %v8327_v5  ;;  %v8382_v5 = vld [vmem:[%s10766_s1 + $0x620] sm:$0xff]  }
  0x9e   :  { %7507 = vmatpush3.bf16.msra.mxu1 %v8326_v2  ;;  %v8379_v2 = vld [vmem:[%s10766_s1 + $0x698] sm:$0xff]  }
  0x9f   :  { %7508 = vmatprep.subr.bf16.mxu1 %v8328_v6  ;;  %v8383_v6 = vld [vmem:[%s10766_s1 + $0x6a0] sm:$0xff]  }
  0xa0   :  { %7487 = vmatpush3.bf16.msra.mxu0 %v8329_v9  ;;  %v8386_v9 = vld [vmem:[%s10766_s1 + $0x628] sm:$0xff]  }
  0xa1   :  { %7516 = vmatprep.subr.bf16.mxu0 %v8331_v13  ;;  %v8389_v13 = vld [vmem:[%s10766_s1 + $0x6f0] sm:$0xff]  }
  0xa2   :  { %7509 = vmatpush3.bf16.msra.mxu1 %v8330_v10  ;;  %v8387_v10 = vld [vmem:[%s10766_s1 + $0x6a8] sm:$0xff]  }
  0xa3   :  { %5521 = vmatmul.mubr.bf16.vlgmr.msra.gmra.mrb[16].mxu0 %v1320_v12  ;;  %7538 = vmatprep.subr.bf16.mxu1 %v8332_v14  ;;  %v25_v12 = vld [vmem:[%s10765_s0 + $0x18] sm:$0xff] }
  0xa4   :  { %7517 = vmatpush3.bf16.msra.mxu0 %v8333_v16  ;;  %5600 = vmatprep.mubr.bf16.mxu0 %v1341_v15  ;;  %v1353_v14 = vrot.slane %v25_v12, %v8918_v41  ;;  %v1346_v15 = vcombine.high %v25_v12, %v25_v12  ;;  %v8390_v16 = vld [vmem:[%s10766_s1 + $0x630] sm:$0xff]   ;;  %v8427_v12 = vld [vmem:[%s10766_s1 + $0x7b8] sm:$0xff]  }
  0xa5   :  { %5561 = vmatmul.mubr.bf16.vlgmr.msra.gmra.mrb[16].mxu1 %v1342_v18  ;;  %7518 = vmatprep.subr.bf16.mxu0 %v8335_v19 }
  0xa6   :  { %7539 = vmatpush3.bf16.msra.mxu1 %v8334_v17  ;;  %5640 = vmatprep.mubr.bf16.mxu1 %v1345_v21  ;;  %v8392_v17 = vld [vmem:[%s10766_s1 + $0x678] sm:$0xff]   ;;  %v1361_v18 = vcombine.high %v1353_v14, %v1353_v14  ;;  %v9522_v19 = vrot.slane %v1346_v15, %v8918_v41  ;;  %v8430_v15 = vld [vmem:[%s10766_s1 + $0x8c0] sm:$0xff]  }
  0xa7   :  { %7540 = vmatprep.subr.bf16.mxu1 %v8336_v20  ;;  %v8391_v20 = vld [vmem:[%s10766_s1 + $0x6b0] sm:$0xff]   ;;  %v8393_v21 = vld [vmem:[%s10766_s1 + $0x6f8] sm:$0xff]  }
  0xa8   :  { %7519 = vmatpush3.bf16.msra.mxu0 %v8337_v22  ;;  %v1383_v22 = vrot.slane %v1361_v18, %v8918_v41 }
  0xa9   :  { %7520 = vmatprep.subr.bf16.mxu0 %v8339_v24  ;;  %v8394_v24 = vld [vmem:[%s10766_s1 + $0x638] sm:$0xff]  }
  0xaa   :  { %7541 = vmatpush3.bf16.msra.mxu1 %v8338_v23  ;;  %v1362_v23 = vcombine.high %v9522_v19, %v9522_v19 }
  0xab   :  { %7542 = vmatprep.subr.bf16.mxu1 %v8340_v25  ;;  %v1393_v25 = vcombine.high %v1383_v22, %v1383_v22 }
  0xac   :  { %7521 = vmatpush3.bf16.msra.mxu0 %v8341_v26  ;;  %v1369_v26 = vrot.slane %v1353_v14, %v8918_v41  ;;  %v8429_v14 = vld [vmem:[%s10766_s1 + $0x840] sm:$0xff]  }
  0xad   :  { %7522 = vmatprep.subr.bf16.mxu0 %v8343_v28  ;;  %v8395_v28 = vld [vmem:[%s10766_s1 + $0x6b8] sm:$0xff]  }
  0xae   :  { %7543 = vmatpush3.bf16.msra.mxu1 %v8342_v27  ;;  %v8396_v27 = vld [vmem:[%s10766_s1 + $0x740] sm:$0xff]  }
  0xaf   :  { %7544 = vmatprep.subr.bf16.mxu1 %v8344_v29  ;;  %v1390_v29 = vrot.slane %v1362_v23, %v8918_v41  ;;  %v8437_v23 = vld [vmem:[%s10766_s1 + $0x850] sm:$0xff]  }
  0xb0   :  { %7523 = vmatpush3.bf16.msra.mxu0 %v8345_v30  ;;  %v8397_v30 = vld [vmem:[%s10766_s1 + $0x7c0] sm:$0xff]  }
  0xb1   :  { %7524 = vmatprep.subr.bf16.mxu0 %v8347_v32  ;;  %v1391_v32 = vcombine.high %v1369_v26, %v1369_v26 }
  0xb2   :  { %7545 = vmatpush3.bf16.msra.mxu1 %v8346_v31  ;;  %v8398_v31 = vld [vmem:[%s10766_s1 + $0x700] sm:$0xff]  }
  0xb3   :  { %7546 = vmatprep.subr.bf16.mxu1 %v8348_v33  ;;  %v8400_v33 = vld [vmem:[%s10766_s1 + $0x748] sm:$0xff]  }
  0xb4   :  { %7525 = vmatpush3.bf16.msra.mxu0 %v8349_v34  ;;  %v8399_v34 = vld [vmem:[%s10766_s1 + $0x780] sm:$0xff]  }
  0xb5   :  { %7526 = vmatprep.subr.bf16.mxu0 %v8351_v36  ;;  %v8401_v36 = vld [vmem:[%s10766_s1 + $0x7c8] sm:$0xff]  }
  0xb6   :  { %7547 = vmatpush3.bf16.msra.mxu1 %v8350_v35  ;;  %v1394_v35 = vcombine.high %v1390_v29, %v1390_v29 }
  0xb7   :  { %7548 = vmatprep.subr.bf16.mxu1 %v8352_v37  ;;  %v8402_v37 = vld [vmem:[%s10766_s1 + $0x708] sm:$0xff]  }
  0xb8   :  { %7527 = vmatpush3.bf16.msra.mxu0 %v8353_v38  ;;  %v8404_v38 = vld [vmem:[%s10766_s1 + $0x750] sm:$0xff]  }
  0xb9   :  { %7528 = vmatprep.subr.bf16.mxu0 %v8355_v40  ;;  %v8405_v40 = vld [vmem:[%s10766_s1 + $0x7d0] sm:$0xff]  }
  0xba   :  { %7549 = vmatpush3.bf16.msra.mxu1 %v8354_v39  ;;  %v8403_v39 = vld [vmem:[%s10766_s1 + $0x788] sm:$0xff]  }
  0xbb   :  { %7550 = vmatprep.subr.bf16.mxu1 %v8356_v42  ;;  %v8406_v42 = vld [vmem:[%s10766_s1 + $0x710] sm:$0xff]  }
  0xbc   :  { %7529 = vmatpush3.bf16.msra.mxu0 %v8357_v43  ;;  %v8408_v43 = vld [vmem:[%s10766_s1 + $0x758] sm:$0xff]  }
  0xbd   :  { %7530 = vmatprep.subr.bf16.mxu0 %v8359_v45  ;;  %v8409_v45 = vld [vmem:[%s10766_s1 + $0x7d8] sm:$0xff]  }
  0xbe   :  { %7551 = vmatpush3.bf16.msra.mxu1 %v8358_v44  ;;  %v8407_v44 = vld [vmem:[%s10766_s1 + $0x790] sm:$0xff]  }
  0xbf   :  { %7552 = vmatprep.subr.bf16.mxu1 %v8360_v46  ;;  %v8410_v46 = vld [vmem:[%s10766_s1 + $0x718] sm:$0xff]  }
  0xc0   :  { %7531 = vmatpush3.bf16.msra.mxu0 %v8361_v47  ;;  %v8411_v47 = vld [vmem:[%s10766_s1 + $0x798] sm:$0xff]  }
  0xc1   :  { %7560 = vmatprep.subr.bf16.mxu0 %v8364_v50  ;;  %v8414_v50 = vld [vmem:[%s10766_s1 + $0x720] sm:$0xff]  }
  0xc2   :  { %7553 = vmatpush3.bf16.msra.mxu1 %v8362_v48  ;;  %v8412_v48 = vld [vmem:[%s10766_s1 + $0x760] sm:$0xff]  }
  0xc3   :  { %5601 = vmatmul.mubr.bf16.vlgmr.msra.gmra.mrb[20].mxu0 %v1327_v49  ;;  %7582 = vmatprep.subr.bf16.mxu1 %v8365_v51  ;;  %v8413_v49 = vld [vmem:[%s10766_s1 + $0x7e0] sm:$0xff]  }
  0xc4   :  { %7561 = vmatpush3.bf16.msra.mxu0 %v8366_v52  ;;  %5680 = vmatprep.mubr.bf16.mxu0 %v1383_v22  ;;  %v8415_v51 = vld [vmem:[%s10766_s1 + $0x7a0] sm:$0xff]   ;;  %v8416_v52 = vld [vmem:[%s10766_s1 + $0x768] sm:$0xff]  }
  0xc5   :  { %5641 = vmatmul.mubr.bf16.vlgmr.msra.gmra.mrb[20].mxu1 %v1343_v54  ;;  %7562 = vmatprep.subr.bf16.mxu0 %v8368_v55  ;;  %v8418_v54 = vld [vmem:[%s10766_s1 + $0x728] sm:$0xff]  }
  0xc6   :  { %7583 = vmatpush3.bf16.msra.mxu1 %v8367_v53  ;;  %5720 = vmatprep.mubr.bf16.mxu1 %v1393_v25  ;;  %v8417_v53 = vld [vmem:[%s10766_s1 + $0x7e8] sm:$0xff]   ;;  %v8439_v25 = vld [vmem:[%s10766_s1 + $0x810] sm:$0xff]  }
  0xc7   :  { %7584 = vmatprep.subr.bf16.mxu1 %v8369_v56  ;;  %v8419_v55 = vld [vmem:[%s10766_s1 + $0x7a8] sm:$0xff]   ;;  %v6718_v56 = vld [vmem:[%s10767_s2] ss:$0 sm:$0xff] }
  0xc8   :  { %7563 = vmatpush3.bf16.msra.mxu0 %v8370_v57  ;;  %v8420_v57 = vld [vmem:[%s10766_s1 + $0x770] sm:$0xff]   ;;  %v8436_v22 = vld [vmem:[%s10766_s1 + $0x888] sm:$0xff]  }
  0xc9   :  { %7564 = vmatprep.subr.bf16.mxu0 %v8372_v59  ;;  %v8421_v59 = vld [vmem:[%s10766_s1 + $0x7f0] sm:$0xff]  }
  0xca   :  { %7585 = vmatpush3.bf16.msra.mxu1 %v8371_v58 }
  0xcb   :  { %7586 = vmatprep.subr.bf16.mxu1 %v8373_v60 }
  0xcc   :  { %7565 = vmatpush3.bf16.msra.mxu0 %v8374_v61  ;;  %v8422_v61 = vld [vmem:[%s10766_s1 + $0x730] sm:$0xff]  }
  0xcd   :  { %7566 = vmatprep.subr.bf16.mxu0 %v8376_v63 }
  0xce   :  { %7587 = vmatpush3.bf16.msra.mxu1 %v8375_v62 }
  0xcf   :  { %7588 = vmatprep.subr.bf16.mxu1 %v8377_v0 }
  0xd0   :  { %7567 = vmatpush3.bf16.msra.mxu0 %v8378_v1  ;;  %v8423_v1 = vld [vmem:[%s10766_s1 + $0x7b0] sm:$0xff]  }
  0xd1   :  { %7568 = vmatprep.subr.bf16.mxu0 %v8380_v3 }
  0xd2   :  { %7589 = vmatpush3.bf16.msra.mxu1 %v8379_v2  ;;  %v8424_v2 = vld [vmem:[%s10766_s1 + $0x778] sm:$0xff]  }
  0xd3   :  { %7590 = vmatprep.subr.bf16.mxu1 %v8381_v4 }
  0xd4   :  { %7569 = vmatpush3.bf16.msra.mxu0 %v8382_v5 }
  0xd5   :  { %7570 = vmatprep.subr.bf16.mxu0 %v8384_v7 }
  0xd6   :  { %7591 = vmatpush3.bf16.msra.mxu1 %v8383_v6 }
  0xd7   :  { %7592 = vmatprep.subr.bf16.mxu1 %v8385_v8  ;;  %v8425_v8 = vld [vmem:[%s10766_s1 + $0x7f8] sm:$0xff]  }
  0xd8   :  { %7571 = vmatpush3.bf16.msra.mxu0 %v8386_v9 }
  0xd9   :  { %7572 = vmatprep.subr.bf16.mxu0 %v8388_v11 }
  0xda   :  { %7593 = vmatpush3.bf16.msra.mxu1 %v8387_v10  ;;  %v8426_v10 = vld [vmem:[%s10766_s1 + $0x738] sm:$0xff]  }
  0xdb   :  { %7594 = vmatprep.subr.bf16.mxu1 %v8389_v13  ;;  %v1376_v13 = vrot.slane %v9522_v19, %v8918_v41  ;;  %v8433_v19 = vld [vmem:[%s10766_s1 + $0x848] sm:$0xff]  }
  0xdc   :  { %7573 = vmatpush3.bf16.msra.mxu0 %v8390_v16  ;;  %v8431_v16 = vld [vmem:[%s10766_s1 + $0x800] sm:$0xff]  }
  0xdd   :  { %7574 = vmatprep.subr.bf16.mxu0 %v8392_v17  ;;  %v8432_v17 = vld [vmem:[%s10766_s1 + $0x880] sm:$0xff]   ;;  %v1392_v18 = vcombine.high %v1376_v13, %v1376_v13 }
  0xde   :  { %7595 = vmatpush3.bf16.msra.mxu1 %v8391_v20  ;;  %v8434_v20 = vld [vmem:[%s10766_s1 + $0x8c8] sm:$0xff]  }
  0xdf   :  { %7596 = vmatprep.subr.bf16.mxu1 %v8393_v21  ;;  %v8435_v21 = vld [vmem:[%s10766_s1 + $0x808] sm:$0xff]  }
  0xe0   :  { %7575 = vmatpush3.bf16.msra.mxu0 %v8394_v24  ;;  %v8438_v24 = vld [vmem:[%s10766_s1 + $0x8d0] sm:$0xff]  }
  0xe1   :  { %7604 = vmatprep.subr.bf16.mxu0 %v8396_v27  ;;  %v8441_v27 = vld [vmem:[%s10766_s1 + $0x858] sm:$0xff]  }
  0xe2   :  { %7597 = vmatpush3.bf16.msra.mxu1 %v8395_v28  ;;  %v8442_v28 = vld [vmem:[%s10766_s1 + $0x8d8] sm:$0xff]  }
  0xe3   :  { %5681 = vmatmul.mubr.bf16.vlgmr.msra.gmra.mrb[24].mxu0 %v1369_v26  ;;  %7626 = vmatprep.subr.bf16.mxu1 %v8397_v30  ;;  %v8440_v26 = vld [vmem:[%s10766_s1 + $0x890] sm:$0xff]   ;;  %v8444_v30 = vld [vmem:[%s10766_s1 + $0x898] sm:$0xff]  }
  0xe4   :  { %7605 = vmatpush3.bf16.msra.mxu0 %v8398_v31  ;;  %5760 = vmatprep.mubr.bf16.mxu0 %v1390_v29  ;;  %v8443_v29 = vld [vmem:[%s10766_s1 + $0x818] sm:$0xff]   ;;  %v8445_v31 = vld [vmem:[%s10766_s1 + $0x860] sm:$0xff]  }
  0xe5   :  { %5721 = vmatmul.mubr.bf16.vlgmr.msra.gmra.mrb[24].mxu1 %v1391_v32  ;;  %7606 = vmatprep.subr.bf16.mxu0 %v8400_v33  ;;  %v8446_v32 = vld [vmem:[%s10766_s1 + $0x8e0] sm:$0xff]  }
  0xe6   :  { %7627 = vmatpush3.bf16.msra.mxu1 %v8399_v34  ;;  %5800 = vmatprep.mubr.bf16.mxu1 %v1394_v35  ;;  %v8447_v33 = vld [vmem:[%s10766_s1 + $0x820] sm:$0xff]   ;;  %v8449_v35 = vld [vmem:[%s10766_s1 + $0x868] sm:$0xff]  }
  0xe7   :  { %7628 = vmatprep.subr.bf16.mxu1 %v8401_v36  ;;  %v8448_v34 = vld [vmem:[%s10766_s1 + $0x8a0] sm:$0xff]   ;;  %v8450_v36 = vld [vmem:[%s10766_s1 + $0x8e8] sm:$0xff]  }
  0xe8   :  { %7607 = vmatpush3.bf16.msra.mxu0 %v8402_v37  ;;  %v8451_v37 = vld [vmem:[%s10766_s1 + $0x828] sm:$0xff]  }
  0xe9   :  { %7608 = vmatprep.subr.bf16.mxu0 %v8404_v38  ;;  %v8452_v38 = vld [vmem:[%s10766_s1 + $0x8a8] sm:$0xff]  }
  0xea   :  { %7629 = vmatpush3.bf16.msra.mxu1 %v8403_v39  ;;  %v8453_v39 = vld [vmem:[%s10766_s1 + $0x870] sm:$0xff]  }
  0xeb   :  { %7630 = vmatprep.subr.bf16.mxu1 %v8405_v40  ;;  %v8454_v40 = vld [vmem:[%s10766_s1 + $0x8f0] sm:$0xff]  }
  0xec   :  { %7609 = vmatpush3.bf16.msra.mxu0 %v8406_v42 }
  0xed   :  { %7610 = vmatprep.subr.bf16.mxu0 %v8408_v43  ;;  %v8455_v43 = vld [vmem:[%s10766_s1 + $0x830] sm:$0xff]  }
  0xee   :  { %7631 = vmatpush3.bf16.msra.mxu1 %v8407_v44 }
  0xef   :  { %7632 = vmatprep.subr.bf16.mxu1 %v8409_v45  ;;  %v26_v45 = vld [vmem:[%s10765_s0 + $0x20] sm:$0xff] }
  0xf0   :  { %7611 = vmatpush3.bf16.msra.mxu0 %v8410_v46 }
  0xf1   :  { %7612 = vmatprep.subr.bf16.mxu0 %v8412_v48 }
  0xf2   :  { %7633 = vmatpush3.bf16.msra.mxu1 %v8411_v47 }
  0xf3   :  { %7634 = vmatprep.subr.bf16.mxu1 %v8413_v49  ;;  %v8456_v49 = vld [vmem:[%s10766_s1 + $0x8b0] sm:$0xff]  }
  0xf4   :  { %7613 = vmatpush3.bf16.msra.mxu0 %v8414_v50  ;;  %v8457_v50 = vld [vmem:[%s10766_s1 + $0x878] sm:$0xff]  }
  0xf5   :  { %7614 = vmatprep.subr.bf16.mxu0 %v8416_v52  ;;  %v1395_v52 = vcombine.high %v26_v45, %v26_v45 }
  0xf6   :  { %7635 = vmatpush3.bf16.msra.mxu1 %v8415_v51  ;;  %v7312_v58 = vpop.f32.mrb[0].mxu0  ;;  %v1402_v51 = vrot.slane %v26_v45, %v8918_v41 }
  0xf7   :  { %v7313_v60 = vpop.f32.mrb[1].mxu0  ;;  %7636 = vmatprep.subr.bf16.mxu1 %v8417_v53  ;;  %v7334_v62 = vpop.f32.mrb[0].mxu1 }
  0xf8   :  { %v7314_v63 = vadd.f32 %v7313_v60, %v7312_v58  ;;  %v7315_v0 = vpop.f32.mrb[2].mxu0  ;;  %7615 = vmatpush3.bf16.msra.mxu0 %v8418_v54  ;;  %v7335_v3 = vpop.f32.mrb[1].mxu1  ;;  %v8458_v58 = vld [vmem:[%s10766_s1 + $0x8f8] sm:$0xff]  }
  0xf9   :  { %v7316_v4 = vpop.f32.mrb[3].mxu0  ;;  %7616 = vmatprep.subr.bf16.mxu0 %v8420_v57  ;;  %v7336_v6 = vadd.f32 %v7335_v3, %v7334_v62  ;;  %v7337_v7 = vpop.f32.mrb[2].mxu1  ;;  %v9743_v62 = vrot.slane %v1395_v52, %v8918_v41  ;;  %v8460_v0 = vld [vmem:[%s10766_s1 + $0x8b8] sm:$0xff]   ;;  %v8461_v3 = vld [vmem:[%s10766_s1 + $0x940] sm:$0xff]  }
  0xfa   :  { %v5203_v5 = vadd.f32 %v7314_v63, %v6718_v56  ;;  %7637 = vmatpush3.bf16.msra.mxu1 %v8419_v55  ;;  %v7338_v9 = vpop.f32.mrb[3].mxu1  ;;  %v8463_v7 = vld [vmem:[%s10766_s1 + $0x900] sm:$0xff]   ;;  %v8492_v52 = vld [vmem:[%s10766_s1 + $0x9b8] sm:$0xff]  }
  0xfb   :  { %7638 = vmatprep.subr.bf16.mxu1 %v8421_v59  ;;  %v1410_v59 = vcombine.high %v1402_v51, %v1402_v51  ;;  %v1411_v4 = vcombine.high %v9743_v62, %v9743_v62  ;;  %v8464_v9 = vld [vmem:[%s10766_s1 + $0x980] sm:$0xff]  }
  0xfc   :  { %v9637_v11 = vadd.f32 %v7336_v6, %v5203_v5  ;;  %7617 = vmatpush3.bf16.msra.mxu0 %v8422_v61  ;;  %v8459_v61 = vld [vmem:[%s10766_s1 + $0x838] sm:$0xff]   ;;  %v8462_v6 = vld [vmem:[%s10766_s1 + $0x9c0] sm:$0xff]  }
  0xfd   :  { %7618 = vmatprep.subr.bf16.mxu0 %v8424_v2  ;;  %v1418_v2 = vrot.slane %v1402_v51, %v8918_v41 }
  0xfe   :  { %7639 = vmatpush3.bf16.msra.mxu1 %v8423_v1  ;;  %v1432_v1 = vrot.slane %v1410_v59, %v8918_v41  ;;  %v8498_v59 = vld [vmem:[%s10766_s1 + $0xa48] sm:$0xff]  }
  0xff   :  { %7640 = vmatprep.subr.bf16.mxu1 %v8425_v8  ;;  %v1439_v8 = vrot.slane %v1411_v4, %v8918_v41  ;;  %v8507_v4 = vld [vmem:[%s10766_s1 + $0xad8] sm:$0xff]  }
 0x100   :  { %7619 = vmatpush3.bf16.msra.mxu0 %v8426_v10  ;;  %v1442_v5 = vcombine.high %v1432_v1, %v1432_v1  ;;  %v1440_v10 = vcombine.high %v1418_v2, %v1418_v2 }
 0x101   :  { %7648 = vmatprep.subr.bf16.mxu0 %v8429_v14  ;;  %v8467_v14 = vld [vmem:[%s10766_s1 + $0x908] sm:$0xff]  }
 0x102   :  { %7641 = vmatpush3.bf16.msra.mxu1 %v8427_v12  ;;  %v8466_v12 = vld [vmem:[%s10766_s1 + $0x9c8] sm:$0xff]  }
 0x103   :  { %5761 = vmatmul.mubr.bf16.vlgmr.msra.gmra.mrb[28].mxu0 %v1376_v13  ;;  %7670 = vmatprep.subr.bf16.mxu1 %v8430_v15  ;;  %v1443_v13 = vcombine.high %v1439_v8, %v1439_v8  ;;  %v8468_v15 = vld [vmem:[%s10766_s1 + $0x988] sm:$0xff]  }
 0x104   :  { %7649 = vmatpush3.bf16.msra.mxu0 %v8431_v16  ;;  %5840 = vmatprep.mubr.bf16.mxu0 %v1432_v1  ;;  %v8469_v16 = vld [vmem:[%s10766_s1 + $0x950] sm:$0xff]  }
 0x105   :  { %5801 = vmatmul.mubr.bf16.vlgmr.msra.gmra.mrb[28].mxu1 %v1392_v18  ;;  %7650 = vmatprep.subr.bf16.mxu0 %v8433_v19  ;;  %v8471_v18 = vld [vmem:[%s10766_s1 + $0x910] sm:$0xff]  }
 0x106   :  { %7671 = vmatpush3.bf16.msra.mxu1 %v8432_v17  ;;  %5880 = vmatprep.mubr.bf16.mxu1 %v1442_v5  ;;  %v8470_v17 = vld [vmem:[%s10766_s1 + $0x9d0] sm:$0xff]   ;;  %v8508_v5 = vld [vmem:[%s10766_s1 + $0xa18] sm:$0xff]  }
 0x107   :  { %7672 = vmatprep.subr.bf16.mxu1 %v8434_v20  ;;  %v8472_v19 = vld [vmem:[%s10766_s1 + $0x990] sm:$0xff]   ;;  %v8473_v20 = vld [vmem:[%s10766_s1 + $0x958] sm:$0xff]  }
 0x108   :  { %7651 = vmatpush3.bf16.msra.mxu0 %v8435_v21  ;;  %v8474_v21 = vld [vmem:[%s10766_s1 + $0x9d8] sm:$0xff]   ;;  %v8504_v1 = vld [vmem:[%s10766_s1 + $0xa10] sm:$0xff]  }
 0x109   :  { %7652 = vmatprep.subr.bf16.mxu0 %v8437_v23  ;;  %v8476_v23 = vld [vmem:[%s10766_s1 + $0x998] sm:$0xff]  }
 0x10a   :  { %7673 = vmatpush3.bf16.msra.mxu1 %v8436_v22  ;;  %v8475_v22 = vld [vmem:[%s10766_s1 + $0x918] sm:$0xff]  }
 0x10b   :  { %7674 = vmatprep.subr.bf16.mxu1 %v8438_v24  ;;  %v8477_v24 = vld [vmem:[%s10766_s1 + $0x960] sm:$0xff]  }
 0x10c   :  { %7653 = vmatpush3.bf16.msra.mxu0 %v8439_v25  ;;  %v8478_v25 = vld [vmem:[%s10766_s1 + $0x9e0] sm:$0xff]  }
 0x10d   :  { %7654 = vmatprep.subr.bf16.mxu0 %v8441_v27  ;;  %v8480_v27 = vld [vmem:[%s10766_s1 + $0x9a0] sm:$0xff]  }
 0x10e   :  { %7675 = vmatpush3.bf16.msra.mxu1 %v8440_v26  ;;  %v8479_v26 = vld [vmem:[%s10766_s1 + $0x920] sm:$0xff]  }
 0x10f   :  { %7676 = vmatprep.subr.bf16.mxu1 %v8442_v28  ;;  %v8481_v28 = vld [vmem:[%s10766_s1 + $0x968] sm:$0xff]  }
 0x110   :  { %7655 = vmatpush3.bf16.msra.mxu0 %v8443_v29  ;;  %v8482_v29 = vld [vmem:[%s10766_s1 + $0x9e8] sm:$0xff]  }
 0x111   :  { %7656 = vmatprep.subr.bf16.mxu0 %v8445_v31  ;;  %v8484_v31 = vld [vmem:[%s10766_s1 + $0x9a8] sm:$0xff]  }
 0x112   :  { %7677 = vmatpush3.bf16.msra.mxu1 %v8444_v30  ;;  %v8483_v30 = vld [vmem:[%s10766_s1 + $0x928] sm:$0xff]  }
 0x113   :  { %7678 = vmatprep.subr.bf16.mxu1 %v8446_v32  ;;  %v8485_v32 = vld [vmem:[%s10766_s1 + $0x970] sm:$0xff]  }
 0x114   :  { %7657 = vmatpush3.bf16.msra.mxu0 %v8447_v33 }
 0x115   :  { %7658 = vmatprep.subr.bf16.mxu0 %v8449_v35 }
 0x116   :  { %7679 = vmatpush3.bf16.msra.mxu1 %v8448_v34  ;;  %v7356_v42 = vpop.f32.mrb[4].mxu0  ;;  %v8486_v34 = vld [vmem:[%s10766_s1 + $0x9f0] sm:$0xff]  }
 0x117   :  { %v7357_v44 = vpop.f32.mrb[5].mxu0  ;;  %7680 = vmatprep.subr.bf16.mxu1 %v8450_v36  ;;  %v7378_v46 = vpop.f32.mrb[4].mxu1  ;;  %v8487_v36 = vld [vmem:[%s10766_s1 + $0x930] sm:$0xff]  }
 0x118   :  { %v7358_v47 = vadd.f32 %v7357_v44, %v7356_v42  ;;  %v7359_v48 = vpop.f32.mrb[6].mxu0  ;;  %7659 = vmatpush3.bf16.msra.mxu0 %v8451_v37  ;;  %v7379_v53 = vpop.f32.mrb[5].mxu1  ;;  %v8489_v42 = vld [vmem:[%s10766_s1 + $0x978] sm:$0xff]  }
 0x119   :  { %v7360_v54 = vpop.f32.mrb[7].mxu0  ;;  %7660 = vmatprep.subr.bf16.mxu0 %v8453_v39  ;;  %v7380_v56 = vadd.f32 %v7379_v53, %v7378_v46  ;;  %v7381_v57 = vpop.f32.mrb[6].mxu1  ;;  %v8490_v48 = vld [vmem:[%s10766_s1 + $0x9f8] sm:$0xff]   ;;  %v1425_v53 = vrot.slane %v9743_v62, %v8918_v41  ;;  %v8501_v62 = vld [vmem:[%s10766_s1 + $0xa88] sm:$0xff]  }
 0x11a   :  { %v5283_v55 = vadd.f32 %v7358_v47, %v9637_v11  ;;  %7681 = vmatpush3.bf16.msra.mxu1 %v8452_v38  ;;  %v7382_v60 = vpop.f32.mrb[7].mxu1  ;;  %v8465_v11 = vld [vmem:[%s10766_s1 + $0x948] sm:$0xff]   ;;  %v8494_v54 = vld [vmem:[%s10766_s1 + $0xa40] sm:$0xff]  }
 0x11b   :  { %7682 = vmatprep.subr.bf16.mxu1 %v8454_v40  ;;  %v8488_v40 = vld [vmem:[%s10766_s1 + $0x9b0] sm:$0xff]   ;;  %v8497_v57 = vld [vmem:[%s10766_s1 + $0xa80] sm:$0xff]   ;;  %v8499_v60 = vld [vmem:[%s10766_s1 + $0xac8] sm:$0xff]  }
 0x11c   :  { %v9745_v63 = vadd.f32 %v7380_v56, %v5283_v55  ;;  %7661 = vmatpush3.bf16.msra.mxu0 %v8455_v43  ;;  %v8495_v55 = vld [vmem:[%s10766_s1 + $0xac0] sm:$0xff]  }
 0x11d   :  { %7662 = vmatprep.subr.bf16.mxu0 %v8457_v50  ;;  %v8491_v50 = vld [vmem:[%s10766_s1 + $0x938] sm:$0xff]   ;;  %v8496_v56 = vld [vmem:[%s10766_s1 + $0xa00] sm:$0xff]  }
 0x11e   :  { %7683 = vmatpush3.bf16.msra.mxu1 %v8456_v49 }
 0x11f   :  { %7684 = vmatprep.subr.bf16.mxu1 %v8458_v58  ;;  %v1441_v58 = vcombine.high %v1425_v53, %v1425_v53 }
 0x120   :  { %7663 = vmatpush3.bf16.msra.mxu0 %v8459_v61  ;;  %v8500_v61 = vld [vmem:[%s10766_s1 + $0xa08] sm:$0xff]  }
 0x121   :  { %7692 = vmatprep.subr.bf16.mxu0 %v8461_v3  ;;  %v8506_v3 = vld [vmem:[%s10766_s1 + $0xa58] sm:$0xff]  }
 0x122   :  { %7685 = vmatpush3.bf16.msra.mxu1 %v8460_v0  ;;  %v8503_v0 = vld [vmem:[%s10766_s1 + $0xad0] sm:$0xff]  }
 0x123   :  { %5841 = vmatmul.mubr.bf16.vlgmr.msra.gmra.mrb[32].mxu0 %v1418_v2  ;;  %7714 = vmatprep.subr.bf16.mxu1 %v8462_v6  ;;  %v8505_v2 = vld [vmem:[%s10766_s1 + $0xa90] sm:$0xff]   ;;  %v8509_v6 = vld [vmem:[%s10766_s1 + $0xa98] sm:$0xff]  }
 0x124   :  { %7693 = vmatpush3.bf16.msra.mxu0 %v8463_v7  ;;  %5920 = vmatprep.mubr.bf16.mxu0 %v1439_v8  ;;  %v8510_v7 = vld [vmem:[%s10766_s1 + $0xa60] sm:$0xff]  }
 0x125   :  { %5881 = vmatmul.mubr.bf16.vlgmr.msra.gmra.mrb[32].mxu1 %v1440_v10  ;;  %7694 = vmatprep.subr.bf16.mxu0 %v8465_v11  ;;  %v8511_v8 = vld [vmem:[%s10766_s1 + $0xae0] sm:$0xff]   ;;  %v8514_v11 = vld [vmem:[%s10766_s1 + $0xa68] sm:$0xff]  }
 0x126   :  { %7715 = vmatpush3.bf16.msra.mxu1 %v8464_v9  ;;  %5960 = vmatprep.mubr.bf16.mxu1 %v1443_v13  ;;  %v8512_v9 = vld [vmem:[%s10766_s1 + $0xa20] sm:$0xff]   ;;  %v8516_v13 = vld [vmem:[%s10766_s1 + $0xa28] sm:$0xff]  }
 0x127   :  { %7716 = vmatprep.subr.bf16.mxu1 %v8466_v12  ;;  %v8513_v10 = vld [vmem:[%s10766_s1 + $0xaa0] sm:$0xff]   ;;  %v8515_v12 = vld [vmem:[%s10766_s1 + $0xae8] sm:$0xff]  }
 0x128   :  { %7695 = vmatpush3.bf16.msra.mxu0 %v8467_v14  ;;  %v8517_v14 = vld [vmem:[%s10766_s1 + $0xaa8] sm:$0xff]  }
 0x129   :  { %7696 = vmatprep.subr.bf16.mxu0 %v8469_v16 }
 0x12a   :  { %7717 = vmatpush3.bf16.msra.mxu1 %v8468_v15  ;;  %v8518_v15 = vld [vmem:[%s10766_s1 + $0xa70] sm:$0xff]  }
 0x12b   :  { %7718 = vmatprep.subr.bf16.mxu1 %v8470_v17  ;;  %v8519_v17 = vld [vmem:[%s10766_s1 + $0xaf0] sm:$0xff]  }
 0x12c   :  { %7697 = vmatpush3.bf16.msra.mxu0 %v8471_v18 }
 0x12d   :  { %7698 = vmatprep.subr.bf16.mxu0 %v8473_v20 }
 0x12e   :  { %7719 = vmatpush3.bf16.msra.mxu1 %v8472_v19  ;;  %v8520_v19 = vld [vmem:[%s10766_s1 + $0xa30] sm:$0xff]  }
 0x12f   :  { %7720 = vmatprep.subr.bf16.mxu1 %v8474_v21 }
 0x130   :  { %7699 = vmatpush3.bf16.msra.mxu0 %v8475_v22 }
 0x131   :  { %7700 = vmatprep.subr.bf16.mxu0 %v8477_v24  ;;  %v8522_v24 = vld [vmem:[%s10766_s1 + $0xa78] sm:$0xff]  }
 0x132   :  { %7721 = vmatpush3.bf16.msra.mxu1 %v8476_v23  ;;  %v8521_v23 = vld [vmem:[%s10766_s1 + $0xab0] sm:$0xff]  }
 0x133   :  { %7722 = vmatprep.subr.bf16.mxu1 %v8478_v25  ;;  %v27_v25 = vld [vmem:[%s10765_s0 + $0x28] sm:$0xff] }
 0x134   :  { %7701 = vmatpush3.bf16.msra.mxu0 %v8479_v26 }
 0x135   :  { %7702 = vmatprep.subr.bf16.mxu0 %v8481_v28  ;;  %v1451_v28 = vrot.slane %v27_v25, %v8918_v41 }
 0x136   :  { %7723 = vmatpush3.bf16.msra.mxu1 %v8480_v27  ;;  %v7400_v33 = vpop.f32.mrb[8].mxu0 }
 0x137   :  { %v7401_v35 = vpop.f32.mrb[9].mxu0  ;;  %7724 = vmatprep.subr.bf16.mxu1 %v8482_v29  ;;  %v1444_v29 = vcombine.high %v27_v25, %v27_v25  ;;  %v8556_v25 = vld [vmem:[%s10766_s1 + $0xb38] sm:$0xff]  }
 0x138   :  { %v7422_v37 = vpop.f32.mrb[8].mxu1  ;;  %v7402_v38 = vadd.f32 %v7401_v35, %v7400_v33  ;;  %v7403_v39 = vpop.f32.mrb[10].mxu0  ;;  %7703 = vmatpush3.bf16.msra.mxu0 %v8483_v30  ;;  %v8523_v33 = vld [vmem:[%s10766_s1 + $0xaf8] sm:$0xff]  }
 0x139   :  { %v7423_v43 = vpop.f32.mrb[9].mxu1  ;;  %v7404_v44 = vpop.f32.mrb[11].mxu0  ;;  %7704 = vmatprep.subr.bf16.mxu0 %v8485_v32  ;;  %v8524_v35 = vld [vmem:[%s10766_s1 + $0xa38] sm:$0xff]  }
 0x13a   :  { %v5363_v45 = vadd.f32 %v7402_v38, %v9745_v63  ;;  %v7424_v46 = vadd.f32 %v7423_v43, %v7422_v37  ;;  %v7425_v47 = vpop.f32.mrb[10].mxu1  ;;  %7725 = vmatpush3.bf16.msra.mxu1 %v8484_v31  ;;  %v8502_v63 = vld [vmem:[%s10766_s1 + $0xa50] sm:$0xff]   ;;  %v9955_v37 = vrot.slane %v1444_v29, %v8918_v41  ;;  %v8525_v39 = vld [vmem:[%s10766_s1 + $0xab8] sm:$0xff]   ;;  %v8526_v43 = vld [vmem:[%s10766_s1 + $0xb40] sm:$0xff]  }
 0x13b   :  { %v7426_v49 = vpop.f32.mrb[11].mxu1  ;;  %7726 = vmatprep.subr.bf16.mxu1 %v8486_v34  ;;  %v8528_v47 = vld [vmem:[%s10766_s1 + $0xb00] sm:$0xff]  }
 0x13c   :  { %v9849_v51 = vadd.f32 %v7424_v46, %v5363_v45  ;;  %7705 = vmatpush3.bf16.msra.mxu0 %v8487_v36  ;;  %v1459_v36 = vcombine.high %v1451_v28, %v1451_v28  ;;  %v1460_v44 = vcombine.high %v9955_v37, %v9955_v37  ;;  %v8527_v45 = vld [vmem:[%s10766_s1 + $0xbc0] sm:$0xff]  }
 0x13d   :  { %7706 = vmatprep.subr.bf16.mxu0 %v8489_v42  ;;  %v1467_v42 = vrot.slane %v1451_v28, %v8918_v41  ;;  %v8529_v49 = vld [vmem:[%s10766_s1 + $0xb80] sm:$0xff]   ;;  %v1474_v28 = vrot.slane %v9955_v37, %v8918_v41  ;;  %v8566_v37 = vld [vmem:[%s10766_s1 + $0xc88] sm:$0xff]  }
 0x13e   :  { %7727 = vmatpush3.bf16.msra.mxu1 %v8488_v40  ;;  %v1481_v40 = vrot.slane %v1459_v36, %v8918_v41  ;;  %v8559_v29 = vld [vmem:[%s10766_s1 + $0xc40] sm:$0xff]   ;;  %v8565_v36 = vld [vmem:[%s10766_s1 + $0xc08] sm:$0xff]  }
 0x13f   :  { %7728 = vmatprep.subr.bf16.mxu1 %v8490_v48  ;;  %v1488_v48 = vrot.slane %v1460_v44, %v8918_v41  ;;  %v8572_v44 = vld [vmem:[%s10766_s1 + $0xcd8] sm:$0xff]  }
 0x140   :  { %7707 = vmatpush3.bf16.msra.mxu0 %v8491_v50  ;;  %v1491_v46 = vcombine.high %v1481_v40, %v1481_v40  ;;  %v1489_v50 = vcombine.high %v1467_v42, %v1467_v42 }
 0x141   :  { %7736 = vmatprep.subr.bf16.mxu0 %v8494_v54  ;;  %v8532_v54 = vld [vmem:[%s10766_s1 + $0xb08] sm:$0xff]  }
 0x142   :  { %7729 = vmatpush3.bf16.msra.mxu1 %v8492_v52  ;;  %v8531_v52 = vld [vmem:[%s10766_s1 + $0xbc8] sm:$0xff]  }
 0x143   :  { %5921 = vmatmul.mubr.bf16.vlgmr.msra.gmra.mrb[36].mxu0 %v1425_v53  ;;  %7758 = vmatprep.subr.bf16.mxu1 %v8495_v55  ;;  %v1492_v53 = vcombine.high %v1488_v48, %v1488_v48  ;;  %v8533_v55 = vld [vmem:[%s10766_s1 + $0xb88] sm:$0xff]  }
 0x144   :  { %7737 = vmatpush3.bf16.msra.mxu0 %v8496_v56  ;;  %6000 = vmatprep.mubr.bf16.mxu0 %v1481_v40  ;;  %v8534_v56 = vld [vmem:[%s10766_s1 + $0xb50] sm:$0xff]  }
 0x145   :  { %5961 = vmatmul.mubr.bf16.vlgmr.msra.gmra.mrb[36].mxu1 %v1441_v58  ;;  %7738 = vmatprep.subr.bf16.mxu0 %v8498_v59  ;;  %v8536_v58 = vld [vmem:[%s10766_s1 + $0xb10] sm:$0xff]  }
 0x146   :  { %7759 = vmatpush3.bf16.msra.mxu1 %v8497_v57  ;;  %6040 = vmatprep.mubr.bf16.mxu1 %v1491_v46  ;;  %v8535_v57 = vld [vmem:[%s10766_s1 + $0xbd0] sm:$0xff]   ;;  %v8574_v46 = vld [vmem:[%s10766_s1 + $0xc98] sm:$0xff]  }
 0x147   :  { %7760 = vmatprep.subr.bf16.mxu1 %v8499_v60  ;;  %v8537_v59 = vld [vmem:[%s10766_s1 + $0xb90] sm:$0xff]   ;;  %v8538_v60 = vld [vmem:[%s10766_s1 + $0xb58] sm:$0xff]  }
 0x148   :  { %7739 = vmatpush3.bf16.msra.mxu0 %v8500_v61  ;;  %v8539_v61 = vld [vmem:[%s10766_s1 + $0xbd8] sm:$0xff]   ;;  %v8569_v40 = vld [vmem:[%s10766_s1 + $0xc10] sm:$0xff]  }
 0x149   :  { %7740 = vmatprep.subr.bf16.mxu0 %v8502_v63  ;;  %v8541_v63 = vld [vmem:[%s10766_s1 + $0xb98] sm:$0xff]  }
 0x14a   :  { %7761 = vmatpush3.bf16.msra.mxu1 %v8501_v62  ;;  %v8540_v62 = vld [vmem:[%s10766_s1 + $0xb18] sm:$0xff]  }
 0x14b   :  { %7762 = vmatprep.subr.bf16.mxu1 %v8503_v0  ;;  %v8542_v0 = vld [vmem:[%s10766_s1 + $0xb60] sm:$0xff]  }
 0x14c   :  { %7741 = vmatpush3.bf16.msra.mxu0 %v8504_v1  ;;  %v8543_v1 = vld [vmem:[%s10766_s1 + $0xbe0] sm:$0xff]  }
 0x14d   :  { %7742 = vmatprep.subr.bf16.mxu0 %v8506_v3  ;;  %v8545_v3 = vld [vmem:[%s10766_s1 + $0xba0] sm:$0xff]  }
 0x14e   :  { %7763 = vmatpush3.bf16.msra.mxu1 %v8505_v2  ;;  %v8544_v2 = vld [vmem:[%s10766_s1 + $0xb20] sm:$0xff]  }
 0x14f   :  { %7764 = vmatprep.subr.bf16.mxu1 %v8507_v4  ;;  %v8546_v4 = vld [vmem:[%s10766_s1 + $0xb68] sm:$0xff]  }
 0x150   :  { %7743 = vmatpush3.bf16.msra.mxu0 %v8508_v5  ;;  %v8547_v5 = vld [vmem:[%s10766_s1 + $0xbe8] sm:$0xff]  }
 0x151   :  { %7744 = vmatprep.subr.bf16.mxu0 %v8510_v7  ;;  %v8549_v7 = vld [vmem:[%s10766_s1 + $0xba8] sm:$0xff]  }
 0x152   :  { %7765 = vmatpush3.bf16.msra.mxu1 %v8509_v6  ;;  %v8548_v6 = vld [vmem:[%s10766_s1 + $0xb28] sm:$0xff]  }
 0x153   :  { %7766 = vmatprep.subr.bf16.mxu1 %v8511_v8  ;;  %v8550_v8 = vld [vmem:[%s10766_s1 + $0xb70] sm:$0xff]  }
 0x154   :  { %7745 = vmatpush3.bf16.msra.mxu0 %v8512_v9 }
 0x155   :  { %7746 = vmatprep.subr.bf16.mxu0 %v8514_v11 }
 0x156   :  { %7767 = vmatpush3.bf16.msra.mxu1 %v8513_v10  ;;  %v7444_v16 = vpop.f32.mrb[12].mxu0  ;;  %v8551_v10 = vld [vmem:[%s10766_s1 + $0xbf0] sm:$0xff]  }
 0x157   :  { %v7445_v18 = vpop.f32.mrb[13].mxu0  ;;  %7768 = vmatprep.subr.bf16.mxu1 %v8515_v12  ;;  %v8552_v12 = vld [vmem:[%s10766_s1 + $0xb30] sm:$0xff]  }
 0x158   :  { %v7466_v20 = vpop.f32.mrb[12].mxu1  ;;  %v7446_v21 = vadd.f32 %v7445_v18, %v7444_v16  ;;  %v7447_v22 = vpop.f32.mrb[14].mxu0  ;;  %7747 = vmatpush3.bf16.msra.mxu0 %v8516_v13  ;;  %v8553_v16 = vld [vmem:[%s10766_s1 + $0xbb0] sm:$0xff]  }
 0x159   :  { %v7467_v26 = vpop.f32.mrb[13].mxu1  ;;  %v7448_v27 = vpop.f32.mrb[15].mxu0  ;;  %7748 = vmatprep.subr.bf16.mxu0 %v8518_v15 }
 0x15a   :  { %v5443_v30 = vadd.f32 %v7446_v21, %v9849_v51  ;;  %v7468_v31 = vadd.f32 %v7467_v26, %v7466_v20  ;;  %v7469_v32 = vpop.f32.mrb[14].mxu1  ;;  %7769 = vmatpush3.bf16.msra.mxu1 %v8517_v14  ;;  %v8530_v51 = vld [vmem:[%s10766_s1 + $0xb48] sm:$0xff]   ;;  %v8557_v27 = vld [vmem:[%s10766_s1 + $0xbb8] sm:$0xff]  }
 0x15b   :  { %v7470_v34 = vpop.f32.mrb[15].mxu1  ;;  %7770 = vmatprep.subr.bf16.mxu1 %v8519_v17  ;;  %v8554_v17 = vld [vmem:[%s10766_s1 + $0xb78] sm:$0xff]   ;;  %v8562_v32 = vld [vmem:[%s10766_s1 + $0xc80] sm:$0xff]  }
 0x15c   :  { %v9957_v38 = vadd.f32 %v7468_v31, %v5443_v30  ;;  %7749 = vmatpush3.bf16.msra.mxu0 %v8520_v19  ;;  %v8560_v30 = vld [vmem:[%s10766_s1 + $0xcc0] sm:$0xff]   ;;  %v8563_v34 = vld [vmem:[%s10766_s1 + $0xc48] sm:$0xff]  }
 0x15d   :  { %7750 = vmatprep.subr.bf16.mxu0 %v8522_v24  ;;  %v8561_v31 = vld [vmem:[%s10766_s1 + $0xc00] sm:$0xff]  }
 0x15e   :  { %7771 = vmatpush3.bf16.msra.mxu1 %v8521_v23  ;;  %v8555_v23 = vld [vmem:[%s10766_s1 + $0xbf8] sm:$0xff]  }
 0x15f   :  { %7772 = vmatprep.subr.bf16.mxu1 %v8523_v33  ;;  %v1490_v33 = vcombine.high %v1474_v28, %v1474_v28 }
 0x160   :  { %7751 = vmatpush3.bf16.msra.mxu0 %v8524_v35  ;;  %v8564_v35 = vld [vmem:[%s10766_s1 + $0xcc8] sm:$0xff]  }
 0x161   :  { %7780 = vmatprep.subr.bf16.mxu0 %v8526_v43  ;;  %v8571_v43 = vld [vmem:[%s10766_s1 + $0xc58] sm:$0xff]  }
 0x162   :  { %7773 = vmatpush3.bf16.msra.mxu1 %v8525_v39  ;;  %v8568_v39 = vld [vmem:[%s10766_s1 + $0xcd0] sm:$0xff]  }
 0x163   :  { %6001 = vmatmul.mubr.bf16.vlgmr.msra.gmra.mrb[40].mxu0 %v1467_v42  ;;  %7802 = vmatprep.subr.bf16.mxu1 %v8527_v45  ;;  %v8570_v42 = vld [vmem:[%s10766_s1 + $0xc90] sm:$0xff]   ;;  %v8573_v45 = vld [vmem:[%s10766_s1 + $0xc18] sm:$0xff]  }
 0x164   :  { %7781 = vmatpush3.bf16.msra.mxu0 %v8528_v47  ;;  %6080 = vmatprep.mubr.bf16.mxu0 %v1488_v48  ;;  %v8575_v47 = vld [vmem:[%s10766_s1 + $0xc60] sm:$0xff]  }
 0x165   :  { %6041 = vmatmul.mubr.bf16.vlgmr.msra.gmra.mrb[40].mxu1 %v1489_v50  ;;  %7782 = vmatprep.subr.bf16.mxu0 %v8530_v51  ;;  %v8576_v48 = vld [vmem:[%s10766_s1 + $0xce0] sm:$0xff]   ;;  %v8579_v51 = vld [vmem:[%s10766_s1 + $0xc68] sm:$0xff]  }
 0x166   :  { %7803 = vmatpush3.bf16.msra.mxu1 %v8529_v49  ;;  %6120 = vmatprep.mubr.bf16.mxu1 %v1492_v53  ;;  %v8577_v49 = vld [vmem:[%s10766_s1 + $0xc20] sm:$0xff]   ;;  %v8581_v53 = vld [vmem:[%s10766_s1 + $0xc28] sm:$0xff]  }
 0x167   :  { %7804 = vmatprep.subr.bf16.mxu1 %v8531_v52  ;;  %v8578_v50 = vld [vmem:[%s10766_s1 + $0xca0] sm:$0xff]   ;;  %v8580_v52 = vld [vmem:[%s10766_s1 + $0xce8] sm:$0xff]  }
 0x168   :  { %7783 = vmatpush3.bf16.msra.mxu0 %v8532_v54  ;;  %v8582_v54 = vld [vmem:[%s10766_s1 + $0xca8] sm:$0xff]  }
 0x169   :  { %7784 = vmatprep.subr.bf16.mxu0 %v8534_v56 }
 0x16a   :  { %7805 = vmatpush3.bf16.msra.mxu1 %v8533_v55  ;;  %v8583_v55 = vld [vmem:[%s10766_s1 + $0xc70] sm:$0xff]  }
 0x16b   :  { %7806 = vmatprep.subr.bf16.mxu1 %v8535_v57  ;;  %v8584_v57 = vld [vmem:[%s10766_s1 + $0xcf0] sm:$0xff]  }
 0x16c   :  { %7785 = vmatpush3.bf16.msra.mxu0 %v8536_v58 }
 0x16d   :  { %7786 = vmatprep.subr.bf16.mxu0 %v8538_v60 }
 0x16e   :  { %7807 = vmatpush3.bf16.msra.mxu1 %v8537_v59  ;;  %v8585_v59 = vld [vmem:[%s10766_s1 + $0xc30] sm:$0xff]  }
 0x16f   :  { %7808 = vmatprep.subr.bf16.mxu1 %v8539_v61 }
 0x170   :  { %7787 = vmatpush3.bf16.msra.mxu0 %v8540_v62 }
 0x171   :  { %7788 = vmatprep.subr.bf16.mxu0 %v8542_v0 }
 0x172   :  { %7809 = vmatpush3.bf16.msra.mxu1 %v8541_v63  ;;  %v8586_v63 = vld [vmem:[%s10766_s1 + $0xcb0] sm:$0xff]  }
 0x173   :  { %7810 = vmatprep.subr.bf16.mxu1 %v8543_v1 }
 0x174   :  { %7789 = vmatpush3.bf16.msra.mxu0 %v8544_v2  ;;  %v8587_v2 = vld [vmem:[%s10766_s1 + $0xc78] sm:$0xff]  }
 0x175   :  { %7790 = vmatprep.subr.bf16.mxu0 %v8546_v4 }
 0x176   :  { %7811 = vmatpush3.bf16.msra.mxu1 %v8545_v3  ;;  %v7488_v9 = vpop.f32.mrb[16].mxu0  ;;  %v28_v3 = vld [vmem:[%s10765_s0 + $0x30] sm:$0xff] }
 0x177   :  { %v7489_v11 = vpop.f32.mrb[17].mxu0  ;;  %7812 = vmatprep.subr.bf16.mxu1 %v8547_v5 }
 0x178   :  { %v7510_v13 = vpop.f32.mrb[16].mxu1  ;;  %v7490_v14 = vadd.f32 %v7489_v11, %v7488_v9  ;;  %v7491_v15 = vpop.f32.mrb[18].mxu0  ;;  %7791 = vmatpush3.bf16.msra.mxu0 %v8548_v6  ;;  %v1493_v9 = vcombine.high %v28_v3, %v28_v3  ;;  %v8589_v11 = vld [vmem:[%s10766_s1 + $0xc38] sm:$0xff]  }
 0x179   :  { %v7511_v18 = vpop.f32.mrb[17].mxu1  ;;  %v7492_v19 = vpop.f32.mrb[19].mxu0  ;;  %7792 = vmatprep.subr.bf16.mxu0 %v8550_v8  ;;  %v1500_v8 = vrot.slane %v28_v3, %v8918_v41  ;;  %v8622_v3 = vld [vmem:[%s10766_s1 + $0xdb8] sm:$0xff]  }
 0x17a   :  { %v5523_v20 = vadd.f32 %v7490_v14, %v9957_v38  ;;  %v7512_v21 = vadd.f32 %v7511_v18, %v7510_v13  ;;  %v7513_v22 = vpop.f32.mrb[18].mxu1  ;;  %7813 = vmatpush3.bf16.msra.mxu1 %v8549_v7  ;;  %v8567_v38 = vld [vmem:[%s10766_s1 + $0xc50] sm:$0xff]   ;;  %v8588_v7 = vld [vmem:[%s10766_s1 + $0xcf8] sm:$0xff]   ;;  %v10172_v15 = vrot.slane %v1493_v9, %v8918_v41  ;;  %v8592_v19 = vld [vmem:[%s10766_s1 + $0xdc0] sm:$0xff]  }
 0x17b   :  { %v7514_v24 = vpop.f32.mrb[19].mxu1  ;;  %7814 = vmatprep.subr.bf16.mxu1 %v8551_v10  ;;  %v8590_v13 = vld [vmem:[%s10766_s1 + $0xcb8] sm:$0xff]   ;;  %v1508_v14 = vcombine.high %v1500_v8, %v1500_v8 }
 0x17c   :  { %v10061_v26 = vadd.f32 %v7512_v21, %v5523_v20  ;;  %7793 = vmatpush3.bf16.msra.mxu0 %v8552_v12  ;;  %v1509_v20 = vcombine.high %v10172_v15, %v10172_v15  ;;  %v8593_v21 = vld [vmem:[%s10766_s1 + $0xd00] sm:$0xff]  }
 0x17d   :  { %7794 = vmatprep.subr.bf16.mxu0 %v8554_v17  ;;  %v8591_v17 = vld [vmem:[%s10766_s1 + $0xd40] sm:$0xff]   ;;  %v1530_v18 = vrot.slane %v1508_v14, %v8918_v41  ;;  %v8632_v14 = vld [vmem:[%s10766_s1 + $0xe50] sm:$0xff]  }
 0x17e   :  { %7815 = vmatpush3.bf16.msra.mxu1 %v8553_v16  ;;  %v1516_v16 = vrot.slane %v1500_v8, %v8918_v41  ;;  %v1537_v24 = vrot.slane %v1509_v20, %v8918_v41  ;;  %v8627_v8 = vld [vmem:[%s10766_s1 + $0xe80] sm:$0xff]   ;;  %v8638_v20 = vld [vmem:[%s10766_s1 + $0xe18] sm:$0xff]  }
 0x17f   :  { %7816 = vmatprep.subr.bf16.mxu1 %v8555_v23  ;;  %v1540_v22 = vcombine.high %v1530_v18, %v1530_v18  ;;  %v8594_v23 = vld [vmem:[%s10766_s1 + $0xd80] sm:$0xff]  }
 0x180   :  { %7795 = vmatpush3.bf16.msra.mxu0 %v8556_v25  ;;  %v1538_v25 = vcombine.high %v1516_v16, %v1516_v16 }
 0x181   :  { %7824 = vmatprep.subr.bf16.mxu0 %v8559_v29  ;;  %v8597_v29 = vld [vmem:[%s10766_s1 + $0xd08] sm:$0xff]  }
 0x182   :  { %7817 = vmatpush3.bf16.msra.mxu1 %v8557_v27  ;;  %v8596_v27 = vld [vmem:[%s10766_s1 + $0xdc8] sm:$0xff]  }
 0x183   :  { %6081 = vmatmul.mubr.bf16.vlgmr.msra.gmra.mrb[44].mxu0 %v1474_v28  ;;  %7846 = vmatprep.subr.bf16.mxu1 %v8560_v30  ;;  %v1541_v28 = vcombine.high %v1537_v24, %v1537_v24  ;;  %v8598_v30 = vld [vmem:[%s10766_s1 + $0xd88] sm:$0xff]  }
 0x184   :  { %7825 = vmatpush3.bf16.msra.mxu0 %v8561_v31  ;;  %6160 = vmatprep.mubr.bf16.mxu0 %v1530_v18  ;;  %v8599_v31 = vld [vmem:[%s10766_s1 + $0xd50] sm:$0xff]   ;;  %v8636_v18 = vld [vmem:[%s10766_s1 + $0xe58] sm:$0xff]  }
 0x185   :  { %6121 = vmatmul.mubr.bf16.vlgmr.msra.gmra.mrb[44].mxu1 %v1490_v33  ;;  %7826 = vmatprep.subr.bf16.mxu0 %v8563_v34  ;;  %v8601_v33 = vld [vmem:[%s10766_s1 + $0xd10] sm:$0xff]  }
 0x186   :  { %7847 = vmatpush3.bf16.msra.mxu1 %v8562_v32  ;;  %6200 = vmatprep.mubr.bf16.mxu1 %v1540_v22  ;;  %v8600_v32 = vld [vmem:[%s10766_s1 + $0xdd0] sm:$0xff]   ;;  %v8640_v22 = vld [vmem:[%s10766_s1 + $0xe60] sm:$0xff]  }
 0x187   :  { %7848 = vmatprep.subr.bf16.mxu1 %v8564_v35  ;;  %v8602_v34 = vld [vmem:[%s10766_s1 + $0xd90] sm:$0xff]   ;;  %v8603_v35 = vld [vmem:[%s10766_s1 + $0xd58] sm:$0xff]  }
 0x188   :  { %7827 = vmatpush3.bf16.msra.mxu0 %v8565_v36  ;;  %v8604_v36 = vld [vmem:[%s10766_s1 + $0xdd8] sm:$0xff]  }
 0x189   :  { %7828 = vmatprep.subr.bf16.mxu0 %v8567_v38  ;;  %v8606_v38 = vld [vmem:[%s10766_s1 + $0xd98] sm:$0xff]  }
 0x18a   :  { %7849 = vmatpush3.bf16.msra.mxu1 %v8566_v37  ;;  %v8605_v37 = vld [vmem:[%s10766_s1 + $0xd18] sm:$0xff]  }
 0x18b   :  { %7850 = vmatprep.subr.bf16.mxu1 %v8568_v39  ;;  %v8607_v39 = vld [vmem:[%s10766_s1 + $0xd60] sm:$0xff]  }
 0x18c   :  { %7829 = vmatpush3.bf16.msra.mxu0 %v8569_v40  ;;  %v8608_v40 = vld [vmem:[%s10766_s1 + $0xde0] sm:$0xff]  }
 0x18d   :  { %7830 = vmatprep.subr.bf16.mxu0 %v8571_v43  ;;  %v8610_v43 = vld [vmem:[%s10766_s1 + $0xda0] sm:$0xff]  }
 0x18e   :  { %7851 = vmatpush3.bf16.msra.mxu1 %v8570_v42  ;;  %v8609_v42 = vld [vmem:[%s10766_s1 + $0xd20] sm:$0xff]  }
 0x18f   :  { %7852 = vmatprep.subr.bf16.mxu1 %v8572_v44  ;;  %v8611_v44 = vld [vmem:[%s10766_s1 + $0xd68] sm:$0xff]  }
 0x190   :  { %7831 = vmatpush3.bf16.msra.mxu0 %v8573_v45  ;;  %v8612_v45 = vld [vmem:[%s10766_s1 + $0xde8] sm:$0xff]  }
 0x191   :  { %7832 = vmatprep.subr.bf16.mxu0 %v8575_v47  ;;  %v8614_v47 = vld [vmem:[%s10766_s1 + $0xda8] sm:$0xff]  }
 0x192   :  { %7853 = vmatpush3.bf16.msra.mxu1 %v8574_v46  ;;  %v8613_v46 = vld [vmem:[%s10766_s1 + $0xd28] sm:$0xff]  }
 0x193   :  { %7854 = vmatprep.subr.bf16.mxu1 %v8576_v48  ;;  %v8615_v48 = vld [vmem:[%s10766_s1 + $0xd70] sm:$0xff]  }
 0x194   :  { %7833 = vmatpush3.bf16.msra.mxu0 %v8577_v49 }
 0x195   :  { %7834 = vmatprep.subr.bf16.mxu0 %v8579_v51 }
 0x196   :  { %7855 = vmatpush3.bf16.msra.mxu1 %v8578_v50  ;;  %v7532_v56 = vpop.f32.mrb[20].mxu0  ;;  %v8616_v50 = vld [vmem:[%s10766_s1 + $0xdf0] sm:$0xff]  }
 0x197   :  { %v7533_v58 = vpop.f32.mrb[21].mxu0  ;;  %7856 = vmatprep.subr.bf16.mxu1 %v8580_v52  ;;  %v8617_v52 = vld [vmem:[%s10766_s1 + $0xd30] sm:$0xff]  }
 0x198   :  { %v7554_v60 = vpop.f32.mrb[20].mxu1  ;;  %v7534_v61 = vadd.f32 %v7533_v58, %v7532_v56  ;;  %v7535_v62 = vpop.f32.mrb[22].mxu0  ;;  %7835 = vmatpush3.bf16.msra.mxu0 %v8581_v53  ;;  %v8618_v56 = vld [vmem:[%s10766_s1 + $0xdb0] sm:$0xff]  }
 0x199   :  { %v7555_v0 = vpop.f32.mrb[21].mxu1  ;;  %v7536_v1 = vpop.f32.mrb[23].mxu0  ;;  %7836 = vmatprep.subr.bf16.mxu0 %v8583_v55 }
 0x19a   :  { %v5603_v4 = vadd.f32 %v7534_v61, %v10061_v26  ;;  %v7556_v5 = vadd.f32 %v7555_v0, %v7554_v60  ;;  %v7557_v6 = vpop.f32.mrb[22].mxu1  ;;  %7857 = vmatpush3.bf16.msra.mxu1 %v8582_v54  ;;  %v8595_v26 = vld [vmem:[%s10766_s1 + $0xd48] sm:$0xff]   ;;  %v8621_v1 = vld [vmem:[%s10766_s1 + $0xd38] sm:$0xff]  }
 0x19b   :  { %v7558_v10 = vpop.f32.mrb[23].mxu1  ;;  %7858 = vmatprep.subr.bf16.mxu1 %v8584_v57  ;;  %v8619_v57 = vld [vmem:[%s10766_s1 + $0xd78] sm:$0xff]   ;;  %v8625_v6 = vld [vmem:[%s10766_s1 + $0xec0] sm:$0xff]  }
 0x19c   :  { %v10166_v12 = vadd.f32 %v7556_v5, %v5603_v4  ;;  %7837 = vmatpush3.bf16.msra.mxu0 %v8585_v59  ;;  %v1523_v4 = vrot.slane %v10172_v15, %v8918_v41  ;;  %v8624_v5 = vld [vmem:[%s10766_s1 + $0xe40] sm:$0xff]   ;;  %v8628_v10 = vld [vmem:[%s10766_s1 + $0xe48] sm:$0xff]   ;;  %v8633_v15 = vld [vmem:[%s10766_s1 + $0xed0] sm:$0xff]  }
 0x19d   :  { %7838 = vmatprep.subr.bf16.mxu0 %v8587_v2 }
 0x19e   :  { %7859 = vmatpush3.bf16.msra.mxu1 %v8586_v63  ;;  %v8620_v63 = vld [vmem:[%s10766_s1 + $0xdf8] sm:$0xff]   ;;  %v1539_v9 = vcombine.high %v1523_v4, %v1523_v4 }
 0x19f   :  { %7860 = vmatprep.subr.bf16.mxu1 %v8588_v7  ;;  %v8626_v7 = vld [vmem:[%s10766_s1 + $0xe00] sm:$0xff]  }
 0x1a0   :  { %7839 = vmatpush3.bf16.msra.mxu0 %v8589_v11  ;;  %v8629_v11 = vld [vmem:[%s10766_s1 + $0xec8] sm:$0xff]  }
 0x1a1   :  { %7868 = vmatprep.subr.bf16.mxu0 %v8591_v17  ;;  %v8635_v17 = vld [vmem:[%s10766_s1 + $0xe90] sm:$0xff]  }
 0x1a2   :  { %7861 = vmatpush3.bf16.msra.mxu1 %v8590_v13  ;;  %v8631_v13 = vld [vmem:[%s10766_s1 + $0xe88] sm:$0xff]  }
 0x1a3   :  { %6161 = vmatmul.mubr.bf16.vlgmr.msra.gmra.mrb[48].mxu0 %v1516_v16  ;;  %7890 = vmatprep.subr.bf16.mxu1 %v8592_v19  ;;  %v8634_v16 = vld [vmem:[%s10766_s1 + $0xe10] sm:$0xff]   ;;  %v8637_v19 = vld [vmem:[%s10766_s1 + $0xed8] sm:$0xff]  }
 0x1a4   :  { %7869 = vmatpush3.bf16.msra.mxu0 %v8593_v21  ;;  %6240 = vmatprep.mubr.bf16.mxu0 %v1537_v24  ;;  %v8639_v21 = vld [vmem:[%s10766_s1 + $0xe98] sm:$0xff]   ;;  %v8642_v24 = vld [vmem:[%s10766_s1 + $0xe20] sm:$0xff]  }
 0x1a5   :  { %6201 = vmatmul.mubr.bf16.vlgmr.msra.gmra.mrb[48].mxu1 %v1538_v25  ;;  %7870 = vmatprep.subr.bf16.mxu0 %v8595_v26  ;;  %v8643_v25 = vld [vmem:[%s10766_s1 + $0xea0] sm:$0xff]   ;;  %v8644_v26 = vld [vmem:[%s10766_s1 + $0xe68] sm:$0xff]  }
 0x1a6   :  { %7891 = vmatpush3.bf16.msra.mxu1 %v8594_v23  ;;  %6280 = vmatprep.mubr.bf16.mxu1 %v1541_v28  ;;  %v8641_v23 = vld [vmem:[%s10766_s1 + $0xee0] sm:$0xff]   ;;  %v8646_v28 = vld [vmem:[%s10766_s1 + $0xe28] sm:$0xff]  }
 0x1a7   :  { %7892 = vmatprep.subr.bf16.mxu1 %v8596_v27  ;;  %v8645_v27 = vld [vmem:[%s10766_s1 + $0xee8] sm:$0xff]  }
 0x1a8   :  { %7871 = vmatpush3.bf16.msra.mxu0 %v8597_v29  ;;  %v8647_v29 = vld [vmem:[%s10766_s1 + $0xea8] sm:$0xff]  }
 0x1a9   :  { %7872 = vmatprep.subr.bf16.mxu0 %v8599_v31 }
 0x1aa   :  { %7893 = vmatpush3.bf16.msra.mxu1 %v8598_v30  ;;  %v8648_v30 = vld [vmem:[%s10766_s1 + $0xe70] sm:$0xff]  }
 0x1ab   :  { %7894 = vmatprep.subr.bf16.mxu1 %v8600_v32  ;;  %v8649_v32 = vld [vmem:[%s10766_s1 + $0xef0] sm:$0xff]  }
 0x1ac   :  { %7873 = vmatpush3.bf16.msra.mxu0 %v8601_v33 }
 0x1ad   :  { %7874 = vmatprep.subr.bf16.mxu0 %v8603_v35 }
 0x1ae   :  { %7895 = vmatpush3.bf16.msra.mxu1 %v8602_v34  ;;  %v8650_v34 = vld [vmem:[%s10766_s1 + $0xe30] sm:$0xff]  }
 0x1af   :  { %7896 = vmatprep.subr.bf16.mxu1 %v8604_v36 }
 0x1b0   :  { %7875 = vmatpush3.bf16.msra.mxu0 %v8605_v37 }
 0x1b1   :  { %7876 = vmatprep.subr.bf16.mxu0 %v8607_v39 }
 0x1b2   :  { %7897 = vmatpush3.bf16.msra.mxu1 %v8606_v38  ;;  %v8651_v38 = vld [vmem:[%s10766_s1 + $0xeb0] sm:$0xff]  }
 0x1b3   :  { %7898 = vmatprep.subr.bf16.mxu1 %v8608_v40 }
 0x1b4   :  { %7877 = vmatpush3.bf16.msra.mxu0 %v8609_v42  ;;  %v8652_v42 = vld [vmem:[%s10766_s1 + $0xe78] sm:$0xff]  }
 0x1b5   :  { %7878 = vmatprep.subr.bf16.mxu0 %v8611_v44 }
 0x1b6   :  { %7899 = vmatpush3.bf16.msra.mxu1 %v8610_v43  ;;  %v7576_v49 = vpop.f32.mrb[24].mxu0  ;;  %v8653_v43 = vld [vmem:[%s10766_s1 + $0xef8] sm:$0xff]  }
 0x1b7   :  { %v7577_v51 = vpop.f32.mrb[25].mxu0  ;;  %7900 = vmatprep.subr.bf16.mxu1 %v8612_v45 }
 0x1b8   :  { %v7598_v53 = vpop.f32.mrb[24].mxu1  ;;  %v7578_v54 = vadd.f32 %v7577_v51, %v7576_v49  ;;  %v7579_v55 = vpop.f32.mrb[26].mxu0  ;;  %7879 = vmatpush3.bf16.msra.mxu0 %v8613_v46  ;;  %v8654_v49 = vld [vmem:[%s10766_s1 + $0xe38] sm:$0xff]  }
 0x1b9   :  { %v7599_v58 = vpop.f32.mrb[25].mxu1  ;;  %v7580_v59 = vpop.f32.mrb[27].mxu0  ;;  %7880 = vmatprep.subr.bf16.mxu0 %v8615_v48 }
 0x1ba   :  { %v5683_v60 = vadd.f32 %v7578_v54, %v10166_v12  ;;  %v7600_v61 = vadd.f32 %v7599_v58, %v7598_v53  ;;  %v7601_v62 = vpop.f32.mrb[26].mxu1  ;;  %7901 = vmatpush3.bf16.msra.mxu1 %v8614_v47  ;;  %v8630_v12 = vld [vmem:[%s10766_s1 + $0xe08] sm:$0xff]   ;;  %v29_v47 = vld [vmem:[%s10765_s0 + $0x38] sm:$0xff]  ;;  %v8657_v58 = vld [vmem:[%s10766_s1 + $0xfc0] sm:$0xff]  }
 0x1bb   :  { %v7602_v0 = vpop.f32.mrb[27].mxu1  ;;  %7902 = vmatprep.subr.bf16.mxu1 %v8616_v50  ;;  %v1549_v50 = vrot.slane %v29_v47, %v8918_v41  ;;  %v1542_v51 = vcombine.high %v29_v47, %v29_v47  ;;  %v8655_v53 = vld [vmem:[%s10766_s1 + $0xeb8] sm:$0xff]   ;;  %v8659_v62 = vld [vmem:[%s10766_s1 + $0xf80] sm:$0xff]  }
 0x1bc   :  { %v10273_v2 = vadd.f32 %v7600_v61, %v5683_v60  ;;  %7881 = vmatpush3.bf16.msra.mxu0 %v8617_v52  ;;  %v8658_v60 = vld [vmem:[%s10766_s1 + $0xf00] sm:$0xff]  }
 0x1bd   :  { %7882 = vmatprep.subr.bf16.mxu0 %v8619_v57  ;;  %v1557_v54 = vcombine.high %v1549_v50, %v1549_v50  ;;  %v1565_v55 = vrot.slane %v1549_v50, %v8918_v41  ;;  %v10388_v57 = vrot.slane %v1542_v51, %v8918_v41  ;;  %v8691_v47 = vld [vmem:[%s10766_s1 + $0x1000] sm:$0xff]   ;;  %v8693_v50 = vld [vmem:[%s10766_s1 + $0x1048] sm:$0xff]  }
 0x1be   :  { %7903 = vmatpush3.bf16.msra.mxu1 %v8618_v56  ;;  %v8656_v56 = vld [vmem:[%s10766_s1 + $0xf40] sm:$0xff]   ;;  %v8694_v51 = vld [vmem:[%s10766_s1 + $0x10c8] sm:$0xff]  }
 0x1bf   :  { %7904 = vmatprep.subr.bf16.mxu1 %v8620_v63  ;;  %v1579_v59 = vrot.slane %v1557_v54, %v8918_v41  ;;  %v1558_v61 = vcombine.high %v10388_v57, %v10388_v57  ;;  %v1587_v0 = vcombine.high %v1565_v55, %v1565_v55  ;;  %v8697_v54 = vld [vmem:[%s10766_s1 + $0x1050] sm:$0xff]  }
 0x1c0   :  { %7883 = vmatpush3.bf16.msra.mxu0 %v8621_v1  ;;  %v8660_v1 = vld [vmem:[%s10766_s1 + $0xf48] sm:$0xff]  }
 0x1c1   :  { %7912 = vmatprep.subr.bf16.mxu0 %v8624_v5  ;;  %v1589_v63 = vcombine.high %v1579_v59, %v1579_v59 }
 0x1c2   :  { %7905 = vmatpush3.bf16.msra.mxu1 %v8622_v3  ;;  %v8661_v3 = vld [vmem:[%s10766_s1 + $0xfc8] sm:$0xff]  }
 0x1c3   :  { %6241 = vmatmul.mubr.bf16.vlgmr.msra.gmra.mrb[52].mxu0 %v1523_v4  ;;  %7934 = vmatprep.subr.bf16.mxu1 %v8625_v6  ;;  %v8662_v4 = vld [vmem:[%s10766_s1 + $0xf08] sm:$0xff]  }
 0x1c4   :  { %7913 = vmatpush3.bf16.msra.mxu0 %v8626_v7  ;;  %6320 = vmatprep.mubr.bf16.mxu0 %v1579_v59  ;;  %v8663_v6 = vld [vmem:[%s10766_s1 + $0xf88] sm:$0xff]   ;;  %v8664_v7 = vld [vmem:[%s10766_s1 + $0xf50] sm:$0xff]   ;;  %v8702_v59 = vld [vmem:[%s10766_s1 + $0x10d8] sm:$0xff]  }
 0x1c5   :  { %6281 = vmatmul.mubr.bf16.vlgmr.msra.gmra.mrb[52].mxu1 %v1539_v9  ;;  %7914 = vmatprep.subr.bf16.mxu0 %v8628_v10  ;;  %v8666_v9 = vld [vmem:[%s10766_s1 + $0xf10] sm:$0xff]  }
 0x1c6   :  { %7935 = vmatpush3.bf16.msra.mxu1 %v8627_v8  ;;  %6360 = vmatprep.mubr.bf16.mxu1 %v1589_v63  ;;  %v8665_v8 = vld [vmem:[%s10766_s1 + $0xfd0] sm:$0xff]   ;;  %v8706_v63 = vld [vmem:[%s10766_s1 + $0x10e0] sm:$0xff]  }
 0x1c7   :  { %7936 = vmatprep.subr.bf16.mxu1 %v8629_v11  ;;  %v8667_v10 = vld [vmem:[%s10766_s1 + $0xf90] sm:$0xff]   ;;  %v8668_v11 = vld [vmem:[%s10766_s1 + $0xf58] sm:$0xff]  }
 0x1c8   :  { %7915 = vmatpush3.bf16.msra.mxu0 %v8630_v12  ;;  %v8669_v12 = vld [vmem:[%s10766_s1 + $0xfd8] sm:$0xff]  }
 0x1c9   :  { %7916 = vmatprep.subr.bf16.mxu0 %v8632_v14  ;;  %v8671_v14 = vld [vmem:[%s10766_s1 + $0xf98] sm:$0xff]  }
 0x1ca   :  { %7937 = vmatpush3.bf16.msra.mxu1 %v8631_v13  ;;  %v8670_v13 = vld [vmem:[%s10766_s1 + $0xf18] sm:$0xff]  }
 0x1cb   :  { %7938 = vmatprep.subr.bf16.mxu1 %v8633_v15  ;;  %v8672_v15 = vld [vmem:[%s10766_s1 + $0xf60] sm:$0xff]  }
 0x1cc   :  { %7917 = vmatpush3.bf16.msra.mxu0 %v8634_v16  ;;  %v8673_v16 = vld [vmem:[%s10766_s1 + $0xfe0] sm:$0xff]  }
 0x1cd   :  { %7918 = vmatprep.subr.bf16.mxu0 %v8636_v18  ;;  %v8675_v18 = vld [vmem:[%s10766_s1 + $0xfa0] sm:$0xff]  }
 0x1ce   :  { %7939 = vmatpush3.bf16.msra.mxu1 %v8635_v17  ;;  %v8674_v17 = vld [vmem:[%s10766_s1 + $0xf20] sm:$0xff]  }
 0x1cf   :  { %7940 = vmatprep.subr.bf16.mxu1 %v8637_v19  ;;  %v8676_v19 = vld [vmem:[%s10766_s1 + $0xf68] sm:$0xff]  }
 0x1d0   :  { %7919 = vmatpush3.bf16.msra.mxu0 %v8638_v20  ;;  %v8677_v20 = vld [vmem:[%s10766_s1 + $0xfe8] sm:$0xff]  }
 0x1d1   :  { %7920 = vmatprep.subr.bf16.mxu0 %v8640_v22  ;;  %v8679_v22 = vld [vmem:[%s10766_s1 + $0xfa8] sm:$0xff]  }
 0x1d2   :  { %7941 = vmatpush3.bf16.msra.mxu1 %v8639_v21  ;;  %v8678_v21 = vld [vmem:[%s10766_s1 + $0xf28] sm:$0xff]  }
 0x1d3   :  { %7942 = vmatprep.subr.bf16.mxu1 %v8641_v23  ;;  %v8680_v23 = vld [vmem:[%s10766_s1 + $0xf70] sm:$0xff]  }
 0x1d4   :  { %7921 = vmatpush3.bf16.msra.mxu0 %v8642_v24 }
 0x1d5   :  { %7922 = vmatprep.subr.bf16.mxu0 %v8644_v26 }
 0x1d6   :  { %7943 = vmatpush3.bf16.msra.mxu1 %v8643_v25  ;;  %v7620_v31 = vpop.f32.mrb[28].mxu0  ;;  %v8681_v25 = vld [vmem:[%s10766_s1 + $0xff0] sm:$0xff]  }
 0x1d7   :  { %v7621_v33 = vpop.f32.mrb[29].mxu0  ;;  %7944 = vmatprep.subr.bf16.mxu1 %v8645_v27  ;;  %v8682_v27 = vld [vmem:[%s10766_s1 + $0xf30] sm:$0xff]  }
 0x1d8   :  { %v7642_v35 = vpop.f32.mrb[28].mxu1  ;;  %v7622_v36 = vadd.f32 %v7621_v33, %v7620_v31  ;;  %v7623_v37 = vpop.f32.mrb[30].mxu0  ;;  %7923 = vmatpush3.bf16.msra.mxu0 %v8646_v28  ;;  %v8683_v31 = vld [vmem:[%s10766_s1 + $0xfb0] sm:$0xff]  }
 0x1d9   :  { %v7643_v39 = vpop.f32.mrb[29].mxu1  ;;  %v7624_v40 = vpop.f32.mrb[31].mxu0  ;;  %7924 = vmatprep.subr.bf16.mxu0 %v8648_v30 }
 0x1da   :  { %v5763_v44 = vadd.f32 %v7622_v36, %v10273_v2  ;;  %v7644_v45 = vadd.f32 %v7643_v39, %v7642_v35  ;;  %v7645_v46 = vpop.f32.mrb[30].mxu1  ;;  %7945 = vmatpush3.bf16.msra.mxu1 %v8647_v29  ;;  %v1586_v2 = vrot.slane %v1558_v61, %v8918_v41  ;;  %v8686_v40 = vld [vmem:[%s10766_s1 + $0xf38] sm:$0xff]  }
 0x1db   :  { %v7646_v48 = vpop.f32.mrb[31].mxu1  ;;  %7946 = vmatprep.subr.bf16.mxu1 %v8649_v32  ;;  %v8684_v32 = vld [vmem:[%s10766_s1 + $0xf78] sm:$0xff]   ;;  %v8690_v46 = vld [vmem:[%s10766_s1 + $0x10c0] sm:$0xff]  }
 0x1dc   :  { %v10378_v52 = vadd.f32 %v7644_v45, %v5763_v44  ;;  %7925 = vmatpush3.bf16.msra.mxu0 %v8650_v34  ;;  %v1590_v5 = vcombine.high %v1586_v2, %v1586_v2  ;;  %v1572_v44 = vrot.slane %v10388_v57, %v8918_v41  ;;  %v8689_v45 = vld [vmem:[%s10766_s1 + $0x1040] sm:$0xff]   ;;  %v8700_v57 = vld [vmem:[%s10766_s1 + $0x1090] sm:$0xff]   ;;  %v8704_v61 = vld [vmem:[%s10766_s1 + $0x1098] sm:$0xff]  }
 0x1dd   :  { %7926 = vmatprep.subr.bf16.mxu0 %v8652_v42  ;;  %v8692_v48 = vld [vmem:[%s10766_s1 + $0x1080] sm:$0xff]  }
 0x1de   :  { %7947 = vmatpush3.bf16.msra.mxu1 %v8651_v38  ;;  %v8685_v38 = vld [vmem:[%s10766_s1 + $0xff8] sm:$0xff]  }
 0x1df   :  { %7948 = vmatprep.subr.bf16.mxu1 %v8653_v43  ;;  %v8687_v43 = vld [vmem:[%s10766_s1 + $0xfb8] sm:$0xff]  }
 0x1e0   :  { %7927 = vmatpush3.bf16.msra.mxu0 %v8654_v49  ;;  %v1588_v49 = vcombine.high %v1572_v44, %v1572_v44 }
 0x1e1   :  { %7956 = vmatprep.subr.bf16.mxu0 %v8656_v56  ;;  %v8699_v56 = vld [vmem:[%s10766_s1 + $0x1010] sm:$0xff]  }
 0x1e2   :  { %7949 = vmatpush3.bf16.msra.mxu1 %v8655_v53  ;;  %v8696_v53 = vld [vmem:[%s10766_s1 + $0x1088] sm:$0xff]  }
 0x1e3   :  { %6321 = vmatmul.mubr.bf16.vlgmr.msra.gmra.mrb[56].mxu0 %v1565_v55  ;;  %7978 = vmatprep.subr.bf16.mxu1 %v8657_v58  ;;  %v8698_v55 = vld [vmem:[%s10766_s1 + $0x10d0] sm:$0xff]   ;;  %v8701_v58 = vld [vmem:[%s10766_s1 + $0x1058] sm:$0xff]  }
 0x1e4   :  { %7957 = vmatpush3.bf16.msra.mxu0 %v8658_v60  ;;  %6400 = vmatprep.mubr.bf16.mxu0 %v1586_v2  ;;  %v8703_v60 = vld [vmem:[%s10766_s1 + $0x1018] sm:$0xff]   ;;  %v8709_v2 = vld [vmem:[%s10766_s1 + $0x1068] sm:$0xff]  }
 0x1e5   :  { %6361 = vmatmul.mubr.bf16.vlgmr.msra.gmra.mrb[56].mxu1 %v1587_v0  ;;  %7958 = vmatprep.subr.bf16.mxu0 %v8660_v1  ;;  %v8707_v0 = vld [vmem:[%s10766_s1 + $0x1020] sm:$0xff]  }
 0x1e6   :  { %7979 = vmatpush3.bf16.msra.mxu1 %v8659_v62  ;;  %6440 = vmatprep.mubr.bf16.mxu1 %v1590_v5  ;;  %v8705_v62 = vld [vmem:[%s10766_s1 + $0x1060] sm:$0xff]   ;;  %v8712_v5 = vld [vmem:[%s10766_s1 + $0x10a8] sm:$0xff]  }
 0x1e7   :  { %7980 = vmatprep.subr.bf16.mxu1 %v8661_v3  ;;  %v8708_v1 = vld [vmem:[%s10766_s1 + $0x10a0] sm:$0xff]   ;;  %v8710_v3 = vld [vmem:[%s10766_s1 + $0x10e8] sm:$0xff]  }
 0x1e8   :  { %7959 = vmatpush3.bf16.msra.mxu0 %v8662_v4  ;;  %v8711_v4 = vld [vmem:[%s10766_s1 + $0x1028] sm:$0xff]  }
 0x1e9   :  { %7960 = vmatprep.subr.bf16.mxu0 %v8664_v7 }
 0x1ea   :  { %7981 = vmatpush3.bf16.msra.mxu1 %v8663_v6  ;;  %v8713_v6 = vld [vmem:[%s10766_s1 + $0x1070] sm:$0xff]  }
 0x1eb   :  { %7982 = vmatprep.subr.bf16.mxu1 %v8665_v8  ;;  %v8714_v8 = vld [vmem:[%s10766_s1 + $0x10f0] sm:$0xff]  }
 0x1ec   :  { %7961 = vmatpush3.bf16.msra.mxu0 %v8666_v9 }
 0x1ed   :  { %7962 = vmatprep.subr.bf16.mxu0 %v8668_v11 }
 0x1ee   :  { %7983 = vmatpush3.bf16.msra.mxu1 %v8667_v10  ;;  %v8715_v10 = vld [vmem:[%s10766_s1 + $0x1030] sm:$0xff]  }
 0x1ef   :  { %7984 = vmatprep.subr.bf16.mxu1 %v8669_v12 }
 0x1f0   :  { %7963 = vmatpush3.bf16.msra.mxu0 %v8670_v13 }
 0x1f1   :  { %7964 = vmatprep.subr.bf16.mxu0 %v8672_v15 }
 0x1f2   :  { %7985 = vmatpush3.bf16.msra.mxu1 %v8671_v14 }
 0x1f3   :  { %7986 = vmatprep.subr.bf16.mxu1 %v8673_v16  ;;  %v8716_v16 = vld [vmem:[%s10766_s1 + $0x10b0] sm:$0xff]  }
 0x1f4   :  { %7965 = vmatpush3.bf16.msra.mxu0 %v8674_v17  ;;  %v8717_v17 = vld [vmem:[%s10766_s1 + $0x1078] sm:$0xff]  }
 0x1f5   :  { %7966 = vmatprep.subr.bf16.mxu0 %v8676_v19 }
 0x1f6   :  { %7987 = vmatpush3.bf16.msra.mxu1 %v8675_v18  ;;  %v7664_v24 = vpop.f32.mrb[32].mxu0 }
 0x1f7   :  { %v7665_v26 = vpop.f32.mrb[33].mxu0  ;;  %7988 = vmatprep.subr.bf16.mxu1 %v8677_v20 }
 0x1f8   :  { %v7686_v28 = vpop.f32.mrb[32].mxu1  ;;  %v7666_v29 = vadd.f32 %v7665_v26, %v7664_v24  ;;  %v7667_v30 = vpop.f32.mrb[34].mxu0  ;;  %7967 = vmatpush3.bf16.msra.mxu0 %v8678_v21  ;;  %v8718_v21 = vld [vmem:[%s10766_s1 + $0x10f8] sm:$0xff]  }
 0x1f9   :  { %v7687_v33 = vpop.f32.mrb[33].mxu1  ;;  %v7668_v34 = vpop.f32.mrb[35].mxu0  ;;  %7968 = vmatprep.subr.bf16.mxu0 %v8680_v23  ;;  %v30_v23 = vld [vmem:[%s10765_s0 + $0x40] sm:$0xff] }
 0x1fa   :  { %v5843_v35 = vadd.f32 %v7666_v29, %v10378_v52  ;;  %v7688_v36 = vadd.f32 %v7687_v33, %v7686_v28  ;;  %v7689_v37 = vpop.f32.mrb[34].mxu1  ;;  %7989 = vmatpush3.bf16.msra.mxu1 %v8679_v22  ;;  %v8695_v52 = vld [vmem:[%s10766_s1 + $0x1008] sm:$0xff]   ;;  %v1598_v26 = vrot.slane %v30_v23, %v8918_v41  ;;  %v8721_v28 = vld [vmem:[%s10766_s1 + $0x1140] sm:$0xff]   ;;  %v8720_v29 = vld [vmem:[%s10766_s1 + $0x10b8] sm:$0xff]  }
 0x1fb   :  { %v7690_v39 = vpop.f32.mrb[35].mxu1  ;;  %7990 = vmatprep.subr.bf16.mxu1 %v8681_v25  ;;  %v8719_v25 = vld [vmem:[%s10766_s1 + $0x1038] sm:$0xff]   ;;  %v8722_v33 = vld [vmem:[%s10766_s1 + $0x11c0] sm:$0xff]  }
 0x1fc   :  { %v10485_v42 = vadd.f32 %v7688_v36, %v5843_v35  ;;  %7969 = vmatpush3.bf16.msra.mxu0 %v8682_v27  ;;  %v1591_v27 = vcombine.high %v30_v23, %v30_v23  ;;  %v1606_v30 = vcombine.high %v1598_v26, %v1598_v26  ;;  %v8723_v35 = vld [vmem:[%s10766_s1 + $0x1100] sm:$0xff]  }
 0x1fd   :  { %7970 = vmatprep.subr.bf16.mxu0 %v8684_v32 }
 0x1fe   :  { %7991 = vmatpush3.bf16.msra.mxu1 %v8683_v31  ;;  %v1614_v31 = vrot.slane %v1598_v26, %v8918_v41  ;;  %v10600_v32 = vrot.slane %v1591_v27, %v8918_v41  ;;  %v1628_v34 = vrot.slane %v1606_v30, %v8918_v41 }
 0x1ff   :  { %7992 = vmatprep.subr.bf16.mxu1 %v8685_v38  ;;  %v8725_v38 = vld [vmem:[%s10766_s1 + $0x1148] sm:$0xff]  }
 0x200   :  { %7971 = vmatpush3.bf16.msra.mxu0 %v8686_v40  ;;  %v1607_v36 = vcombine.high %v10600_v32, %v10600_v32  ;;  %v1636_v37 = vcombine.high %v1614_v31, %v1614_v31  ;;  %v1638_v39 = vcombine.high %v1628_v34, %v1628_v34  ;;  %v8724_v40 = vld [vmem:[%s10766_s1 + $0x1180] sm:$0xff]  }
 0x201   :  { %8000 = vmatprep.subr.bf16.mxu0 %v8689_v45 }
 0x202   :  { %7993 = vmatpush3.bf16.msra.mxu1 %v8687_v43  ;;  %v8726_v43 = vld [vmem:[%s10766_s1 + $0x11c8] sm:$0xff]  }
 0x203   :  { %6401 = vmatmul.mubr.bf16.vlgmr.msra.gmra.mrb[60].mxu0 %v1572_v44  ;;  %8022 = vmatprep.subr.bf16.mxu1 %v8690_v46  ;;  %v8727_v44 = vld [vmem:[%s10766_s1 + $0x1108] sm:$0xff]   ;;  %v8729_v46 = vld [vmem:[%s10766_s1 + $0x1150] sm:$0xff]  }
 0x204   :  { %8001 = vmatpush3.bf16.msra.mxu0 %v8691_v47  ;;  %6480 = vmatprep.mubr.bf16.mxu0 %v1628_v34  ;;  %v8728_v47 = vld [vmem:[%s10766_s1 + $0x1188] sm:$0xff]  }
 0x205   :  { %6441 = vmatmul.mubr.bf16.vlgmr.msra.gmra.mrb[60].mxu1 %v1588_v49  ;;  %8002 = vmatprep.subr.bf16.mxu0 %v8693_v50  ;;  %v8731_v49 = vld [vmem:[%s10766_s1 + $0x1110] sm:$0xff]   ;;  %v8733_v50 = vld [vmem:[%s10766_s1 + $0x1158] sm:$0xff]  }
 0x206   :  { %8023 = vmatpush3.bf16.msra.mxu1 %v8692_v48  ;;  %6520 = vmatprep.mubr.bf16.mxu1 %v1638_v39  ;;  %v8730_v48 = vld [vmem:[%s10766_s1 + $0x11d0] sm:$0xff]  }
 0x207   :  { %8024 = vmatprep.subr.bf16.mxu1 %v8694_v51  ;;  %v8732_v51 = vld [vmem:[%s10766_s1 + $0x1190] sm:$0xff]  }
 0x208   :  { %8003 = vmatpush3.bf16.msra.mxu0 %v8695_v52  ;;  %v8734_v52 = vld [vmem:[%s10766_s1 + $0x11d8] sm:$0xff]  }
 0x209   :  { %8004 = vmatprep.subr.bf16.mxu0 %v8697_v54  ;;  %v8737_v54 = vld [vmem:[%s10766_s1 + $0x1160] sm:$0xff]  }
 0x20a   :  { %8025 = vmatpush3.bf16.msra.mxu1 %v8696_v53  ;;  %v8735_v53 = vld [vmem:[%s10766_s1 + $0x1118] sm:$0xff]  }
 0x20b   :  { %8026 = vmatprep.subr.bf16.mxu1 %v8698_v55  ;;  %v8736_v55 = vld [vmem:[%s10766_s1 + $0x1198] sm:$0xff]  }
 0x20c   :  { %8005 = vmatpush3.bf16.msra.mxu0 %v8699_v56  ;;  %v8738_v56 = vld [vmem:[%s10766_s1 + $0x11e0] sm:$0xff]  }
 0x20d   :  { %8006 = vmatprep.subr.bf16.mxu0 %v8701_v58  ;;  %v8741_v58 = vld [vmem:[%s10766_s1 + $0x1168] sm:$0xff]  }
 0x20e   :  { %8027 = vmatpush3.bf16.msra.mxu1 %v8700_v57  ;;  %v8739_v57 = vld [vmem:[%s10766_s1 + $0x1120] sm:$0xff]  }
 0x20f   :  { %8028 = vmatprep.subr.bf16.mxu1 %v8702_v59  ;;  %v8740_v59 = vld [vmem:[%s10766_s1 + $0x11a0] sm:$0xff]  }
 0x210   :  { %8007 = vmatpush3.bf16.msra.mxu0 %v8703_v60  ;;  %v8742_v60 = vld [vmem:[%s10766_s1 + $0x11e8] sm:$0xff]  }
 0x211   :  { %8008 = vmatprep.subr.bf16.mxu0 %v8705_v62  ;;  %v8745_v62 = vld [vmem:[%s10766_s1 + $0x1170] sm:$0xff]  }
 0x212   :  { %8029 = vmatpush3.bf16.msra.mxu1 %v8704_v61  ;;  %v8743_v61 = vld [vmem:[%s10766_s1 + $0x1128] sm:$0xff]  }
 0x213   :  { %8030 = vmatprep.subr.bf16.mxu1 %v8706_v63 }
 0x214   :  { %8009 = vmatpush3.bf16.msra.mxu0 %v8707_v0  ;;  %v8744_v0 = vld [vmem:[%s10766_s1 + $0x11a8] sm:$0xff]  }
 0x215   :  { %8010 = vmatprep.subr.bf16.mxu0 %v8709_v2  ;;  %v8746_v2 = vld [vmem:[%s10766_s1 + $0x11f0] sm:$0xff]  }
 0x216   :  { %8031 = vmatpush3.bf16.msra.mxu1 %v8708_v1  ;;  %v7708_v7 = vpop.f32.mrb[36].mxu0 }
 0x217   :  { %v7709_v9 = vpop.f32.mrb[37].mxu0  ;;  %8032 = vmatprep.subr.bf16.mxu1 %v8710_v3 }
 0x218   :  { %v7730_v11 = vpop.f32.mrb[36].mxu1  ;;  %v7710_v12 = vadd.f32 %v7709_v9, %v7708_v7  ;;  %v7711_v13 = vpop.f32.mrb[38].mxu0  ;;  %8011 = vmatpush3.bf16.msra.mxu0 %v8711_v4  ;;  %v8749_v7 = vld [vmem:[%s10766_s1 + $0x1178] sm:$0xff]  }
 0x219   :  { %v7731_v14 = vpop.f32.mrb[37].mxu1  ;;  %v7712_v15 = vpop.f32.mrb[39].mxu0  ;;  %8012 = vmatprep.subr.bf16.mxu0 %v8713_v6  ;;  %v8747_v6 = vld [vmem:[%s10766_s1 + $0x1130] sm:$0xff]  }
 0x21a   :  { %v5923_v18 = vadd.f32 %v7710_v12, %v10485_v42  ;;  %v7732_v19 = vadd.f32 %v7731_v14, %v7730_v11  ;;  %v7733_v20 = vpop.f32.mrb[38].mxu1  ;;  %8033 = vmatpush3.bf16.msra.mxu1 %v8712_v5  ;;  %v1635_v42 = vrot.slane %v1607_v36, %v8918_v41  ;;  %v8748_v13 = vld [vmem:[%s10766_s1 + $0x11b0] sm:$0xff]   ;;  %v8750_v15 = vld [vmem:[%s10766_s1 + $0x11f8] sm:$0xff]  }
 0x21b   :  { %v7734_v22 = vpop.f32.mrb[39].mxu1  ;;  %8034 = vmatprep.subr.bf16.mxu1 %v8714_v8 }
 0x21c   :  { %v10586_v24 = vadd.f32 %v7732_v19, %v5923_v18  ;;  %8013 = vmatpush3.bf16.msra.mxu0 %v8715_v10  ;;  %v1639_v45 = vcombine.high %v1635_v42, %v1635_v42 }
 0x21d   :  { %8014 = vmatprep.subr.bf16.mxu0 %v8717_v17  ;;  %v8751_v17 = vld [vmem:[%s10766_s1 + $0x1138] sm:$0xff]  }
 0x21e   :  { %8035 = vmatpush3.bf16.msra.mxu1 %v8716_v16 }
 0x21f   :  { %8036 = vmatprep.subr.bf16.mxu1 %v8718_v21 }
 0x220   :  { %8015 = vmatpush3.bf16.msra.mxu0 %v8719_v25 }
 0x221   :  { %8044 = vmatprep.subr.bf16.mxu0 %v8721_v28 }
 0x222   :  { %8037 = vmatpush3.bf16.msra.mxu1 %v8720_v29 }
 0x223   :  { %6481 = vmatmul.mubr.bf16.vlgmr.msra.gmra.mrb[64].mxu0 %v1614_v31  ;;  %8066 = vmatprep.subr.bf16.mxu1 %v8722_v33 }
 0x224   :  { %8045 = vmatpush3.bf16.msra.mxu0 %v8723_v35  ;;  %6560 = vmatprep.mubr.bf16.mxu0 %v1635_v42 }
 0x225   :  { %6521 = vmatmul.mubr.bf16.vlgmr.msra.gmra.mrb[64].mxu1 %v1636_v37  ;;  %8046 = vmatprep.subr.bf16.mxu0 %v8725_v38 }
 0x226   :  { %8067 = vmatpush3.bf16.msra.mxu1 %v8724_v40  ;;  %6600 = vmatprep.mubr.bf16.mxu1 %v1639_v45 }
 0x227   :  { %8068 = vmatprep.subr.bf16.mxu1 %v8726_v43 }
 0x228   :  { %8047 = vmatpush3.bf16.msra.mxu0 %v8727_v44 }
 0x229   :  { %8048 = vmatprep.subr.bf16.mxu0 %v8729_v46 }
 0x22a   :  { %8069 = vmatpush3.bf16.msra.mxu1 %v8728_v47 }
 0x22b   :  { %8070 = vmatprep.subr.bf16.mxu1 %v8730_v48 }
 0x22c   :  { %8049 = vmatpush3.bf16.msra.mxu0 %v8731_v49 }
 0x22d   :  { %8050 = vmatprep.subr.bf16.mxu0 %v8733_v50 }
 0x22e   :  { %8071 = vmatpush3.bf16.msra.mxu1 %v8732_v51 }
 0x22f   :  { %8072 = vmatprep.subr.bf16.mxu1 %v8734_v52 }
 0x230   :  { %8051 = vmatpush3.bf16.msra.mxu0 %v8735_v53 }
 0x231   :  { %8052 = vmatprep.subr.bf16.mxu0 %v8737_v54 }
 0x232   :  { %8073 = vmatpush3.bf16.msra.mxu1 %v8736_v55 }
 0x233   :  { %8074 = vmatprep.subr.bf16.mxu1 %v8738_v56 }
 0x234   :  { %8053 = vmatpush3.bf16.msra.mxu0 %v8739_v57 }
 0x235   :  { %8054 = vmatprep.subr.bf16.mxu0 %v8741_v58 }
 0x236   :  { %8075 = vmatpush3.bf16.msra.mxu1 %v8740_v59  ;;  %v7752_v63 = vpop.f32.mrb[40].mxu0 }
 0x237   :  { %v7753_v1 = vpop.f32.mrb[41].mxu0  ;;  %8076 = vmatprep.subr.bf16.mxu1 %v8742_v60 }
 0x238   :  { %v7774_v3 = vpop.f32.mrb[40].mxu1  ;;  %v7754_v4 = vadd.f32 %v7753_v1, %v7752_v63  ;;  %v7755_v5 = vpop.f32.mrb[42].mxu0  ;;  %8055 = vmatpush3.bf16.msra.mxu0 %v8743_v61 }
 0x239   :  { %v7775_v8 = vpop.f32.mrb[41].mxu1  ;;  %v7756_v9 = vpop.f32.mrb[43].mxu0  ;;  %8056 = vmatprep.subr.bf16.mxu0 %v8745_v62 }
 0x23a   :  { %v6003_v10 = vadd.f32 %v7754_v4, %v10586_v24  ;;  %v7776_v11 = vadd.f32 %v7775_v8, %v7774_v3  ;;  %v7777_v12 = vpop.f32.mrb[42].mxu1  ;;  %8077 = vmatpush3.bf16.msra.mxu1 %v8744_v0 }
 0x23b   :  { %v7778_v14 = vpop.f32.mrb[43].mxu1  ;;  %8078 = vmatprep.subr.bf16.mxu1 %v8746_v2 }
 0x23c   :  { %v6043_v16 = vadd.f32 %v7776_v11, %v6003_v10  ;;  %8057 = vmatpush3.bf16.msra.mxu0 %v8747_v6 }
 0x23d   :  { %10 = vsyncpa [#allocation3], 0  ;;  %8058 = vmatprep.subr.bf16.mxu0 %v8749_v7  ;;  %v1621_v18 = vrot.slane %v10600_v32, %v8918_v41  ;;  %v8752_v19 = vld [vmem:[%s10766_s1 + $0x11b8] sm:$0xff]   ;;  %v6609_v45 = vld [vmem:[%s10768_s3] sm:$0xff]  ;;  %v8779_v48 = vmov 0.0|0.0   ;;  %vm8780_vm0 = vmmov 0  }
 0x23e   :  { %8079 = vmatpush3.bf16.msra.mxu1 %v8748_v13  ;;  %v6610_v46 = vld [vmem:[%s10768_s3 + $0x8] sm:$0xff]  ;;  %v6611_v47 = vld [vmem:[%s10768_s3 + $0x10] sm:$0xff]  ;;  %v6612_v50 = vld [vmem:[%s10768_s3 + $0x18] sm:$0xff]  ;;  %s8782_s15 = smov [#allocation2]   ;;  %vm6702_vm1 = vcmask 74752  }
 0x23f   :  { %8080 = vmatprep.subr.bf16.mxu1 %v8750_v15  ;;  %v1637_v20 = vcombine.high %v1621_v18, %v1621_v18  ;;  %v8141_v49 = vpack.c.bf16 %v6610_v46, %v6609_v45  ;;  %v8144_v51 = vpack.c.bf16 %v6612_v50, %v6611_v47  ;;  %v6613_v52 = vld [vmem:[%s10768_s3 + $0x20] sm:$0xff]  ;;  %v6614_v53 = vld [vmem:[%s10768_s3 + $0x28] sm:$0xff]  ;;  %v6615_v55 = vld [vmem:[%s10768_s3 + $0x30] sm:$0xff]  ;;  %s6710_s16 = sshll.u32 %s8782_s15, 4  ;;  %s6711_s16 = int_to_ptr.vmem [resolvable:$true] %s6710_s16 }
 0x240   :  { %8059 = vmatpush3.bf16.msra.mxu0 %v8751_v17  ;;  %v8147_v54 = vpack.c.bf16 %v6614_v53, %v6613_v52  ;;  %v6616_v56 = vld [vmem:[%s10768_s3 + $0x38] sm:$0xff]  ;;  %v6617_v58 = vld [vmem:[%s10768_s3 + $0x40] sm:$0xff]  ;;  %v6618_v59 = vld [vmem:[%s10768_s3 + $0x48] sm:$0xff]  ;;  %s8754_s17 = scalar_lea.vmem %s6711_s16, 32  ;;  %p8759_p1 = scmp.lt.s32.totalorder %s6711_s16, %s6711_s16 }
 0x241   :  { %8140 = vmatprep.subr.bf16.mxu0 %v8779_v48  ;;  %v8150_v57 = vpack.c.bf16 %v6616_v56, %v6615_v55  ;;  %v8153_v60 = vpack.c.bf16 %v6618_v59, %v6617_v58  ;;  %v6619_v61 = vld [vmem:[%s10768_s3 + $0x50] sm:$0xff]  ;;  %v6620_v62 = vld [vmem:[%s10768_s3 + $0x58] sm:$0xff]  ;;  %v6621_v5 = vld [vmem:[%s10768_s3 + $0x60] sm:$0xff]  ;;  %p8755_p0 = scmp.ne.s32.totalorder %s6711_s16, %s8754_s17  ;;  %p8760_p2 = scmp.lt.s32.totalorder %s8754_s17, %s8754_s17 }
 0x242   :  { %8081 = vmatpush3.bf16.msra.mxu1 %v8752_v19  ;;  %v8156_v63 = vpack.c.bf16 %v6620_v62, %v6619_v61  ;;  %v6622_v6 = vld [vmem:[%s10768_s3 + $0x68] sm:$0xff]  ;;  %v6623_v15 = vld [vmem:[%s10768_s3 + $0x70] sm:$0xff] }
 0x243   :  { %6561 = vmatmul.mubr.bf16.vlgmr.msra.gmra.mrb[68].mxu0 %v1621_v18  ;;  %v8159_v9 = vpack.c.bf16 %v6622_v6, %v6621_v5  ;;  %v8781_v18 = vmov 0.0   ;;  %p8761_p3 = por %p8760_p2, %p8759_p1 }
 0x244   :  { %8142 = vmatpush3.bf16.msra.mxu0 %v8141_v49  ;;  %8137 = vmatprep.mubr.msk.f32.mxu0 %vm8780_vm0, %v8781_v18 }
 0x245   :  { %6601 = vmatmul.mubr.bf16.vlgmr.msra.gmra.mrb[68].mxu1 %v1637_v20  ;;  %8143 = vmatprep.subr.bf16.mxu0 %v8779_v48  ;;  %p8762_p4 = pnand %p8761_p3, %p8755_p0 }
 0x248   :  { %8145 = vmatpush3.bf16.msra.mxu0 %v8144_v51 }
 0x249   :  { %8146 = vmatprep.subr.bf16.mxu0 %v8779_v48 }
 0x24c   :  { %8148 = vmatpush3.bf16.msra.mxu0 %v8147_v54 }
 0x24d   :  { %8149 = vmatprep.subr.bf16.mxu0 %v8779_v48 }
 0x250   :  { %8151 = vmatpush3.bf16.msra.mxu0 %v8150_v57 }
 0x251   :  { %8152 = vmatprep.subr.bf16.mxu0 %v8779_v48 }
 0x254   :  { %8154 = vmatpush3.bf16.msra.mxu0 %v8153_v60 }
 0x255   :  { %8155 = vmatprep.subr.bf16.mxu0 %v8779_v48 }
 0x256   :  { %v7796_v21 = vpop.f32.mrb[44].mxu0 }
 0x257   :  { %v7797_v22 = vpop.f32.mrb[45].mxu0 }
 0x258   :  { %v7818_v23 = vpop.f32.mrb[44].mxu1  ;;  %v7798_v24 = vadd.f32 %v7797_v22, %v7796_v21  ;;  %v7799_v25 = vpop.f32.mrb[46].mxu0  ;;  %8157 = vmatpush3.bf16.msra.mxu0 %v8156_v63 }
 0x259   :  { %v7819_v26 = vpop.f32.mrb[45].mxu1  ;;  %v7800_v27 = vpop.f32.mrb[47].mxu0  ;;  %8158 = vmatprep.subr.bf16.mxu0 %v8779_v48 }
 0x25a   :  { %v6083_v28 = vadd.f32 %v7798_v24, %v6043_v16  ;;  %v7820_v41 = vadd.f32 %v7819_v26, %v7818_v23  ;;  %v7821_v29 = vpop.f32.mrb[46].mxu1  ;;  %v6624_v16 = vld [vmem:[%s10768_s3 + $0x78] sm:$0xff] }
 0x25b   :  { %v7822_v30 = vpop.f32.mrb[47].mxu1  ;;  %v8162_v17 = vpack.c.bf16 %v6624_v16, %v6623_v15 }
 0x25c   :  { %v6123_v31 = vadd.f32 %v7820_v41, %v6083_v28  ;;  %8160 = vmatpush3.bf16.msra.mxu0 %v8159_v9 }
 0x25d   :  { %8161 = vmatprep.subr.bf16.mxu0 %v8779_v48 }
 0x260   :  { %8163 = vmatpush3.bf16.msra.mxu0 %v8162_v17 }
 0x276   :  { %v7840_v32 = vpop.f32.mrb[48].mxu0 }
 0x277   :  { %v7841_v33 = vpop.f32.mrb[49].mxu0 }
 0x278   :  { %v7862_v34 = vpop.f32.mrb[48].mxu1  ;;  %v7842_v35 = vadd.f32 %v7841_v33, %v7840_v32  ;;  %v7843_v36 = vpop.f32.mrb[50].mxu0 }
 0x279   :  { %v7863_v37 = vpop.f32.mrb[49].mxu1  ;;  %v7844_v38 = vpop.f32.mrb[51].mxu0 }
 0x27a   :  { %v6163_v39 = vadd.f32 %v7842_v35, %v6123_v31  ;;  %v7864_v40 = vadd.f32 %v7863_v37, %v7862_v34  ;;  %v7865_v42 = vpop.f32.mrb[50].mxu1 }
 0x27b   :  { %v7866_v43 = vpop.f32.mrb[51].mxu1 }
 0x27c   :  { %v6203_v44 = vadd.f32 %v7864_v40, %v6163_v39 }
 0x296   :  { %v7884_v0 = vpop.f32.mrb[52].mxu0 }
 0x297   :  { %v7885_v1 = vpop.f32.mrb[53].mxu0 }
 0x298   :  { %v7906_v2 = vpop.f32.mrb[52].mxu1  ;;  %v7886_v3 = vadd.f32 %v7885_v1, %v7884_v0  ;;  %v7887_v4 = vpop.f32.mrb[54].mxu0 }
 0x299   :  { %v7907_v7 = vpop.f32.mrb[53].mxu1  ;;  %v7888_v8 = vpop.f32.mrb[55].mxu0  ;;  %v7295_v4 = vld [vmem:[%s10769_s4] ss:$0 sm:$0xff] }
 0x29a   :  { %v6243_v10 = vadd.f32 %v7886_v3, %v6203_v44  ;;  %v7908_v11 = vadd.f32 %v7907_v7, %v7906_v2  ;;  %v7909_v12 = vpop.f32.mrb[54].mxu1 }
 0x29b   :  { %v7910_v13 = vpop.f32.mrb[55].mxu1 }
 0x29c   :  { %v6283_v14 = vadd.f32 %v7908_v11, %v6243_v10 }
 0x2b6   :  { %v7928_v19 = vpop.f32.mrb[56].mxu0 }
 0x2b7   :  { %v7929_v20 = vpop.f32.mrb[57].mxu0 }
 0x2b8   :  { %v7950_v21 = vpop.f32.mrb[56].mxu1  ;;  %v7930_v22 = vadd.f32 %v7929_v20, %v7928_v19  ;;  %v7931_v23 = vpop.f32.mrb[58].mxu0 }
 0x2b9   :  { %v7951_v24 = vpop.f32.mrb[57].mxu1  ;;  %v7932_v25 = vpop.f32.mrb[59].mxu0 }
 0x2ba   :  { %v6323_v26 = vadd.f32 %v7930_v22, %v6283_v14  ;;  %v7952_v27 = vadd.f32 %v7951_v24, %v7950_v21  ;;  %v7953_v28 = vpop.f32.mrb[58].mxu1 }
 0x2bb   :  { %v7954_v41 = vpop.f32.mrb[59].mxu1 }
 0x2bc   :  { %v6363_v29 = vadd.f32 %v7952_v27, %v6323_v26 }
 0x2d6   :  { %v7972_v30 = vpop.f32.mrb[60].mxu0 }
 0x2d7   :  { %v7973_v31 = vpop.f32.mrb[61].mxu0 }
 0x2d8   :  { %v7994_v32 = vpop.f32.mrb[60].mxu1  ;;  %v7974_v33 = vadd.f32 %v7973_v31, %v7972_v30  ;;  %v7975_v34 = vpop.f32.mrb[62].mxu0 }
 0x2d9   :  { %v7995_v35 = vpop.f32.mrb[61].mxu1  ;;  %v7976_v36 = vpop.f32.mrb[63].mxu0 }
 0x2da   :  { %v6403_v37 = vadd.f32 %v7974_v33, %v6363_v29  ;;  %v7996_v38 = vadd.f32 %v7995_v35, %v7994_v32  ;;  %v7997_v39 = vpop.f32.mrb[62].mxu1 }
 0x2db   :  { %v7998_v40 = vpop.f32.mrb[63].mxu1 }
 0x2dc   :  { %v6443_v42 = vadd.f32 %v7996_v38, %v6403_v37 }
 0x2f6   :  { %v8016_v43 = vpop.f32.mrb[64].mxu0 }
 0x2f7   :  { %v8017_v44 = vpop.f32.mrb[65].mxu0 }
 0x2f8   :  { %v8038_v45 = vpop.f32.mrb[64].mxu1  ;;  %v8018_v46 = vadd.f32 %v8017_v44, %v8016_v43  ;;  %v8019_v47 = vpop.f32.mrb[66].mxu0 }
 0x2f9   :  { %v8039_v48 = vpop.f32.mrb[65].mxu1  ;;  %v8020_v49 = vpop.f32.mrb[67].mxu0 }
 0x2fa   :  { %v6483_v50 = vadd.f32 %v8018_v46, %v6443_v42  ;;  %v8040_v51 = vadd.f32 %v8039_v48, %v8038_v45  ;;  %v8041_v52 = vpop.f32.mrb[66].mxu1 }
 0x2fb   :  { %v8042_v53 = vpop.f32.mrb[67].mxu1 }
 0x2fc   :  { %v6523_v54 = vadd.f32 %v8040_v51, %v6483_v50 }
 0x316   :  { %v8060_v55 = vpop.f32.mrb[68].mxu0 }
 0x317   :  { %v8061_v56 = vpop.f32.mrb[69].mxu0 }
 0x318   :  { %v8082_v57 = vpop.f32.mrb[68].mxu1  ;;  %v8062_v58 = vadd.f32 %v8061_v56, %v8060_v55  ;;  %v8063_v59 = vpop.f32.mrb[70].mxu0 }
 0x319   :  { %v8083_v60 = vpop.f32.mrb[69].mxu1  ;;  %v8064_v61 = vpop.f32.mrb[71].mxu0 }
 0x31a   :  { %v6563_v62 = vadd.f32 %v8062_v58, %v6523_v54  ;;  %v8084_v63 = vadd.f32 %v8083_v60, %v8082_v57  ;;  %v8085_v0 = vpop.f32.mrb[70].mxu1 }
 0x31b   :  { %v8086_v1 = vpop.f32.mrb[71].mxu1 }
 0x31c   :  { %v6603_v2 = vadd.f32 %v8084_v63, %v6563_v62 }
 0x31e   :  { %v6608_v3 = vmax.f32 %v6603_v2, 0.0 }
 0x320   :  { %8138 = vmatmul.mubr.f32.vlgmr.msra.gmra.mrb[72].mxu0 %v6608_v3 }
 0x3f3   :  { %v6698_v5 = vpop.f32.mrb[72].mxu0 }
 0x3f4   :  { %v6699_v6 = vadd.f32 %v7295_v4, %v6698_v5  ;;  %v8139_v7 = vpop.f32.mrb[73].mxu0 }
 0x3f6   :  { %6703 = vst.msk [vmem:[#allocation2] sm:$0x3] %vm6702_vm1, %v6699_v6 }
 0x3f7   :  { %8765 = shalt.err (!%p8762_p4)
}
 0x3f8   :  { %s8766_s20 = scalar_lea.hbm %s10770_s5, 32 }
 0x3f9   :  { %p8767_p5 = scmp.ne.s32.totalorder %s10770_s5, %s8766_s20  ;;  %p8770_p6 = scmp.lt.u32.totalorder %s8766_s20, %s10770_s5 }
 0x3fb   :  { %p8772_p7 = pnand %p8770_p6, %p8767_p5 }
 0x3fd   :  { %8775 = shalt.err (!%p8772_p7)
}
 0x3fe   :  { %6713 = dma.vmem_to_hbm [thread:$0]  %s6711_s16, 32, %s10770_s5, [#allocation3]  }
 0x3ff   :  { %8776 = dma.done.wait [#allocation3], 32  }
 0x400   :  { %8777 = vsyncadd [#allocation3], 4294967264 }
 0x401   :  { %6717 = vsyncpa [#allocation3], 1 }

// kernel: net_x_forward.2
= control target key start
LH: loop header
LB: loop body
LE: loop exit
PB: predicated region body
PF: predicated region fallthrough
CT: control target
= control target key end

     0   :  { %9 = vsyncpa [#allocation6], 0  ;;  %s16604_s0 = inlined_call_operand.vmem [shape: bf16[1920,10], index: 0, kind: input, shape index: {}]   ;;  %s16605_s1 = inlined_call_operand.hbm [shape: bf16[10,32], index: 1, kind: input, shape index: {}]   ;;  %s16606_s2 = inlined_call_operand.hbm [shape: bf16[9,32,64], index: 2, kind: input, shape index: {}]   ;;  %s16607_s3 = inlined_call_operand.hbm [shape: f32[1,64], index: 3, kind: input, shape index: {}]   ;;  %s16608_s4 = inlined_call_operand.vmem [shape: bf16[288,64], index: 4, kind: output, shape index: {}]  }
   0x1   :  { %10 = vsyncpa [#allocation8], 0  ;;  %s14179_s15 = smov 0  }
   0x2 LB: > { %s14185_s16 = sadd.s32 4294967295, %s14147_s15   ;;  %p10839_p0 = scmp.ge.s32.totalorder %s14147_s15, 1  ;;  %s14147_s15 = sphi %s14179_s15, %s16_s15  }
   0x3   : > { %p136_p1 = scmp.lt.s32.totalorder %s14147_s15, 3  ;;  %p16609_p2 = scmp.eq.s32.totalorder %s14185_s16, 0 }
   0x4   : > { %s14149_s18 = smov [#allocation7]   ;;  %s14150_s20 = smov [#allocation5]  }
   0x5   : > { %p14190_p3 = pnand %p10839_p0, %p136_p1  ;;  %s161_s19 = sshll.u32 %s14149_s18, 4  ;;  %s162_s19 = int_to_ptr.vmem [resolvable:$true] %s161_s19 }
   0x6   : > { %s148_s21 = sshll.u32 %s14150_s20, 4  ;;  %s14151_s23 = smov [#allocation9]   ;;  %s14202_s21 = int_to_ptr.vmem [resolvable:$true] %s148_s21 }
   0x7   : > { %s16617_s17 = scalar_select %p14190_p3, 1, 0 }
   0x8   : > { %p13939_p4 = pneg %p14190_p3  ;;  %s175_s24 = sshll.u32 %s14151_s23, 4  ;;  %s14204_s24 = int_to_ptr.vmem [resolvable:$true] %s175_s24 }
   0x9   : > { %s14049_s27 = scalar_lea.hbm %s16606_s2, 2304 }
   0xa   : > { %p14198_p5 = pnand %p16609_p2, %p13939_p4  ;;  %p14050_p6 = scmp.ne.s32.totalorder %s16606_s2, %s14049_s27 }
   0xb   : > { %p14056_p10 = scmp.lt.u32.totalorder %s14049_s27, %s16606_s2 }
   0xc   : > { %p14214_p7 = pneg %p14198_p5 }
   0xe   : > { %p14052_p8 = pnand %p14214_p7, %p14050_p6 }
  0x10   : > { %p14053_p9 = pneg %p14052_p8 }
  0x12   : > { %p14058_p11 = pnand %p14056_p10, %p14053_p9 }
  0x14   : > { %14061 = shalt.err (!%p14058_p11)
}
  0x15   : > { %s14062_s7 = scalar_lea.vmem %s162_s19, 2304  ;;  %p14070_p1 = scmp.lt.s32.totalorder %s162_s19, %s162_s19 }
  0x16   : > { %p14063_p12 = scmp.ne.s32.totalorder %s162_s19, %s14062_s7  ;;  %p14071_p4 = scmp.lt.s32.totalorder %s14062_s7, %s14062_s7 }
  0x18   : > { %p14065_p13 = pnand %p14063_p12, %p14214_p7  ;;  %p14072_p2 = por %p14071_p4, %p14070_p1 }
  0x1a   : > { %p14066_p0 = pneg %p14065_p13 }
  0x1c   : > { %p14073_p3 = pnand %p14072_p2, %p14066_p0 }
  0x1e   : > { %14076 = shalt.err (!%p14073_p3)
}
  0x1f   : > { %s14152_s8 = smov 64   ;;  %s14153_s9 = smov 4  }
  0x20   : > { %13945 = dma.hbm_to_vmem [thread:$0]  (!%p14198_p5), %s16606_s2, 2304, %s162_s19, [#allocation8], %s14152_s8, %s14152_s8, %s14153_s9  }
  0x21   : > { %s14077_s14 = scalar_lea.hbm %s16605_s1, 128 }
  0x22   : > { %p14078_p6 = scmp.ne.s32.totalorder %s16605_s1, %s14077_s14  ;;  %p14084_p8 = scmp.lt.u32.totalorder %s14077_s14, %s16605_s1 }
  0x24   : > { %p14080_p2 = pnand %p14078_p6, %p14214_p7 }
  0x26   : > { %p14081_p3 = pneg %p14080_p2 }
  0x28   : > { %p14086_p9 = pnand %p14084_p8, %p14081_p3 }
  0x2a   : > { %14089 = shalt.err (!%p14086_p9)
}
  0x2b   : > { %s14090_s19 = scalar_lea.vmem %s14202_s21, 128  ;;  %p14098_p13 = scmp.lt.s32.totalorder %s14202_s21, %s14202_s21 }
  0x2c   : > { %p14091_p10 = scmp.ne.s32.totalorder %s14202_s21, %s14090_s19  ;;  %p14099_p0 = scmp.lt.s32.totalorder %s14090_s19, %s14090_s19 }
  0x2e   : > { %p14093_p11 = pnand %p14091_p10, %p14214_p7  ;;  %p14100_p1 = por %p14099_p0, %p14098_p13 }
  0x30   : > { %p14094_p12 = pneg %p14093_p11 }
  0x32   : > { %p14101_p4 = pnand %p14100_p1, %p14094_p12 }
  0x34   : > { %14104 = shalt.err (!%p14101_p4)
}
  0x35   : > { %13942 = dma.hbm_to_vmem [thread:$0]  (!%p14198_p5), %s16605_s1, 128, %s14202_s21, [#allocation6], %s14152_s8, %s14152_s8, %s14153_s9  }
  0x36   : > { %s14105_s5 = scalar_lea.hbm %s16607_s3, 16 }
  0x37   : > { %p14106_p6 = scmp.ne.s32.totalorder %s16607_s3, %s14105_s5  ;;  %p14112_p8 = scmp.lt.u32.totalorder %s14105_s5, %s16607_s3 }
  0x39   : > { %p14108_p2 = pnand %p14106_p6, %p14214_p7 }
  0x3b   : > { %p14109_p3 = pneg %p14108_p2 }
  0x3d   : > { %p14114_p9 = pnand %p14112_p8, %p14109_p3 }
  0x3f   : > { %14117 = shalt.err (!%p14114_p9)
}
  0x40   : > { %s14118_s21 = scalar_lea.vmem %s14204_s24, 16  ;;  %s14125_s8 = scalar_lea.vmem %s14204_s24, 32 }
  0x41   : > { %p14119_p10 = scmp.ne.s32.totalorder %s14204_s24, %s14118_s21  ;;  %p14126_p13 = scmp.lt.s32.totalorder %s14204_s24, %s14204_s24 }
  0x42   : > { %p14127_p0 = scmp.lt.s32.totalorder %s14125_s8, %s14118_s21 }
  0x43   : > { %p14121_p11 = pnand %p14119_p10, %p14214_p7 }
  0x44   : > { %p14128_p1 = por %p14127_p0, %p14126_p13 }
  0x45   : > { %p14122_p12 = pneg %p14121_p11 }
  0x47   : > { %p14129_p4 = pnand %p14128_p1, %p14122_p12 }
  0x49   : > { %14132 = shalt.err (!%p14129_p4)
}
  0x4a   : > { %13948 = dma.hbm_to_vmem [thread:$0]  (!%p14198_p5), %s16607_s3, 16, %s14204_s24, [#allocation8]  }
  0x4b   : > { %p16620_p6 = scmp.ne.s32.totalorder %s16617_s17, 0 }
  0x4d   : > { %197 = sbr.rel (%p16620_p6) target bundleno = 1528 (0x5f8), region = 36 }
  0x54   : > { %p16621_p7 = scmp.eq.s32.totalorder %s14185_s16, 0 }
  0x56   : > { %14138 = dma.done.wait (%p16621_p7), [#allocation6], 128   ;;  %p16622_p2 = pmov %p16621_p7 }
  0x58   : > { %14140 = vsyncadd (%p16622_p2), [#allocation6], 4294967168  ;;  %p16623_p3 = pmov %p16622_p2 }
  0x59   : > { %p16624_p8 = pmov %p16622_p2 }
  0x5a   : > { %14142 = dma.done.wait (%p16623_p3), [#allocation8], 2320  }
  0x5b   : > { %14144 = vsyncadd (%p16624_p8), [#allocation8], 4294964976  ;;  %s231_s22 = smul.u32 120, %s14185_s16  ;;  %vm895_vm0 = vcmask 1044480   ;;  %vm714_vm1 = vcmask 80896   ;;  %v14024_v27 = vld [vmem:[#allocation7] sm:$0xff]  }
  0x5c   : > { %v13968_v0 = vld [vmem:[#allocation5] sm:$0x1f]   ;;  %v14030_v50 = vld [vmem:[#allocation7 + $0x8] sm:$0xff]   ;;  %vm1592_vm2 = vcmask 261120   ;;  %vm2059_vm3 = vsmask.f32 7424 }
  0x5d   : > { %p232_p9 = scmp.lt.s32.totalorder %s231_s22, 239  ;;  %13925 = vmatprep.subr.msk.bf16.mxu0 %vm895_vm0, %v13968_v0  ;;  %v897_v2 = vsel %vm895_vm0, %v13968_v0, 0  ;;  %13926 = vmatprep.subr.msk.bf16.mxu1 %vm895_vm0, %v13968_v0  ;;  %v14031_v0 = vld [vmem:[#allocation7 + $0x10] sm:$0xff]   ;;  %vm2639_vm4 = vcmask 1046528   ;;  %vm5876_vm5 = vcmask 523264   ;;  %s237_s14 = smul.u32 18, %s14185_s16 }
  0x5e   : > { %12002 = vmatpush3.bf16.msra.mxu0 %v897_v2  ;;  %13060 = vmatpush3.bf16.msra.mxu1 %v897_v2  ;;  %vm10566_vm6 = vcmask 517120   ;;  %vm10564_vm7 = vcmask 519168   ;;  %vm10578_vm8 = vcmask 1041408   ;;  %vm10579_vm9 = vcmask 1045508  }
  0x5f   : > { %s16652_s22 = smov (!%p232_p9, %s231_s22), 239  ;;  %12123 = vmatprep.subr.bf16.mxu1 %v14024_v27  ;;  %12591 = vmatprep.subr.bf16.mxu0 %v14024_v27  ;;  %p16312_p5 = scmp.lt.s32.totalorder %s237_s14, 35  ;;  %vm16369_vm10 = vmor %vm10578_vm8, %vm10579_vm9  ;;  %vm10587_vm11 = vcmask 519170  }
  0x60   : > { %s10848_s24 = sshll.u32 %s16652_s22, 2 }
  0x61   : > { %s14291_s13 = scalar_lea.vmem %s16604_s0, %s10848_s24  ;;  %s16654_s14 = smov (!%p16312_p5, %s237_s14), 35 }
  0x62   : > { %v13969_v1 = vld [vmem:[%s14291_s13] sm:$0xff]   ;;  %v13970_v3 = vld [vmem:[%s14291_s13 + $0x8] sm:$0xff]   ;;  %v13971_v4 = vld [vmem:[%s14291_s13 + $0x10] sm:$0xff]   ;;  %s10849_s16 = sshll.u32 %s16654_s14, 2 }
  0x63   : > { %12003 = vmatprep.mubr.msk.bf16.mxu0 %vm714_vm1, %v13969_v1  ;;  %v13972_v5 = vld [vmem:[%s14291_s13 + $0x18] sm:$0xff]   ;;  %v13973_v6 = vld [vmem:[%s14291_s13 + $0x20] sm:$0xff]   ;;  %v13974_v7 = vld [vmem:[%s14291_s13 + $0x28] sm:$0xff]   ;;  %s16340_s25 = scalar_lea.vmem %s16608_s4, %s10849_s16 }
  0x64   : > { %12004 = vmatmul.mubr.msk.bf16.vlgmr.msra.gmra.mrb[0].mxu0 %vm714_vm1, %v13970_v3  ;;  %v13975_v8 = vld [vmem:[%s14291_s13 + $0x30] sm:$0xff]   ;;  %v13976_v9 = vld [vmem:[%s14291_s13 + $0x38] sm:$0xff]   ;;  %v13977_v10 = vld [vmem:[%s14291_s13 + $0x40] sm:$0xff]  }
  0x65   : > { %12007 = vmatprep.mubr.msk.bf16.mxu0 %vm714_vm1, %v13971_v4  ;;  %v13997_v11 = vld [vmem:[%s14291_s13 + $0xf0] sm:$0xff]   ;;  %v13998_v12 = vld [vmem:[%s14291_s13 + $0xf8] sm:$0xff]   ;;  %v14001_v13 = vld [vmem:[%s14291_s13 + $0x100] sm:$0xff]   ;;  %12592 = vmatpush3.bf16.msra.mxu0 %v14024_v27 }
  0x66   : > { %12063 = vmatprep.mubr.msk.bf16.mxu1 %vm714_vm1, %v13997_v11  ;;  %v13978_v14 = vld [vmem:[%s14291_s13 + $0x48] sm:$0xff]   ;;  %v13979_v15 = vld [vmem:[%s14291_s13 + $0x50] sm:$0xff]   ;;  %v13980_v18 = vld [vmem:[%s14291_s13 + $0x58] sm:$0xff]   ;;  %12593 = vmatprep.subr.bf16.mxu0 %v14030_v50 }
  0x67   : > { %12064 = vmatmul.mubr.msk.bf16.vlgmr.msra.gmra.mrb[0].mxu1 %vm714_vm1, %v13998_v12  ;;  %v14002_v16 = vld [vmem:[%s14291_s13 + $0x108] sm:$0xff]   ;;  %v14003_v17 = vld [vmem:[%s14291_s13 + $0x110] sm:$0xff]   ;;  %v13981_v19 = vld [vmem:[%s14291_s13 + $0x60] sm:$0xff]  }
  0x68   : > { %12067 = vmatprep.mubr.msk.bf16.mxu1 %vm714_vm1, %v14001_v13  ;;  %v14004_v20 = vld [vmem:[%s14291_s13 + $0x118] sm:$0xff]   ;;  %v14005_v21 = vld [vmem:[%s14291_s13 + $0x120] sm:$0xff]   ;;  %v13982_v22 = vld [vmem:[%s14291_s13 + $0x68] sm:$0xff]   ;;  %12124 = vmatpush3.bf16.msra.mxu1 %v14024_v27 }
  0x69   : > { %v13983_v23 = vld [vmem:[%s14291_s13 + $0x70] sm:$0xff]   ;;  %v14006_v24 = vld [vmem:[%s14291_s13 + $0x128] sm:$0xff]   ;;  %v13984_v26 = vld [vmem:[%s14291_s13 + $0x78] sm:$0xff]   ;;  %12125 = vmatprep.subr.bf16.mxu1 %v14030_v50  ;;  %12594 = vmatpush3.bf16.msra.mxu0 %v14030_v50 }
  0x6a   : > { %v14007_v25 = vld [vmem:[%s14291_s13 + $0x130] sm:$0xff]   ;;  %v13985_v28 = vld [vmem:[%s14291_s13 + $0x80] sm:$0xff]   ;;  %v14008_v29 = vld [vmem:[%s14291_s13 + $0x138] sm:$0xff]   ;;  %12643 = vmatprep.subr.bf16.mxu0 %v14031_v0 }
  0x6b   : > { %v14009_v30 = vld [vmem:[%s14291_s13 + $0x140] sm:$0xff]   ;;  %v13986_v31 = vld [vmem:[%s14291_s13 + $0x88] sm:$0xff]   ;;  %v13987_v32 = vld [vmem:[%s14291_s13 + $0x90] sm:$0xff]  }
  0x6c   : > { %12008 = vmatmul.mubr.msk.bf16.gmra.mrb[4].mxu0 %vm714_vm1, %v13972_v5  ;;  %v14010_v33 = vld [vmem:[%s14291_s13 + $0x148] sm:$0xff]   ;;  %v14011_v34 = vld [vmem:[%s14291_s13 + $0x150] sm:$0xff]   ;;  %v13988_v35 = vld [vmem:[%s14291_s13 + $0x98] sm:$0xff]   ;;  %12126 = vmatpush3.bf16.msra.mxu1 %v14030_v50 }
  0x6d   : > { %12011 = vmatprep.mubr.msk.bf16.mxu0 %vm714_vm1, %v13973_v6  ;;  %v13989_v36 = vld [vmem:[%s14291_s13 + $0xa0] sm:$0xff]   ;;  %v14012_v37 = vld [vmem:[%s14291_s13 + $0x158] sm:$0xff]   ;;  %v13990_v39 = vld [vmem:[%s14291_s13 + $0xa8] sm:$0xff]   ;;  %12175 = vmatprep.subr.bf16.mxu1 %v14031_v0 }
  0x6e   : > { %v14013_v38 = vld [vmem:[%s14291_s13 + $0x160] sm:$0xff]   ;;  %v13991_v40 = vld [vmem:[%s14291_s13 + $0xb0] sm:$0xff]   ;;  %v14014_v41 = vld [vmem:[%s14291_s13 + $0x168] sm:$0xff]  }
  0x6f   : > { %12068 = vmatmul.mubr.msk.bf16.gmra.mrb[4].mxu1 %vm714_vm1, %v14002_v16  ;;  %v14015_v42 = vld [vmem:[%s14291_s13 + $0x170] sm:$0xff]   ;;  %v13992_v43 = vld [vmem:[%s14291_s13 + $0xb8] sm:$0xff]   ;;  %v13993_v44 = vld [vmem:[%s14291_s13 + $0xc0] sm:$0xff]  }
  0x70   : > { %12071 = vmatprep.mubr.msk.bf16.mxu1 %vm714_vm1, %v14003_v17  ;;  %v14016_v45 = vld [vmem:[%s14291_s13 + $0x178] sm:$0xff]   ;;  %v14017_v46 = vld [vmem:[%s14291_s13 + $0x180] sm:$0xff]   ;;  %v13994_v47 = vld [vmem:[%s14291_s13 + $0xc8] sm:$0xff]  }
  0x71   : > { %v13995_v48 = vld [vmem:[%s14291_s13 + $0xd0] sm:$0xff]   ;;  %v14018_v49 = vld [vmem:[%s14291_s13 + $0x188] sm:$0xff]   ;;  %v13996_v52 = vld [vmem:[%s14291_s13 + $0xd8] sm:$0xff]  }
  0x72   : > { %v14019_v51 = vld [vmem:[%s14291_s13 + $0x190] sm:$0xff]   ;;  %v13999_v53 = vld [vmem:[%s14291_s13 + $0xe0] sm:$0xff]   ;;  %v14020_v54 = vld [vmem:[%s14291_s13 + $0x198] sm:$0xff]  }
  0x73   : > { %v14021_v55 = vld [vmem:[%s14291_s13 + $0x1a0] sm:$0xff]   ;;  %v14000_v56 = vld [vmem:[%s14291_s13 + $0xe8] sm:$0xff]   ;;  %v14023_v58 = vld [vmem:[%s14291_s13 + $0x1b0] sm:$0xff]  }
  0x74   : > { %12012 = vmatmul.mubr.msk.bf16.gmra.mrb[8].mxu0 %vm714_vm1, %v13974_v7  ;;  %v14022_v57 = vld [vmem:[%s14291_s13 + $0x1a8] sm:$0xff]   ;;  %v14025_v59 = vld [vmem:[%s14291_s13 + $0x1b8] sm:$0xff]   ;;  %v14026_v60 = vld [vmem:[%s14291_s13 + $0x1c0] sm:$0xff]  }
  0x75   : > { %12015 = vmatprep.mubr.msk.bf16.mxu0 %vm714_vm1, %v13975_v8  ;;  %v14027_v61 = vld [vmem:[%s14291_s13 + $0x1c8] sm:$0xff]   ;;  %v14028_v62 = vld [vmem:[%s14291_s13 + $0x1d0] sm:$0xff]   ;;  %v14029_v63 = vld [vmem:[%s14291_s13 + $0x1d8] sm:$0xff]  }
  0x77   : > { %12072 = vmatmul.mubr.msk.bf16.gmra.mrb[8].mxu1 %vm714_vm1, %v14004_v20 }
  0x78   : > { %12075 = vmatprep.mubr.msk.bf16.mxu1 %vm714_vm1, %v14005_v21 }
  0x7c   : > { %12016 = vmatmul.mubr.msk.bf16.gmra.mrb[12].mxu0 %vm714_vm1, %v13976_v9 }
  0x7d   : > { %12019 = vmatprep.mubr.msk.bf16.mxu0 %vm714_vm1, %v13977_v10 }
  0x7f   : > { %12076 = vmatmul.mubr.msk.bf16.gmra.mrb[12].mxu1 %vm714_vm1, %v14006_v24 }
  0x80   : > { %12079 = vmatprep.mubr.msk.bf16.mxu1 %vm714_vm1, %v14007_v25 }
  0x84   : > { %12020 = vmatmul.mubr.msk.bf16.gmra.mrb[16].mxu0 %vm714_vm1, %v13978_v14 }
  0x85   : > { %12023 = vmatprep.mubr.msk.bf16.mxu0 %vm714_vm1, %v13979_v15 }
  0x87   : > { %12080 = vmatmul.mubr.msk.bf16.gmra.mrb[16].mxu1 %vm714_vm1, %v14008_v29 }
  0x88   : > { %12083 = vmatprep.mubr.msk.bf16.mxu1 %vm714_vm1, %v14009_v30 }
  0x8c   : > { %12024 = vmatmul.mubr.msk.bf16.gmra.mrb[20].mxu0 %vm714_vm1, %v13980_v18 }
  0x8d   : > { %12027 = vmatprep.mubr.msk.bf16.mxu0 %vm714_vm1, %v13981_v19 }
  0x8f   : > { %12084 = vmatmul.mubr.msk.bf16.gmra.mrb[20].mxu1 %vm714_vm1, %v14010_v33 }
  0x90   : > { %12087 = vmatprep.mubr.msk.bf16.mxu1 %vm714_vm1, %v14011_v34 }
  0x94   : > { %12028 = vmatmul.mubr.msk.bf16.gmra.mrb[24].mxu0 %vm714_vm1, %v13982_v22 }
  0x95   : > { %12031 = vmatprep.mubr.msk.bf16.mxu0 %vm714_vm1, %v13983_v23  ;;  %v14418_v23 = vld [vmem:[#allocation7 + $0x18] sm:$0xff]  }
  0x97   : > { %12088 = vmatmul.mubr.msk.bf16.gmra.mrb[24].mxu1 %vm714_vm1, %v14012_v37 }
  0x98   : > { %12091 = vmatprep.mubr.msk.bf16.mxu1 %vm714_vm1, %v14013_v38 }
  0x9c   : > { %12032 = vmatmul.mubr.msk.bf16.gmra.mrb[28].mxu0 %vm714_vm1, %v13984_v26 }
  0x9d   : > { %12035 = vmatprep.mubr.msk.bf16.mxu0 %vm714_vm1, %v13985_v28 }
  0x9f   : > { %12092 = vmatmul.mubr.msk.bf16.gmra.mrb[28].mxu1 %vm714_vm1, %v14014_v41 }
  0xa0   : > { %12095 = vmatprep.mubr.msk.bf16.mxu1 %vm714_vm1, %v14015_v42 }
  0xa4   : > { %12036 = vmatmul.mubr.msk.bf16.gmra.mrb[32].mxu0 %vm714_vm1, %v13986_v31 }
  0xa5   : > { %12039 = vmatprep.mubr.msk.bf16.mxu0 %vm714_vm1, %v13987_v32 }
  0xa7   : > { %12096 = vmatmul.mubr.msk.bf16.gmra.mrb[32].mxu1 %vm714_vm1, %v14016_v45 }
  0xa8   : > { %12099 = vmatprep.mubr.msk.bf16.mxu1 %vm714_vm1, %v14017_v46 }
  0xac   : > { %12040 = vmatmul.mubr.msk.bf16.gmra.mrb[36].mxu0 %vm714_vm1, %v13988_v35 }
  0xad   : > { %12043 = vmatprep.mubr.msk.bf16.mxu0 %vm714_vm1, %v13989_v36 }
  0xaf   : > { %12100 = vmatmul.mubr.msk.bf16.gmra.mrb[36].mxu1 %vm714_vm1, %v14018_v49 }
  0xb0   : > { %12103 = vmatprep.mubr.msk.bf16.mxu1 %vm714_vm1, %v14019_v51 }
  0xb4   : > { %12044 = vmatmul.mubr.msk.bf16.gmra.mrb[40].mxu0 %vm714_vm1, %v13990_v39 }
  0xb5   : > { %12047 = vmatprep.mubr.msk.bf16.mxu0 %vm714_vm1, %v13991_v40 }
  0xb7   : > { %12104 = vmatmul.mubr.msk.bf16.gmra.mrb[40].mxu1 %vm714_vm1, %v14020_v54 }
  0xb8   : > { %12107 = vmatprep.mubr.msk.bf16.mxu1 %vm714_vm1, %v14021_v55 }
  0xbc   : > { %12048 = vmatmul.mubr.msk.bf16.gmra.mrb[44].mxu0 %vm714_vm1, %v13992_v43 }
  0xbd   : > { %12051 = vmatprep.mubr.msk.bf16.mxu0 %vm714_vm1, %v13993_v44 }
  0xbf   : > { %12108 = vmatmul.mubr.msk.bf16.gmra.mrb[44].mxu1 %vm714_vm1, %v14022_v57 }
  0xc0   : > { %12111 = vmatprep.mubr.msk.bf16.mxu1 %vm714_vm1, %v14023_v58 }
  0xc4   : > { %12052 = vmatmul.mubr.msk.bf16.gmra.mrb[48].mxu0 %vm714_vm1, %v13994_v47 }
  0xc5   : > { %12055 = vmatprep.mubr.msk.bf16.mxu0 %vm714_vm1, %v13995_v48 }
  0xc7   : > { %12112 = vmatmul.mubr.msk.bf16.gmra.mrb[48].mxu1 %vm714_vm1, %v14025_v59 }
  0xc8   : > { %12115 = vmatprep.mubr.msk.bf16.mxu1 %vm714_vm1, %v14026_v60 }
  0xcc   : > { %12056 = vmatmul.mubr.msk.bf16.gmra.mrb[52].mxu0 %vm714_vm1, %v13996_v52 }
  0xcd   : > { %12059 = vmatprep.mubr.msk.bf16.mxu0 %vm714_vm1, %v13999_v53 }
  0xcf   : > { %12116 = vmatmul.mubr.msk.bf16.gmra.mrb[52].mxu1 %vm714_vm1, %v14027_v61 }
  0xd0   : > { %12119 = vmatprep.mubr.msk.bf16.mxu1 %vm714_vm1, %v14028_v62 }
  0xd4   : > { %12060 = vmatmul.mubr.msk.bf16.gmra.mrb[56].mxu0 %vm714_vm1, %v14000_v56 }
  0xd7   : > { %12120 = vmatmul.mubr.msk.bf16.gmra.mrb[56].mxu1 %vm714_vm1, %v14029_v63 }
 0x137   : > { %v12005_v1 = vpop.f32.mrb[0].mxu0 }
 0x138   : > { %v933_v2 = vpop.f32.mrb[1].mxu0  ;;  %v1414_v4 = vmax.f32 %v12005_v1, 0.0 }
 0x139   : > { %v12006_v3 = vpop.f32.mrb[2].mxu0  ;;  %v1412_v7 = vmax.f32 %v933_v2, 0.0 }
 0x13a   : > { %v1415_v5 = vmax.f32 %v12006_v3, 0.0  ;;  %v936_v6 = vpop.f32.mrb[3].mxu0  ;;  %v12065_v55 = vpop.f32.mrb[0].mxu1 }
 0x13b   : > { %v1413_v8 = vmax.f32 %v936_v6, 0.0  ;;  %v1474_v62 = vmax.f32 %v12065_v55, 0.0  ;;  %v1173_v63 = vpop.f32.mrb[1].mxu1 }
 0x13c   : > { %v1533_v9 = vpack.c.bf16 %v1415_v5, %v1414_v4  ;;  %v1472_v2 = vmax.f32 %v1173_v63, 0.0  ;;  %v12066_v3 = vpop.f32.mrb[2].mxu1 }
 0x13d   : > { %v1532_v10 = vpack.c.bf16 %v1413_v8, %v1412_v7  ;;  %v1475_v7 = vmax.f32 %v12066_v3, 0.0  ;;  %v1176_v8 = vpop.f32.mrb[3].mxu1 }
 0x13e   : > { %1594 = vst.msk [vmem:[#allocation2 + $0x8] sm:$0xff] %vm1592_vm2, %v1533_v9 }
 0x13f   : > { %1593 = vst.msk [vmem:[#allocation2] sm:$0xff] %vm1592_vm2, %v1532_v10  ;;  %v12009_v11 = vpop.f32.mrb[4].mxu0 }
 0x140   : > { %v949_v12 = vpop.f32.mrb[5].mxu0  ;;  %v1418_v14 = vmax.f32 %v12009_v11, 0.0  ;;  %v1473_v11 = vmax.f32 %v1176_v8, 0.0 }
 0x141   : > { %v12010_v13 = vpop.f32.mrb[6].mxu0  ;;  %v1416_v17 = vmax.f32 %v949_v12, 0.0 }
 0x142   : > { %v1419_v15 = vmax.f32 %v12010_v13, 0.0  ;;  %v952_v16 = vpop.f32.mrb[7].mxu0 }
 0x143   : > { %v1417_v18 = vmax.f32 %v952_v16, 0.0 }
 0x144   : > { %v1535_v19 = vpack.c.bf16 %v1419_v15, %v1418_v14  ;;  %v1563_v14 = vpack.c.bf16 %v1475_v7, %v1474_v62 }
 0x145   : > { %v1534_v20 = vpack.c.bf16 %v1417_v18, %v1416_v17  ;;  %v14415_v21 = vld [vmem:[#allocation2 + $0x8] sm:$0xff] }
 0x146   : > { %1596 = vst.msk [vmem:[#allocation2 + $0x18] sm:$0xff] %vm1592_vm2, %v1535_v19  ;;  %v1653_v22 = vld [vmem:[#allocation2] sm:$0xff]  ;;  %v2068_v26 = vshll.u32 %v14415_v21, 16  ;;  %v2072_v43 = vshrl.u32 %v14415_v21, 16  ;;  %v16611_v48 = vrot.slane %v14415_v21, 1  ;;  %v1562_v19 = vpack.c.bf16 %v1473_v11, %v1472_v2  ;;  %1624 = vst.msk [vmem:[#allocation2 + $0xf8] sm:$0xff] %vm1592_vm2, %v1563_v14 }
 0x147   : > { %1595 = vst.msk [vmem:[#allocation2 + $0x10] sm:$0xff] %vm1592_vm2, %v1534_v20  ;;  %v12013_v24 = vpop.f32.mrb[8].mxu0  ;;  %12127 = vmatprep.mubr.msk.bf16.mxu1 %vm1592_vm2, %v1653_v22  ;;  %v2063_v25 = vshll.u32 %v1653_v22, 16  ;;  %v2061_v29 = vshrl.u32 %v1653_v22, 16 }
 0x148   : > { %v965_v27 = vpop.f32.mrb[9].mxu0  ;;  %12128 = vmatmul.mubr.msk.bf16.vlgmr.msra.gmra.mrb[60].mxu1 %vm1592_vm2, %v14415_v21  ;;  %v1422_v31 = vmax.f32 %v12013_v24, 0.0  ;;  %v2070_v37 = vrot.slane %v2068_v26, 1  ;;  %1623 = vst.msk [vmem:[#allocation2 + $0xf0] sm:$0xff] %vm1592_vm2, %v1562_v19 }
 0x149   : > { %v12014_v28 = vpop.f32.mrb[10].mxu0  ;;  %12176 = vmatpush3.bf16.msra.mxu1 %v14031_v0  ;;  %v2065_v30 = vrot.slane %v2063_v25, 1  ;;  %v1420_v34 = vmax.f32 %v965_v27, 0.0 }
 0x14a   : > { %v1423_v32 = vmax.f32 %v12014_v28, 0.0  ;;  %v968_v33 = vpop.f32.mrb[11].mxu0  ;;  %12177 = vmatprep.subr.bf16.mxu1 %v14418_v23  ;;  %v2074_v51 = vor.u32 %v2072_v43, %v2070_v37 }
 0x14b   : > { %v1421_v35 = vmax.f32 %v968_v33, 0.0  ;;  %v2066_v36 = vor.u32 %v2065_v30, %v2061_v29  ;;  %v12069_v29 = vpop.f32.mrb[4].mxu1 }
 0x14c   : > { %v1537_v38 = vpack.c.bf16 %v1423_v32, %v1422_v31 }
 0x14d   : > { %v1536_v39 = vpack.c.bf16 %v1421_v35, %v1420_v34  ;;  %v14426_v40 = vld [vmem:[#allocation2 + $0x18] sm:$0xff]  ;;  %v14429_v41 = vsel %vm2059_vm3, %v2066_v36, %v2070_v37  ;;  %12178 = vmatpush3.bf16.msra.mxu1 %v14418_v23  ;;  %v1478_v36 = vmax.f32 %v12069_v29, 0.0  ;;  %v1189_v37 = vpop.f32.mrb[5].mxu1 }
 0x14e   : > { %1598 = vst.msk [vmem:[#allocation2 + $0x28] sm:$0xff] %vm1592_vm2, %v1537_v38  ;;  %v1655_v42 = vld [vmem:[#allocation2 + $0x10] sm:$0xff]  ;;  %v2084_v44 = vshll.u32 %v14426_v40, 16  ;;  %v2645_v45 = vrot.slane %v14426_v40, 1  ;;  %v2088_v15 = vshrl.u32 %v14426_v40, 16 }
 0x14f   : > { %1597 = vst.msk [vmem:[#allocation2 + $0x20] sm:$0xff] %vm1592_vm2, %v1536_v39  ;;  %v12017_v46 = vpop.f32.mrb[12].mxu0  ;;  %12131 = vmatprep.mubr.msk.bf16.mxu1 %vm1592_vm2, %v1655_v42  ;;  %v2076_v47 = vshll.u32 %v1655_v42, 16  ;;  %v2643_v49 = vrot.slane %v1655_v42, 1  ;;  %v2080_v52 = vshrl.u32 %v1655_v42, 16  ;;  %v12070_v42 = vpop.f32.mrb[6].mxu1 }
 0x150   : > { %v981_v50 = vpop.f32.mrb[13].mxu0  ;;  %12132 = vmatmul.mubr.msk.bf16.gmra.mrb[64].mxu1 %vm1592_vm2, %v14426_v40  ;;  %v1426_v53 = vmax.f32 %v12017_v46, 0.0  ;;  %v2086_v0 = vrot.slane %v2084_v44, 1  ;;  %v1476_v40 = vmax.f32 %v1189_v37, 0.0 }
 0x151   : > { %v12018_v54 = vpop.f32.mrb[14].mxu0  ;;  %v2078_v56 = vrot.slane %v2076_v47, 1  ;;  %v14444_v57 = vsel %vm2639_vm4, %v16611_v48, %v2643_v49  ;;  %v14447_v58 = vsel %vm2639_vm4, %v2643_v49, %v2645_v45  ;;  %v1424_v59 = vmax.f32 %v981_v50, 0.0 }
 0x152   : > { %v1427_v60 = vmax.f32 %v12018_v54, 0.0  ;;  %v984_v61 = vpop.f32.mrb[15].mxu0  ;;  %v2090_v25 = vor.u32 %v2088_v15, %v2086_v0  ;;  %v1479_v47 = vmax.f32 %v12070_v42, 0.0 }
 0x153   : > { %v1425_v1 = vmax.f32 %v984_v61, 0.0  ;;  %v14450_v4 = vsel %vm2059_vm3, %v2074_v51, %v2078_v56  ;;  %v2082_v5 = vor.u32 %v2080_v52, %v2078_v56 }
 0x154   : > { %v1539_v6 = vpack.c.bf16 %v1427_v60, %v1426_v53  ;;  %v1565_v54 = vpack.c.bf16 %v1479_v47, %v1478_v36 }
 0x155   : > { %v1538_v9 = vpack.c.bf16 %v1425_v1, %v1424_v59  ;;  %v14452_v10 = vld [vmem:[#allocation2 + $0x28] sm:$0xff]  ;;  %v14455_v12 = vsel %vm2059_vm3, %v2082_v5, %v2086_v0 }
 0x156   : > { %1600 = vst.msk [vmem:[#allocation2 + $0x38] sm:$0xff] %vm1592_vm2, %v1539_v6  ;;  %v1657_v13 = vld [vmem:[#allocation2 + $0x20] sm:$0xff]  ;;  %v2100_v16 = vshll.u32 %v14452_v10, 16  ;;  %v2649_v17 = vrot.slane %v14452_v10, 1  ;;  %v2104_v55 = vshrl.u32 %v14452_v10, 16  ;;  %1626 = vst.msk [vmem:[#allocation2 + $0x108] sm:$0xff] %vm1592_vm2, %v1565_v54 }
 0x157   : > { %1599 = vst.msk [vmem:[#allocation2 + $0x30] sm:$0xff] %vm1592_vm2, %v1538_v9  ;;  %v12021_v18 = vpop.f32.mrb[16].mxu0  ;;  %12135 = vmatprep.mubr.msk.bf16.mxu1 %vm1592_vm2, %v1657_v13  ;;  %v2092_v20 = vshll.u32 %v1657_v13, 16  ;;  %v2647_v22 = vrot.slane %v1657_v13, 1  ;;  %v2096_v26 = vshrl.u32 %v1657_v13, 16 }
 0x158   : > { %v997_v24 = vpop.f32.mrb[17].mxu0  ;;  %12136 = vmatmul.mubr.msk.bf16.gmra.mrb[68].mxu1 %vm1592_vm2, %v14452_v10  ;;  %v1430_v27 = vmax.f32 %v12021_v18, 0.0  ;;  %v2102_v38 = vrot.slane %v2100_v16, 1 }
 0x159   : > { %v12022_v28 = vpop.f32.mrb[18].mxu0  ;;  %v2094_v30 = vrot.slane %v2092_v20, 1  ;;  %v14468_v31 = vsel %vm2639_vm4, %v2645_v45, %v2647_v22  ;;  %v14471_v32 = vsel %vm2639_vm4, %v2647_v22, %v2649_v17  ;;  %v1428_v33 = vmax.f32 %v997_v24, 0.0  ;;  %v1192_v45 = vpop.f32.mrb[7].mxu1 }
 0x15a   : > { %v1431_v34 = vmax.f32 %v12022_v28, 0.0  ;;  %v1000_v35 = vpop.f32.mrb[19].mxu0  ;;  %v1477_v51 = vmax.f32 %v1192_v45, 0.0  ;;  %v2106_v1 = vor.u32 %v2104_v55, %v2102_v38  ;;  %v12073_v6 = vpop.f32.mrb[8].mxu1 }
 0x15b   : > { %v1429_v39 = vmax.f32 %v1000_v35, 0.0  ;;  %v14474_v43 = vsel %vm2059_vm3, %v2090_v25, %v2094_v30  ;;  %v2098_v44 = vor.u32 %v2096_v26, %v2094_v30  ;;  %v1482_v14 = vmax.f32 %v12073_v6, 0.0  ;;  %v1205_v15 = vpop.f32.mrb[9].mxu1 }
 0x15c   : > { %v1541_v46 = vpack.c.bf16 %v1431_v34, %v1430_v27  ;;  %v1564_v61 = vpack.c.bf16 %v1477_v51, %v1476_v40  ;;  %v1480_v19 = vmax.f32 %v1205_v15, 0.0  ;;  %v12074_v20 = vpop.f32.mrb[10].mxu1 }
 0x15d   : > { %v1540_v49 = vpack.c.bf16 %v1429_v39, %v1428_v33  ;;  %v14476_v50 = vld [vmem:[#allocation2 + $0x38] sm:$0xff]  ;;  %v14479_v52 = vsel %vm2059_vm3, %v2098_v44, %v2102_v38  ;;  %v1483_v26 = vmax.f32 %v12074_v20, 0.0  ;;  %v1208_v27 = vpop.f32.mrb[11].mxu1 }
 0x15e   : > { %1602 = vst.msk [vmem:[#allocation2 + $0x48] sm:$0xff] %vm1592_vm2, %v1541_v46  ;;  %v1659_v53 = vld [vmem:[#allocation2 + $0x30] sm:$0xff]  ;;  %v2116_v56 = vshll.u32 %v14476_v50, 16  ;;  %v2653_v59 = vrot.slane %v14476_v50, 1  ;;  %1625 = vst.msk [vmem:[#allocation2 + $0x100] sm:$0xff] %vm1592_vm2, %v1564_v61  ;;  %v1481_v29 = vmax.f32 %v1208_v27, 0.0 }
 0x15f   : > { %1601 = vst.msk [vmem:[#allocation2 + $0x40] sm:$0xff] %vm1592_vm2, %v1540_v49  ;;  %v12025_v60 = vpop.f32.mrb[20].mxu0  ;;  %12139 = vmatprep.mubr.msk.bf16.mxu1 %vm1592_vm2, %v1659_v53  ;;  %v2108_v62 = vshll.u32 %v1659_v53, 16  ;;  %v2651_v63 = vrot.slane %v1659_v53, 1  ;;  %v2112_v2 = vshrl.u32 %v1659_v53, 16  ;;  %v1567_v34 = vpack.c.bf16 %v1483_v26, %v1482_v14  ;;  %v12077_v49 = vpop.f32.mrb[12].mxu1 }
 0x160   : > { %v1013_v0 = vpop.f32.mrb[21].mxu0  ;;  %12140 = vmatmul.mubr.msk.bf16.gmra.mrb[72].mxu1 %vm1592_vm2, %v14476_v50  ;;  %v1434_v3 = vmax.f32 %v12025_v60, 0.0  ;;  %v2118_v8 = vrot.slane %v2116_v56, 1  ;;  %v2120_v35 = vshrl.u32 %v14476_v50, 16  ;;  %v1566_v38 = vpack.c.bf16 %v1481_v29, %v1480_v19  ;;  %v1221_v61 = vpop.f32.mrb[13].mxu1 }
 0x161   : > { %v12026_v5 = vpop.f32.mrb[22].mxu0  ;;  %v2110_v7 = vrot.slane %v2108_v62, 1  ;;  %v14492_v9 = vsel %vm2639_vm4, %v2649_v17, %v2651_v63  ;;  %v1432_v10 = vmax.f32 %v1013_v0, 0.0  ;;  %v14495_v16 = vsel %vm2639_vm4, %v2651_v63, %v2653_v59  ;;  %1628 = vst.msk [vmem:[#allocation2 + $0x118] sm:$0xff] %vm1592_vm2, %v1567_v34 }
 0x162   : > { %v1435_v11 = vmax.f32 %v12026_v5, 0.0  ;;  %v1016_v13 = vpop.f32.mrb[23].mxu0  ;;  %v2122_v44 = vor.u32 %v2120_v35, %v2118_v8  ;;  %1627 = vst.msk [vmem:[#allocation2 + $0x110] sm:$0xff] %vm1592_vm2, %v1566_v38  ;;  %v1486_v60 = vmax.f32 %v12077_v49, 0.0  ;;  %v1484_v0 = vmax.f32 %v1221_v61, 0.0 }
 0x163   : > { %v1433_v18 = vmax.f32 %v1016_v13, 0.0  ;;  %v14498_v22 = vsel %vm2059_vm3, %v2106_v1, %v2110_v7  ;;  %v2114_v24 = vor.u32 %v2112_v2, %v2110_v7  ;;  %v12078_v1 = vpop.f32.mrb[14].mxu1 }
 0x164   : > { %v1543_v25 = vpack.c.bf16 %v1435_v11, %v1434_v3  ;;  %v1487_v6 = vmax.f32 %v12078_v1, 0.0  ;;  %v1224_v7 = vpop.f32.mrb[15].mxu1 }
 0x165   : > { %v1542_v17 = vpack.c.bf16 %v1433_v18, %v1432_v10  ;;  %v14500_v28 = vld [vmem:[#allocation2 + $0x48] sm:$0xff]  ;;  %v14503_v30 = vsel %vm2059_vm3, %v2114_v24, %v2118_v8  ;;  %v1485_v11 = vmax.f32 %v1224_v7, 0.0 }
 0x166   : > { %1604 = vst.msk [vmem:[#allocation2 + $0x58] sm:$0xff] %vm1592_vm2, %v1543_v25  ;;  %v1661_v33 = vld [vmem:[#allocation2 + $0x40] sm:$0xff]  ;;  %v2132_v36 = vshll.u32 %v14500_v28, 16  ;;  %v2657_v62 = vrot.slane %v14500_v28, 1  ;;  %v1569_v15 = vpack.c.bf16 %v1487_v6, %v1486_v60  ;;  %v2136_v24 = vshrl.u32 %v14500_v28, 16 }
 0x167   : > { %1603 = vst.msk [vmem:[#allocation2 + $0x50] sm:$0xff] %vm1592_vm2, %v1542_v17  ;;  %v12029_v37 = vpop.f32.mrb[24].mxu0  ;;  %12143 = vmatprep.mubr.msk.bf16.mxu1 %vm1592_vm2, %v1661_v33  ;;  %v2124_v39 = vshll.u32 %v1661_v33, 16  ;;  %v2655_v40 = vrot.slane %v1661_v33, 1  ;;  %v2128_v46 = vshrl.u32 %v1661_v33, 16  ;;  %v1568_v20 = vpack.c.bf16 %v1485_v11, %v1484_v0  ;;  %v12081_v33 = vpop.f32.mrb[16].mxu1 }
 0x168   : > { %v1029_v42 = vpop.f32.mrb[25].mxu0  ;;  %12144 = vmatmul.mubr.msk.bf16.gmra.mrb[76].mxu1 %vm1592_vm2, %v14500_v28  ;;  %v1438_v47 = vmax.f32 %v12029_v37, 0.0  ;;  %v2134_v51 = vrot.slane %v2132_v36, 1  ;;  %1630 = vst.msk [vmem:[#allocation2 + $0x128] sm:$0xff] %vm1592_vm2, %v1569_v15  ;;  %v1490_v28 = vmax.f32 %v12081_v33, 0.0 }
 0x169   : > { %v12030_v45 = vpop.f32.mrb[26].mxu0  ;;  %v2126_v50 = vrot.slane %v2124_v39, 1  ;;  %v14515_v53 = vsel %vm2639_vm4, %v2653_v59, %v2655_v40  ;;  %v1436_v54 = vmax.f32 %v1029_v42, 0.0  ;;  %v14522_v59 = vsel %vm2639_vm4, %v2655_v40, %v2657_v62  ;;  %1629 = vst.msk [vmem:[#allocation2 + $0x120] sm:$0xff] %vm1592_vm2, %v1568_v20  ;;  %v1237_v40 = vpop.f32.mrb[17].mxu1 }
 0x16a   : > { %v1439_v55 = vmax.f32 %v12030_v45, 0.0  ;;  %v1032_v56 = vpop.f32.mrb[27].mxu0  ;;  %v2138_v34 = vor.u32 %v2136_v24, %v2134_v51 }
 0x16b   : > { %v1437_v63 = vmax.f32 %v1032_v56, 0.0  ;;  %v14519_v2 = vsel %vm2059_vm3, %v2122_v44, %v2126_v50  ;;  %v2130_v3 = vor.u32 %v2128_v46, %v2126_v50  ;;  %v1488_v46 = vmax.f32 %v1237_v40, 0.0 }
 0x16c   : > { %v1545_v5 = vpack.c.bf16 %v1439_v55, %v1438_v47  ;;  %v12082_v47 = vpop.f32.mrb[18].mxu1 }
 0x16d   : > { %v1544_v8 = vpack.c.bf16 %v1437_v63, %v1436_v54  ;;  %v14524_v10 = vld [vmem:[#allocation2 + $0x58] sm:$0xff]  ;;  %v14527_v13 = vsel %vm2059_vm3, %v2130_v3, %v2134_v51  ;;  %v1491_v54 = vmax.f32 %v12082_v47, 0.0  ;;  %v1240_v55 = vpop.f32.mrb[19].mxu1 }
 0x16e   : > { %1606 = vst.msk [vmem:[#allocation2 + $0x68] sm:$0xff] %vm1592_vm2, %v1545_v5  ;;  %v1663_v14 = vld [vmem:[#allocation2 + $0x50] sm:$0xff]  ;;  %v2148_v18 = vshll.u32 %v14524_v10, 16  ;;  %v1489_v61 = vmax.f32 %v1240_v55, 0.0  ;;  %v2152_v3 = vshrl.u32 %v14524_v10, 16 }
 0x16f   : > { %1605 = vst.msk [vmem:[#allocation2 + $0x60] sm:$0xff] %vm1592_vm2, %v1544_v8  ;;  %v12033_v19 = vpop.f32.mrb[28].mxu0  ;;  %12147 = vmatprep.mubr.msk.bf16.mxu1 %vm1592_vm2, %v1663_v14  ;;  %v2140_v25 = vshll.u32 %v1663_v14, 16  ;;  %v2659_v27 = vrot.slane %v1663_v14, 1  ;;  %v2144_v36 = vshrl.u32 %v1663_v14, 16  ;;  %v1571_v1 = vpack.c.bf16 %v1491_v54, %v1490_v28 }
 0x170   : > { %v1045_v26 = vpop.f32.mrb[29].mxu0  ;;  %12148 = vmatmul.mubr.msk.bf16.gmra.mrb[80].mxu1 %vm1592_vm2, %v14524_v10  ;;  %v1442_v17 = vmax.f32 %v12033_v19, 0.0  ;;  %v2150_v42 = vrot.slane %v2148_v18, 1  ;;  %v1570_v6 = vpack.c.bf16 %v1489_v61, %v1488_v46  ;;  %v2661_v8 = vrot.slane %v14524_v10, 1  ;;  %v12085_v19 = vpop.f32.mrb[20].mxu1  ;;  %v14581_v61 = vld [vmem:[#allocation7 + $0x20] sm:$0xff]  }
 0x171   : > { %v12034_v29 = vpop.f32.mrb[30].mxu0  ;;  %v2142_v35 = vrot.slane %v2140_v25, 1  ;;  %v1440_v37 = vmax.f32 %v1045_v26, 0.0  ;;  %v14542_v51 = vsel %vm2639_vm4, %v2657_v62, %v2659_v27  ;;  %1632 = vst.msk [vmem:[#allocation2 + $0x138] sm:$0xff] %vm1592_vm2, %v1571_v1  ;;  %v1253_v33 = vpop.f32.mrb[21].mxu1  ;;  %12227 = vmatprep.subr.bf16.mxu1 %v14581_v61 }
 0x172   : > { %v1443_v38 = vmax.f32 %v12034_v29, 0.0  ;;  %v1048_v39 = vpop.f32.mrb[31].mxu0  ;;  %v2154_v14 = vor.u32 %v2152_v3, %v2150_v42  ;;  %1631 = vst.msk [vmem:[#allocation2 + $0x130] sm:$0xff] %vm1592_vm2, %v1570_v6  ;;  %v14565_v25 = vsel %vm2639_vm4, %v2659_v27, %v2661_v8  ;;  %v1494_v29 = vmax.f32 %v12085_v19, 0.0 }
 0x173   : > { %v1441_v44 = vmax.f32 %v1048_v39, 0.0  ;;  %v14539_v45 = vsel %vm2059_vm3, %v2138_v34, %v2142_v35  ;;  %v2146_v49 = vor.u32 %v2144_v36, %v2142_v35  ;;  %v1492_v36 = vmax.f32 %v1253_v33, 0.0 }
 0x174   : > { %v1547_v50 = vpack.c.bf16 %v1443_v38, %v1442_v17 }
 0x175   : > { %v1546_v56 = vpack.c.bf16 %v1441_v44, %v1440_v37  ;;  %v14544_v60 = vld [vmem:[#allocation2 + $0x68] sm:$0xff]  ;;  %v14547_v63 = vsel %vm2059_vm3, %v2146_v49, %v2150_v42  ;;  %v12086_v37 = vpop.f32.mrb[22].mxu1 }
 0x176   : > { %1608 = vst.msk [vmem:[#allocation2 + $0x78] sm:$0xff] %vm1592_vm2, %v1547_v50  ;;  %v14550_v0 = vld [vmem:[#allocation2 + $0x60] sm:$0xff]  ;;  %v2164_v5 = vshll.u32 %v14544_v60, 16  ;;  %v1495_v40 = vmax.f32 %v12086_v37, 0.0  ;;  %v1256_v42 = vpop.f32.mrb[23].mxu1  ;;  %v2168_v55 = vshrl.u32 %v14544_v60, 16 }
 0x177   : > { %1607 = vst.msk [vmem:[#allocation2 + $0x70] sm:$0xff] %vm1592_vm2, %v1546_v56  ;;  %v12037_v62 = vpop.f32.mrb[32].mxu0  ;;  %12151 = vmatprep.mubr.msk.bf16.mxu1 %vm1592_vm2, %v14550_v0  ;;  %v2156_v7 = vshll.u32 %v14550_v0, 16  ;;  %v2160_v24 = vshrl.u32 %v14550_v0, 16  ;;  %v2663_v44 = vrot.slane %v14550_v0, 1  ;;  %v1493_v47 = vmax.f32 %v1256_v42, 0.0 }
 0x178   : > { %v1061_v11 = vpop.f32.mrb[33].mxu0  ;;  %12152 = vmatmul.mubr.msk.bf16.gmra.mrb[84].mxu1 %vm1592_vm2, %v14544_v60  ;;  %v1446_v15 = vmax.f32 %v12037_v62, 0.0  ;;  %v2166_v34 = vrot.slane %v2164_v5, 1  ;;  %v1573_v54 = vpack.c.bf16 %v1495_v40, %v1494_v29 }
 0x179   : > { %v12038_v18 = vpop.f32.mrb[34].mxu0  ;;  %v2158_v20 = vrot.slane %v2156_v7, 1  ;;  %v1444_v26 = vmax.f32 %v1061_v11, 0.0  ;;  %v1572_v1 = vpack.c.bf16 %v1493_v47, %v1492_v36  ;;  %v14588_v5 = vsel %vm2639_vm4, %v2661_v8, %v2663_v44 }
 0x17a   : > { %v1447_v10 = vmax.f32 %v12038_v18, 0.0  ;;  %v1064_v17 = vpop.f32.mrb[35].mxu0  ;;  %1634 = vst.msk [vmem:[#allocation2 + $0x148] sm:$0xff] %vm1592_vm2, %v1573_v54  ;;  %v2170_v6 = vor.u32 %v2168_v55, %v2166_v34  ;;  %v2665_v8 = vrot.slane %v14544_v60, 1 }
 0x17b   : > { %v1445_v35 = vmax.f32 %v1064_v17, 0.0  ;;  %v14568_v38 = vsel %vm2059_vm3, %v2154_v14, %v2158_v20  ;;  %v2162_v39 = vor.u32 %v2160_v24, %v2158_v20  ;;  %1633 = vst.msk [vmem:[#allocation2 + $0x140] sm:$0xff] %vm1592_vm2, %v1572_v1  ;;  %v12089_v14 = vpop.f32.mrb[24].mxu1 }
 0x17c   : > { %v1549_v28 = vpack.c.bf16 %v1447_v10, %v1446_v15  ;;  %v1269_v10 = vpop.f32.mrb[25].mxu1  ;;  %v14601_v40 = vsel %vm2639_vm4, %v2663_v44, %v2665_v8 }
 0x17d   : > { %v1548_v27 = vpack.c.bf16 %v1445_v35, %v1444_v26  ;;  %v14571_v46 = vld [vmem:[#allocation2 + $0x78] sm:$0xff]  ;;  %v14574_v49 = vsel %vm2059_vm3, %v2162_v39, %v2166_v34  ;;  %v1498_v26 = vmax.f32 %v12089_v14, 0.0  ;;  %v1496_v33 = vmax.f32 %v1269_v10, 0.0  ;;  %v12090_v34 = vpop.f32.mrb[26].mxu1  ;;  %16625 = vst [vmem:[#allocation12_spill] sm:$0xff] %v14601_v40 }
 0x17e   : > { %1610 = vst.msk [vmem:[#allocation2 + $0x88] sm:$0xff] %vm1592_vm2, %v1549_v28  ;;  %v14577_v50 = vld [vmem:[#allocation2 + $0x70] sm:$0xff]  ;;  %v2180_v56 = vshll.u32 %v14571_v46, 16  ;;  %v1499_v39 = vmax.f32 %v12090_v34, 0.0  ;;  %v1272_v28 = vpop.f32.mrb[27].mxu1  ;;  %v2184_v1 = vshrl.u32 %v14571_v46, 16 }
 0x17f   : > { %1609 = vst.msk [vmem:[#allocation2 + $0x80] sm:$0xff] %vm1592_vm2, %v1548_v27  ;;  %v12041_v0 = vpop.f32.mrb[36].mxu0  ;;  %12155 = vmatprep.mubr.msk.bf16.mxu1 %vm1592_vm2, %v14577_v50  ;;  %v2172_v3 = vshll.u32 %v14577_v50, 16  ;;  %v2176_v18 = vshrl.u32 %v14577_v50, 16  ;;  %v1497_v27 = vmax.f32 %v1272_v28, 0.0  ;;  %v12093_v14 = vpop.f32.mrb[28].mxu1 }
 0x180   : > { %v1077_v62 = vpop.f32.mrb[37].mxu0  ;;  %12156 = vmatmul.mubr.msk.bf16.gmra.mrb[88].mxu1 %vm1592_vm2, %v14571_v46  ;;  %v1450_v7 = vmax.f32 %v12041_v0, 0.0  ;;  %v2182_v17 = vrot.slane %v2180_v56, 1  ;;  %v1575_v55 = vpack.c.bf16 %v1499_v39, %v1498_v26  ;;  %v1502_v10 = vmax.f32 %v12093_v14, 0.0 }
 0x181   : > { %v12042_v11 = vpop.f32.mrb[38].mxu0  ;;  %v2174_v15 = vrot.slane %v2172_v3, 1  ;;  %v1448_v19 = vmax.f32 %v1077_v62, 0.0  ;;  %v1574_v44 = vpack.c.bf16 %v1497_v27, %v1496_v33 }
 0x182   : > { %v1451_v20 = vmax.f32 %v12042_v11, 0.0  ;;  %v1080_v24 = vpop.f32.mrb[39].mxu0  ;;  %1636 = vst.msk [vmem:[#allocation2 + $0x158] sm:$0xff] %vm1592_vm2, %v1575_v55 }
 0x183   : > { %v1449_v29 = vmax.f32 %v1080_v24, 0.0  ;;  %v14598_v35 = vsel %vm2059_vm3, %v2170_v6, %v2174_v15  ;;  %v2178_v36 = vor.u32 %v2176_v18, %v2174_v15  ;;  %v2667_v6 = vrot.slane %v14577_v50, 1  ;;  %1635 = vst.msk [vmem:[#allocation2 + $0x150] sm:$0xff] %vm1592_vm2, %v1574_v44 }
 0x184   : > { %v1551_v37 = vpack.c.bf16 %v1451_v20, %v1450_v7  ;;  %v2186_v15 = vor.u32 %v2184_v1, %v2182_v17 }
 0x185   : > { %v1550_v60 = vpack.c.bf16 %v1449_v29, %v1448_v19  ;;  %v14603_v42 = vld [vmem:[#allocation2 + $0x88] sm:$0xff]  ;;  %v14606_v47 = vsel %vm2059_vm3, %v2178_v36, %v2182_v17  ;;  %v1285_v29 = vpop.f32.mrb[29].mxu1  ;;  %v14627_v17 = vsel %vm2639_vm4, %v2665_v8, %v2667_v6 }
 0x186   : > { %1612 = vst.msk [vmem:[#allocation2 + $0x98] sm:$0xff] %vm1592_vm2, %v1551_v37  ;;  %v14609_v54 = vld [vmem:[#allocation2 + $0x80] sm:$0xff]  ;;  %v2196_v56 = vshll.u32 %v14603_v42, 16  ;;  %v1500_v36 = vmax.f32 %v1285_v29, 0.0  ;;  %v12094_v37 = vpop.f32.mrb[30].mxu1  ;;  %16626 = vst [vmem:[#allocation13_spill] sm:$0xff] %v14627_v17 }
 0x187   : > { %1611 = vst.msk [vmem:[#allocation2 + $0x90] sm:$0xff] %vm1592_vm2, %v1550_v60  ;;  %v12045_v0 = vpop.f32.mrb[40].mxu0  ;;  %12159 = vmatprep.mubr.msk.bf16.mxu1 %vm1592_vm2, %v14609_v54  ;;  %v2188_v3 = vshll.u32 %v14609_v54, 16  ;;  %v2192_v19 = vshrl.u32 %v14609_v54, 16  ;;  %v1503_v60 = vmax.f32 %v12094_v37, 0.0  ;;  %v1288_v27 = vpop.f32.mrb[31].mxu1 }
 0x188   : > { %v1093_v62 = vpop.f32.mrb[41].mxu0  ;;  %12160 = vmatmul.mubr.msk.bf16.gmra.mrb[92].mxu1 %vm1592_vm2, %v14603_v42  ;;  %v1454_v7 = vmax.f32 %v12045_v0, 0.0  ;;  %v2198_v33 = vrot.slane %v2196_v56, 1  ;;  %v1501_v44 = vmax.f32 %v1288_v27, 0.0 }
 0x189   : > { %v12046_v11 = vpop.f32.mrb[42].mxu0  ;;  %v2190_v18 = vrot.slane %v2188_v3, 1  ;;  %v1452_v20 = vmax.f32 %v1093_v62, 0.0  ;;  %v1577_v3 = vpack.c.bf16 %v1503_v60, %v1502_v10  ;;  %v2200_v62 = vshrl.u32 %v14603_v42, 16 }
 0x18a   : > { %v1455_v24 = vmax.f32 %v12046_v11, 0.0  ;;  %v1096_v26 = vpop.f32.mrb[43].mxu0  ;;  %v2669_v11 = vrot.slane %v14571_v46, 1  ;;  %v1576_v14 = vpack.c.bf16 %v1501_v44, %v1500_v36 }
 0x18b   : > { %v1453_v34 = vmax.f32 %v1096_v26, 0.0  ;;  %v14624_v50 = vsel %vm2059_vm3, %v2186_v15, %v2190_v18  ;;  %v2194_v39 = vor.u32 %v2192_v19, %v2190_v18  ;;  %1638 = vst.msk [vmem:[#allocation2 + $0x168] sm:$0xff] %vm1592_vm2, %v1577_v3  ;;  %v2202_v19 = vor.u32 %v2200_v62, %v2198_v33  ;;  %v12097_v26 = vpop.f32.mrb[32].mxu1 }
 0x18c   : > { %v1553_v28 = vpack.c.bf16 %v1455_v24, %v1454_v7  ;;  %1637 = vst.msk [vmem:[#allocation2 + $0x160] sm:$0xff] %vm1592_vm2, %v1576_v14  ;;  %v1301_v60 = vpop.f32.mrb[33].mxu1 }
 0x18d   : > { %v1552_v55 = vpack.c.bf16 %v1453_v34, %v1452_v20  ;;  %v14629_v0 = vld [vmem:[#allocation2 + $0x98] sm:$0xff]  ;;  %v14632_v1 = vsel %vm2059_vm3, %v2194_v39, %v2198_v33  ;;  %v14648_v20 = vsel %vm2639_vm4, %v2667_v6, %v2669_v11  ;;  %v2671_v34 = vrot.slane %v14609_v54, 1  ;;  %v12098_v6 = vpop.f32.mrb[34].mxu1 }
 0x18e   : > { %1614 = vst.msk [vmem:[#allocation2 + $0xa8] sm:$0xff] %vm1592_vm2, %v1553_v28  ;;  %v14635_v56 = vld [vmem:[#allocation2 + $0x90] sm:$0xff]  ;;  %v2212_v7 = vshll.u32 %v14629_v0, 16  ;;  %16627 = vst [vmem:[#allocation14_spill] sm:$0xff] %v14648_v20  ;;  %v1506_v28 = vmax.f32 %v12097_v26, 0.0  ;;  %v1304_v14 = vpop.f32.mrb[35].mxu1 }
 0x18f   : > { %1613 = vst.msk [vmem:[#allocation2 + $0xa0] sm:$0xff] %vm1592_vm2, %v1552_v55  ;;  %v12049_v8 = vpop.f32.mrb[44].mxu0  ;;  %12163 = vmatprep.mubr.msk.bf16.mxu1 %vm1592_vm2, %v14635_v56  ;;  %v2204_v15 = vshll.u32 %v14635_v56, 16  ;;  %v2208_v29 = vshrl.u32 %v14635_v56, 16  ;;  %v1504_v55 = vmax.f32 %v1301_v60, 0.0 }
 0x190   : > { %v1109_v18 = vpop.f32.mrb[45].mxu0  ;;  %12164 = vmatmul.mubr.msk.bf16.gmra.mrb[96].mxu1 %vm1592_vm2, %v14629_v0  ;;  %v1458_v46 = vmax.f32 %v12049_v8, 0.0  ;;  %v2214_v27 = vrot.slane %v2212_v7, 1  ;;  %v1507_v8 = vmax.f32 %v12098_v6, 0.0 }
 0x191   : > { %v12050_v24 = vpop.f32.mrb[46].mxu0  ;;  %v2206_v10 = vrot.slane %v2204_v15, 1  ;;  %v1456_v36 = vmax.f32 %v1109_v18, 0.0  ;;  %v14657_v15 = vsel %vm2639_vm4, %v2669_v11, %v2671_v34 }
 0x192   : > { %v1459_v37 = vmax.f32 %v12050_v24, 0.0  ;;  %v1112_v39 = vpop.f32.mrb[47].mxu0  ;;  %16628 = vst [vmem:[#allocation15_spill] sm:$0xff] %v14657_v15  ;;  %v1505_v24 = vmax.f32 %v1304_v14, 0.0 }
 0x193   : > { %v1457_v33 = vmax.f32 %v1112_v39, 0.0  ;;  %v14654_v44 = vsel %vm2059_vm3, %v2202_v19, %v2206_v10  ;;  %v2210_v3 = vor.u32 %v2208_v29, %v2206_v10  ;;  %v1579_v19 = vpack.c.bf16 %v1507_v8, %v1506_v28 }
 0x194   : > { %v1555_v62 = vpack.c.bf16 %v1459_v37, %v1458_v46  ;;  %v1578_v11 = vpack.c.bf16 %v1505_v24, %v1504_v55  ;;  %v2216_v29 = vshrl.u32 %v14629_v0, 16  ;;  %v2673_v39 = vrot.slane %v14603_v42, 1 }
 0x195   : > { %v1554_v54 = vpack.c.bf16 %v1457_v33, %v1456_v36  ;;  %v14659_v18 = vld [vmem:[#allocation2 + $0xa8] sm:$0xff]  ;;  %v14662_v26 = vsel %vm2059_vm3, %v2210_v3, %v2214_v27  ;;  %1640 = vst.msk [vmem:[#allocation2 + $0x178] sm:$0xff] %vm1592_vm2, %v1579_v19  ;;  %v12101_v33 = vpop.f32.mrb[36].mxu1 }
 0x196   : > { %1616 = vst.msk [vmem:[#allocation2 + $0xb8] sm:$0xff] %vm1592_vm2, %v1555_v62  ;;  %v14665_v7 = vld [vmem:[#allocation2 + $0xa0] sm:$0xff]  ;;  %v2228_v10 = vshll.u32 %v14659_v18, 16  ;;  %1639 = vst.msk [vmem:[#allocation2 + $0x170] sm:$0xff] %vm1592_vm2, %v1578_v11  ;;  %v2218_v6 = vor.u32 %v2216_v29, %v2214_v27  ;;  %v1317_v24 = vpop.f32.mrb[37].mxu1  ;;  %v14683_v27 = vsel %vm2639_vm4, %v2671_v34, %v2673_v39 }
 0x197   : > { %1615 = vst.msk [vmem:[#allocation2 + $0xb0] sm:$0xff] %vm1592_vm2, %v1554_v54  ;;  %v12053_v46 = vpop.f32.mrb[48].mxu0  ;;  %12167 = vmatprep.mubr.msk.bf16.mxu1 %vm1592_vm2, %v14665_v7  ;;  %v2220_v36 = vshll.u32 %v14665_v7, 16  ;;  %v2224_v55 = vshrl.u32 %v14665_v7, 16  ;;  %v1510_v54 = vmax.f32 %v12101_v33, 0.0  ;;  %v1508_v20 = vmax.f32 %v1317_v24, 0.0 }
 0x198   : > { %v1125_v37 = vpop.f32.mrb[49].mxu0  ;;  %12168 = vmatmul.mubr.msk.bf16.gmra.mrb[100].mxu1 %vm1592_vm2, %v14659_v18  ;;  %v1462_v28 = vmax.f32 %v12053_v46, 0.0  ;;  %v2230_v48 = vrot.slane %v2228_v10, 1  ;;  %v12102_v19 = vpop.f32.mrb[38].mxu1 }
 0x199   : > { %v12054_v60 = vpop.f32.mrb[50].mxu0  ;;  %v2222_v3 = vrot.slane %v2220_v36, 1  ;;  %v1460_v62 = vmax.f32 %v1125_v37, 0.0  ;;  %v1511_v11 = vmax.f32 %v12102_v19, 0.0  ;;  %v1320_v40 = vpop.f32.mrb[39].mxu1 }
 0x19a   : > { %v1463_v8 = vmax.f32 %v12054_v60, 0.0  ;;  %v1128_v14 = vpop.f32.mrb[51].mxu0  ;;  %v1509_v37 = vmax.f32 %v1320_v40, 0.0 }
 0x19b   : > { %v1461_v15 = vmax.f32 %v1128_v14, 0.0  ;;  %v14680_v42 = vsel %vm2059_vm3, %v2218_v6, %v2222_v3  ;;  %v2226_v46 = vor.u32 %v2224_v55, %v2222_v3  ;;  %v1581_v33 = vpack.c.bf16 %v1511_v11, %v1510_v54 }
 0x19c   : > { %v1557_v17 = vpack.c.bf16 %v1463_v8, %v1462_v28  ;;  %v1580_v34 = vpack.c.bf16 %v1509_v37, %v1508_v20  ;;  %v2675_v3 = vrot.slane %v14635_v56, 1 }
 0x19d   : > { %v1556_v29 = vpack.c.bf16 %v1461_v15, %v1460_v62  ;;  %v14685_v36 = vld [vmem:[#allocation2 + $0xb8] sm:$0xff]  ;;  %v14688_v60 = vsel %vm2059_vm3, %v2226_v46, %v2230_v48  ;;  %v2232_v15 = vshrl.u32 %v14659_v18, 16  ;;  %1642 = vst.msk [vmem:[#allocation2 + $0x188] sm:$0xff] %vm1592_vm2, %v1581_v33  ;;  %v2677_v46 = vrot.slane %v14629_v0, 1 }
 0x19e   : > { %1618 = vst.msk [vmem:[#allocation2 + $0xc8] sm:$0xff] %vm1592_vm2, %v1557_v17  ;;  %v14691_v10 = vld [vmem:[#allocation2 + $0xb0] sm:$0xff]  ;;  %v2244_v6 = vshll.u32 %v14685_v36, 16  ;;  %1641 = vst.msk [vmem:[#allocation2 + $0x180] sm:$0xff] %vm1592_vm2, %v1580_v34  ;;  %v14708_v14 = vsel %vm2639_vm4, %v2673_v39, %v2675_v3 }
 0x19f   : > { %1617 = vst.msk [vmem:[#allocation2 + $0xc0] sm:$0xff] %vm1592_vm2, %v1556_v29  ;;  %v12057_v28 = vpop.f32.mrb[52].mxu0  ;;  %12171 = vmatprep.mubr.msk.bf16.mxu1 %vm1592_vm2, %v14691_v10  ;;  %v2236_v40 = vshll.u32 %v14691_v10, 16  ;;  %v2234_v62 = vor.u32 %v2232_v15, %v2230_v48  ;;  %v2240_v8 = vshrl.u32 %v14691_v10, 16  ;;  %v14717_v33 = vsel %vm2639_vm4, %v2675_v3, %v2677_v46 }
 0x1a0   : > { %v1141_v55 = vpop.f32.mrb[53].mxu0  ;;  %12172 = vmatmul.mubr.msk.bf16.gmra.mrb[104].mxu1 %vm1592_vm2, %v14685_v36  ;;  %v1466_v56 = vmax.f32 %v12057_v28, 0.0  ;;  %v14710_v19 = vrot.slane %v2244_v6, 1  ;;  %v2679_v6 = vrot.slane %v14665_v7, 1  ;;  %v14047_v7 = vld [vmem:[#allocation7 + $0x10] sm:$0xff]  }
 0x1a1   : > { %v12058_v17 = vpop.f32.mrb[54].mxu0  ;;  %12179 = vmatprep.mubr.msk.bf16.mxu1 %vm1592_vm2, %v14429_v41  ;;  %v2238_v20 = vrot.slane %v2236_v40, 1  ;;  %v1464_v11 = vmax.f32 %v1141_v55, 0.0  ;;  %v14730_v55 = vld [vmem:[#allocation7 + $0x28] sm:$0xff]  }
 0x1a2   : > { %v1467_v54 = vmax.f32 %v12058_v17, 0.0  ;;  %v1144_v24 = vpop.f32.mrb[55].mxu0  ;;  %v14733_v17 = vsel %vm2639_vm4, %v2677_v46, %v2679_v6 }
 0x1a3   : > { %v1465_v29 = vmax.f32 %v1144_v24, 0.0  ;;  %v14714_v41 = vsel %vm2059_vm3, %v2234_v62, %v2238_v20  ;;  %v2242_v37 = vor.u32 %v2240_v8, %v2238_v20 }
 0x1a4   : > { %v1559_v48 = vpack.c.bf16 %v1467_v54, %v1466_v56 }
 0x1a5   : > { %v1558_v34 = vpack.c.bf16 %v1465_v29, %v1464_v11  ;;  %v14719_v39 = vld [vmem:[#allocation2 + $0xc8] sm:$0xff]  ;;  %v14723_v28 = vsel %vm2059_vm3, %v2242_v37, %v14710_v19 }
 0x1a6   : > { %1620 = vst.msk [vmem:[#allocation2 + $0xd8] sm:$0xff] %vm1592_vm2, %v1559_v48  ;;  %v5925_v0 = vld [vmem:[#allocation2 + $0xc0] sm:$0xff]  ;;  %v6327_v3 = vshll.u32 %v14719_v39, 16 }
 0x1a7   : > { %1619 = vst.msk [vmem:[#allocation2 + $0xd0] sm:$0xff] %vm1592_vm2, %v1558_v34  ;;  %v12061_v15 = vpop.f32.mrb[56].mxu0  ;;  %12595 = vmatprep.mubr.msk.bf16.mxu0 %vm1592_vm2, %v5925_v0  ;;  %v6322_v40 = vshll.u32 %v5925_v0, 16  ;;  %v6320_v8 = vshrl.u32 %v5925_v0, 16 }
 0x1a8   : > { %v1157_v62 = vpop.f32.mrb[57].mxu0  ;;  %12180 = vmatmul.mubr.msk.bf16.vlgmr.msra.gmra.mrb[60].mxu1 %vm1592_vm2, %v14450_v4  ;;  %12596 = vmatmul.mubr.msk.bf16.vlgmr.msra.gmra.mrb[60].mxu0 %vm1592_vm2, %v14719_v39  ;;  %v1470_v54 = vmax.f32 %v12061_v15, 0.0  ;;  %v2681_v4 = vrot.slane %v14659_v18, 1  ;;  %v6329_v48 = vrot.slane %v6327_v3, 1 }
 0x1a9   : > { %12644 = vmatpush3.bf16.msra.mxu0 %v14047_v7  ;;  %v12062_v20 = vpop.f32.mrb[58].mxu0  ;;  %12183 = vmatprep.mubr.msk.bf16.mxu1 %vm1592_vm2, %v14455_v12  ;;  %v6324_v56 = vrot.slane %v6322_v40, 1  ;;  %v1468_v46 = vmax.f32 %v1157_v62, 0.0  ;;  %v2683_v7 = vrot.slane %v14691_v10, 1  ;;  %v2685_v10 = vrot.slane %v14685_v36, 1 }
 0x1aa   : > { %v1471_v24 = vmax.f32 %v12062_v20, 0.0  ;;  %v1160_v11 = vpop.f32.mrb[59].mxu0  ;;  %12645 = vmatprep.subr.bf16.mxu0 %v14418_v23  ;;  %12228 = vmatpush3.bf16.msra.mxu1 %v14581_v61  ;;  %v14746_v12 = vsel %vm2639_vm4, %v2679_v6, %v2681_v4  ;;  %v14758_v6 = vld [vmem:[#allocation2 + $0xc0] sm:$0x1] }
 0x1ab   : > { %v1469_v29 = vmax.f32 %v1160_v11, 0.0  ;;  %v6325_v37 = vor.u32 %v6324_v56, %v6320_v8  ;;  %12229 = vmatprep.subr.bf16.mxu1 %v14730_v55  ;;  %v14762_v20 = vsel %vm2639_vm4, %v2681_v4, %v2683_v7  ;;  %v2687_v11 = vrot.slane %v14758_v6, 1 }
 0x1ac   : > { %v1561_v34 = vpack.c.bf16 %v1471_v24, %v1470_v54  ;;  %v14771_v24 = vsel %vm2639_vm4, %v2683_v7, %v2685_v10 }
 0x1ad   : > { %v1560_v0 = vpack.c.bf16 %v1469_v29, %v1468_v46  ;;  %v5928_v15 = vld [vmem:[#allocation2 + $0xd8] sm:$0xff]  ;;  %12646 = vmatpush3.bf16.msra.mxu0 %v14418_v23  ;;  %v14750_v40 = vsel %vm2059_vm3, %v6325_v37, %v6329_v48  ;;  %v6331_v23 = vshrl.u32 %v14719_v39, 16  ;;  %v14778_v29 = vsel %vm2639_vm4, %v2685_v10, %v2687_v11 }
 0x1ae   : > { %1622 = vst.msk [vmem:[#allocation2 + $0xe8] sm:$0xff] %vm1592_vm2, %v1561_v34  ;;  %v5927_v18 = vld [vmem:[#allocation2 + $0xd0] sm:$0xff]  ;;  %12230 = vmatpush3.bf16.msra.mxu1 %v14730_v55  ;;  %12695 = vmatprep.subr.bf16.mxu0 %v14581_v61  ;;  %v6343_v62 = vshll.u32 %v5928_v15, 16  ;;  %v6347_v34 = vshrl.u32 %v5928_v15, 16 }
 0x1af   : > { %1621 = vst.msk [vmem:[#allocation2 + $0xe0] sm:$0xff] %vm1592_vm2, %v1560_v0  ;;  %12599 = vmatprep.mubr.msk.bf16.mxu0 %vm1592_vm2, %v5927_v18  ;;  %v6335_v3 = vshll.u32 %v5927_v18, 16  ;;  %v6333_v8 = vor.u32 %v6331_v23, %v6329_v48  ;;  %v6339_v54 = vshrl.u32 %v5927_v18, 16  ;;  %v16613_v23 = vrot.slane %v14719_v39, 1 }
 0x1b0   : > { %12184 = vmatmul.mubr.msk.bf16.gmra.mrb[64].mxu1 %vm1592_vm2, %v14474_v43  ;;  %12600 = vmatmul.mubr.msk.bf16.gmra.mrb[64].mxu0 %vm1592_vm2, %v5928_v15  ;;  %v6345_v43 = vrot.slane %v6343_v62, 1  ;;  %v14792_v62 = vld [vmem:[#allocation2 + $0xf0] sm:$0xff] }
 0x1b1   : > { %12187 = vmatprep.mubr.msk.bf16.mxu1 %vm1592_vm2, %v14479_v52  ;;  %v6337_v56 = vrot.slane %v6335_v3, 1  ;;  %v6889_v3 = vrot.slane %v5927_v18, 1 }
 0x1b2   : > { %v6349_v10 = vor.u32 %v6347_v34, %v6345_v43 }
 0x1b3   : > { %v14775_v4 = vsel %vm2059_vm3, %v6333_v8, %v6337_v56  ;;  %v6341_v46 = vor.u32 %v6339_v54, %v6337_v56  ;;  %v6891_v8 = vrot.slane %v5928_v15, 1 }
 0x1b5   : > { %v14780_v37 = vld [vmem:[#allocation2 + $0xe8] sm:$0xff]  ;;  %v14783_v52 = vsel %vm2059_vm3, %v6341_v46, %v6345_v43  ;;  %v14805_v46 = vsel %vm2639_vm4, %v6889_v3, %v6891_v8 }
 0x1b6   : > { %v5929_v48 = vld [vmem:[#allocation2 + $0xe0] sm:$0xff]  ;;  %v6359_v7 = vshll.u32 %v14780_v37, 16  ;;  %v16612_v18 = vrot.slane %v14780_v37, 1  ;;  %16629 = vst [vmem:[#allocation16_spill] sm:$0xff] %v14805_v46  ;;  %v14849_v46 = vld [vmem:[#allocation2 + $0x118] sm:$0xff] }
 0x1b7   : > { %12603 = vmatprep.mubr.msk.bf16.mxu0 %vm1592_vm2, %v5929_v48  ;;  %v6351_v0 = vshll.u32 %v5929_v48, 16  ;;  %v6893_v56 = vrot.slane %v5929_v48, 1  ;;  %v6355_v11 = vshrl.u32 %v5929_v48, 16 }
 0x1b8   : > { %12188 = vmatmul.mubr.msk.bf16.gmra.mrb[68].mxu1 %vm1592_vm2, %v14498_v22  ;;  %12604 = vmatmul.mubr.msk.bf16.gmra.mrb[68].mxu0 %vm1592_vm2, %v14780_v37  ;;  %v14801_v22 = vsel %vm2639_vm4, %v16613_v23, %v6889_v3  ;;  %v14813_v34 = vrot.slane %v6359_v7, 1  ;;  %v14824_v3 = vld [vmem:[#allocation2 + $0xf8] sm:$0xff]  ;;  %v12105_v7 = vpop.f32.mrb[40].mxu1 }
 0x1b9   : > { %12191 = vmatprep.mubr.msk.bf16.mxu1 %vm1592_vm2, %v14503_v30  ;;  %12607 = vmatprep.mubr.msk.bf16.mxu0 %vm1592_vm2, %v14792_v62  ;;  %v6353_v54 = vrot.slane %v6351_v0, 1  ;;  %v14808_v15 = vsel %vm2639_vm4, %v6891_v8, %v6893_v56  ;;  %v14818_v48 = vsel %vm2639_vm4, %v6893_v56, %v16612_v18  ;;  %v14836_v8 = vld [vmem:[#allocation2 + $0x108] sm:$0xff]  ;;  %v1514_v56 = vmax.f32 %v12105_v7, 0.0 }
 0x1ba   : > { %16630 = vst [vmem:[#allocation17_spill] sm:$0xff] %v14808_v15  ;;  %16631 = vst [vmem:[#allocation18_spill] sm:$0xff] %v14818_v48 }
 0x1bb   : > { %v14811_v30 = vsel %vm2059_vm3, %v6349_v10, %v6353_v54  ;;  %v6357_v43 = vor.u32 %v6355_v11, %v6353_v54  ;;  %v14830_v10 = vld [vmem:[#allocation2 + $0x100] sm:$0xff]  ;;  %v1333_v54 = vpop.f32.mrb[41].mxu1 }
 0x1bc   : > { %v12106_v11 = vpop.f32.mrb[42].mxu1 }
 0x1bd   : > { %v14822_v0 = vsel %vm2059_vm3, %v6357_v43, %v14813_v34  ;;  %v1515_v43 = vmax.f32 %v12106_v11, 0.0  ;;  %v1336_v18 = vpop.f32.mrb[43].mxu1  ;;  %v14883_v11 = vld [vmem:[#allocation7 + $0x30] sm:$0xff]  }
 0x1be   : > { %v1513_v23 = vmax.f32 %v1336_v18, 0.0  ;;  %v12109_v48 = vpop.f32.mrb[44].mxu1  ;;  %12279 = vmatprep.subr.bf16.mxu1 %v14883_v11 }
 0x1bf   : > { %v1349_v7 = vpop.f32.mrb[45].mxu1 }
 0x1c0   : > { %12192 = vmatmul.mubr.msk.bf16.gmra.mrb[72].mxu1 %vm1592_vm2, %v14519_v2  ;;  %12608 = vmatmul.mubr.msk.bf16.gmra.mrb[72].mxu0 %vm1592_vm2, %v14824_v3  ;;  %v14842_v2 = vld [vmem:[#allocation2 + $0x110] sm:$0xff]  ;;  %v12110_v18 = vpop.f32.mrb[46].mxu1 }
 0x1c1   : > { %12195 = vmatprep.mubr.msk.bf16.mxu1 %vm1592_vm2, %v14527_v13  ;;  %12611 = vmatprep.mubr.msk.bf16.mxu0 %vm1592_vm2, %v14830_v10  ;;  %v1512_v13 = vmax.f32 %v1333_v54, 0.0  ;;  %v1352_v48 = vpop.f32.mrb[47].mxu1  ;;  %v14862_v54 = vld [vmem:[#allocation2 + $0x128] sm:$0xff] }
 0x1c3   : > { %v1582_v15 = vpack.c.bf16 %v1513_v23, %v1512_v13  ;;  %v1516_v23 = vmax.f32 %v1349_v7, 0.0  ;;  %v14875_v13 = vld [vmem:[#allocation2 + $0x138] sm:$0xff] }
 0x1c5   : > { %1643 = vst.msk [vmem:[#allocation2 + $0x190] sm:$0xff] %vm1592_vm2, %v1582_v15 }
 0x1c8   : > { %12196 = vmatmul.mubr.msk.bf16.gmra.mrb[76].mxu1 %vm1592_vm2, %v14539_v45  ;;  %12612 = vmatmul.mubr.msk.bf16.gmra.mrb[76].mxu0 %vm1592_vm2, %v14836_v8  ;;  %v1583_v45 = vpack.c.bf16 %v1515_v43, %v1514_v56  ;;  %v1517_v56 = vmax.f32 %v1352_v48, 0.0 }
 0x1c9   : > { %12199 = vmatprep.mubr.msk.bf16.mxu1 %vm1592_vm2, %v14547_v63  ;;  %12615 = vmatprep.mubr.msk.bf16.mxu0 %vm1592_vm2, %v14842_v2  ;;  %v14856_v63 = vld [vmem:[#allocation2 + $0x120] sm:$0xff] }
 0x1ca   : > { %1644 = vst.msk [vmem:[#allocation2 + $0x198] sm:$0xff] %vm1592_vm2, %v1583_v45  ;;  %v1584_v15 = vpack.c.bf16 %v1517_v56, %v1516_v23  ;;  %v14896_v23 = vld [vmem:[#allocation2 + $0x150] sm:$0xff] }
 0x1cc   : > { %1645 = vst.msk [vmem:[#allocation2 + $0x1a0] sm:$0xff] %vm1592_vm2, %v1584_v15  ;;  %v14902_v15 = vld [vmem:[#allocation2 + $0x158] sm:$0xff] }
 0x1d0   : > { %12200 = vmatmul.mubr.msk.bf16.gmra.mrb[80].mxu1 %vm1592_vm2, %v14568_v38  ;;  %12616 = vmatmul.mubr.msk.bf16.gmra.mrb[80].mxu0 %vm1592_vm2, %v14849_v46  ;;  %v14869_v38 = vld [vmem:[#allocation2 + $0x130] sm:$0xff] }
 0x1d1   : > { %12203 = vmatprep.mubr.msk.bf16.mxu1 %vm1592_vm2, %v14574_v49  ;;  %12619 = vmatprep.mubr.msk.bf16.mxu0 %vm1592_vm2, %v14856_v63  ;;  %v12113_v49 = vpop.f32.mrb[48].mxu1 }
 0x1d2   : > { %v1365_v43 = vpop.f32.mrb[49].mxu1 }
 0x1d8   : > { %12204 = vmatmul.mubr.msk.bf16.gmra.mrb[84].mxu1 %vm1592_vm2, %v14598_v35  ;;  %12620 = vmatmul.mubr.msk.bf16.gmra.mrb[84].mxu0 %vm1592_vm2, %v14862_v54  ;;  %v14881_v35 = vld [vmem:[#allocation2 + $0x140] sm:$0xff] }
 0x1d9   : > { %12207 = vmatprep.mubr.msk.bf16.mxu1 %vm1592_vm2, %v14606_v47  ;;  %12623 = vmatprep.mubr.msk.bf16.mxu0 %vm1592_vm2, %v14869_v38  ;;  %v12114_v47 = vpop.f32.mrb[50].mxu1 }
 0x1da   : > { %v1368_v45 = vpop.f32.mrb[51].mxu1  ;;  %v14914_v47 = vld [vmem:[#allocation2 + $0x168] sm:$0xff] }
 0x1db   : > { %v12117_v7 = vpop.f32.mrb[52].mxu1  ;;  %v2252_v45 = vshll.u32 %v14758_v6, 16 }
 0x1dc   : > { %v2248_v7 = vshrl.u32 %v14685_v36, 16  ;;  %v14945_v36 = vld [vmem:[#allocation7 + $0x38] sm:$0xff]  }
 0x1de   : > { %v2250_v6 = vor.u32 %v2248_v7, %v14710_v19  ;;  %v6375_v19 = vshll.u32 %v14824_v3, 16  ;;  %v6395_v7 = vshrl.u32 %v14836_v8, 16 }
 0x1e0   : > { %12208 = vmatmul.mubr.msk.bf16.gmra.mrb[88].mxu1 %vm1592_vm2, %v14624_v50  ;;  %12624 = vmatmul.mubr.msk.bf16.gmra.mrb[88].mxu0 %vm1592_vm2, %v14875_v13  ;;  %v14890_v50 = vld [vmem:[#allocation2 + $0x148] sm:$0xff] }
 0x1e1   : > { %12211 = vmatprep.mubr.msk.bf16.mxu1 %vm1592_vm2, %v14632_v1  ;;  %12627 = vmatprep.mubr.msk.bf16.mxu0 %vm1592_vm2, %v14881_v35  ;;  %v1381_v1 = vpop.f32.mrb[53].mxu1 }
 0x1e2   : > { %v12118_v18 = vpop.f32.mrb[54].mxu1  ;;  %v2254_v1 = vrot.slane %v2252_v45, 1 }
 0x1e3   : > { %v1384_v48 = vpop.f32.mrb[55].mxu1 }
 0x1e4   : > { %v12121_v56 = vpop.f32.mrb[56].mxu1  ;;  %v14930_v48 = vld [vmem:[#allocation2 + $0x178] sm:$0xff] }
 0x1e5   : > { %v1397_v49 = vpop.f32.mrb[57].mxu1 }
 0x1e6   : > { %v6391_v49 = vshll.u32 %v14836_v8, 16 }
 0x1e8   : > { %12212 = vmatmul.mubr.msk.bf16.gmra.mrb[92].mxu1 %vm1592_vm2, %v14654_v44  ;;  %12628 = vmatmul.mubr.msk.bf16.gmra.mrb[92].mxu0 %vm1592_vm2, %v14890_v50  ;;  %v14908_v44 = vld [vmem:[#allocation2 + $0x160] sm:$0xff]  ;;  %v6393_v45 = vrot.slane %v6391_v49, 1 }
 0x1e9   : > { %12215 = vmatprep.mubr.msk.bf16.mxu1 %vm1592_vm2, %v14662_v26  ;;  %12631 = vmatprep.mubr.msk.bf16.mxu0 %vm1592_vm2, %v14896_v23  ;;  %v12122_v26 = vpop.f32.mrb[58].mxu1 }
 0x1ea   : > { %v1400_v43 = vpop.f32.mrb[59].mxu1 }
 0x1f0   : > { %12216 = vmatmul.mubr.msk.bf16.gmra.mrb[96].mxu1 %vm1592_vm2, %v14680_v42  ;;  %12632 = vmatmul.mubr.msk.bf16.gmra.mrb[96].mxu0 %vm1592_vm2, %v14902_v15  ;;  %v14921_v42 = vld [vmem:[#allocation2 + $0x170] sm:$0xff] }
 0x1f1   : > { %12219 = vmatprep.mubr.msk.bf16.mxu1 %vm1592_vm2, %v14688_v60  ;;  %12635 = vmatprep.mubr.msk.bf16.mxu0 %vm1592_vm2, %v14908_v44  ;;  %v2613_v60 = vld [vmem:[#allocation2] sm:$0xfe] }
 0x1f2   : > { %v2640_v18 = vrot.slane %v2613_v60, 1  ;;  %v6399_v60 = vshll.u32 %v14842_v2, 16 }
 0x1f8   : > { %12220 = vmatmul.mubr.msk.bf16.gmra.mrb[100].mxu1 %vm1592_vm2, %v14714_v41  ;;  %12636 = vmatmul.mubr.msk.bf16.gmra.mrb[100].mxu0 %vm1592_vm2, %v14914_v47  ;;  %v2255_v41 = vsel %vm2059_vm3, %v2250_v6, %v2254_v1  ;;  %v6403_v1 = vshrl.u32 %v14842_v2, 16  ;;  %v6407_v6 = vshll.u32 %v14849_v46, 16 }
 0x1f9   : > { %12223 = vmatprep.mubr.msk.bf16.mxu1 %vm1592_vm2, %v14723_v28  ;;  %12639 = vmatprep.mubr.msk.bf16.mxu0 %vm1592_vm2, %v14921_v42  ;;  %v16632_v28 = vrot.slane %v14415_v21, 1  ;;  %v6367_v21 = vshll.u32 %v14792_v62, 16 }
 0x1fb   : > { %v2642_v56 = vsel %vm2639_vm4, %v2640_v18, %v16632_v28  ;;  %v6401_v18 = vrot.slane %v6399_v60, 1  ;;  %v6443_v60 = vshrl.u32 %v14875_v13, 16 }
 0x1fd   : > { %v6405_v28 = vor.u32 %v6403_v1, %v6401_v18  ;;  %v16635_v1 = vld [vmem:[#allocation14_spill] sm:$0xff] }
 0x200   : > { %12224 = vmatmul.mubr.msk.bf16.gmra.mrb[104].mxu1 %vm1592_vm2, %v2255_v41  ;;  %12640 = vmatmul.mubr.msk.bf16.gmra.mrb[104].mxu0 %vm1592_vm2, %v14930_v48  ;;  %v6397_v41 = vor.u32 %v6395_v7, %v6393_v45 }
 0x201   : > { %12231 = vmatprep.mubr.msk.bf16.mxu1 %vm1592_vm2, %v2642_v56  ;;  %12647 = vmatprep.mubr.msk.bf16.mxu0 %vm1592_vm2, %v14750_v40  ;;  %v6409_v56 = vrot.slane %v6407_v6, 1  ;;  %v6455_v6 = vshll.u32 %v14890_v50, 16 }
 0x208   : > { %12232 = vmatmul.mubr.msk.bf16.vlgmr.msra.gmra.mrb[60].mxu1 %vm1592_vm2, %v14444_v57  ;;  %12648 = vmatmul.mubr.msk.bf16.vlgmr.msra.gmra.mrb[60].mxu0 %vm1592_vm2, %v14775_v4  ;;  %v6371_v57 = vshrl.u32 %v14792_v62, 16  ;;  %v6383_v4 = vshll.u32 %v14830_v10, 16 }
 0x209   : > { %12696 = vmatpush3.bf16.msra.mxu0 %v14581_v61  ;;  %12235 = vmatprep.mubr.msk.bf16.mxu1 %vm1592_vm2, %v14447_v58  ;;  %v6363_v58 = vshrl.u32 %v14780_v37, 16  ;;  %v6369_v61 = vrot.slane %v6367_v21, 1  ;;  %v6415_v21 = vshll.u32 %v14856_v63, 16 }
 0x20a   : > { %12651 = vmatprep.mubr.msk.bf16.mxu0 %vm1592_vm2, %v14783_v52  ;;  %12697 = vmatprep.subr.bf16.mxu0 %v14730_v55 }
 0x20b   : > { %12280 = vmatpush3.bf16.msra.mxu1 %v14883_v11  ;;  %v6373_v40 = vor.u32 %v6371_v57, %v6369_v61  ;;  %v6411_v57 = vshrl.u32 %v14849_v46, 16 }
 0x20c   : > { %12281 = vmatprep.subr.bf16.mxu1 %v14945_v36 }
 0x20d   : > { %12698 = vmatpush3.bf16.msra.mxu0 %v14730_v55  ;;  %v6365_v55 = vor.u32 %v6363_v58, %v14813_v34  ;;  %v6385_v34 = vrot.slane %v6383_v4, 1  ;;  %v6419_v58 = vshrl.u32 %v14856_v63, 16  ;;  %v6431_v4 = vshll.u32 %v14869_v38, 16 }
 0x20e   : > { %12747 = vmatprep.subr.bf16.mxu0 %v14883_v11 }
 0x20f   : > { %12282 = vmatpush3.bf16.msra.mxu1 %v14945_v36  ;;  %v6370_v52 = vsel %vm2059_vm3, %v6365_v55, %v6369_v61  ;;  %v6417_v61 = vrot.slane %v6415_v21, 1  ;;  %v6413_v55 = vor.u32 %v6411_v57, %v6409_v56  ;;  %v6463_v21 = vshll.u32 %v14896_v23, 16 }
 0x210   : > { %12236 = vmatmul.mubr.msk.bf16.gmra.mrb[64].mxu1 %vm1592_vm2, %v14468_v31  ;;  %12652 = vmatmul.mubr.msk.bf16.gmra.mrb[64].mxu0 %vm1592_vm2, %v14811_v30  ;;  %v6377_v31 = vrot.slane %v6375_v19, 1  ;;  %v6379_v30 = vshrl.u32 %v14824_v3, 16  ;;  %v6423_v19 = vshll.u32 %v14862_v54, 16  ;;  %v6459_v57 = vshrl.u32 %v14890_v50, 16 }
 0x211   : > { %12239 = vmatprep.mubr.msk.bf16.mxu1 %vm1592_vm2, %v14471_v32  ;;  %12655 = vmatprep.mubr.msk.bf16.mxu0 %vm1592_vm2, %v14822_v0  ;;  %v6387_v0 = vshrl.u32 %v14830_v10, 16 }
 0x212   : > { %v6378_v32 = vsel %vm2059_vm3, %v6373_v40, %v6377_v31  ;;  %v6381_v26 = vor.u32 %v6379_v30, %v6377_v31  ;;  %v6421_v40 = vor.u32 %v6419_v58, %v6417_v61  ;;  %v6425_v31 = vrot.slane %v6423_v19, 1  ;;  %v15039_v19 = vld [vmem:[#allocation7 + $0x40] sm:$0xff]  }
 0x213   : > { %v6389_v43 = vor.u32 %v6387_v0, %v6385_v34  ;;  %v6435_v30 = vshrl.u32 %v14869_v38, 16  ;;  %v6433_v0 = vrot.slane %v6431_v4, 1  ;;  %12331 = vmatprep.subr.bf16.mxu1 %v15039_v19 }
 0x218   : > { %12240 = vmatmul.mubr.msk.bf16.gmra.mrb[68].mxu1 %vm1592_vm2, %v14492_v9  ;;  %12656 = vmatmul.mubr.msk.bf16.gmra.mrb[68].mxu0 %vm1592_vm2, %v6370_v52  ;;  %v6386_v9 = vsel %vm2059_vm3, %v6381_v26, %v6385_v34  ;;  %v6427_v52 = vshrl.u32 %v14862_v54, 16  ;;  %v6439_v34 = vshll.u32 %v14875_v13, 16  ;;  %v6437_v26 = vor.u32 %v6435_v30, %v6433_v0 }
 0x219   : > { %12243 = vmatprep.mubr.msk.bf16.mxu1 %vm1592_vm2, %v14495_v16  ;;  %12659 = vmatprep.mubr.msk.bf16.mxu0 %vm1592_vm2, %v6378_v32  ;;  %v6394_v16 = vsel %vm2059_vm3, %v6389_v43, %v6393_v45  ;;  %v16633_v32 = vld [vmem:[#allocation12_spill] sm:$0xff]  ;;  %v6447_v45 = vshll.u32 %v14881_v35, 16  ;;  %v6475_v30 = vshrl.u32 %v14902_v15, 16 }
 0x21a   : > { %v6429_v49 = vor.u32 %v6427_v52, %v6425_v31  ;;  %v6441_v43 = vrot.slane %v6439_v34, 1  ;;  %v6479_v52 = vshll.u32 %v14908_v44, 16  ;;  %v6487_v34 = vshll.u32 %v14914_v47, 16 }
 0x21c   : > { %v6442_v7 = vsel %vm2059_vm3, %v6437_v26, %v6441_v43 }
 0x220   : > { %12244 = vmatmul.mubr.msk.bf16.gmra.mrb[72].mxu1 %vm1592_vm2, %v14515_v53  ;;  %12660 = vmatmul.mubr.msk.bf16.gmra.mrb[72].mxu0 %vm1592_vm2, %v6386_v9  ;;  %v6402_v53 = vsel %vm2059_vm3, %v6397_v41, %v6401_v18  ;;  %v16634_v9 = vld [vmem:[#allocation13_spill] sm:$0xff]  ;;  %v6449_v18 = vrot.slane %v6447_v45, 1  ;;  %v6445_v41 = vor.u32 %v6443_v60, %v6441_v43  ;;  %v6489_v43 = vrot.slane %v6487_v34, 1 }
 0x221   : > { %12247 = vmatprep.mubr.msk.bf16.mxu1 %vm1592_vm2, %v14522_v59  ;;  %12663 = vmatprep.mubr.msk.bf16.mxu0 %vm1592_vm2, %v6394_v16  ;;  %v6410_v59 = vsel %vm2059_vm3, %v6405_v28, %v6409_v56  ;;  %v6451_v16 = vshrl.u32 %v14881_v35, 16  ;;  %v6457_v56 = vrot.slane %v6455_v6, 1  ;;  %v6495_v45 = vshll.u32 %v14921_v42, 16 }
 0x222   : > { %v6499_v60 = vshrl.u32 %v14921_v42, 16 }
 0x223   : > { %v6453_v28 = vor.u32 %v6451_v16, %v6449_v18 }
 0x225   : > { %v6458_v58 = vsel %vm2059_vm3, %v6453_v28, %v6457_v56 }
 0x228   : > { %12248 = vmatmul.mubr.msk.bf16.gmra.mrb[76].mxu1 %vm1592_vm2, %v14542_v51  ;;  %12664 = vmatmul.mubr.msk.bf16.gmra.mrb[76].mxu0 %vm1592_vm2, %v6402_v53  ;;  %v6418_v51 = vsel %vm2059_vm3, %v6413_v55, %v6417_v61  ;;  %v6450_v53 = vsel %vm2059_vm3, %v6445_v41, %v6449_v18  ;;  %v6467_v61 = vshrl.u32 %v14896_v23, 16  ;;  %v6465_v55 = vrot.slane %v6463_v21, 1  ;;  %v15070_v18 = vld [vmem:[#allocation2 + $0x180] sm:$0x1] }
 0x229   : > { %12251 = vmatprep.mubr.msk.bf16.mxu1 %vm1592_vm2, %v14565_v25  ;;  %12667 = vmatprep.mubr.msk.bf16.mxu0 %vm1592_vm2, %v6410_v59  ;;  %v6426_v25 = vsel %vm2059_vm3, %v6421_v40, %v6425_v31  ;;  %v16636_v59 = vld [vmem:[#allocation15_spill] sm:$0xff]  ;;  %v6471_v40 = vshll.u32 %v14902_v15, 16  ;;  %v6461_v31 = vor.u32 %v6459_v57, %v6457_v56  ;;  %v6507_v41 = vshrl.u32 %v14930_v48, 16  ;;  %v6860_v56 = vld [vmem:[#allocation2 + $0xc0] sm:$0xfe] }
 0x22a   : > { %v6469_v4 = vor.u32 %v6467_v61, %v6465_v55  ;;  %v6511_v28 = vshll.u32 %v15070_v18, 16  ;;  %v6886_v57 = vrot.slane %v6860_v56, 1  ;;  %v15218_v56 = vld [vmem:[#allocation2 + $0x98] sm:$0xff] }
 0x230   : > { %12252 = vmatmul.mubr.msk.bf16.gmra.mrb[80].mxu1 %vm1592_vm2, %v14588_v5  ;;  %12668 = vmatmul.mubr.msk.bf16.gmra.mrb[80].mxu0 %vm1592_vm2, %v6418_v51  ;;  %v6434_v5 = vsel %vm2059_vm3, %v6429_v49, %v6433_v0  ;;  %v6473_v51 = vrot.slane %v6471_v40, 1  ;;  %v6481_v0 = vrot.slane %v6479_v52, 1  ;;  %v15121_v40 = vld [vmem:[#allocation2 + $0x30] sm:$0xff]  ;;  %v16641_v52 = vrot.slane %v14780_v37, 1 }
 0x231   : > { %12255 = vmatprep.mubr.msk.bf16.mxu1 %vm1592_vm2, %v16633_v32  ;;  %12671 = vmatprep.mubr.msk.bf16.mxu0 %vm1592_vm2, %v6426_v25  ;;  %v6466_v25 = vsel %vm2059_vm3, %v6461_v31, %v6465_v55  ;;  %v6483_v32 = vshrl.u32 %v14908_v44, 16  ;;  %v15102_v55 = vld [vmem:[#allocation7 + $0x48] sm:$0xff]   ;;  %v6903_v37 = vrot.slane %v14836_v8, 1  ;;  %v6907_v8 = vrot.slane %v14849_v46, 1 }
 0x232   : > { %v6477_v49 = vor.u32 %v6475_v30, %v6473_v51  ;;  %v16640_v31 = vld [vmem:[#allocation18_spill] sm:$0xff]  ;;  %v6909_v46 = vrot.slane %v14856_v63, 1  ;;  %v6913_v63 = vrot.slane %v14869_v38, 1  ;;  %v6917_v38 = vrot.slane %v14881_v35, 1 }
 0x233   : > { %v6485_v26 = vor.u32 %v6483_v32, %v6481_v0  ;;  %v15137_v30 = vld [vmem:[#allocation2 + $0x40] sm:$0xff]  ;;  %v6921_v35 = vrot.slane %v14896_v23, 1  ;;  %v6925_v23 = vrot.slane %v14908_v44, 1  ;;  %v6929_v44 = vrot.slane %v14921_v42, 1 }
 0x238   : > { %12256 = vmatmul.mubr.msk.bf16.gmra.mrb[84].mxu1 %vm1592_vm2, %v16634_v9  ;;  %12672 = vmatmul.mubr.msk.bf16.gmra.mrb[84].mxu0 %vm1592_vm2, %v6434_v5  ;;  %v6491_v5 = vshrl.u32 %v14914_v47, 16  ;;  %v6497_v9 = vrot.slane %v6495_v45, 1 }
 0x239   : > { %12259 = vmatprep.mubr.msk.bf16.mxu1 %vm1592_vm2, %v16635_v1  ;;  %12675 = vmatprep.mubr.msk.bf16.mxu0 %vm1592_vm2, %v6442_v7  ;;  %v6503_v7 = vshll.u32 %v14930_v48, 16 }
 0x23a   : > { %v6493_v16 = vor.u32 %v6491_v5, %v6489_v43  ;;  %v6501_v1 = vor.u32 %v6499_v60, %v6497_v9  ;;  %v6910_v5 = vsel %vm2639_vm4, %v6907_v8, %v6909_v46 }
 0x23b   : > { %v6505_v6 = vrot.slane %v6503_v7, 1 }
 0x23d   : > { %v6509_v21 = vor.u32 %v6507_v41, %v6505_v6  ;;  %v15207_v41 = vld [vmem:[#allocation2 + $0x90] sm:$0xff] }
 0x240   : > { %12260 = vmatmul.mubr.msk.bf16.gmra.mrb[88].mxu1 %vm1592_vm2, %v16636_v59  ;;  %12676 = vmatmul.mubr.msk.bf16.gmra.mrb[88].mxu0 %vm1592_vm2, %v6450_v53  ;;  %v6513_v53 = vrot.slane %v6511_v28, 1 }
 0x241   : > { %12263 = vmatprep.mubr.msk.bf16.mxu1 %vm1592_vm2, %v14683_v27  ;;  %12679 = vmatprep.mubr.msk.bf16.mxu0 %vm1592_vm2, %v6458_v58  ;;  %v6474_v27 = vsel %vm2059_vm3, %v6469_v4, %v6473_v51  ;;  %v16637_v58 = vrot.slane %v14719_v39, 1  ;;  %v16638_v39 = vld [vmem:[#allocation16_spill] sm:$0xff]  ;;  %v6899_v4 = vrot.slane %v14824_v3, 1  ;;  %v15145_v3 = vld [vmem:[#allocation2 + $0x48] sm:$0xff] }
 0x242   : > { %v6514_v59 = vsel %vm2059_vm3, %v6509_v21, %v6513_v53  ;;  %v15129_v51 = vld [vmem:[#allocation2 + $0x38] sm:$0xff]  ;;  %v15224_v53 = vld [vmem:[#allocation2 + $0xa0] sm:$0xff] }
 0x243   : > { %v6888_v61 = vsel %vm2639_vm4, %v6886_v57, %v16637_v58 }
 0x248   : > { %12264 = vmatmul.mubr.msk.bf16.gmra.mrb[92].mxu1 %vm1592_vm2, %v14708_v14  ;;  %12680 = vmatmul.mubr.msk.bf16.gmra.mrb[92].mxu0 %vm1592_vm2, %v6466_v25  ;;  %v6482_v14 = vsel %vm2059_vm3, %v6477_v49, %v6481_v0  ;;  %v15151_v0 = vld [vmem:[#allocation2 + $0x50] sm:$0xff]  ;;  %v15159_v49 = vld [vmem:[#allocation2 + $0x58] sm:$0xff] }
 0x249   : > { %12267 = vmatprep.mubr.msk.bf16.mxu1 %vm1592_vm2, %v14717_v33  ;;  %12683 = vmatprep.mubr.msk.bf16.mxu0 %vm1592_vm2, %v6474_v27  ;;  %v6490_v33 = vsel %vm2059_vm3, %v6485_v26, %v6489_v43  ;;  %v15165_v43 = vld [vmem:[#allocation2 + $0x60] sm:$0xff] }
 0x250   : > { %12268 = vmatmul.mubr.msk.bf16.gmra.mrb[96].mxu1 %vm1592_vm2, %v14733_v17  ;;  %12684 = vmatmul.mubr.msk.bf16.gmra.mrb[96].mxu0 %vm1592_vm2, %v6482_v14  ;;  %v6498_v17 = vsel %vm2059_vm3, %v6493_v16, %v6497_v9  ;;  %v15173_v14 = vld [vmem:[#allocation2 + $0x68] sm:$0xff]  ;;  %v15187_v9 = vld [vmem:[#allocation2 + $0x78] sm:$0xff]  ;;  %v15193_v16 = vld [vmem:[#allocation2 + $0x80] sm:$0xff] }
 0x251   : > { %12271 = vmatprep.mubr.msk.bf16.mxu1 %vm1592_vm2, %v14746_v12  ;;  %12687 = vmatprep.mubr.msk.bf16.mxu0 %vm1592_vm2, %v6490_v33  ;;  %v6506_v12 = vsel %vm2059_vm3, %v6501_v1, %v6505_v6  ;;  %v15179_v33 = vld [vmem:[#allocation2 + $0x70] sm:$0xff]  ;;  %v15201_v6 = vld [vmem:[#allocation2 + $0x88] sm:$0xff] }
 0x258   : > { %12272 = vmatmul.mubr.msk.bf16.gmra.mrb[100].mxu1 %vm1592_vm2, %v14762_v20  ;;  %12688 = vmatmul.mubr.msk.bf16.gmra.mrb[100].mxu0 %vm1592_vm2, %v6498_v17  ;;  %v15086_v20 = vld [vmem:[#allocation2 + $0x10] sm:$0xff] }
 0x259   : > { %12275 = vmatprep.mubr.msk.bf16.mxu1 %vm1592_vm2, %v14771_v24  ;;  %12691 = vmatprep.mubr.msk.bf16.mxu0 %vm1592_vm2, %v6506_v12  ;;  %v15094_v24 = vld [vmem:[#allocation2 + $0x18] sm:$0xff]  ;;  %v15210_v12 = vld [vmem:[#allocation7 + $0x50] sm:$0xff]   ;;  %v3453_v42 = vshrl.u32 %v15086_v20, 16 }
 0x260   : > { %12276 = vmatmul.mubr.msk.bf16.gmra.mrb[104].mxu1 %vm1592_vm2, %v14778_v29  ;;  %12692 = vmatmul.mubr.msk.bf16.gmra.mrb[104].mxu0 %vm1592_vm2, %v6514_v59  ;;  %v15100_v29 = vld [vmem:[#allocation2 + $0x20] sm:$0xff]  ;;  %v15232_v59 = vld [vmem:[#allocation2 + $0xa8] sm:$0xff] }
 0x261   : > { %12283 = vmatprep.mubr.msk.bf16.mxu1 %vm1592_vm2, %v15086_v20  ;;  %12699 = vmatprep.mubr.msk.bf16.mxu0 %vm1592_vm2, %v6888_v61  ;;  %v15238_v61 = vld [vmem:[#allocation2 + $0xb0] sm:$0xff] }
 0x268   : > { %12284 = vmatmul.mubr.msk.bf16.vlgmr.msra.gmra.mrb[60].mxu1 %vm1592_vm2, %v15094_v24  ;;  %12700 = vmatmul.mubr.msk.bf16.vlgmr.msra.gmra.mrb[60].mxu0 %vm1592_vm2, %v14801_v22  ;;  %v15114_v22 = vld [vmem:[#allocation2 + $0x28] sm:$0xff] }
 0x269   : > { %12748 = vmatpush3.bf16.msra.mxu0 %v14883_v11  ;;  %12287 = vmatprep.mubr.msk.bf16.mxu1 %vm1592_vm2, %v15100_v29  ;;  %v16639_v11 = vld [vmem:[#allocation17_spill] sm:$0xff] }
 0x26a   : > { %12703 = vmatprep.mubr.msk.bf16.mxu0 %vm1592_vm2, %v16638_v39  ;;  %12749 = vmatprep.subr.bf16.mxu0 %v14945_v36 }
 0x26b   : > { %12332 = vmatpush3.bf16.msra.mxu1 %v15039_v19 }
 0x26c   : > { %12333 = vmatprep.subr.bf16.mxu1 %v15102_v55 }
 0x26d   : > { %12750 = vmatpush3.bf16.msra.mxu0 %v14945_v36  ;;  %v6897_v36 = vrot.slane %v14792_v62, 1  ;;  %v6901_v62 = vrot.slane %v14830_v10, 1  ;;  %v6905_v10 = vrot.slane %v14842_v2, 1  ;;  %v6911_v2 = vrot.slane %v14862_v54, 1 }
 0x26e   : > { %12799 = vmatprep.subr.bf16.mxu0 %v15039_v19  ;;  %v6915_v54 = vrot.slane %v14875_v13, 1  ;;  %v6919_v13 = vrot.slane %v14890_v50, 1  ;;  %v6923_v50 = vrot.slane %v14902_v15, 1  ;;  %v6927_v15 = vrot.slane %v14914_v47, 1 }
 0x26f   : > { %12334 = vmatpush3.bf16.msra.mxu1 %v15102_v55  ;;  %v6898_v25 = vsel %vm2639_vm4, %v16641_v52, %v6897_v36  ;;  %v6900_v27 = vsel %vm2639_vm4, %v6897_v36, %v6899_v4  ;;  %v6902_v32 = vsel %vm2639_vm4, %v6899_v4, %v6901_v62  ;;  %v6904_v34 = vsel %vm2639_vm4, %v6901_v62, %v6903_v37  ;;  %v15253_v4 = vld [vmem:[#allocation2 + $0xc0] sm:$0xff] }
 0x270   : > { %12288 = vmatmul.mubr.msk.bf16.gmra.mrb[64].mxu1 %vm1592_vm2, %v15114_v22  ;;  %12704 = vmatmul.mubr.msk.bf16.gmra.mrb[64].mxu0 %vm1592_vm2, %v16639_v11  ;;  %v6906_v26 = vsel %vm2639_vm4, %v6903_v37, %v6905_v10  ;;  %v6908_v45 = vsel %vm2639_vm4, %v6905_v10, %v6907_v8  ;;  %v6912_v60 = vsel %vm2639_vm4, %v6909_v46, %v6911_v2  ;;  %v6931_v47 = vrot.slane %v14930_v48, 1 }
 0x271   : > { %12291 = vmatprep.mubr.msk.bf16.mxu1 %vm1592_vm2, %v15121_v40  ;;  %12707 = vmatprep.mubr.msk.bf16.mxu0 %vm1592_vm2, %v16640_v31  ;;  %v6914_v7 = vsel %vm2639_vm4, %v6911_v2, %v6913_v63  ;;  %v6916_v1 = vsel %vm2639_vm4, %v6913_v63, %v6915_v54  ;;  %v6918_v17 = vsel %vm2639_vm4, %v6915_v54, %v6917_v38  ;;  %v3455_v11 = vshll.u32 %v15086_v20, 16  ;;  %v15247_v31 = vld [vmem:[#allocation2 + $0xb8] sm:$0xff]  ;;  %v15270_v20 = vld [vmem:[#allocation2 + $0xd0] sm:$0xff] }
 0x272   : > { %v6920_v28 = vsel %vm2639_vm4, %v6917_v38, %v6919_v13  ;;  %12383 = vmatprep.subr.bf16.mxu1 %v15210_v12  ;;  %v6922_v21 = vsel %vm2639_vm4, %v6919_v13, %v6921_v35  ;;  %v6924_v57 = vsel %vm2639_vm4, %v6921_v35, %v6923_v50  ;;  %v6926_v58 = vsel %vm2639_vm4, %v6923_v50, %v6925_v23  ;;  %v15286_v13 = vld [vmem:[#allocation7 + $0x58] sm:$0xff]  }
 0x273   : > { %v6928_v39 = vsel %vm2639_vm4, %v6925_v23, %v6927_v15  ;;  %v6930_v36 = vsel %vm2639_vm4, %v6927_v15, %v6929_v44  ;;  %16642 = vst [vmem:[#allocation12_spill] sm:$0xff] %v15253_v4  ;;  %v6932_v52 = vsel %vm2639_vm4, %v6929_v44, %v6931_v47  ;;  %v3460_v48 = vshll.u32 %v15094_v24, 16  ;;  %v15311_v44 = vld [vmem:[#allocation2 + $0xf0] sm:$0xff] }
 0x274   : > { %v3468_v37 = vshll.u32 %v15100_v29, 16  ;;  %v3464_v46 = vshrl.u32 %v15094_v24, 16  ;;  %v3492_v35 = vshll.u32 %v15129_v51, 16  ;;  %v3480_v50 = vshrl.u32 %v15114_v22, 16 }
 0x276   : > { %v3494_v23 = vrot.slane %v3492_v35, 1  ;;  %v3540_v35 = vshll.u32 %v15173_v14, 16 }
 0x278   : > { %12292 = vmatmul.mubr.msk.bf16.gmra.mrb[68].mxu1 %vm1592_vm2, %v15129_v51  ;;  %12708 = vmatmul.mubr.msk.bf16.gmra.mrb[68].mxu0 %vm1592_vm2, %v6898_v25  ;;  %v3457_v25 = vrot.slane %v3455_v11, 1  ;;  %v3508_v11 = vshll.u32 %v15145_v3, 16 }
 0x279   : > { %12295 = vmatprep.mubr.msk.bf16.mxu1 %vm1592_vm2, %v15137_v30  ;;  %12711 = vmatprep.mubr.msk.bf16.mxu0 %vm1592_vm2, %v6900_v27  ;;  %v6933_v27 = vrot.slane %v15070_v18, 1  ;;  %v3472_v18 = vshrl.u32 %v15100_v29, 16 }
 0x27a   : > { %v3458_v62 = vor.u32 %v3457_v25, %v3453_v42  ;;  %v3516_v25 = vshll.u32 %v15151_v0, 16 }
 0x27b   : > { %v6934_v10 = vsel %vm2639_vm4, %v6931_v47, %v6933_v27 }
 0x280   : > { %12296 = vmatmul.mubr.msk.bf16.gmra.mrb[72].mxu1 %vm1592_vm2, %v15145_v3  ;;  %12712 = vmatmul.mubr.msk.bf16.gmra.mrb[72].mxu0 %vm1592_vm2, %v6902_v32  ;;  %v3462_v32 = vrot.slane %v3460_v48, 1  ;;  %v3510_v48 = vrot.slane %v3508_v11, 1 }
 0x281   : > { %12299 = vmatprep.mubr.msk.bf16.mxu1 %vm1592_vm2, %v15151_v0  ;;  %12715 = vmatprep.mubr.msk.bf16.mxu0 %vm1592_vm2, %v6904_v34  ;;  %v15263_v34 = vld [vmem:[#allocation2 + $0xc8] sm:$0xff] }
 0x282   : > { %v3463_v8 = vsel %vm2059_vm3, %v3458_v62, %v3462_v32  ;;  %v15321_v62 = vld [vmem:[#allocation2 + $0xf8] sm:$0xff] }
 0x288   : > { %12300 = vmatmul.mubr.msk.bf16.gmra.mrb[76].mxu1 %vm1592_vm2, %v15159_v49  ;;  %12716 = vmatmul.mubr.msk.bf16.gmra.mrb[76].mxu0 %vm1592_vm2, %v6906_v26  ;;  %v3470_v26 = vrot.slane %v3468_v37, 1 }
 0x289   : > { %12303 = vmatprep.mubr.msk.bf16.mxu1 %vm1592_vm2, %v15165_v43  ;;  %12719 = vmatprep.mubr.msk.bf16.mxu0 %vm1592_vm2, %v6908_v45  ;;  %v3476_v45 = vshll.u32 %v15114_v22, 16 }
 0x28a   : > { %v3474_v2 = vor.u32 %v3472_v18, %v3470_v26  ;;  %v3512_v18 = vshrl.u32 %v15145_v3, 16 }
 0x28b   : > { %v3478_v63 = vrot.slane %v3476_v45, 1 }
 0x290   : > { %12304 = vmatmul.mubr.msk.bf16.gmra.mrb[80].mxu1 %vm1592_vm2, %v15173_v14  ;;  %12720 = vmatmul.mubr.msk.bf16.gmra.mrb[80].mxu0 %vm1592_vm2, %v6910_v5  ;;  %v3484_v5 = vshll.u32 %v15121_v40, 16 }
 0x291   : > { %12307 = vmatprep.mubr.msk.bf16.mxu1 %vm1592_vm2, %v15179_v33  ;;  %12723 = vmatprep.mubr.msk.bf16.mxu0 %vm1592_vm2, %v6912_v60  ;;  %v3466_v60 = vor.u32 %v3464_v46, %v3462_v32  ;;  %v15327_v32 = vld [vmem:[#allocation2 + $0x100] sm:$0xff]  ;;  %v3532_v46 = vshll.u32 %v15165_v43, 16 }
 0x292   : > { %v3486_v38 = vrot.slane %v3484_v5, 1 }
 0x293   : > { %v3471_v54 = vsel %vm2059_vm3, %v3466_v60, %v3470_v26  ;;  %v3524_v26 = vshll.u32 %v15159_v49, 16 }
 0x295   : > { %v3526_v5 = vrot.slane %v3524_v26, 1 }
 0x298   : > { %12308 = vmatmul.mubr.msk.bf16.gmra.mrb[84].mxu1 %vm1592_vm2, %v15187_v9  ;;  %12724 = vmatmul.mubr.msk.bf16.gmra.mrb[84].mxu0 %vm1592_vm2, %v6914_v7  ;;  %v15280_v7 = vld [vmem:[#allocation2 + $0xd8] sm:$0xff] }
 0x299   : > { %12311 = vmatprep.mubr.msk.bf16.mxu1 %vm1592_vm2, %v15193_v16  ;;  %12727 = vmatprep.mubr.msk.bf16.mxu0 %vm1592_vm2, %v6916_v1  ;;  %v3479_v1 = vsel %vm2059_vm3, %v3474_v2, %v3478_v63  ;;  %v3514_v2 = vor.u32 %v3512_v18, %v3510_v48  ;;  %v15375_v18 = vld [vmem:[#allocation2 + $0x130] sm:$0xff] }
 0x2a0   : > { %12312 = vmatmul.mubr.msk.bf16.gmra.mrb[88].mxu1 %vm1592_vm2, %v15201_v6  ;;  %12728 = vmatmul.mubr.msk.bf16.gmra.mrb[88].mxu0 %vm1592_vm2, %v6918_v17  ;;  %v15290_v17 = vld [vmem:[#allocation2 + $0xe0] sm:$0xff] }
 0x2a1   : > { %12315 = vmatprep.mubr.msk.bf16.mxu1 %vm1592_vm2, %v15207_v41  ;;  %12731 = vmatprep.mubr.msk.bf16.mxu0 %vm1592_vm2, %v6920_v28  ;;  %v3488_v28 = vshrl.u32 %v15121_v40, 16 }
 0x2a8   : > { %12316 = vmatmul.mubr.msk.bf16.gmra.mrb[92].mxu1 %vm1592_vm2, %v15218_v56  ;;  %12732 = vmatmul.mubr.msk.bf16.gmra.mrb[92].mxu0 %vm1592_vm2, %v6922_v21  ;;  %v3490_v21 = vor.u32 %v3488_v28, %v3486_v38  ;;  %v3536_v28 = vshrl.u32 %v15165_v43, 16 }
 0x2a9   : > { %12319 = vmatprep.mubr.msk.bf16.mxu1 %vm1592_vm2, %v15224_v53  ;;  %12735 = vmatprep.mubr.msk.bf16.mxu0 %vm1592_vm2, %v6924_v57  ;;  %v3482_v57 = vor.u32 %v3480_v50, %v3478_v63  ;;  %v15337_v63 = vld [vmem:[#allocation2 + $0x108] sm:$0xff]  ;;  %v3528_v50 = vshrl.u32 %v15159_v49, 16 }
 0x2ab   : > { %v3487_v15 = vsel %vm2059_vm3, %v3482_v57, %v3486_v38  ;;  %v3534_v38 = vrot.slane %v3532_v46, 1  ;;  %v3530_v57 = vor.u32 %v3528_v50, %v3526_v5  ;;  %v3568_v46 = vshrl.u32 %v15193_v16, 16  ;;  %v15385_v50 = vld [vmem:[#allocation2 + $0x138] sm:$0xff] }
 0x2b0   : > { %12320 = vmatmul.mubr.msk.bf16.gmra.mrb[96].mxu1 %vm1592_vm2, %v15232_v59  ;;  %12736 = vmatmul.mubr.msk.bf16.gmra.mrb[96].mxu0 %vm1592_vm2, %v6926_v58  ;;  %v15304_v58 = vld [vmem:[#allocation2 + $0xe8] sm:$0xff] }
 0x2b1   : > { %12323 = vmatprep.mubr.msk.bf16.mxu1 %vm1592_vm2, %v15238_v61  ;;  %12739 = vmatprep.mubr.msk.bf16.mxu0 %vm1592_vm2, %v6928_v39  ;;  %v3495_v39 = vsel %vm2059_vm3, %v3490_v21, %v3494_v23  ;;  %v3538_v21 = vor.u32 %v3536_v28, %v3534_v38 }
 0x2b8   : > { %12324 = vmatmul.mubr.msk.bf16.gmra.mrb[100].mxu1 %vm1592_vm2, %v15247_v31  ;;  %12740 = vmatmul.mubr.msk.bf16.gmra.mrb[100].mxu0 %vm1592_vm2, %v6930_v36  ;;  %v3496_v36 = vshrl.u32 %v15129_v51, 16 }
 0x2b9   : > { %12327 = vmatprep.mubr.msk.bf16.mxu1 %vm1592_vm2, %v15253_v4  ;;  %12743 = vmatprep.mubr.msk.bf16.mxu0 %vm1592_vm2, %v6932_v52 }
 0x2ba   : > { %v3498_v42 = vor.u32 %v3496_v36, %v3494_v23  ;;  %v3542_v23 = vrot.slane %v3540_v35, 1  ;;  %v3552_v36 = vshrl.u32 %v15179_v33, 16 }
 0x2c0   : > { %12328 = vmatmul.mubr.msk.bf16.gmra.mrb[104].mxu1 %vm1592_vm2, %v15263_v34  ;;  %12744 = vmatmul.mubr.msk.bf16.gmra.mrb[104].mxu0 %vm1592_vm2, %v6934_v10  ;;  %v3518_v10 = vrot.slane %v3516_v25, 1  ;;  %v3544_v25 = vshrl.u32 %v15173_v14, 16 }
 0x2c1   : > { %12335 = vmatprep.mubr.msk.bf16.mxu1 %vm1592_vm2, %v3463_v8  ;;  %12751 = vmatprep.mubr.msk.bf16.mxu0 %vm1592_vm2, %v15270_v20  ;;  %v3520_v8 = vshrl.u32 %v15151_v0, 16 }
 0x2c2   : > { %v3519_v60 = vsel %vm2059_vm3, %v3514_v2, %v3518_v10  ;;  %v3572_v2 = vshll.u32 %v15201_v6, 16 }
 0x2c3   : > { %v3522_v45 = vor.u32 %v3520_v8, %v3518_v10  ;;  %v15369_v8 = vld [vmem:[#allocation2 + $0x128] sm:$0xff] }
 0x2c4   : > { %v3574_v28 = vrot.slane %v3572_v2, 1  ;;  %v3592_v2 = vshrl.u32 %v15218_v56, 16 }
 0x2c8   : > { %12336 = vmatmul.mubr.msk.bf16.vlgmr.msra.gmra.mrb[60].mxu1 %vm1592_vm2, %v3471_v54  ;;  %12752 = vmatmul.mubr.msk.bf16.vlgmr.msra.gmra.mrb[60].mxu0 %vm1592_vm2, %v15280_v7  ;;  %v3527_v54 = vsel %vm2059_vm3, %v3522_v45, %v3526_v5  ;;  %v3560_v5 = vshrl.u32 %v15187_v9, 16 }
 0x2c9   : > { %12800 = vmatpush3.bf16.msra.mxu0 %v15039_v19  ;;  %12339 = vmatprep.mubr.msk.bf16.mxu1 %vm1592_vm2, %v3479_v1  ;;  %v3500_v19 = vshll.u32 %v15137_v30, 16  ;;  %v15343_v1 = vld [vmem:[#allocation2 + $0x110] sm:$0xff] }
 0x2ca   : > { %12755 = vmatprep.mubr.msk.bf16.mxu0 %vm1592_vm2, %v15290_v17  ;;  %12801 = vmatprep.subr.bf16.mxu0 %v15102_v55 }
 0x2cb   : > { %12384 = vmatpush3.bf16.msra.mxu1 %v15210_v12  ;;  %v3502_v47 = vrot.slane %v3500_v19, 1  ;;  %v3548_v19 = vshll.u32 %v15179_v33, 16 }
 0x2cc   : > { %12385 = vmatprep.subr.bf16.mxu1 %v15286_v13 }
 0x2cd   : > { %12802 = vmatpush3.bf16.msra.mxu0 %v15102_v55  ;;  %v3504_v55 = vshrl.u32 %v15137_v30, 16  ;;  %v3503_v27 = vsel %vm2059_vm3, %v3498_v42, %v3502_v47  ;;  %v3550_v11 = vrot.slane %v3548_v19, 1  ;;  %v15391_v19 = vld [vmem:[#allocation2 + $0x140] sm:$0xff] }
 0x2ce   : > { %12851 = vmatprep.subr.bf16.mxu0 %v15210_v12 }
 0x2cf   : > { %12386 = vmatpush3.bf16.msra.mxu1 %v15286_v13  ;;  %v3506_v52 = vor.u32 %v3504_v55, %v3502_v47  ;;  %v3543_v47 = vsel %vm2059_vm3, %v3538_v21, %v3542_v23  ;;  %v15359_v55 = vld [vmem:[#allocation2 + $0x120] sm:$0xff]  ;;  %v3554_v42 = vor.u32 %v3552_v36, %v3550_v11  ;;  %v3596_v36 = vshll.u32 %v15224_v53, 16 }
 0x2d0   : > { %12340 = vmatmul.mubr.msk.bf16.gmra.mrb[64].mxu1 %vm1592_vm2, %v3487_v15  ;;  %12756 = vmatmul.mubr.msk.bf16.gmra.mrb[64].mxu0 %vm1592_vm2, %v15304_v58  ;;  %v3535_v15 = vsel %vm2059_vm3, %v3530_v57, %v3534_v38 }
 0x2d1   : > { %12343 = vmatprep.mubr.msk.bf16.mxu1 %vm1592_vm2, %v3495_v39  ;;  %12759 = vmatprep.mubr.msk.bf16.mxu0 %vm1592_vm2, %v15311_v44  ;;  %v3511_v37 = vsel %vm2059_vm3, %v3506_v52, %v3510_v48  ;;  %v15353_v39 = vld [vmem:[#allocation2 + $0x118] sm:$0xff]  ;;  %v3556_v52 = vshll.u32 %v15187_v9, 16  ;;  %v3564_v48 = vshll.u32 %v15193_v16, 16 }
 0x2d3   : > { %v3566_v45 = vrot.slane %v3564_v48, 1  ;;  %v15401_v48 = vld [vmem:[#allocation2 + $0x148] sm:$0xff] }
 0x2d8   : > { %12344 = vmatmul.mubr.msk.bf16.gmra.mrb[68].mxu1 %vm1592_vm2, %v3503_v27  ;;  %12760 = vmatmul.mubr.msk.bf16.gmra.mrb[68].mxu0 %vm1592_vm2, %v15321_v62  ;;  %v3546_v27 = vor.u32 %v3544_v25, %v3542_v23  ;;  %v3584_v23 = vshrl.u32 %v15207_v41, 16 }
 0x2d9   : > { %12347 = vmatprep.mubr.msk.bf16.mxu1 %vm1592_vm2, %v3511_v37  ;;  %12763 = vmatprep.mubr.msk.bf16.mxu0 %vm1592_vm2, %v15327_v32  ;;  %v3558_v37 = vrot.slane %v3556_v52, 1 }
 0x2da   : > { %v3551_v10 = vsel %vm2059_vm3, %v3546_v27, %v3550_v11 }
 0x2db   : > { %v3559_v26 = vsel %vm2059_vm3, %v3554_v42, %v3558_v37  ;;  %v3562_v38 = vor.u32 %v3560_v5, %v3558_v37  ;;  %v15407_v37 = vld [vmem:[#allocation2 + $0x150] sm:$0xff] }
 0x2dd   : > { %v3567_v35 = vsel %vm2059_vm3, %v3562_v38, %v3566_v45 }
 0x2e0   : > { %12348 = vmatmul.mubr.msk.bf16.gmra.mrb[72].mxu1 %vm1592_vm2, %v3519_v60  ;;  %12764 = vmatmul.mubr.msk.bf16.gmra.mrb[72].mxu0 %vm1592_vm2, %v15337_v63  ;;  %v3570_v60 = vor.u32 %v3568_v46, %v3566_v45  ;;  %v3600_v45 = vshrl.u32 %v15224_v53, 16  ;;  %v3604_v46 = vshll.u32 %v15232_v59, 16 }
 0x2e1   : > { %12351 = vmatprep.mubr.msk.bf16.mxu1 %vm1592_vm2, %v3527_v54  ;;  %12767 = vmatprep.mubr.msk.bf16.mxu0 %vm1592_vm2, %v15343_v1  ;;  %v3580_v54 = vshll.u32 %v15207_v41, 16 }
 0x2e2   : > { %v3575_v21 = vsel %vm2059_vm3, %v3570_v60, %v3574_v28  ;;  %v3612_v60 = vshll.u32 %v15238_v61, 16  ;;  %v3606_v38 = vrot.slane %v3604_v46, 1  ;;  %v15442_v46 = vld [vmem:[#allocation2 + $0x170] sm:$0xff] }
 0x2e3   : > { %v3582_v57 = vrot.slane %v3580_v54, 1 }
 0x2e5   : > { %v3586_v11 = vor.u32 %v3584_v23, %v3582_v57  ;;  %v3614_v23 = vrot.slane %v3612_v60, 1  ;;  %v3636_v60 = vshll.u32 %v15263_v34, 16 }
 0x2e8   : > { %12352 = vmatmul.mubr.msk.bf16.gmra.mrb[76].mxu1 %vm1592_vm2, %v3535_v15  ;;  %12768 = vmatmul.mubr.msk.bf16.gmra.mrb[76].mxu0 %vm1592_vm2, %v15353_v39  ;;  %v3588_v15 = vshll.u32 %v15218_v56, 16 }
 0x2e9   : > { %12355 = vmatprep.mubr.msk.bf16.mxu1 %vm1592_vm2, %v3543_v47  ;;  %12771 = vmatprep.mubr.msk.bf16.mxu0 %vm1592_vm2, %v15359_v55  ;;  %v3576_v47 = vshrl.u32 %v15201_v6, 16 }
 0x2ea   : > { %v3590_v25 = vrot.slane %v3588_v15, 1  ;;  %v3616_v15 = vshrl.u32 %v15238_v61, 16 }
 0x2eb   : > { %v3578_v52 = vor.u32 %v3576_v47, %v3574_v28  ;;  %v3620_v47 = vshll.u32 %v15247_v31, 16 }
 0x2ec   : > { %v3591_v27 = vsel %vm2059_vm3, %v3586_v11, %v3590_v25  ;;  %v3594_v54 = vor.u32 %v3592_v2, %v3590_v25  ;;  %v3608_v11 = vshrl.u32 %v15232_v59, 16 }
 0x2ed   : > { %v3583_v42 = vsel %vm2059_vm3, %v3578_v52, %v3582_v57  ;;  %v15426_v57 = vld [vmem:[#allocation2 + $0x160] sm:$0xff]  ;;  %v3628_v52 = vshll.u32 %v15253_v4, 16 }
 0x2ee   : > { %v3610_v25 = vor.u32 %v3608_v11, %v3606_v38  ;;  %v15454_v11 = vld [vmem:[#allocation2 + $0x178] sm:$0xff] }
 0x2ef   : > { %v3630_v2 = vrot.slane %v3628_v52, 1 }
 0x2f0   : > { %12356 = vmatmul.mubr.msk.bf16.gmra.mrb[80].mxu1 %vm1592_vm2, %v3551_v10  ;;  %12772 = vmatmul.mubr.msk.bf16.gmra.mrb[80].mxu0 %vm1592_vm2, %v15369_v8  ;;  %v3598_v10 = vrot.slane %v3596_v36, 1  ;;  %v3618_v36 = vor.u32 %v3616_v15, %v3614_v23  ;;  %v3638_v15 = vrot.slane %v3636_v60, 1 }
 0x2f1   : > { %12359 = vmatprep.mubr.msk.bf16.mxu1 %vm1592_vm2, %v3559_v26  ;;  %12775 = vmatprep.mubr.msk.bf16.mxu0 %vm1592_vm2, %v15375_v18  ;;  %v15409_v26 = vld [vmem:[#allocation7 + $0x60] sm:$0xff]  }
 0x2f2   : > { %12435 = vmatprep.subr.bf16.mxu1 %v15409_v26  ;;  %v3602_v5 = vor.u32 %v3600_v45, %v3598_v10  ;;  %v3599_v28 = vsel %vm2059_vm3, %v3594_v54, %v3598_v10  ;;  %v15436_v10 = vld [vmem:[#allocation2 + $0x168] sm:$0xff]  ;;  %v3624_v54 = vshrl.u32 %v15247_v31, 16 }
 0x2f8   : > { %12360 = vmatmul.mubr.msk.bf16.gmra.mrb[84].mxu1 %vm1592_vm2, %v3567_v35  ;;  %12776 = vmatmul.mubr.msk.bf16.gmra.mrb[84].mxu0 %vm1592_vm2, %v15385_v50  ;;  %v15420_v35 = vld [vmem:[#allocation2 + $0x158] sm:$0xff] }
 0x2f9   : > { %12363 = vmatprep.mubr.msk.bf16.mxu1 %vm1592_vm2, %v3575_v21  ;;  %12779 = vmatprep.mubr.msk.bf16.mxu0 %vm1592_vm2, %v15391_v19  ;;  %v3607_v21 = vsel %vm2059_vm3, %v3602_v5, %v3606_v38  ;;  %v3632_v5 = vshrl.u32 %v15253_v4, 16  ;;  %v15472_v4 = vld [vmem:[#allocation2 + $0x188] sm:$0xff] }
 0x2fb   : > { %v3634_v38 = vor.u32 %v3632_v5, %v3630_v2  ;;  %v3640_v5 = vshrl.u32 %v15263_v34, 16 }
 0x2fd   : > { %v3639_v52 = vsel %vm2059_vm3, %v3634_v38, %v3638_v15 }
 0x300   : > { %12364 = vmatmul.mubr.msk.bf16.gmra.mrb[88].mxu1 %vm1592_vm2, %v3583_v42  ;;  %12780 = vmatmul.mubr.msk.bf16.gmra.mrb[88].mxu0 %vm1592_vm2, %v15401_v48  ;;  %v3622_v42 = vrot.slane %v3620_v47, 1 }
 0x301   : > { %12367 = vmatprep.mubr.msk.bf16.mxu1 %vm1592_vm2, %v3591_v27  ;;  %12783 = vmatprep.mubr.msk.bf16.mxu0 %vm1592_vm2, %v15407_v37  ;;  %v3615_v27 = vsel %vm2059_vm3, %v3610_v25, %v3614_v23  ;;  %v15461_v25 = vld [vmem:[#allocation2 + $0x180] sm:$0xff] }
 0x302   : > { %v3623_v45 = vsel %vm2059_vm3, %v3618_v36, %v3622_v42  ;;  %v3626_v23 = vor.u32 %v3624_v54, %v3622_v42  ;;  %v4005_v42 = vld [vmem:[#allocation2 + $0x10] sm:$0xfe] }
 0x303   : > { %v4031_v54 = vrot.slane %v4005_v42, 1  ;;  %v7694_v42 = vshrl.u32 %v15290_v17, 16 }
 0x304   : > { %v3631_v47 = vsel %vm2059_vm3, %v3626_v23, %v3630_v2  ;;  %v7682_v2 = vshll.u32 %v15280_v7, 16  ;;  %v4032_v23 = vrot.slane %v15094_v24, 1 }
 0x308   : > { %12368 = vmatmul.mubr.msk.bf16.gmra.mrb[92].mxu1 %vm1592_vm2, %v3599_v28  ;;  %12784 = vmatmul.mubr.msk.bf16.gmra.mrb[92].mxu0 %vm1592_vm2, %v15420_v35  ;;  %v15450_v28 = vld [vmem:[#allocation2 + $0xd0] sm:$0x1] }
 0x309   : > { %12371 = vmatprep.mubr.msk.bf16.mxu1 %vm1592_vm2, %v3607_v21  ;;  %12787 = vmatprep.mubr.msk.bf16.mxu0 %vm1592_vm2, %v15426_v57  ;;  %16643 = vst [vmem:[#allocation13_spill] sm:$0xff] %v15450_v28  ;;  %v7677_v21 = vshll.u32 %v15270_v20, 16  ;;  %v3644_v36 = vshll.u32 %v15450_v28, 16  ;;  %v7684_v28 = vrot.slane %v7682_v2, 1  ;;  %v4036_v2 = vrot.slane %v15114_v22, 1 }
 0x30b   : > { %v3646_v60 = vrot.slane %v3644_v36, 1 }
 0x310   : > { %12372 = vmatmul.mubr.msk.bf16.gmra.mrb[96].mxu1 %vm1592_vm2, %v3615_v27  ;;  %12788 = vmatmul.mubr.msk.bf16.gmra.mrb[96].mxu0 %vm1592_vm2, %v15436_v10  ;;  %v7679_v27 = vrot.slane %v7677_v21, 1  ;;  %v7690_v21 = vshll.u32 %v15290_v17, 16 }
 0x311   : > { %12375 = vmatprep.mubr.msk.bf16.mxu1 %vm1592_vm2, %v3623_v45  ;;  %12791 = vmatprep.mubr.msk.bf16.mxu0 %vm1592_vm2, %v15442_v46  ;;  %v7675_v45 = vshrl.u32 %v15270_v20, 16  ;;  %v4033_v20 = vsel %vm2639_vm4, %v4031_v54, %v4032_v23  ;;  %v7706_v54 = vshll.u32 %v15311_v44, 16 }
 0x312   : > { %v7692_v24 = vrot.slane %v7690_v21, 1  ;;  %v7710_v21 = vshrl.u32 %v15311_v44, 16 }
 0x313   : > { %v7680_v38 = vor.u32 %v7679_v27, %v7675_v45  ;;  %v4034_v27 = vrot.slane %v15100_v29, 1  ;;  %v7698_v45 = vshll.u32 %v15304_v58, 16 }
 0x315   : > { %v7685_v36 = vsel %vm2059_vm3, %v7680_v38, %v7684_v28  ;;  %v4035_v38 = vsel %vm2639_vm4, %v4032_v23, %v4034_v27  ;;  %v4037_v29 = vsel %vm2639_vm4, %v4034_v27, %v4036_v2  ;;  %v7708_v23 = vrot.slane %v7706_v54, 1 }
 0x316   : > { %v7726_v54 = vshrl.u32 %v15327_v32, 16 }
 0x317   : > { %v7712_v27 = vor.u32 %v7710_v21, %v7708_v23 }
 0x318   : > { %12376 = vmatmul.mubr.msk.bf16.gmra.mrb[100].mxu1 %vm1592_vm2, %v3631_v47  ;;  %12792 = vmatmul.mubr.msk.bf16.gmra.mrb[100].mxu0 %vm1592_vm2, %v15454_v11  ;;  %v3642_v47 = vor.u32 %v3640_v5, %v3638_v15  ;;  %v7686_v15 = vshrl.u32 %v15280_v7, 16 }
 0x319   : > { %12379 = vmatprep.mubr.msk.bf16.mxu1 %vm1592_vm2, %v3639_v52  ;;  %12795 = vmatprep.mubr.msk.bf16.mxu0 %vm1592_vm2, %v15461_v25 }
 0x31a   : > { %v3647_v52 = vsel %vm2059_vm3, %v3642_v47, %v3646_v60  ;;  %v7688_v5 = vor.u32 %v7686_v15, %v7684_v28  ;;  %v7696_v60 = vor.u32 %v7694_v42, %v7692_v24  ;;  %v7702_v28 = vshrl.u32 %v15304_v58, 16 }
 0x31c   : > { %v7693_v47 = vsel %vm2059_vm3, %v7688_v5, %v7692_v24  ;;  %v4038_v24 = vrot.slane %v15121_v40, 1  ;;  %v7718_v40 = vshrl.u32 %v15321_v62, 16 }
 0x31e   : > { %v4039_v5 = vsel %vm2639_vm4, %v4036_v2, %v4038_v24 }
 0x320   : > { %12380 = vmatmul.mubr.msk.bf16.gmra.mrb[104].mxu1 %vm1592_vm2, %v3647_v52  ;;  %12796 = vmatmul.mubr.msk.bf16.gmra.mrb[104].mxu0 %vm1592_vm2, %v15472_v4  ;;  %v7700_v52 = vrot.slane %v7698_v45, 1  ;;  %v7722_v45 = vshll.u32 %v15327_v32, 16 }
 0x321   : > { %12387 = vmatprep.mubr.msk.bf16.mxu1 %vm1592_vm2, %v4033_v20  ;;  %12803 = vmatprep.mubr.msk.bf16.mxu0 %vm1592_vm2, %v7685_v36  ;;  %v15493_v20 = vld [vmem:[#allocation7 + $0x68] sm:$0xff]   ;;  %v7714_v36 = vshll.u32 %v15321_v62, 16 }
 0x322   : > { %v7701_v22 = vsel %vm2059_vm3, %v7696_v60, %v7700_v52  ;;  %v7704_v15 = vor.u32 %v7702_v28, %v7700_v52  ;;  %v7724_v2 = vrot.slane %v7722_v45, 1  ;;  %v7738_v28 = vshll.u32 %v15343_v1, 16 }
 0x323   : > { %v7716_v42 = vrot.slane %v7714_v36, 1 }
 0x324   : > { %v7709_v60 = vsel %vm2059_vm3, %v7704_v15, %v7708_v23  ;;  %v7728_v21 = vor.u32 %v7726_v54, %v7724_v2 }
 0x325   : > { %v7720_v52 = vor.u32 %v7718_v40, %v7716_v42 }
 0x327   : > { %v7725_v36 = vsel %vm2059_vm3, %v7720_v52, %v7724_v2  ;;  %v7750_v2 = vshrl.u32 %v15353_v39, 16  ;;  %v7762_v52 = vshll.u32 %v15369_v8, 16 }
 0x328   : > { %12388 = vmatmul.mubr.msk.bf16.vlgmr.msra.gmra.mrb[60].mxu1 %vm1592_vm2, %v4035_v38  ;;  %12804 = vmatmul.mubr.msk.bf16.vlgmr.msra.gmra.mrb[60].mxu0 %vm1592_vm2, %v7693_v47  ;;  %v7730_v38 = vshll.u32 %v15337_v63, 16  ;;  %v4042_v47 = vrot.slane %v15137_v30, 1 }
 0x329   : > { %12852 = vmatpush3.bf16.msra.mxu0 %v15210_v12  ;;  %12391 = vmatprep.mubr.msk.bf16.mxu1 %vm1592_vm2, %v4037_v29  ;;  %v4040_v12 = vrot.slane %v15129_v51, 1  ;;  %v4044_v29 = vrot.slane %v15145_v3, 1  ;;  %v7742_v3 = vshrl.u32 %v15343_v1, 16 }
 0x32a   : > { %12807 = vmatprep.mubr.msk.bf16.mxu0 %vm1592_vm2, %v7701_v22  ;;  %12853 = vmatprep.subr.bf16.mxu0 %v15286_v13  ;;  %v7732_v22 = vrot.slane %v7730_v38, 1 }
 0x32b   : > { %12436 = vmatpush3.bf16.msra.mxu1 %v15409_v26  ;;  %v4041_v51 = vsel %vm2639_vm4, %v4038_v24, %v4040_v12  ;;  %v4043_v23 = vsel %vm2639_vm4, %v4040_v12, %v4042_v47  ;;  %v7734_v24 = vshrl.u32 %v15337_v63, 16  ;;  %v4045_v15 = vsel %vm2639_vm4, %v4042_v47, %v4044_v29 }
 0x32c   : > { %12437 = vmatprep.subr.bf16.mxu1 %v15493_v20  ;;  %v7733_v30 = vsel %vm2059_vm3, %v7728_v21, %v7732_v22  ;;  %v7746_v12 = vshll.u32 %v15353_v39, 16 }
 0x32d   : > { %12854 = vmatpush3.bf16.msra.mxu0 %v15286_v13  ;;  %v7717_v13 = vsel %vm2059_vm3, %v7712_v27, %v7716_v42  ;;  %v7740_v27 = vrot.slane %v7738_v28, 1  ;;  %v4046_v42 = vrot.slane %v15151_v0, 1  ;;  %v7736_v45 = vor.u32 %v7734_v24, %v7732_v22 }
 0x32e   : > { %12903 = vmatprep.subr.bf16.mxu0 %v15409_v26  ;;  %v7748_v40 = vrot.slane %v7746_v12, 1  ;;  %v4052_v22 = vrot.slane %v15173_v14, 1  ;;  %v7774_v14 = vshrl.u32 %v15375_v18, 16  ;;  %v7778_v12 = vshll.u32 %v15385_v50, 16 }
 0x32f   : > { %12438 = vmatpush3.bf16.msra.mxu1 %v15493_v20  ;;  %v7741_v54 = vsel %vm2059_vm3, %v7736_v45, %v7740_v27 }
 0x330   : > { %12392 = vmatmul.mubr.msk.bf16.gmra.mrb[64].mxu1 %vm1592_vm2, %v4039_v5  ;;  %12808 = vmatmul.mubr.msk.bf16.gmra.mrb[64].mxu0 %vm1592_vm2, %v7709_v60  ;;  %v4048_v5 = vrot.slane %v15159_v49, 1  ;;  %v7744_v60 = vor.u32 %v7742_v3, %v7740_v27  ;;  %v7758_v49 = vshrl.u32 %v15359_v55, 16  ;;  %v7752_v21 = vor.u32 %v7750_v2, %v7748_v40 }
 0x331   : > { %12395 = vmatprep.mubr.msk.bf16.mxu1 %vm1592_vm2, %v4041_v51  ;;  %12811 = vmatprep.mubr.msk.bf16.mxu0 %vm1592_vm2, %v7717_v13  ;;  %v7754_v51 = vshll.u32 %v15359_v55, 16  ;;  %v4047_v13 = vsel %vm2639_vm4, %v4044_v29, %v4046_v42  ;;  %v4050_v29 = vrot.slane %v15165_v43, 1  ;;  %v7782_v2 = vshrl.u32 %v15385_v50, 16 }
 0x332   : > { %v4049_v38 = vsel %vm2639_vm4, %v4046_v42, %v4048_v5  ;;  %v7749_v0 = vsel %vm2059_vm3, %v7744_v60, %v7748_v40  ;;  %v4054_v42 = vrot.slane %v15179_v33, 1  ;;  %v7780_v40 = vrot.slane %v7778_v12, 1 }
 0x333   : > { %v7756_v47 = vrot.slane %v7754_v51, 1  ;;  %v4051_v24 = vsel %vm2639_vm4, %v4048_v5, %v4050_v29  ;;  %v4053_v3 = vsel %vm2639_vm4, %v4050_v29, %v4052_v22  ;;  %v4056_v5 = vrot.slane %v15187_v9, 1 }
 0x334   : > { %v7786_v51 = vshll.u32 %v15391_v19, 16  ;;  %v7790_v9 = vshrl.u32 %v15391_v19, 16  ;;  %v4060_v29 = vrot.slane %v15201_v6, 1  ;;  %v7806_v6 = vshrl.u32 %v15407_v37, 16 }
 0x335   : > { %v7760_v28 = vor.u32 %v7758_v49, %v7756_v47  ;;  %v7794_v49 = vshll.u32 %v15401_v48, 16 }
 0x338   : > { %12396 = vmatmul.mubr.msk.bf16.gmra.mrb[68].mxu1 %vm1592_vm2, %v4043_v23  ;;  %12812 = vmatmul.mubr.msk.bf16.gmra.mrb[68].mxu0 %vm1592_vm2, %v7725_v36  ;;  %v7764_v23 = vrot.slane %v7762_v52, 1  ;;  %v7770_v36 = vshll.u32 %v15375_v18, 16  ;;  %v7784_v52 = vor.u32 %v7782_v2, %v7780_v40  ;;  %v7826_v2 = vshll.u32 %v15436_v10, 16 }
 0x339   : > { %12399 = vmatprep.mubr.msk.bf16.mxu1 %vm1592_vm2, %v4045_v15  ;;  %12815 = vmatprep.mubr.msk.bf16.mxu0 %vm1592_vm2, %v7733_v30  ;;  %v7757_v15 = vsel %vm2059_vm3, %v7752_v21, %v7756_v47  ;;  %v7766_v30 = vshrl.u32 %v15369_v8, 16  ;;  %v4058_v47 = vrot.slane %v15193_v16, 1 }
 0x33a   : > { %v7765_v43 = vsel %vm2059_vm3, %v7760_v28, %v7764_v23  ;;  %v7772_v27 = vrot.slane %v7770_v36, 1  ;;  %v7802_v28 = vshll.u32 %v15407_v37, 16 }
 0x33b   : > { %v7768_v45 = vor.u32 %v7766_v30, %v7764_v23  ;;  %v4059_v23 = vsel %vm2639_vm4, %v4056_v5, %v4058_v47 }
 0x33c   : > { %v7776_v60 = vor.u32 %v7774_v14, %v7772_v27  ;;  %v7804_v30 = vrot.slane %v7802_v28, 1 }
 0x33e   : > { %v7781_v33 = vsel %vm2059_vm3, %v7776_v60, %v7780_v40  ;;  %v7808_v12 = vor.u32 %v7806_v6, %v7804_v30  ;;  %v7814_v40 = vshrl.u32 %v15420_v35, 16 }
 0x340   : > { %12400 = vmatmul.mubr.msk.bf16.gmra.mrb[72].mxu1 %vm1592_vm2, %v4047_v13  ;;  %12816 = vmatmul.mubr.msk.bf16.gmra.mrb[72].mxu0 %vm1592_vm2, %v7741_v54  ;;  %v4055_v13 = vsel %vm2639_vm4, %v4052_v22, %v4054_v42  ;;  %v7773_v54 = vsel %vm2059_vm3, %v7768_v45, %v7772_v27  ;;  %v7796_v22 = vrot.slane %v7794_v49, 1  ;;  %v4064_v27 = vrot.slane %v15218_v56, 1 }
 0x341   : > { %12403 = vmatprep.mubr.msk.bf16.mxu1 %vm1592_vm2, %v4049_v38  ;;  %12819 = vmatprep.mubr.msk.bf16.mxu0 %vm1592_vm2, %v7749_v0  ;;  %v4057_v38 = vsel %vm2639_vm4, %v4054_v42, %v4056_v5  ;;  %v7788_v0 = vrot.slane %v7786_v51, 1  ;;  %v7818_v45 = vshll.u32 %v15426_v57, 16  ;;  %v7822_v56 = vshrl.u32 %v15426_v57, 16 }
 0x342   : > { %v7828_v49 = vrot.slane %v7826_v2, 1 }
 0x343   : > { %v7792_v21 = vor.u32 %v7790_v9, %v7788_v0  ;;  %v7789_v36 = vsel %vm2059_vm3, %v7784_v52, %v7788_v0  ;;  %v4068_v9 = vrot.slane %v15232_v59, 1  ;;  %v7838_v59 = vshrl.u32 %v15442_v46, 16 }
 0x345   : > { %v7797_v16 = vsel %vm2059_vm3, %v7792_v21, %v7796_v22  ;;  %v7830_v21 = vshrl.u32 %v15436_v10, 16 }
 0x348   : > { %12404 = vmatmul.mubr.msk.bf16.gmra.mrb[76].mxu1 %vm1592_vm2, %v4051_v24  ;;  %12820 = vmatmul.mubr.msk.bf16.gmra.mrb[76].mxu0 %vm1592_vm2, %v7757_v15  ;;  %v7798_v24 = vshrl.u32 %v15401_v48, 16  ;;  %v4061_v15 = vsel %vm2639_vm4, %v4058_v47, %v4060_v29  ;;  %v7834_v47 = vshll.u32 %v15442_v46, 16 }
 0x349   : > { %12407 = vmatprep.mubr.msk.bf16.mxu1 %vm1592_vm2, %v4053_v3  ;;  %12823 = vmatprep.mubr.msk.bf16.mxu0 %vm1592_vm2, %v7765_v43  ;;  %v7810_v3 = vshll.u32 %v15420_v35, 16  ;;  %v4062_v43 = vrot.slane %v15207_v41, 1 }
 0x34a   : > { %v7800_v14 = vor.u32 %v7798_v24, %v7796_v22  ;;  %v7836_v28 = vrot.slane %v7834_v47, 1  ;;  %v7832_v24 = vor.u32 %v7830_v21, %v7828_v49 }
 0x34b   : > { %v7812_v42 = vrot.slane %v7810_v3, 1  ;;  %v4063_v5 = vsel %vm2639_vm4, %v4060_v29, %v4062_v43  ;;  %v4065_v51 = vsel %vm2639_vm4, %v4062_v43, %v4064_v27 }
 0x34c   : > { %v7805_v60 = vsel %vm2059_vm3, %v7800_v14, %v7804_v30  ;;  %v7850_v30 = vshll.u32 %v15461_v25, 16  ;;  %v7837_v43 = vsel %vm2059_vm3, %v7832_v24, %v7836_v28  ;;  %v7846_v14 = vshrl.u32 %v15454_v11, 16  ;;  %v15664_v24 = vld [vmem:[#allocation2 + $0x28] sm:$0xff] }
 0x34d   : > { %v7813_v41 = vsel %vm2059_vm3, %v7808_v12, %v7812_v42 }
 0x34e   : > { %v7852_v12 = vrot.slane %v7850_v30, 1  ;;  %v8250_v30 = vrot.slane %v15321_v62, 1 }
 0x350   : > { %12408 = vmatmul.mubr.msk.bf16.gmra.mrb[80].mxu1 %vm1592_vm2, %v4055_v13  ;;  %12824 = vmatmul.mubr.msk.bf16.gmra.mrb[80].mxu0 %vm1592_vm2, %v7773_v54  ;;  %v15602_v13 = vld [vmem:[#allocation7 + $0x70] sm:$0xff]   ;;  %v7820_v54 = vrot.slane %v7818_v45, 1 }
 0x351   : > { %12411 = vmatprep.mubr.msk.bf16.mxu1 %vm1592_vm2, %v4057_v38  ;;  %12827 = vmatprep.mubr.msk.bf16.mxu0 %vm1592_vm2, %v7781_v33  ;;  %v4066_v38 = vrot.slane %v15224_v53, 1  ;;  %v7816_v33 = vor.u32 %v7814_v40, %v7812_v42  ;;  %v7858_v42 = vshll.u32 %v15472_v4, 16  ;;  %v16644_v45 = vld [vmem:[#allocation12_spill] sm:$0xff]  ;;  %v4076_v40 = vrot.slane %v15263_v34, 1 }
 0x352   : > { %12487 = vmatprep.subr.bf16.mxu1 %v15602_v13  ;;  %v7824_v0 = vor.u32 %v7822_v56, %v7820_v54 }
 0x353   : > { %v4067_v52 = vsel %vm2639_vm4, %v4064_v27, %v4066_v38  ;;  %v7821_v29 = vsel %vm2059_vm3, %v7816_v33, %v7820_v54  ;;  %v4069_v22 = vsel %vm2639_vm4, %v4066_v38, %v4068_v9  ;;  %v7860_v56 = vrot.slane %v7858_v42, 1 }
 0x354   : > { %v7829_v53 = vsel %vm2059_vm3, %v7824_v0, %v7828_v49  ;;  %v7862_v38 = vshrl.u32 %v15472_v4, 16  ;;  %v8215_v0 = vld [vmem:[#allocation2 + $0xd0] sm:$0xfe]  ;;  %v16645_v49 = vld [vmem:[#allocation13_spill] sm:$0xff] }
 0x355   : > { %v4078_v47 = vrot.slane %v16645_v49, 1  ;;  %v8241_v21 = vrot.slane %v8215_v0, 1  ;;  %v15763_v0 = vld [vmem:[#allocation2 + $0x90] sm:$0xff] }
 0x358   : > { %12412 = vmatmul.mubr.msk.bf16.gmra.mrb[84].mxu1 %vm1592_vm2, %v4059_v23  ;;  %12828 = vmatmul.mubr.msk.bf16.gmra.mrb[84].mxu0 %vm1592_vm2, %v7789_v36  ;;  %v7842_v23 = vshll.u32 %v15454_v11, 16  ;;  %v4070_v36 = vrot.slane %v15238_v61, 1 }
 0x359   : > { %12415 = vmatprep.mubr.msk.bf16.mxu1 %vm1592_vm2, %v4061_v15  ;;  %12831 = vmatprep.mubr.msk.bf16.mxu0 %vm1592_vm2, %v7797_v16  ;;  %v4072_v15 = vrot.slane %v15247_v31, 1  ;;  %v7840_v16 = vor.u32 %v7838_v59, %v7836_v28  ;;  %v7854_v31 = vshrl.u32 %v15461_v25, 16  ;;  %v15656_v28 = vld [vmem:[#allocation2 + $0x20] sm:$0xff] }
 0x35a   : > { %v7844_v6 = vrot.slane %v7842_v23, 1  ;;  %v4071_v3 = vsel %vm2639_vm4, %v4068_v9, %v4070_v36 }
 0x35b   : > { %v4073_v27 = vsel %vm2639_vm4, %v4070_v36, %v4072_v15  ;;  %v8244_v36 = vrot.slane %v15290_v17, 1 }
 0x35c   : > { %v7845_v61 = vsel %vm2059_vm3, %v7840_v16, %v7844_v6  ;;  %v15670_v16 = vld [vmem:[#allocation2 + $0x30] sm:$0xff] }
 0x360   : > { %12416 = vmatmul.mubr.msk.bf16.gmra.mrb[88].mxu1 %vm1592_vm2, %v4063_v5  ;;  %12832 = vmatmul.mubr.msk.bf16.gmra.mrb[88].mxu0 %vm1592_vm2, %v7805_v60  ;;  %v4074_v5 = vrot.slane %v16644_v45, 1  ;;  %v7848_v60 = vor.u32 %v7846_v14, %v7844_v6  ;;  %v15672_v6 = vld [vmem:[#allocation7 + $0x78] sm:$0xff]   ;;  %v15701_v14 = vld [vmem:[#allocation2 + $0x48] sm:$0xff]  ;;  %v15721_v45 = vld [vmem:[#allocation2 + $0x60] sm:$0xff] }
 0x361   : > { %12419 = vmatprep.mubr.msk.bf16.mxu1 %vm1592_vm2, %v4065_v51  ;;  %12835 = vmatprep.mubr.msk.bf16.mxu0 %vm1592_vm2, %v7813_v41  ;;  %v7856_v51 = vor.u32 %v7854_v31, %v7852_v12  ;;  %v15638_v41 = vld [vmem:[#allocation2 + $0x190] sm:$0x1] }
 0x362   : > { %v4075_v54 = vsel %vm2639_vm4, %v4072_v15, %v4074_v5  ;;  %v7853_v2 = vsel %vm2059_vm3, %v7848_v60, %v7852_v12  ;;  %v7866_v33 = vshll.u32 %v15638_v41, 16  ;;  %v4077_v9 = vsel %vm2639_vm4, %v4074_v5, %v4076_v40  ;;  %v15715_v12 = vld [vmem:[#allocation2 + $0x58] sm:$0xff]  ;;  %v15729_v60 = vld [vmem:[#allocation2 + $0x68] sm:$0xff] }
 0x363   : > { %v7861_v34 = vsel %vm2059_vm3, %v7856_v51, %v7860_v56  ;;  %v15735_v51 = vld [vmem:[#allocation2 + $0x70] sm:$0xff] }
 0x368   : > { %12420 = vmatmul.mubr.msk.bf16.gmra.mrb[92].mxu1 %vm1592_vm2, %v4067_v52  ;;  %12836 = vmatmul.mubr.msk.bf16.gmra.mrb[92].mxu0 %vm1592_vm2, %v7821_v29  ;;  %v7864_v52 = vor.u32 %v7862_v38, %v7860_v56  ;;  %v7868_v29 = vrot.slane %v7866_v33, 1  ;;  %v15749_v38 = vld [vmem:[#allocation2 + $0x80] sm:$0xff] }
 0x369   : > { %12423 = vmatprep.mubr.msk.bf16.mxu1 %vm1592_vm2, %v4069_v22  ;;  %12839 = vmatprep.mubr.msk.bf16.mxu0 %vm1592_vm2, %v7829_v53  ;;  %v8242_v22 = vrot.slane %v15280_v7, 1  ;;  %v4079_v53 = vsel %vm2639_vm4, %v4076_v40, %v4078_v47  ;;  %v8246_v7 = vrot.slane %v15304_v58, 1  ;;  %v8248_v58 = vrot.slane %v15311_v44, 1  ;;  %v15693_v44 = vld [vmem:[#allocation2 + $0x40] sm:$0xff]  ;;  %v15771_v47 = vld [vmem:[#allocation2 + $0x98] sm:$0xff] }
 0x36a   : > { %v7869_v59 = vsel %vm2059_vm3, %v7864_v52, %v7868_v29  ;;  %v15777_v29 = vld [vmem:[#allocation2 + $0xa0] sm:$0xff] }
 0x36b   : > { %v8243_v23 = vsel %vm2639_vm4, %v8241_v21, %v8242_v22  ;;  %v8245_v15 = vsel %vm2639_vm4, %v8242_v22, %v8244_v36  ;;  %v8247_v17 = vsel %vm2639_vm4, %v8244_v36, %v8246_v7  ;;  %v8251_v62 = vsel %vm2639_vm4, %v8248_v58, %v8250_v30  ;;  %v15780_v22 = vld [vmem:[#allocation7 + $0x80] sm:$0xff]  }
 0x370   : > { %12424 = vmatmul.mubr.msk.bf16.gmra.mrb[96].mxu1 %vm1592_vm2, %v4071_v3  ;;  %12840 = vmatmul.mubr.msk.bf16.gmra.mrb[96].mxu0 %vm1592_vm2, %v7837_v43  ;;  %v8249_v3 = vsel %vm2639_vm4, %v8246_v7, %v8248_v58  ;;  %v8254_v43 = vrot.slane %v15337_v63, 1  ;;  %v8258_v63 = vrot.slane %v15353_v39, 1  ;;  %v8262_v39 = vrot.slane %v15369_v8, 1  ;;  %v15802_v7 = vld [vmem:[#allocation2 + $0xb8] sm:$0xff] }
 0x371   : > { %12427 = vmatprep.mubr.msk.bf16.mxu1 %vm1592_vm2, %v4073_v27  ;;  %12843 = vmatprep.mubr.msk.bf16.mxu0 %vm1592_vm2, %v7845_v61  ;;  %v15707_v61 = vld [vmem:[#allocation2 + $0x50] sm:$0xff]  ;;  %v8266_v8 = vrot.slane %v15385_v50, 1  ;;  %v8270_v50 = vrot.slane %v15401_v48, 1  ;;  %v8274_v48 = vrot.slane %v15420_v35, 1  ;;  %v8278_v35 = vrot.slane %v15436_v10, 1 }
 0x372   : > { %v8282_v10 = vrot.slane %v15454_v11, 1  ;;  %v8286_v11 = vrot.slane %v15472_v4, 1  ;;  %v4844_v4 = vshrl.u32 %v15656_v28, 16 }
 0x378   : > { %12428 = vmatmul.mubr.msk.bf16.gmra.mrb[100].mxu1 %vm1592_vm2, %v4075_v54  ;;  %12844 = vmatmul.mubr.msk.bf16.gmra.mrb[100].mxu0 %vm1592_vm2, %v7853_v2  ;;  %v15743_v54 = vld [vmem:[#allocation2 + $0x78] sm:$0xff] }
 0x379   : > { %12431 = vmatprep.mubr.msk.bf16.mxu1 %vm1592_vm2, %v4077_v9  ;;  %12847 = vmatprep.mubr.msk.bf16.mxu0 %vm1592_vm2, %v7861_v34  ;;  %v15757_v9 = vld [vmem:[#allocation2 + $0x88] sm:$0xff] }
 0x380   : > { %12432 = vmatmul.mubr.msk.bf16.gmra.mrb[104].mxu1 %vm1592_vm2, %v4079_v53  ;;  %12848 = vmatmul.mubr.msk.bf16.gmra.mrb[104].mxu0 %vm1592_vm2, %v7869_v59  ;;  %v15788_v53 = vld [vmem:[#allocation2 + $0xa8] sm:$0xff] }
 0x381   : > { %12439 = vmatprep.mubr.msk.bf16.mxu1 %vm1592_vm2, %v15656_v28  ;;  %12855 = vmatprep.mubr.msk.bf16.mxu0 %vm1592_vm2, %v8243_v23  ;;  %v15794_v23 = vld [vmem:[#allocation2 + $0xb0] sm:$0xff] }
 0x388   : > { %12440 = vmatmul.mubr.msk.bf16.vlgmr.msra.gmra.mrb[60].mxu1 %vm1592_vm2, %v15664_v24  ;;  %12856 = vmatmul.mubr.msk.bf16.vlgmr.msra.gmra.mrb[60].mxu0 %vm1592_vm2, %v8245_v15 }
 0x389   : > { %12904 = vmatpush3.bf16.msra.mxu0 %v15409_v26  ;;  %12443 = vmatprep.mubr.msk.bf16.mxu1 %vm1592_vm2, %v15670_v16  ;;  %v15686_v26 = vld [vmem:[#allocation2 + $0x38] sm:$0xff] }
 0x38a   : > { %12859 = vmatprep.mubr.msk.bf16.mxu0 %vm1592_vm2, %v8247_v17  ;;  %12905 = vmatprep.subr.bf16.mxu0 %v15493_v20  ;;  %v15808_v17 = vld [vmem:[#allocation2 + $0xc0] sm:$0xff] }
 0x38b   : > { %12488 = vmatpush3.bf16.msra.mxu1 %v15602_v13 }
 0x38c   : > { %12489 = vmatprep.subr.bf16.mxu1 %v15672_v6 }
 0x38d   : > { %12906 = vmatpush3.bf16.msra.mxu0 %v15493_v20  ;;  %v8252_v20 = vrot.slane %v15327_v32, 1  ;;  %v8256_v32 = vrot.slane %v15343_v1, 1  ;;  %v8260_v1 = vrot.slane %v15359_v55, 1  ;;  %v8264_v55 = vrot.slane %v15375_v18, 1 }
 0x38e   : > { %12955 = vmatprep.subr.bf16.mxu0 %v15602_v13  ;;  %v8268_v18 = vrot.slane %v15391_v19, 1  ;;  %v8272_v19 = vrot.slane %v15407_v37, 1  ;;  %v8276_v37 = vrot.slane %v15426_v57, 1  ;;  %v8280_v57 = vrot.slane %v15442_v46, 1 }
 0x38f   : > { %12490 = vmatpush3.bf16.msra.mxu1 %v15672_v6  ;;  %v8253_v27 = vsel %vm2639_vm4, %v8250_v30, %v8252_v20  ;;  %v8255_v31 = vsel %vm2639_vm4, %v8252_v20, %v8254_v43  ;;  %v8257_v42 = vsel %vm2639_vm4, %v8254_v43, %v8256_v32  ;;  %v8259_v5 = vsel %vm2639_vm4, %v8256_v32, %v8258_v63  ;;  %v15823_v20 = vld [vmem:[#allocation2 + $0xd0] sm:$0xff] }
 0x390   : > { %12444 = vmatmul.mubr.msk.bf16.gmra.mrb[64].mxu1 %vm1592_vm2, %v15686_v26  ;;  %12860 = vmatmul.mubr.msk.bf16.gmra.mrb[64].mxu0 %vm1592_vm2, %v8249_v3  ;;  %v8261_v40 = vsel %vm2639_vm4, %v8258_v63, %v8260_v1  ;;  %v8263_v56 = vsel %vm2639_vm4, %v8260_v1, %v8262_v39  ;;  %v8265_v2 = vsel %vm2639_vm4, %v8262_v39, %v8264_v55  ;;  %v8284_v46 = vrot.slane %v15461_v25, 1  ;;  %v15817_v3 = vld [vmem:[#allocation2 + $0xc8] sm:$0xff] }
 0x391   : > { %12447 = vmatprep.mubr.msk.bf16.mxu1 %vm1592_vm2, %v15693_v44  ;;  %12863 = vmatprep.mubr.msk.bf16.mxu0 %vm1592_vm2, %v8251_v62  ;;  %v8267_v33 = vsel %vm2639_vm4, %v8264_v55, %v8266_v8  ;;  %v8269_v34 = vsel %vm2639_vm4, %v8266_v8, %v8268_v18  ;;  %v8271_v49 = vsel %vm2639_vm4, %v8268_v18, %v8270_v50  ;;  %v4846_v30 = vshll.u32 %v15656_v28, 16  ;;  %v15840_v28 = vld [vmem:[#allocation2 + $0xe0] sm:$0xff] }
 0x392   : > { %v8273_v52 = vsel %vm2639_vm4, %v8270_v50, %v8272_v19  ;;  %v8275_v21 = vsel %vm2639_vm4, %v8272_v19, %v8274_v48  ;;  %12539 = vmatprep.subr.bf16.mxu1 %v15780_v22  ;;  %v8277_v59 = vsel %vm2639_vm4, %v8274_v48, %v8276_v37  ;;  %v8279_v36 = vsel %vm2639_vm4, %v8276_v37, %v8278_v35  ;;  %v15856_v48 = vld [vmem:[#allocation7 + $0x88] sm:$0xff]  }
 0x393   : > { %v8281_v15 = vsel %vm2639_vm4, %v8278_v35, %v8280_v57  ;;  %v8283_v58 = vsel %vm2639_vm4, %v8280_v57, %v8282_v10  ;;  %v8285_v62 = vsel %vm2639_vm4, %v8282_v10, %v8284_v46  ;;  %v8287_v43 = vsel %vm2639_vm4, %v8284_v46, %v8286_v11  ;;  %v15881_v46 = vld [vmem:[#allocation2 + $0x100] sm:$0xff] }
 0x394   : > { %v4851_v25 = vshll.u32 %v15664_v24, 16  ;;  %v4859_v63 = vshll.u32 %v15670_v16, 16  ;;  %v4855_v55 = vshrl.u32 %v15664_v24, 16  ;;  %v4883_v37 = vshll.u32 %v15701_v14, 16 }
 0x395   : > { %v4871_v35 = vshrl.u32 %v15686_v26, 16 }
 0x396   : > { %v4885_v57 = vrot.slane %v4883_v37, 1  ;;  %v4931_v37 = vshll.u32 %v15743_v54, 16 }
 0x398   : > { %12448 = vmatmul.mubr.msk.bf16.gmra.mrb[68].mxu1 %vm1592_vm2, %v15701_v14  ;;  %12864 = vmatmul.mubr.msk.bf16.gmra.mrb[68].mxu0 %vm1592_vm2, %v8253_v27  ;;  %v4848_v27 = vrot.slane %v4846_v30, 1  ;;  %v4899_v30 = vshll.u32 %v15715_v12, 16 }
 0x399   : > { %12451 = vmatprep.mubr.msk.bf16.mxu1 %vm1592_vm2, %v15707_v61  ;;  %12867 = vmatprep.mubr.msk.bf16.mxu0 %vm1592_vm2, %v8255_v31  ;;  %v8288_v31 = vrot.slane %v15638_v41, 1  ;;  %v4863_v41 = vshrl.u32 %v15670_v16, 16 }
 0x39a   : > { %v4849_v32 = vor.u32 %v4848_v27, %v4844_v4  ;;  %v4907_v27 = vshll.u32 %v15721_v45, 16 }
 0x39b   : > { %v8289_v1 = vsel %vm2639_vm4, %v8286_v11, %v8288_v31 }
 0x3a0   : > { %12452 = vmatmul.mubr.msk.bf16.gmra.mrb[72].mxu1 %vm1592_vm2, %v15715_v12  ;;  %12868 = vmatmul.mubr.msk.bf16.gmra.mrb[72].mxu0 %vm1592_vm2, %v8257_v42  ;;  %v4853_v42 = vrot.slane %v4851_v25, 1  ;;  %v4901_v25 = vrot.slane %v4899_v30, 1 }
 0x3a1   : > { %12455 = vmatprep.mubr.msk.bf16.mxu1 %vm1592_vm2, %v15721_v45  ;;  %12871 = vmatprep.mubr.msk.bf16.mxu0 %vm1592_vm2, %v8259_v5  ;;  %v15833_v5 = vld [vmem:[#allocation2 + $0xd8] sm:$0xff] }
 0x3a2   : > { %v4854_v39 = vsel %vm2059_vm3, %v4849_v32, %v4853_v42  ;;  %v15891_v32 = vld [vmem:[#allocation2 + $0x108] sm:$0xff] }
 0x3a8   : > { %12456 = vmatmul.mubr.msk.bf16.gmra.mrb[76].mxu1 %vm1592_vm2, %v15729_v60  ;;  %12872 = vmatmul.mubr.msk.bf16.gmra.mrb[76].mxu0 %vm1592_vm2, %v8261_v40  ;;  %v4861_v40 = vrot.slane %v4859_v63, 1 }
 0x3a9   : > { %12459 = vmatprep.mubr.msk.bf16.mxu1 %vm1592_vm2, %v15735_v51  ;;  %12875 = vmatprep.mubr.msk.bf16.mxu0 %vm1592_vm2, %v8263_v56  ;;  %v4867_v56 = vshll.u32 %v15686_v26, 16 }
 0x3aa   : > { %v4865_v8 = vor.u32 %v4863_v41, %v4861_v40  ;;  %v4903_v41 = vshrl.u32 %v15715_v12, 16 }
 0x3ab   : > { %v4869_v18 = vrot.slane %v4867_v56, 1 }
 0x3b0   : > { %12460 = vmatmul.mubr.msk.bf16.gmra.mrb[80].mxu1 %vm1592_vm2, %v15743_v54  ;;  %12876 = vmatmul.mubr.msk.bf16.gmra.mrb[80].mxu0 %vm1592_vm2, %v8265_v2  ;;  %v4875_v2 = vshll.u32 %v15693_v44, 16 }
 0x3b1   : > { %12463 = vmatprep.mubr.msk.bf16.mxu1 %vm1592_vm2, %v15749_v38  ;;  %12879 = vmatprep.mubr.msk.bf16.mxu0 %vm1592_vm2, %v8267_v33  ;;  %v4857_v33 = vor.u32 %v4855_v55, %v4853_v42  ;;  %v15897_v42 = vld [vmem:[#allocation2 + $0x110] sm:$0xff]  ;;  %v4923_v55 = vshll.u32 %v15735_v51, 16 }
 0x3b2   : > { %v4877_v19 = vrot.slane %v4875_v2, 1 }
 0x3b3   : > { %v4862_v50 = vsel %vm2059_vm3, %v4857_v33, %v4861_v40  ;;  %v4915_v40 = vshll.u32 %v15729_v60, 16 }
 0x3b5   : > { %v4917_v2 = vrot.slane %v4915_v40, 1 }
 0x3b8   : > { %12464 = vmatmul.mubr.msk.bf16.gmra.mrb[84].mxu1 %vm1592_vm2, %v15757_v9  ;;  %12880 = vmatmul.mubr.msk.bf16.gmra.mrb[84].mxu0 %vm1592_vm2, %v8269_v34  ;;  %v15850_v34 = vld [vmem:[#allocation2 + $0xe8] sm:$0xff] }
 0x3b9   : > { %12467 = vmatprep.mubr.msk.bf16.mxu1 %vm1592_vm2, %v15763_v0  ;;  %12883 = vmatprep.mubr.msk.bf16.mxu0 %vm1592_vm2, %v8271_v49  ;;  %v4870_v49 = vsel %vm2059_vm3, %v4865_v8, %v4869_v18  ;;  %v4905_v8 = vor.u32 %v4903_v41, %v4901_v25  ;;  %v15945_v41 = vld [vmem:[#allocation2 + $0x140] sm:$0xff] }
 0x3c0   : > { %12468 = vmatmul.mubr.msk.bf16.gmra.mrb[88].mxu1 %vm1592_vm2, %v15771_v47  ;;  %12884 = vmatmul.mubr.msk.bf16.gmra.mrb[88].mxu0 %vm1592_vm2, %v8273_v52  ;;  %v15860_v52 = vld [vmem:[#allocation2 + $0xf0] sm:$0xff] }
 0x3c1   : > { %12471 = vmatprep.mubr.msk.bf16.mxu1 %vm1592_vm2, %v15777_v29  ;;  %12887 = vmatprep.mubr.msk.bf16.mxu0 %vm1592_vm2, %v8275_v21  ;;  %v4879_v21 = vshrl.u32 %v15693_v44, 16 }
 0x3c8   : > { %12472 = vmatmul.mubr.msk.bf16.gmra.mrb[92].mxu1 %vm1592_vm2, %v15788_v53  ;;  %12888 = vmatmul.mubr.msk.bf16.gmra.mrb[92].mxu0 %vm1592_vm2, %v8277_v59  ;;  %v4881_v59 = vor.u32 %v4879_v21, %v4877_v19  ;;  %v4927_v21 = vshrl.u32 %v15735_v51, 16 }
 0x3c9   : > { %12475 = vmatprep.mubr.msk.bf16.mxu1 %vm1592_vm2, %v15794_v23  ;;  %12891 = vmatprep.mubr.msk.bf16.mxu0 %vm1592_vm2, %v8279_v36  ;;  %v4873_v36 = vor.u32 %v4871_v35, %v4869_v18  ;;  %v15907_v18 = vld [vmem:[#allocation2 + $0x118] sm:$0xff]  ;;  %v4919_v35 = vshrl.u32 %v15729_v60, 16 }
 0x3cb   : > { %v4878_v10 = vsel %vm2059_vm3, %v4873_v36, %v4877_v19  ;;  %v4925_v19 = vrot.slane %v4923_v55, 1  ;;  %v4921_v36 = vor.u32 %v4919_v35, %v4917_v2  ;;  %v4959_v55 = vshrl.u32 %v15763_v0, 16  ;;  %v15955_v35 = vld [vmem:[#allocation2 + $0x148] sm:$0xff] }
 0x3d0   : > { %12476 = vmatmul.mubr.msk.bf16.gmra.mrb[96].mxu1 %vm1592_vm2, %v15802_v7  ;;  %12892 = vmatmul.mubr.msk.bf16.gmra.mrb[96].mxu0 %vm1592_vm2, %v8281_v15  ;;  %v15874_v15 = vld [vmem:[#allocation2 + $0xf8] sm:$0xff] }
 0x3d1   : > { %12479 = vmatprep.mubr.msk.bf16.mxu1 %vm1592_vm2, %v15808_v17  ;;  %12895 = vmatprep.mubr.msk.bf16.mxu0 %vm1592_vm2, %v8283_v58  ;;  %v4886_v58 = vsel %vm2059_vm3, %v4881_v59, %v4885_v57  ;;  %v4929_v59 = vor.u32 %v4927_v21, %v4925_v19 }
 0x3d8   : > { %12480 = vmatmul.mubr.msk.bf16.gmra.mrb[100].mxu1 %vm1592_vm2, %v15817_v3  ;;  %12896 = vmatmul.mubr.msk.bf16.gmra.mrb[100].mxu0 %vm1592_vm2, %v8285_v62  ;;  %v4887_v62 = vshrl.u32 %v15701_v14, 16 }
 0x3d9   : > { %12483 = vmatprep.mubr.msk.bf16.mxu1 %vm1592_vm2, %v15823_v20  ;;  %12899 = vmatprep.mubr.msk.bf16.mxu0 %vm1592_vm2, %v8287_v43 }
 0x3da   : > { %v4889_v4 = vor.u32 %v4887_v62, %v4885_v57  ;;  %v4933_v57 = vrot.slane %v4931_v37, 1  ;;  %v4943_v62 = vshrl.u32 %v15749_v38, 16 }
 0x3e0   : > { %12484 = vmatmul.mubr.msk.bf16.gmra.mrb[104].mxu1 %vm1592_vm2, %v15833_v5  ;;  %12900 = vmatmul.mubr.msk.bf16.gmra.mrb[104].mxu0 %vm1592_vm2, %v8289_v1  ;;  %v4909_v1 = vrot.slane %v4907_v27, 1  ;;  %v4935_v27 = vshrl.u32 %v15743_v54, 16 }
 0x3e1   : > { %12491 = vmatprep.mubr.msk.bf16.mxu1 %vm1592_vm2, %v4854_v39  ;;  %12907 = vmatprep.mubr.msk.bf16.mxu0 %vm1592_vm2, %v15840_v28  ;;  %v4911_v39 = vshrl.u32 %v15721_v45, 16 }
 0x3e2   : > { %v4910_v33 = vsel %vm2059_vm3, %v4905_v8, %v4909_v1  ;;  %v4963_v8 = vshll.u32 %v15771_v47, 16 }
 0x3e3   : > { %v4913_v56 = vor.u32 %v4911_v39, %v4909_v1  ;;  %v15939_v39 = vld [vmem:[#allocation2 + $0x138] sm:$0xff] }
 0x3e4   : > { %v4965_v21 = vrot.slane %v4963_v8, 1 }
 0x3e8   : > { %12492 = vmatmul.mubr.msk.bf16.vlgmr.msra.gmra.mrb[60].mxu1 %vm1592_vm2, %v4862_v50  ;;  %12908 = vmatmul.mubr.msk.bf16.vlgmr.msra.gmra.mrb[60].mxu0 %vm1592_vm2, %v15850_v34  ;;  %v4918_v50 = vsel %vm2059_vm3, %v4913_v56, %v4917_v2  ;;  %v4951_v2 = vshrl.u32 %v15757_v9, 16 }
 0x3e9   : > { %12956 = vmatpush3.bf16.msra.mxu0 %v15602_v13  ;;  %12495 = vmatprep.mubr.msk.bf16.mxu1 %vm1592_vm2, %v4870_v49  ;;  %v4891_v13 = vshll.u32 %v15707_v61, 16  ;;  %v15913_v49 = vld [vmem:[#allocation2 + $0x120] sm:$0xff] }
 0x3ea   : > { %12911 = vmatprep.mubr.msk.bf16.mxu0 %vm1592_vm2, %v15860_v52  ;;  %12957 = vmatprep.subr.bf16.mxu0 %v15672_v6 }
 0x3eb   : > { %12540 = vmatpush3.bf16.msra.mxu1 %v15780_v22  ;;  %v4893_v11 = vrot.slane %v4891_v13, 1  ;;  %v4939_v13 = vshll.u32 %v15749_v38, 16 }
 0x3ec   : > { %12541 = vmatprep.subr.bf16.mxu1 %v15856_v48 }
 0x3ed   : > { %12958 = vmatpush3.bf16.msra.mxu0 %v15672_v6  ;;  %v4895_v6 = vshrl.u32 %v15707_v61, 16  ;;  %v4894_v31 = vsel %vm2059_vm3, %v4889_v4, %v4893_v11  ;;  %v4941_v30 = vrot.slane %v4939_v13, 1  ;;  %v15961_v13 = vld [vmem:[#allocation2 + $0x150] sm:$0xff] }
 0x3ee   : > { %13007 = vmatprep.subr.bf16.mxu0 %v15780_v22 }
 0x3ef   : > { %12542 = vmatpush3.bf16.msra.mxu1 %v15856_v48  ;;  %v4897_v43 = vor.u32 %v4895_v6, %v4893_v11  ;;  %v4934_v11 = vsel %vm2059_vm3, %v4929_v59, %v4933_v57  ;;  %v15929_v6 = vld [vmem:[#allocation2 + $0x130] sm:$0xff]  ;;  %v4945_v4 = vor.u32 %v4943_v62, %v4941_v30  ;;  %v4987_v62 = vshll.u32 %v15794_v23, 16 }
 0x3f0   : > { %12496 = vmatmul.mubr.msk.bf16.gmra.mrb[64].mxu1 %vm1592_vm2, %v4878_v10  ;;  %12912 = vmatmul.mubr.msk.bf16.gmra.mrb[64].mxu0 %vm1592_vm2, %v15874_v15  ;;  %v4926_v10 = vsel %vm2059_vm3, %v4921_v36, %v4925_v19 }
 0x3f1   : > { %12499 = vmatprep.mubr.msk.bf16.mxu1 %vm1592_vm2, %v4886_v58  ;;  %12915 = vmatprep.mubr.msk.bf16.mxu0 %vm1592_vm2, %v15881_v46  ;;  %v4902_v63 = vsel %vm2059_vm3, %v4897_v43, %v4901_v25  ;;  %v15923_v58 = vld [vmem:[#allocation2 + $0x128] sm:$0xff]  ;;  %v4947_v43 = vshll.u32 %v15757_v9, 16  ;;  %v4955_v25 = vshll.u32 %v15763_v0, 16 }
 0x3f3   : > { %v4957_v56 = vrot.slane %v4955_v25, 1  ;;  %v15971_v25 = vld [vmem:[#allocation2 + $0x158] sm:$0xff] }
 0x3f8   : > { %12500 = vmatmul.mubr.msk.bf16.gmra.mrb[68].mxu1 %vm1592_vm2, %v4894_v31  ;;  %12916 = vmatmul.mubr.msk.bf16.gmra.mrb[68].mxu0 %vm1592_vm2, %v15891_v32  ;;  %v4937_v31 = vor.u32 %v4935_v27, %v4933_v57  ;;  %v4975_v57 = vshrl.u32 %v15777_v29, 16 }
 0x3f9   : > { %12503 = vmatprep.mubr.msk.bf16.mxu1 %vm1592_vm2, %v4902_v63  ;;  %12919 = vmatprep.mubr.msk.bf16.mxu0 %vm1592_vm2, %v15897_v42  ;;  %v4949_v63 = vrot.slane %v4947_v43, 1 }
 0x3fa   : > { %v4942_v1 = vsel %vm2059_vm3, %v4937_v31, %v4941_v30 }
 0x3fb   : > { %v4950_v40 = vsel %vm2059_vm3, %v4945_v4, %v4949_v63  ;;  %v4953_v19 = vor.u32 %v4951_v2, %v4949_v63  ;;  %v15977_v63 = vld [vmem:[#allocation2 + $0x160] sm:$0xff]  ;;  %v5003_v2 = vshll.u32 %v15808_v17, 16 }
 0x3fd   : > { %v4958_v37 = vsel %vm2059_vm3, %v4953_v19, %v4957_v56 }
 0x400   : > { %12504 = vmatmul.mubr.msk.bf16.gmra.mrb[72].mxu1 %vm1592_vm2, %v4910_v33  ;;  %12920 = vmatmul.mubr.msk.bf16.gmra.mrb[72].mxu0 %vm1592_vm2, %v15907_v18  ;;  %v4961_v33 = vor.u32 %v4959_v55, %v4957_v56  ;;  %v4995_v56 = vshll.u32 %v15802_v7, 16  ;;  %v4983_v55 = vshrl.u32 %v15788_v53, 16 }
 0x401   : > { %12507 = vmatprep.mubr.msk.bf16.mxu1 %vm1592_vm2, %v4918_v50  ;;  %12923 = vmatprep.mubr.msk.bf16.mxu0 %vm1592_vm2, %v15913_v49  ;;  %v4971_v50 = vshll.u32 %v15777_v29, 16 }
 0x402   : > { %v4966_v59 = vsel %vm2059_vm3, %v4961_v33, %v4965_v21 }
 0x403   : > { %v4973_v36 = vrot.slane %v4971_v50, 1  ;;  %v4997_v50 = vrot.slane %v4995_v56, 1 }
 0x405   : > { %v4977_v30 = vor.u32 %v4975_v57, %v4973_v36  ;;  %v5007_v57 = vshrl.u32 %v15808_v17, 16 }
 0x408   : > { %12508 = vmatmul.mubr.msk.bf16.gmra.mrb[76].mxu1 %vm1592_vm2, %v4926_v10  ;;  %12924 = vmatmul.mubr.msk.bf16.gmra.mrb[76].mxu0 %vm1592_vm2, %v15923_v58  ;;  %v4979_v10 = vshll.u32 %v15788_v53, 16 }
 0x409   : > { %12511 = vmatprep.mubr.msk.bf16.mxu1 %vm1592_vm2, %v4934_v11  ;;  %12927 = vmatprep.mubr.msk.bf16.mxu0 %vm1592_vm2, %v15929_v6  ;;  %v4967_v11 = vshrl.u32 %v15771_v47, 16 }
 0x40a   : > { %v4981_v27 = vrot.slane %v4979_v10, 1  ;;  %v5011_v10 = vshll.u32 %v15817_v3, 16 }
 0x40b   : > { %v4969_v43 = vor.u32 %v4967_v11, %v4965_v21  ;;  %v15987_v21 = vld [vmem:[#allocation2 + $0x168] sm:$0xff]  ;;  %v4999_v11 = vshrl.u32 %v15802_v7, 16 }
 0x40c   : > { %v4982_v31 = vsel %vm2059_vm3, %v4977_v30, %v4981_v27  ;;  %v4985_v33 = vor.u32 %v4983_v55, %v4981_v27  ;;  %v5013_v27 = vrot.slane %v5011_v10, 1  ;;  %v5023_v55 = vshrl.u32 %v15823_v20, 16  ;;  %v16021_v10 = vld [vmem:[#allocation2 + $0x188] sm:$0xff] }
 0x40d   : > { %v4974_v4 = vsel %vm2059_vm3, %v4969_v43, %v4973_v36  ;;  %v5005_v36 = vrot.slane %v5003_v2, 1  ;;  %v5001_v43 = vor.u32 %v4999_v11, %v4997_v50  ;;  %v5015_v2 = vshrl.u32 %v15817_v3, 16 }
 0x40f   : > { %v5009_v30 = vor.u32 %v5007_v57, %v5005_v36 }
 0x410   : > { %12512 = vmatmul.mubr.msk.bf16.gmra.mrb[80].mxu1 %vm1592_vm2, %v4942_v1  ;;  %12928 = vmatmul.mubr.msk.bf16.gmra.mrb[80].mxu0 %vm1592_vm2, %v15939_v39  ;;  %v4989_v1 = vrot.slane %v4987_v62, 1  ;;  %v5019_v62 = vshll.u32 %v15823_v20, 16 }
 0x411   : > { %12515 = vmatprep.mubr.msk.bf16.mxu1 %vm1592_vm2, %v4950_v40  ;;  %12931 = vmatprep.mubr.msk.bf16.mxu0 %vm1592_vm2, %v15945_v41  ;;  %v4991_v40 = vshrl.u32 %v15794_v23, 16 }
 0x412   : > { %v4990_v19 = vsel %vm2059_vm3, %v4985_v33, %v4989_v1  ;;  %v5021_v56 = vrot.slane %v5019_v62, 1  ;;  %v16028_v62 = vld [vmem:[#allocation2 + $0x190] sm:$0xff] }
 0x413   : > { %v4993_v8 = vor.u32 %v4991_v40, %v4989_v1  ;;  %v5014_v1 = vsel %vm2059_vm3, %v5009_v30, %v5013_v27  ;;  %v16009_v40 = vld [vmem:[#allocation2 + $0x180] sm:$0xff] }
 0x414   : > { %v5025_v33 = vor.u32 %v5023_v55, %v5021_v56 }
 0x418   : > { %12516 = vmatmul.mubr.msk.bf16.gmra.mrb[84].mxu1 %vm1592_vm2, %v4958_v37  ;;  %12932 = vmatmul.mubr.msk.bf16.gmra.mrb[84].mxu0 %vm1592_vm2, %v15955_v35  ;;  %v4998_v37 = vsel %vm2059_vm3, %v4993_v8, %v4997_v50  ;;  %v5027_v8 = vshll.u32 %v15833_v5, 16  ;;  %v16017_v50 = vld [vmem:[#allocation2 + $0xe0] sm:$0x1] }
 0x419   : > { %12519 = vmatprep.mubr.msk.bf16.mxu1 %vm1592_vm2, %v4966_v59  ;;  %12935 = vmatprep.mubr.msk.bf16.mxu0 %vm1592_vm2, %v15961_v13  ;;  %v15993_v59 = vld [vmem:[#allocation2 + $0x170] sm:$0xff]  ;;  %16646 = vst [vmem:[#allocation14_spill] sm:$0xff] %v16017_v50  ;;  %v5035_v11 = vshll.u32 %v16017_v50, 16  ;;  %v9045_v50 = vshll.u32 %v15860_v52, 16 }
 0x41b   : > { %v5037_v55 = vrot.slane %v5035_v11, 1 }
 0x420   : > { %12520 = vmatmul.mubr.msk.bf16.gmra.mrb[88].mxu1 %vm1592_vm2, %v4974_v4  ;;  %12936 = vmatmul.mubr.msk.bf16.gmra.mrb[88].mxu0 %vm1592_vm2, %v15971_v25  ;;  %v5006_v4 = vsel %vm2059_vm3, %v5001_v43, %v5005_v36  ;;  %v5029_v36 = vrot.slane %v5027_v8, 1 }
 0x421   : > { %12523 = vmatprep.mubr.msk.bf16.mxu1 %vm1592_vm2, %v4982_v31  ;;  %12939 = vmatprep.mubr.msk.bf16.mxu0 %vm1592_vm2, %v15977_v63  ;;  %v16003_v31 = vld [vmem:[#allocation2 + $0x178] sm:$0xff] }
 0x422   : > { %v5030_v30 = vsel %vm2059_vm3, %v5025_v33, %v5029_v36 }
 0x428   : > { %12524 = vmatmul.mubr.msk.bf16.gmra.mrb[92].mxu1 %vm1592_vm2, %v4990_v19  ;;  %12940 = vmatmul.mubr.msk.bf16.gmra.mrb[92].mxu0 %vm1592_vm2, %v15987_v21  ;;  %v9032_v19 = vshll.u32 %v15840_v28, 16 }
 0x429   : > { %12527 = vmatprep.mubr.msk.bf16.mxu1 %vm1592_vm2, %v4998_v37  ;;  %12943 = vmatprep.mubr.msk.bf16.mxu0 %vm1592_vm2, %v15993_v59  ;;  %v5017_v37 = vor.u32 %v5015_v2, %v5013_v27  ;;  %v5396_v27 = vld [vmem:[#allocation2 + $0x20] sm:$0xfe]  ;;  %v5423_v2 = vrot.slane %v15664_v24, 1  ;;  %v9041_v24 = vshrl.u32 %v15850_v34, 16 }
 0x42a   : > { %v9034_v43 = vrot.slane %v9032_v19, 1  ;;  %v5422_v8 = vrot.slane %v5396_v27, 1  ;;  %v5425_v27 = vrot.slane %v15670_v16, 1 }
 0x42b   : > { %v5022_v57 = vsel %vm2059_vm3, %v5017_v37, %v5021_v56  ;;  %v5031_v56 = vshrl.u32 %v15833_v5, 16 }
 0x42d   : > { %v5033_v37 = vor.u32 %v5031_v56, %v5029_v36  ;;  %v9049_v36 = vshrl.u32 %v15860_v52, 16  ;;  %v5427_v56 = vrot.slane %v15686_v26, 1 }
 0x42f   : > { %v5038_v19 = vsel %vm2059_vm3, %v5033_v37, %v5037_v55  ;;  %v5428_v16 = vsel %vm2639_vm4, %v5425_v27, %v5427_v56 }
 0x430   : > { %12528 = vmatmul.mubr.msk.bf16.gmra.mrb[96].mxu1 %vm1592_vm2, %v5006_v4  ;;  %12944 = vmatmul.mubr.msk.bf16.gmra.mrb[96].mxu0 %vm1592_vm2, %v16003_v31  ;;  %v9030_v4 = vshrl.u32 %v15840_v28, 16  ;;  %v5424_v28 = vsel %vm2639_vm4, %v5422_v8, %v5423_v2  ;;  %v9061_v8 = vshll.u32 %v15881_v46, 16 }
 0x431   : > { %12531 = vmatprep.mubr.msk.bf16.mxu1 %vm1592_vm2, %v5014_v1  ;;  %12947 = vmatprep.mubr.msk.bf16.mxu0 %vm1592_vm2, %v16009_v40  ;;  %v9037_v1 = vshll.u32 %v15850_v34, 16 }
 0x432   : > { %v9035_v33 = vor.u32 %v9034_v43, %v9030_v4  ;;  %v9047_v4 = vrot.slane %v9045_v50, 1  ;;  %v9065_v50 = vshrl.u32 %v15881_v46, 16 }
 0x434   : > { %v9051_v55 = vor.u32 %v9049_v36, %v9047_v4  ;;  %v5431_v36 = vrot.slane %v15701_v14, 1 }
 0x438   : > { %12532 = vmatmul.mubr.msk.bf16.gmra.mrb[100].mxu1 %vm1592_vm2, %v5022_v57  ;;  %12948 = vmatmul.mubr.msk.bf16.gmra.mrb[100].mxu0 %vm1592_vm2, %v16021_v10  ;;  %v9039_v57 = vrot.slane %v9037_v1, 1  ;;  %v9053_v1 = vshll.u32 %v15874_v15, 16 }
 0x439   : > { %12535 = vmatprep.mubr.msk.bf16.mxu1 %vm1592_vm2, %v5030_v30  ;;  %12951 = vmatprep.mubr.msk.bf16.mxu0 %vm1592_vm2, %v16028_v62  ;;  %v16038_v30 = vld [vmem:[#allocation2 + $0x198] sm:$0xff] }
 0x43a   : > { %v9040_v11 = vsel %vm2059_vm3, %v9035_v33, %v9039_v57  ;;  %v9043_v43 = vor.u32 %v9041_v24, %v9039_v57  ;;  %v5426_v33 = vsel %vm2639_vm4, %v5423_v2, %v5425_v27  ;;  %v9063_v2 = vrot.slane %v9061_v8, 1 }
 0x43b   : > { %v9069_v57 = vshll.u32 %v15891_v32, 16  ;;  %v9077_v27 = vshll.u32 %v15897_v42, 16  ;;  %v9081_v8 = vshrl.u32 %v15897_v42, 16 }
 0x43c   : > { %v9048_v37 = vsel %vm2059_vm3, %v9043_v43, %v9047_v4  ;;  %v9067_v43 = vor.u32 %v9065_v50, %v9063_v2  ;;  %v9093_v50 = vshll.u32 %v15913_v49, 16 }
 0x440   : > { %12536 = vmatmul.mubr.msk.bf16.gmra.mrb[104].mxu1 %vm1592_vm2, %v5038_v19  ;;  %12952 = vmatmul.mubr.msk.bf16.gmra.mrb[104].mxu0 %vm1592_vm2, %v16038_v30  ;;  %v9055_v19 = vrot.slane %v9053_v1, 1 }
 0x441   : > { %12543 = vmatprep.mubr.msk.bf16.mxu1 %vm1592_vm2, %v5424_v28  ;;  %12959 = vmatprep.mubr.msk.bf16.mxu0 %vm1592_vm2, %v9040_v11  ;;  %v9057_v28 = vshrl.u32 %v15874_v15, 16  ;;  %v5429_v11 = vrot.slane %v15693_v44, 1 }
 0x442   : > { %v9056_v26 = vsel %vm2059_vm3, %v9051_v55, %v9055_v19  ;;  %v9073_v55 = vshrl.u32 %v15891_v32, 16 }
 0x443   : > { %v9059_v24 = vor.u32 %v9057_v28, %v9055_v19  ;;  %v5430_v4 = vsel %vm2639_vm4, %v5427_v56, %v5429_v11  ;;  %v5432_v44 = vsel %vm2639_vm4, %v5429_v11, %v5431_v36  ;;  %v9085_v56 = vshll.u32 %v15907_v18, 16 }
 0x444   : > { %v5435_v19 = vrot.slane %v15715_v12, 1  ;;  %v9097_v12 = vshrl.u32 %v15913_v49, 16 }
 0x445   : > { %v9064_v1 = vsel %vm2059_vm3, %v9059_v24, %v9063_v2  ;;  %v9095_v24 = vrot.slane %v9093_v50, 1 }
 0x448   : > { %12544 = vmatmul.mubr.msk.bf16.vlgmr.msra.gmra.mrb[60].mxu1 %vm1592_vm2, %v5426_v33  ;;  %12960 = vmatmul.mubr.msk.bf16.vlgmr.msra.gmra.mrb[60].mxu0 %vm1592_vm2, %v9048_v37  ;;  %v5433_v33 = vrot.slane %v15707_v61, 1 }
 0x449   : > { %13008 = vmatpush3.bf16.msra.mxu0 %v15780_v22  ;;  %12547 = vmatprep.mubr.msk.bf16.mxu1 %vm1592_vm2, %v5428_v16  ;;  %v9071_v22 = vrot.slane %v9069_v57, 1  ;;  %v9087_v16 = vrot.slane %v9085_v56, 1  ;;  %v9089_v57 = vshrl.u32 %v15907_v18, 16 }
 0x44a   : > { %12963 = vmatprep.mubr.msk.bf16.mxu0 %vm1592_vm2, %v9056_v26  ;;  %13009 = vmatprep.subr.bf16.mxu0 %v15856_v48  ;;  %v5434_v26 = vsel %vm2639_vm4, %v5431_v36, %v5433_v33  ;;  %v5436_v11 = vsel %vm2639_vm4, %v5433_v33, %v5435_v19  ;;  %v9101_v36 = vshll.u32 %v15923_v58, 16  ;;  %v9117_v33 = vshll.u32 %v15939_v39, 16 }
 0x44b   : > { %v9072_v14 = vsel %vm2059_vm3, %v9067_v43, %v9071_v22  ;;  %v9075_v37 = vor.u32 %v9073_v55, %v9071_v22  ;;  %v5437_v43 = vrot.slane %v15721_v45, 1  ;;  %v9091_v22 = vor.u32 %v9089_v57, %v9087_v16 }
 0x44c   : > { %v9109_v55 = vshll.u32 %v15929_v6, 16  ;;  %v9119_v50 = vrot.slane %v9117_v33, 1  ;;  %v5451_v33 = vrot.slane %v15771_v47, 1  ;;  %v9161_v47 = vshrl.u32 %v15977_v63, 16 }
 0x44d   : > { %13010 = vmatpush3.bf16.msra.mxu0 %v15856_v48  ;;  %v9079_v48 = vrot.slane %v9077_v27, 1  ;;  %v5439_v27 = vrot.slane %v15729_v60, 1  ;;  %v9113_v60 = vshrl.u32 %v15929_v6, 16 }
 0x44e   : > { %v9111_v56 = vrot.slane %v9109_v55, 1 }
 0x44f   : > { %v9083_v28 = vor.u32 %v9081_v8, %v9079_v48  ;;  %v9080_v2 = vsel %vm2059_vm3, %v9075_v37, %v9079_v48  ;;  %v9105_v8 = vshrl.u32 %v15923_v58, 16  ;;  %v5440_v48 = vsel %vm2639_vm4, %v5437_v43, %v5439_v27 }
 0x450   : > { %12548 = vmatmul.mubr.msk.bf16.gmra.mrb[64].mxu1 %vm1592_vm2, %v5430_v4  ;;  %12964 = vmatmul.mubr.msk.bf16.gmra.mrb[64].mxu0 %vm1592_vm2, %v9064_v1  ;;  %v9099_v4 = vor.u32 %v9097_v12, %v9095_v24  ;;  %v9103_v1 = vrot.slane %v9101_v36, 1  ;;  %v5441_v37 = vrot.slane %v15735_v51, 1  ;;  %v5445_v36 = vrot.slane %v15749_v38, 1 }
 0x451   : > { %12551 = vmatprep.mubr.msk.bf16.mxu1 %vm1592_vm2, %v5432_v44  ;;  %12967 = vmatprep.mubr.msk.bf16.mxu0 %vm1592_vm2, %v9072_v14  ;;  %v9088_v61 = vsel %vm2059_vm3, %v9083_v28, %v9087_v16  ;;  %v5438_v44 = vsel %vm2639_vm4, %v5435_v19, %v5437_v43  ;;  %v9096_v14 = vsel %vm2059_vm3, %v9091_v22, %v9095_v24  ;;  %v5443_v28 = vrot.slane %v15743_v54, 1 }
 0x452   : > { %v9104_v45 = vsel %vm2059_vm3, %v9099_v4, %v9103_v1  ;;  %v9107_v19 = vor.u32 %v9105_v8, %v9103_v1  ;;  %v9115_v16 = vor.u32 %v9113_v60, %v9111_v56  ;;  %v9129_v54 = vshrl.u32 %v15945_v41, 16 }
 0x453   : > { %v9133_v24 = vshll.u32 %v15955_v35, 16  ;;  %v5447_v22 = vrot.slane %v15757_v9, 1  ;;  %v9141_v1 = vshll.u32 %v15961_v13, 16  ;;  %v5446_v55 = vsel %vm2639_vm4, %v5443_v28, %v5445_v36 }
 0x454   : > { %v9112_v57 = vsel %vm2059_vm3, %v9107_v19, %v9111_v56  ;;  %v9120_v51 = vsel %vm2059_vm3, %v9115_v16, %v9119_v50  ;;  %v9145_v9 = vshrl.u32 %v15961_v13, 16  ;;  %v5449_v60 = vrot.slane %v15763_v0, 1 }
 0x455   : > { %v9135_v4 = vrot.slane %v9133_v24, 1  ;;  %v5448_v8 = vsel %vm2639_vm4, %v5445_v36, %v5447_v22  ;;  %v9173_v36 = vshll.u32 %v15993_v59, 16 }
 0x456   : > { %v5450_v16 = vsel %vm2639_vm4, %v5447_v22, %v5449_v60 }
 0x458   : > { %12552 = vmatmul.mubr.msk.bf16.gmra.mrb[68].mxu1 %vm1592_vm2, %v5434_v26  ;;  %12968 = vmatmul.mubr.msk.bf16.gmra.mrb[68].mxu0 %vm1592_vm2, %v9080_v2  ;;  %v9125_v26 = vshll.u32 %v15945_v41, 16  ;;  %v5442_v2 = vsel %vm2639_vm4, %v5439_v27, %v5441_v37 }
 0x459   : > { %12555 = vmatprep.mubr.msk.bf16.mxu1 %vm1592_vm2, %v5436_v11  ;;  %12971 = vmatprep.mubr.msk.bf16.mxu0 %vm1592_vm2, %v9088_v61  ;;  %v9121_v11 = vshrl.u32 %v15939_v39, 16  ;;  %v5444_v61 = vsel %vm2639_vm4, %v5441_v37, %v5443_v28  ;;  %v9157_v28 = vshll.u32 %v15977_v63, 16 }
 0x45a   : > { %v9127_v12 = vrot.slane %v9125_v26, 1  ;;  %v9153_v26 = vshrl.u32 %v15971_v25, 16 }
 0x45b   : > { %v9123_v43 = vor.u32 %v9121_v11, %v9119_v50  ;;  %v9165_v11 = vshll.u32 %v15987_v21, 16 }
 0x45c   : > { %v9131_v27 = vor.u32 %v9129_v54, %v9127_v12  ;;  %v5455_v54 = vrot.slane %v15788_v53, 1  ;;  %v9177_v53 = vshrl.u32 %v15993_v59, 16 }
 0x45d   : > { %v9167_v24 = vrot.slane %v9165_v11, 1  ;;  %v9201_v11 = vshrl.u32 %v16021_v10, 16 }
 0x45e   : > { %v9136_v38 = vsel %vm2059_vm3, %v9131_v27, %v9135_v4  ;;  %v9169_v27 = vshrl.u32 %v15987_v21, 16 }
 0x460   : > { %12556 = vmatmul.mubr.msk.bf16.gmra.mrb[72].mxu1 %vm1592_vm2, %v5438_v44  ;;  %12972 = vmatmul.mubr.msk.bf16.gmra.mrb[72].mxu0 %vm1592_vm2, %v9096_v14  ;;  %v9128_v44 = vsel %vm2059_vm3, %v9123_v43, %v9127_v12  ;;  %v9137_v14 = vshrl.u32 %v15955_v35, 16 }
 0x461   : > { %12559 = vmatprep.mubr.msk.bf16.mxu1 %vm1592_vm2, %v5440_v48  ;;  %12975 = vmatprep.mubr.msk.bf16.mxu0 %vm1592_vm2, %v9104_v45  ;;  %v9143_v48 = vrot.slane %v9141_v1, 1  ;;  %v9149_v45 = vshll.u32 %v15971_v25, 16  ;;  %v9175_v1 = vrot.slane %v9173_v36, 1  ;;  %v5467_v36 = vrot.slane %v15833_v5, 1 }
 0x462   : > { %v9139_v56 = vor.u32 %v9137_v14, %v9135_v4  ;;  %v9171_v14 = vor.u32 %v9169_v27, %v9167_v24 }
 0x463   : > { %v9147_v37 = vor.u32 %v9145_v9, %v9143_v48  ;;  %v9151_v19 = vrot.slane %v9149_v45, 1 }
 0x464   : > { %v9144_v50 = vsel %vm2059_vm3, %v9139_v56, %v9143_v48  ;;  %v9189_v48 = vshll.u32 %v16009_v40, 16  ;;  %v9185_v56 = vshrl.u32 %v16003_v31, 16 }
 0x465   : > { %v9152_v0 = vsel %vm2059_vm3, %v9147_v37, %v9151_v19 }
 0x466   : > { %v9191_v37 = vrot.slane %v9189_v48, 1  ;;  %v9597_v48 = vrot.slane %v15850_v34, 1 }
 0x468   : > { %12560 = vmatmul.mubr.msk.bf16.gmra.mrb[76].mxu1 %vm1592_vm2, %v5442_v2  ;;  %12976 = vmatmul.mubr.msk.bf16.gmra.mrb[76].mxu0 %vm1592_vm2, %v9112_v57  ;;  %v5452_v2 = vsel %vm2639_vm4, %v5449_v60, %v5451_v33  ;;  %v9159_v57 = vrot.slane %v9157_v28, 1  ;;  %v9176_v60 = vsel %vm2059_vm3, %v9171_v14, %v9175_v1  ;;  %v5461_v28 = vrot.slane %v15808_v17, 1 }
 0x469   : > { %12563 = vmatprep.mubr.msk.bf16.mxu1 %vm1592_vm2, %v5444_v61  ;;  %12979 = vmatprep.mubr.msk.bf16.mxu0 %vm1592_vm2, %v9120_v51  ;;  %v5453_v61 = vrot.slane %v15777_v29, 1  ;;  %v9155_v51 = vor.u32 %v9153_v26, %v9151_v19  ;;  %v9197_v19 = vshll.u32 %v16021_v10, 16 }
 0x46a   : > { %v9163_v12 = vor.u32 %v9161_v47, %v9159_v57 }
 0x46b   : > { %v5454_v43 = vsel %vm2639_vm4, %v5451_v33, %v5453_v61  ;;  %v9160_v22 = vsel %vm2059_vm3, %v9155_v51, %v9159_v57  ;;  %v5456_v4 = vsel %vm2639_vm4, %v5453_v61, %v5455_v54 }
 0x46c   : > { %v9168_v29 = vsel %vm2059_vm3, %v9163_v12, %v9167_v24  ;;  %v5465_v12 = vrot.slane %v15823_v20, 1 }
 0x46e   : > { %v5468_v20 = vsel %vm2639_vm4, %v5465_v12, %v5467_v36 }
 0x470   : > { %12564 = vmatmul.mubr.msk.bf16.gmra.mrb[80].mxu1 %vm1592_vm2, %v5446_v55  ;;  %12980 = vmatmul.mubr.msk.bf16.gmra.mrb[80].mxu0 %vm1592_vm2, %v9128_v44  ;;  %v9181_v55 = vshll.u32 %v16003_v31, 16  ;;  %v5457_v44 = vrot.slane %v15794_v23, 1 }
 0x471   : > { %12567 = vmatprep.mubr.msk.bf16.mxu1 %vm1592_vm2, %v5448_v8  ;;  %12983 = vmatprep.mubr.msk.bf16.mxu0 %vm1592_vm2, %v9136_v38  ;;  %v5459_v8 = vrot.slane %v15802_v7, 1  ;;  %v9179_v38 = vor.u32 %v9177_v53, %v9175_v1  ;;  %v9193_v7 = vshrl.u32 %v16009_v40, 16  ;;  %v9217_v53 = vshrl.u32 %v16038_v30, 16 }
 0x472   : > { %v9183_v9 = vrot.slane %v9181_v55, 1  ;;  %v5458_v45 = vsel %vm2639_vm4, %v5455_v54, %v5457_v44  ;;  %v9213_v54 = vshll.u32 %v16038_v30, 16  ;;  %v9570_v55 = vld [vmem:[#allocation2 + $0xe0] sm:$0xfe] }
 0x473   : > { %v5460_v33 = vsel %vm2639_vm4, %v5457_v44, %v5459_v8  ;;  %v9195_v26 = vor.u32 %v9193_v7, %v9191_v37  ;;  %v5462_v47 = vsel %vm2639_vm4, %v5459_v8, %v5461_v28  ;;  %v16647_v44 = vld [vmem:[#allocation14_spill] sm:$0xff] }
 0x474   : > { %v9184_v23 = vsel %vm2059_vm3, %v9179_v38, %v9183_v9  ;;  %v9215_v27 = vrot.slane %v9213_v54, 1  ;;  %v5469_v14 = vrot.slane %v16647_v44, 1  ;;  %v9633_v54 = vrot.slane %v16003_v31, 1 }
 0x475   : > { %v9639_v31 = vrot.slane %v16028_v62, 1 }
 0x476   : > { %v9219_v8 = vor.u32 %v9217_v53, %v9215_v27 }
 0x478   : > { %12568 = vmatmul.mubr.msk.bf16.gmra.mrb[84].mxu1 %vm1592_vm2, %v5450_v16  ;;  %12984 = vmatmul.mubr.msk.bf16.gmra.mrb[84].mxu0 %vm1592_vm2, %v9144_v50  ;;  %v9187_v16 = vor.u32 %v9185_v56, %v9183_v9  ;;  %v5463_v50 = vrot.slane %v15817_v3, 1  ;;  %v9209_v3 = vshrl.u32 %v16028_v62, 16  ;;  %v9596_v9 = vrot.slane %v9570_v55, 1 }
 0x479   : > { %12571 = vmatprep.mubr.msk.bf16.mxu1 %vm1592_vm2, %v5452_v2  ;;  %12987 = vmatprep.mubr.msk.bf16.mxu0 %vm1592_vm2, %v9152_v0  ;;  %v9199_v2 = vrot.slane %v9197_v19, 1  ;;  %v9205_v0 = vshll.u32 %v16028_v62, 16  ;;  %v9605_v19 = vrot.slane %v15891_v32, 1  ;;  %v9611_v32 = vrot.slane %v15913_v49, 1 }
 0x47a   : > { %v9192_v57 = vsel %vm2059_vm3, %v9187_v16, %v9191_v37  ;;  %v5464_v61 = vsel %vm2639_vm4, %v5461_v28, %v5463_v50  ;;  %v9598_v56 = vsel %vm2639_vm4, %v9596_v9, %v9597_v48  ;;  %v9603_v37 = vrot.slane %v15881_v46, 1 }
 0x47b   : > { %v9200_v17 = vsel %vm2059_vm3, %v9195_v26, %v9199_v2  ;;  %v9207_v51 = vrot.slane %v9205_v0, 1  ;;  %v9203_v24 = vor.u32 %v9201_v11, %v9199_v2  ;;  %v9609_v16 = vrot.slane %v15907_v18, 1 }
 0x47c   : > { %v9613_v26 = vrot.slane %v15923_v58, 1  ;;  %v9615_v18 = vrot.slane %v15929_v6, 1  ;;  %v9617_v0 = vrot.slane %v15939_v39, 1  ;;  %v9619_v58 = vrot.slane %v15945_v41, 1 }
 0x47d   : > { %v9612_v2 = vsel %vm2639_vm4, %v9609_v16, %v9611_v32  ;;  %v9623_v39 = vrot.slane %v15961_v13, 1 }
 0x47e   : > { %v9618_v49 = vsel %vm2639_vm4, %v9615_v18, %v9617_v0  ;;  %v9620_v11 = vsel %vm2639_vm4, %v9617_v0, %v9619_v58 }
 0x480   : > { %12572 = vmatmul.mubr.msk.bf16.gmra.mrb[88].mxu1 %vm1592_vm2, %v5454_v43  ;;  %12988 = vmatmul.mubr.msk.bf16.gmra.mrb[88].mxu0 %vm1592_vm2, %v9160_v22  ;;  %v9211_v43 = vor.u32 %v9209_v3, %v9207_v51  ;;  %v16196_v22 = vld [vmem:[#allocation2 + $0x1a0] sm:$0x1]  ;;  %v9629_v3 = vrot.slane %v15987_v21, 1  ;;  %v9635_v21 = vrot.slane %v16009_v40, 1 }
 0x481   : > { %12575 = vmatprep.mubr.msk.bf16.mxu1 %vm1592_vm2, %v5456_v4  ;;  %12991 = vmatprep.mubr.msk.bf16.mxu0 %vm1592_vm2, %v9168_v29  ;;  %v5466_v4 = vsel %vm2639_vm4, %v5463_v50, %v5465_v12  ;;  %v9208_v29 = vsel %vm2059_vm3, %v9203_v24, %v9207_v51  ;;  %v9221_v1 = vshll.u32 %v16196_v22, 16  ;;  %v9637_v24 = vrot.slane %v16021_v10, 1 }
 0x482   : > { %v9216_v5 = vsel %vm2059_vm3, %v9211_v43, %v9215_v27  ;;  %v9641_v43 = vrot.slane %v16038_v30, 1  ;;  %v9643_v10 = vrot.slane %v16196_v22, 1 }
 0x483   : > { %v9223_v38 = vrot.slane %v9221_v1, 1  ;;  %v9640_v27 = vsel %vm2639_vm4, %v9637_v24, %v9639_v31 }
 0x484   : > { %v9642_v40 = vsel %vm2639_vm4, %v9639_v31, %v9641_v43 }
 0x488   : > { %12576 = vmatmul.mubr.msk.bf16.gmra.mrb[92].mxu1 %vm1592_vm2, %v5458_v45  ;;  %12992 = vmatmul.mubr.msk.bf16.gmra.mrb[92].mxu0 %vm1592_vm2, %v9176_v60  ;;  %v5470_v45 = vsel %vm2639_vm4, %v5467_v36, %v5469_v14  ;;  %v9224_v60 = vsel %vm2059_vm3, %v9219_v8, %v9223_v38  ;;  %v9636_v36 = vsel %vm2639_vm4, %v9633_v54, %v9635_v21 }
 0x489   : > { %12579 = vmatprep.mubr.msk.bf16.mxu1 %vm1592_vm2, %v5460_v33  ;;  %12995 = vmatprep.mubr.msk.bf16.mxu0 %vm1592_vm2, %v9184_v23  ;;  %v9599_v33 = vrot.slane %v15860_v52, 1  ;;  %v9601_v23 = vrot.slane %v15874_v15, 1  ;;  %v9606_v52 = vsel %vm2639_vm4, %v9603_v37, %v9605_v19  ;;  %v9607_v15 = vrot.slane %v15897_v42, 1 }
 0x48a   : > { %v9614_v42 = vsel %vm2639_vm4, %v9611_v32, %v9613_v26 }
 0x48b   : > { %v9600_v7 = vsel %vm2639_vm4, %v9597_v48, %v9599_v33  ;;  %v9602_v34 = vsel %vm2639_vm4, %v9599_v33, %v9601_v23  ;;  %v9604_v28 = vsel %vm2639_vm4, %v9601_v23, %v9603_v37  ;;  %v9608_v50 = vsel %vm2639_vm4, %v9605_v19, %v9607_v15 }
 0x48c   : > { %v9610_v46 = vsel %vm2639_vm4, %v9607_v15, %v9609_v16 }
 0x490   : > { %12580 = vmatmul.mubr.msk.bf16.gmra.mrb[96].mxu1 %vm1592_vm2, %v5462_v47  ;;  %12996 = vmatmul.mubr.msk.bf16.gmra.mrb[96].mxu0 %vm1592_vm2, %v9192_v57  ;;  %v9616_v47 = vsel %vm2639_vm4, %v9613_v26, %v9615_v18  ;;  %v9621_v57 = vrot.slane %v15955_v35, 1  ;;  %v9627_v35 = vrot.slane %v15977_v63, 1 }
 0x491   : > { %12583 = vmatprep.mubr.msk.bf16.mxu1 %vm1592_vm2, %v5464_v61  ;;  %12999 = vmatprep.mubr.msk.bf16.mxu0 %vm1592_vm2, %v9200_v17  ;;  %v9625_v61 = vrot.slane %v15971_v25, 1  ;;  %v9631_v25 = vrot.slane %v15993_v59, 1  ;;  %v9638_v59 = vsel %vm2639_vm4, %v9635_v21, %v9637_v24 }
 0x492   : > { %v9622_v6 = vsel %vm2639_vm4, %v9619_v58, %v9621_v57  ;;  %v9624_v17 = vsel %vm2639_vm4, %v9621_v57, %v9623_v39  ;;  %v9630_v13 = vsel %vm2639_vm4, %v9627_v35, %v9629_v3 }
 0x493   : > { %v9626_v41 = vsel %vm2639_vm4, %v9623_v39, %v9625_v61  ;;  %v9628_v51 = vsel %vm2639_vm4, %v9625_v61, %v9627_v35  ;;  %v9632_v12 = vsel %vm2639_vm4, %v9629_v3, %v9631_v25  ;;  %v9634_v63 = vsel %vm2639_vm4, %v9631_v25, %v9633_v54 }
 0x498   : > { %12584 = vmatmul.mubr.msk.bf16.gmra.mrb[100].mxu1 %vm1592_vm2, %v5466_v4  ;;  %13000 = vmatmul.mubr.msk.bf16.gmra.mrb[100].mxu0 %vm1592_vm2, %v9208_v29  ;;  %v9644_v4 = vsel %vm2639_vm4, %v9641_v43, %v9643_v10  ;;  %v16285_v29 = vld [vmem:[#allocation9] ss:$0 sm:$0xff] }
 0x499   : > { %12587 = vmatprep.mubr.msk.bf16.mxu1 %vm1592_vm2, %v5468_v20  ;;  %13003 = vmatprep.mubr.msk.bf16.mxu0 %vm1592_vm2, %v9216_v5 }
 0x4a0   : > { %12588 = vmatmul.mubr.msk.bf16.gmra.mrb[104].mxu1 %vm1592_vm2, %v5470_v45  ;;  %13004 = vmatmul.mubr.msk.bf16.gmra.mrb[104].mxu0 %vm1592_vm2, %v9224_v60 }
 0x4a1   : > { %13011 = vmatprep.mubr.msk.bf16.mxu0 %vm1592_vm2, %v9598_v56 }
 0x4a8   : > { %13012 = vmatmul.mubr.msk.bf16.vlgmr.msra.gmra.mrb[60].mxu0 %vm1592_vm2, %v9600_v7 }
 0x4a9   : > { %13015 = vmatprep.mubr.msk.bf16.mxu0 %vm1592_vm2, %v9602_v34 }
 0x4b0   : > { %13016 = vmatmul.mubr.msk.bf16.gmra.mrb[64].mxu0 %vm1592_vm2, %v9604_v28 }
 0x4b1   : > { %13019 = vmatprep.mubr.msk.bf16.mxu0 %vm1592_vm2, %v9606_v52 }
 0x4b8   : > { %13020 = vmatmul.mubr.msk.bf16.gmra.mrb[68].mxu0 %vm1592_vm2, %v9608_v50 }
 0x4b9   : > { %13023 = vmatprep.mubr.msk.bf16.mxu0 %vm1592_vm2, %v9610_v46 }
 0x4c0   : > { %13024 = vmatmul.mubr.msk.bf16.gmra.mrb[72].mxu0 %vm1592_vm2, %v9612_v2 }
 0x4c1   : > { %13027 = vmatprep.mubr.msk.bf16.mxu0 %vm1592_vm2, %v9614_v42 }
 0x4c8   : > { %13028 = vmatmul.mubr.msk.bf16.gmra.mrb[76].mxu0 %vm1592_vm2, %v9616_v47 }
 0x4c9   : > { %13031 = vmatprep.mubr.msk.bf16.mxu0 %vm1592_vm2, %v9618_v49 }
 0x4d0   : > { %13032 = vmatmul.mubr.msk.bf16.gmra.mrb[80].mxu0 %vm1592_vm2, %v9620_v11 }
 0x4d1   : > { %13035 = vmatprep.mubr.msk.bf16.mxu0 %vm1592_vm2, %v9622_v6 }
 0x4d8   : > { %13036 = vmatmul.mubr.msk.bf16.gmra.mrb[84].mxu0 %vm1592_vm2, %v9624_v17 }
 0x4d9   : > { %13039 = vmatprep.mubr.msk.bf16.mxu0 %vm1592_vm2, %v9626_v41 }
 0x4e0   : > { %13040 = vmatmul.mubr.msk.bf16.gmra.mrb[88].mxu0 %vm1592_vm2, %v9628_v51 }
 0x4e1   : > { %13043 = vmatprep.mubr.msk.bf16.mxu0 %vm1592_vm2, %v9630_v13 }
 0x4e8   : > { %13044 = vmatmul.mubr.msk.bf16.gmra.mrb[92].mxu0 %vm1592_vm2, %v9632_v12 }
 0x4e9   : > { %13047 = vmatprep.mubr.msk.bf16.mxu0 %vm1592_vm2, %v9634_v63 }
 0x4f0   : > { %13048 = vmatmul.mubr.msk.bf16.gmra.mrb[96].mxu0 %vm1592_vm2, %v9636_v36 }
 0x4f1   : > { %13051 = vmatprep.mubr.msk.bf16.mxu0 %vm1592_vm2, %v9638_v59 }
 0x4f8   : > { %13052 = vmatmul.mubr.msk.bf16.gmra.mrb[100].mxu0 %vm1592_vm2, %v9640_v27 }
 0x4f9   : > { %13055 = vmatprep.mubr.msk.bf16.mxu0 %vm1592_vm2, %v9642_v40 }
 0x500   : > { %13056 = vmatmul.mubr.msk.bf16.gmra.mrb[104].mxu0 %vm1592_vm2, %v9644_v4 }
 0x51b   : > { %v12545_v53 = vpop.f32.mrb[60].mxu1 }
 0x51c   : > { %v13061_v62 = vadd.f32 %v12545_v53, %v16285_v29  ;;  %v5589_v30 = vpop.f32.mrb[61].mxu1 }
 0x51d   : > { %v13062_v1 = vadd.f32 %v16285_v29, %v5589_v30  ;;  %v12546_v20 = vpop.f32.mrb[62].mxu1 }
 0x51e   : > { %v5830_v5 = vmax.f32 %v13061_v62, 0.0  ;;  %v13063_v55 = vadd.f32 %v12546_v20, %v16285_v29  ;;  %v5592_v44 = vpop.f32.mrb[63].mxu1 }
 0x51f   : > { %v5828_v14 = vmax.f32 %v13062_v1, 0.0  ;;  %v13064_v22 = vadd.f32 %v16285_v29, %v5592_v44 }
 0x520   : > { %5879 = vst.msk [vmem:[#allocation3 + $0x10] sm:$0xff] %vm5876_vm5, %v5830_v5  ;;  %v5831_v8 = vmax.f32 %v13063_v55, 0.0 }
 0x521   : > { %5877 = vst.msk [vmem:[#allocation3] sm:$0xff] %vm5876_vm5, %v5828_v14  ;;  %v5829_v38 = vmax.f32 %v13064_v22, 0.0 }
 0x522   : > { %5880 = vst.msk [vmem:[#allocation3 + $0x18] sm:$0xff] %vm5876_vm5, %v5831_v8 }
 0x523   : > { %5878 = vst.msk [vmem:[#allocation3 + $0x8] sm:$0xff] %vm5876_vm5, %v5829_v38  ;;  %v12549_v9 = vpop.f32.mrb[64].mxu1 }
 0x524   : > { %v13065_v48 = vadd.f32 %v12549_v9, %v16285_v29  ;;  %v5605_v45 = vpop.f32.mrb[65].mxu1 }
 0x525   : > { %v13066_v60 = vadd.f32 %v16285_v29, %v5605_v45  ;;  %v12550_v56 = vpop.f32.mrb[66].mxu1 }
 0x526   : > { %v5834_v33 = vmax.f32 %v13065_v48, 0.0  ;;  %v13067_v23 = vadd.f32 %v12550_v56, %v16285_v29  ;;  %v5608_v7 = vpop.f32.mrb[67].mxu1 }
 0x527   : > { %v5832_v34 = vmax.f32 %v13066_v60, 0.0  ;;  %v13068_v37 = vadd.f32 %v16285_v29, %v5608_v7  ;;  %v10088_v42 = vld [vmem:[#allocation3 + $0x10] sm:$0xff] }
 0x528   : > { %5883 = vst.msk [vmem:[#allocation3 + $0x30] sm:$0xff] %vm5876_vm5, %v5834_v33  ;;  %v5835_v19 = vmax.f32 %v13067_v23, 0.0  ;;  %v10086_v49 = vld [vmem:[#allocation3] sm:$0xff] }
 0x529   : > { %5881 = vst.msk [vmem:[#allocation3 + $0x20] sm:$0xff] %vm5876_vm5, %v5832_v34  ;;  %v5833_v28 = vmax.f32 %v13068_v37, 0.0  ;;  %v10179_v18 = vld [vmem:[#allocation3 + $0x11] sm:$0xff] }
 0x52a   : > { %5884 = vst.msk [vmem:[#allocation3 + $0x38] sm:$0xff] %vm5876_vm5, %v5835_v19  ;;  %v10087_v58 = vld [vmem:[#allocation3 + $0x8] sm:$0xff]  ;;  %v10270_v35 = vmax.f32 %v10088_v42, %v10179_v18 }
 0x52b   : > { %5882 = vst.msk [vmem:[#allocation3 + $0x28] sm:$0xff] %vm5876_vm5, %v5833_v28  ;;  %v12553_v52 = vpop.f32.mrb[68].mxu1  ;;  %v10177_v57 = vld [vmem:[#allocation3 + $0x1] sm:$0xff]  ;;  %v10178_v11 = vld [vmem:[#allocation3 + $0x9] sm:$0xff] }
 0x52c   : > { %v13069_v15 = vadd.f32 %v12553_v52, %v16285_v29  ;;  %v5621_v16 = vpop.f32.mrb[69].mxu1  ;;  %v10268_v54 = vmax.f32 %v10086_v49, %v10177_v57  ;;  %v10269_v12 = vmax.f32 %v10087_v58, %v10178_v11 }
 0x52d   : > { %v13070_v50 = vadd.f32 %v16285_v29, %v5621_v16  ;;  %v12554_v46 = vpop.f32.mrb[70].mxu1 }
 0x52e   : > { %v5838_v32 = vmax.f32 %v13069_v15, 0.0  ;;  %v13071_v26 = vadd.f32 %v12554_v46, %v16285_v29  ;;  %v5624_v2 = vpop.f32.mrb[71].mxu1 }
 0x52f   : > { %v5836_v0 = vmax.f32 %v13070_v50, 0.0  ;;  %v13072_v47 = vadd.f32 %v16285_v29, %v5624_v2  ;;  %v10092_v39 = vld [vmem:[#allocation3 + $0x30] sm:$0xff] }
 0x530   : > { %5887 = vst.msk [vmem:[#allocation3 + $0x50] sm:$0xff] %vm5876_vm5, %v5838_v32  ;;  %v5839_v6 = vmax.f32 %v13071_v26, 0.0  ;;  %v10090_v61 = vld [vmem:[#allocation3 + $0x20] sm:$0xff] }
 0x531   : > { %v10183_v17 = vld [vmem:[#allocation3 + $0x31] sm:$0xff]  ;;  %5885 = vst.msk [vmem:[#allocation3 + $0x40] sm:$0xff] %vm5876_vm5, %v5836_v0  ;;  %v5837_v41 = vmax.f32 %v13072_v47, 0.0 }
 0x532   : > { %v10274_v3 = vmax.f32 %v10092_v39, %v10183_v17  ;;  %v10091_v51 = vld [vmem:[#allocation3 + $0x28] sm:$0xff]  ;;  %5888 = vst.msk [vmem:[#allocation3 + $0x58] sm:$0xff] %vm5876_vm5, %v5839_v6 }
 0x533   : > { %v10181_v13 = vld [vmem:[#allocation3 + $0x21] sm:$0xff]  ;;  %v10182_v25 = vld [vmem:[#allocation3 + $0x29] sm:$0xff]  ;;  %5886 = vst.msk [vmem:[#allocation3 + $0x48] sm:$0xff] %vm5876_vm5, %v5837_v41  ;;  %v12557_v24 = vpop.f32.mrb[72].mxu1 }
 0x534   : > { %v10272_v63 = vmax.f32 %v10090_v61, %v10181_v13  ;;  %v10273_v21 = vmax.f32 %v10091_v51, %v10182_v25  ;;  %v10373_v36 = vmax.f32 %v10270_v35, %v10274_v3  ;;  %v13073_v59 = vadd.f32 %v12557_v24, %v16285_v29  ;;  %v5637_v31 = vpop.f32.mrb[73].mxu1 }
 0x535   : > { %v13074_v40 = vadd.f32 %v16285_v29, %v5637_v31  ;;  %v12558_v10 = vpop.f32.mrb[74].mxu1 }
 0x536   : > { %v10371_v43 = vmax.f32 %v10268_v54, %v10272_v63  ;;  %v10372_v27 = vmax.f32 %v10269_v12, %v10273_v21  ;;  %10464 = vst.msk [vmem:[#allocation4 + $0x10] sm:$0xff] %vm5876_vm5, %v10373_v36  ;;  %v5842_v4 = vmax.f32 %v13073_v59, 0.0  ;;  %v13075_v53 = vadd.f32 %v12558_v10, %v16285_v29  ;;  %v5640_v62 = vpop.f32.mrb[75].mxu1 }
 0x537   : > { %v5840_v30 = vmax.f32 %v13074_v40, 0.0  ;;  %v13076_v1 = vadd.f32 %v16285_v29, %v5640_v62  ;;  %v10096_v5 = vld [vmem:[#allocation3 + $0x50] sm:$0xff] }
 0x538   : > { %10462 = vst.msk [vmem:[#allocation4] sm:$0xff] %vm5876_vm5, %v10371_v43  ;;  %10463 = vst.msk [vmem:[#allocation4 + $0x8] sm:$0xff] %vm5876_vm5, %v10372_v27  ;;  %v5843_v20 = vmax.f32 %v13075_v53, 0.0  ;;  %v10094_v55 = vld [vmem:[#allocation3 + $0x40] sm:$0xff] }
 0x539   : > { %5891 = vst.msk [vmem:[#allocation3 + $0x70] sm:$0xff] %vm5876_vm5, %v5842_v4  ;;  %v10187_v44 = vld [vmem:[#allocation3 + $0x51] sm:$0xff]  ;;  %5889 = vst.msk [vmem:[#allocation3 + $0x60] sm:$0xff] %vm5876_vm5, %v5840_v30  ;;  %v5841_v14 = vmax.f32 %v13076_v1, 0.0 }
 0x53a   : > { %v10278_v22 = vmax.f32 %v10096_v5, %v10187_v44  ;;  %v10095_v8 = vld [vmem:[#allocation3 + $0x48] sm:$0xff]  ;;  %5892 = vst.msk [vmem:[#allocation3 + $0x78] sm:$0xff] %vm5876_vm5, %v5843_v20 }
 0x53b   : > { %v10185_v38 = vld [vmem:[#allocation3 + $0x41] sm:$0xff]  ;;  %v10186_v9 = vld [vmem:[#allocation3 + $0x49] sm:$0xff]  ;;  %5890 = vst.msk [vmem:[#allocation3 + $0x68] sm:$0xff] %vm5876_vm5, %v5841_v14  ;;  %v12561_v60 = vpop.f32.mrb[76].mxu1 }
 0x53c   : > { %v10276_v48 = vmax.f32 %v10094_v55, %v10185_v38  ;;  %v10277_v45 = vmax.f32 %v10095_v8, %v10186_v9  ;;  %v13077_v56 = vadd.f32 %v12561_v60, %v16285_v29  ;;  %v5653_v33 = vpop.f32.mrb[77].mxu1 }
 0x53d   : > { %v10555_v23 = vld [vmem:[#allocation4 + $0x10] ss:$2 sm:$0xf]  ;;  %v13078_v7 = vadd.f32 %v16285_v29, %v5653_v33  ;;  %v12562_v34 = vpop.f32.mrb[78].mxu1 }
 0x53e   : > { %v11449_v37 = vpack.c.bf16 %v10555_v23, %v10555_v23  ;;  %v5846_v28 = vmax.f32 %v13077_v56, 0.0  ;;  %v13079_v52 = vadd.f32 %v12562_v34, %v16285_v29  ;;  %v5656_v15 = vpop.f32.mrb[79].mxu1 }
 0x53f   : > { %v10553_v19 = vld [vmem:[#allocation4] ss:$2 sm:$0xff]  ;;  %v5844_v50 = vmax.f32 %v13078_v7, 0.0  ;;  %v13080_v46 = vadd.f32 %v16285_v29, %v5656_v15 }
 0x540   : > { %v11448_v16 = vpack.c.bf16 %v10553_v19, %v10553_v19  ;;  %10567 = vst.msk [vmem:[%s16340_s25 + $0x4] sm:$0x3] %vm10566_vm6, %v11449_v37  ;;  %v5847_v32 = vmax.f32 %v13079_v52, 0.0  ;;  %v10100_v26 = vld [vmem:[#allocation3 + $0x70] sm:$0xff]  ;;  %v10098_v2 = vld [vmem:[#allocation3 + $0x60] sm:$0xff] }
 0x541   : > { %5895 = vst.msk [vmem:[#allocation3 + $0x90] sm:$0xff] %vm5876_vm5, %v5846_v28  ;;  %v10191_v42 = vld [vmem:[#allocation3 + $0x71] sm:$0xff]  ;;  %5893 = vst.msk [vmem:[#allocation3 + $0x80] sm:$0xff] %vm5876_vm5, %v5844_v50  ;;  %v5845_v18 = vmax.f32 %v13080_v46, 0.0 }
 0x542   : > { %10565 = vst.msk [vmem:[%s16340_s25] sm:$0xf] %vm10564_vm7, %v11448_v16  ;;  %v10282_v0 = vmax.f32 %v10100_v26, %v10191_v42  ;;  %v10099_v47 = vld [vmem:[#allocation3 + $0x68] sm:$0xff] }
 0x543   : > { %v10189_v49 = vld [vmem:[#allocation3 + $0x61] sm:$0xff]  ;;  %v10190_v58 = vld [vmem:[#allocation3 + $0x69] sm:$0xff]  ;;  %5896 = vst.msk [vmem:[#allocation3 + $0x98] sm:$0xff] %vm5876_vm5, %v5847_v32  ;;  %5894 = vst.msk [vmem:[#allocation3 + $0x88] sm:$0xff] %vm5876_vm5, %v5845_v18  ;;  %v12565_v6 = vpop.f32.mrb[80].mxu1 }
 0x544   : > { %v10280_v57 = vmax.f32 %v10098_v2, %v10189_v49  ;;  %v10281_v11 = vmax.f32 %v10099_v47, %v10190_v58  ;;  %v10381_v39 = vmax.f32 %v10278_v22, %v10282_v0  ;;  %v13081_v61 = vadd.f32 %v12565_v6, %v16285_v29  ;;  %v5669_v17 = vpop.f32.mrb[81].mxu1 }
 0x545   : > { %v13082_v3 = vadd.f32 %v16285_v29, %v5669_v17  ;;  %v12566_v51 = vpop.f32.mrb[82].mxu1 }
 0x546   : > { %v10379_v41 = vmax.f32 %v10276_v48, %v10280_v57  ;;  %v10380_v35 = vmax.f32 %v10277_v45, %v10281_v11  ;;  %10472 = vst.msk [vmem:[#allocation4 + $0x50] sm:$0xff] %vm5876_vm5, %v10381_v39  ;;  %v5850_v13 = vmax.f32 %v13081_v61, 0.0  ;;  %v13083_v25 = vadd.f32 %v12566_v51, %v16285_v29  ;;  %v5672_v54 = vpop.f32.mrb[83].mxu1 }
 0x547   : > { %v5848_v12 = vmax.f32 %v13082_v3, 0.0  ;;  %v13084_v63 = vadd.f32 %v16285_v29, %v5672_v54 }
 0x548   : > { %10470 = vst.msk [vmem:[#allocation4 + $0x40] sm:$0xff] %vm5876_vm5, %v10379_v41  ;;  %10471 = vst.msk [vmem:[#allocation4 + $0x48] sm:$0xff] %vm5876_vm5, %v10380_v35  ;;  %v5851_v21 = vmax.f32 %v13083_v25, 0.0  ;;  %v10104_v24 = vld [vmem:[#allocation3 + $0x90] sm:$0xff]  ;;  %v10102_v36 = vld [vmem:[#allocation3 + $0x80] sm:$0xff] }
 0x549   : > { %5899 = vst.msk [vmem:[#allocation3 + $0xb0] sm:$0xff] %vm5876_vm5, %v5850_v13  ;;  %5897 = vst.msk [vmem:[#allocation3 + $0xa0] sm:$0xff] %vm5876_vm5, %v5848_v12  ;;  %v5849_v31 = vmax.f32 %v13084_v63, 0.0 }
 0x54a   : > { %v10195_v59 = vld [vmem:[#allocation3 + $0x91] sm:$0xff]  ;;  %v10103_v27 = vld [vmem:[#allocation3 + $0x88] sm:$0xff]  ;;  %5900 = vst.msk [vmem:[#allocation3 + $0xb8] sm:$0xff] %vm5876_vm5, %v5851_v21 }
 0x54b   : > { %v10286_v43 = vmax.f32 %v10104_v24, %v10195_v59  ;;  %v10193_v40 = vld [vmem:[#allocation3 + $0x81] sm:$0xff]  ;;  %v10194_v10 = vld [vmem:[#allocation3 + $0x89] sm:$0xff]  ;;  %5898 = vst.msk [vmem:[#allocation3 + $0xa8] sm:$0xff] %vm5876_vm5, %v5849_v31  ;;  %v12569_v62 = vpop.f32.mrb[84].mxu1 }
 0x54c   : > { %v10284_v4 = vmax.f32 %v10102_v36, %v10193_v40  ;;  %v10285_v53 = vmax.f32 %v10103_v27, %v10194_v10  ;;  %v13085_v30 = vadd.f32 %v12569_v62, %v16285_v29  ;;  %v5685_v1 = vpop.f32.mrb[85].mxu1 }
 0x54d   : > { %v10571_v20 = vld [vmem:[#allocation4 + $0x50] ss:$2 sm:$0xf]  ;;  %v13086_v5 = vadd.f32 %v16285_v29, %v5685_v1  ;;  %v12570_v55 = vpop.f32.mrb[86].mxu1 }
 0x54e   : > { %v11451_v44 = vpack.c.bf16 %v10571_v20, %v10571_v20  ;;  %v5854_v22 = vmax.f32 %v13085_v30, 0.0  ;;  %v13087_v8 = vadd.f32 %v12570_v55, %v16285_v29  ;;  %v5688_v38 = vpop.f32.mrb[87].mxu1 }
 0x54f   : > { %v10569_v14 = vld [vmem:[#allocation4 + $0x40] ss:$2 sm:$0xff]  ;;  %v5852_v48 = vmax.f32 %v13086_v5, 0.0  ;;  %v13088_v45 = vadd.f32 %v16285_v29, %v5688_v38 }
 0x550   : > { %v11450_v9 = vpack.c.bf16 %v10569_v14, %v10569_v14  ;;  %5903 = vst.msk [vmem:[#allocation3 + $0xd0] sm:$0xff] %vm5876_vm5, %v5854_v22  ;;  %v5855_v56 = vmax.f32 %v13087_v8, 0.0  ;;  %v10108_v23 = vld [vmem:[#allocation3 + $0xb0] sm:$0xff]  ;;  %v10106_v7 = vld [vmem:[#allocation3 + $0xa0] sm:$0xff]  ;;  %v10583_v19 = vrot.slane %v11451_v44, 6 }
 0x551   : > { %v10199_v34 = vld [vmem:[#allocation3 + $0xb1] sm:$0xff]  ;;  %5901 = vst.msk [vmem:[#allocation3 + $0xc0] sm:$0xff] %vm5876_vm5, %v5852_v48  ;;  %v5853_v37 = vmax.f32 %v13088_v45, 0.0 }
 0x552   : > { %v10581_v33 = vrot.slane %v11450_v9, 6  ;;  %v10290_v28 = vmax.f32 %v10108_v23, %v10199_v34  ;;  %v10107_v52 = vld [vmem:[#allocation3 + $0xa8] sm:$0xff]  ;;  %5904 = vst.msk [vmem:[#allocation3 + $0xd8] sm:$0xff] %vm5876_vm5, %v5855_v56 }
 0x553   : > { %v10197_v15 = vld [vmem:[#allocation3 + $0xa1] sm:$0xff]  ;;  %v10198_v16 = vld [vmem:[#allocation3 + $0xa9] sm:$0xff]  ;;  %5902 = vst.msk [vmem:[#allocation3 + $0xc8] sm:$0xff] %vm5876_vm5, %v5853_v37  ;;  %v12573_v26 = vpop.f32.mrb[88].mxu1 }
 0x554   : > { %v10582_v50 = vrot.slane %v10581_v33, 4  ;;  %10588 = vst.msk [vmem:[%s16340_s25 + $0x4] sm:$0xc] %vm10587_vm11, %v10581_v33  ;;  %v10288_v46 = vmax.f32 %v10106_v7, %v10197_v15  ;;  %v10289_v32 = vmax.f32 %v10107_v52, %v10198_v16  ;;  %v10389_v2 = vmax.f32 %v10286_v43, %v10290_v28  ;;  %v5701_v18 = vpop.f32.mrb[89].mxu1 }
 0x555   : > { %v13089_v42 = vadd.f32 %v12573_v26, %v16285_v29  ;;  %v13090_v58 = vadd.f32 %v16285_v29, %v5701_v18  ;;  %v12574_v57 = vpop.f32.mrb[90].mxu1 }
 0x556   : > { %v10584_v0 = vsel %vm16369_vm10, %v10582_v50, %v10583_v19  ;;  %v10387_v47 = vmax.f32 %v10284_v4, %v10288_v46  ;;  %v10388_v49 = vmax.f32 %v10285_v53, %v10289_v32  ;;  %10480 = vst.msk [vmem:[#allocation4 + $0x90] sm:$0xff] %vm5876_vm5, %v10389_v2  ;;  %v13091_v6 = vadd.f32 %v12574_v57, %v16285_v29  ;;  %v5704_v39 = vpop.f32.mrb[91].mxu1 }
 0x557   : > { %10589 = vst.msk [vmem:[%s16340_s25 + $0x8] sm:$0xf] %vm10564_vm7, %v10584_v0  ;;  %v5858_v11 = vmax.f32 %v13089_v42, 0.0  ;;  %v5856_v61 = vmax.f32 %v13090_v58, 0.0  ;;  %v13092_v17 = vadd.f32 %v16285_v29, %v5704_v39  ;;  %v10112_v35 = vld [vmem:[#allocation3 + $0xd0] sm:$0xff] }
 0x558   : > { %10478 = vst.msk [vmem:[#allocation4 + $0x80] sm:$0xff] %vm5876_vm5, %v10387_v47  ;;  %10479 = vst.msk [vmem:[#allocation4 + $0x88] sm:$0xff] %vm5876_vm5, %v10388_v49  ;;  %v5859_v41 = vmax.f32 %v13091_v6, 0.0  ;;  %v10110_v3 = vld [vmem:[#allocation3 + $0xc0] sm:$0xff] }
 0x559   : > { %5907 = vst.msk [vmem:[#allocation3 + $0xf0] sm:$0xff] %vm5876_vm5, %v5858_v11  ;;  %v10203_v51 = vld [vmem:[#allocation3 + $0xd1] sm:$0xff]  ;;  %5905 = vst.msk [vmem:[#allocation3 + $0xe0] sm:$0xff] %vm5876_vm5, %v5856_v61  ;;  %v5857_v13 = vmax.f32 %v13092_v17, 0.0 }
 0x55a   : > { %v10294_v25 = vmax.f32 %v10112_v35, %v10203_v51  ;;  %v10111_v54 = vld [vmem:[#allocation3 + $0xc8] sm:$0xff]  ;;  %5908 = vst.msk [vmem:[#allocation3 + $0xf8] sm:$0xff] %vm5876_vm5, %v5859_v41 }
 0x55b   : > { %v10201_v12 = vld [vmem:[#allocation3 + $0xc1] sm:$0xff]  ;;  %v10202_v63 = vld [vmem:[#allocation3 + $0xc9] sm:$0xff]  ;;  %5906 = vst.msk [vmem:[#allocation3 + $0xe8] sm:$0xff] %vm5876_vm5, %v5857_v13  ;;  %v12577_v36 = vpop.f32.mrb[92].mxu1 }
 0x55c   : > { %v10292_v21 = vmax.f32 %v10110_v3, %v10201_v12  ;;  %v10293_v24 = vmax.f32 %v10111_v54, %v10202_v63  ;;  %v13093_v59 = vadd.f32 %v12577_v36, %v16285_v29  ;;  %v5717_v31 = vpop.f32.mrb[93].mxu1 }
 0x55d   : > { %v10593_v43 = vld [vmem:[#allocation4 + $0x90] ss:$2 sm:$0xf]  ;;  %v13094_v27 = vadd.f32 %v16285_v29, %v5717_v31  ;;  %v12578_v40 = vpop.f32.mrb[94].mxu1 }
 0x55e   : > { %v11453_v10 = vpack.c.bf16 %v10593_v43, %v10593_v43  ;;  %v5862_v53 = vmax.f32 %v13093_v59, 0.0  ;;  %v13095_v62 = vadd.f32 %v12578_v40, %v16285_v29  ;;  %v5720_v30 = vpop.f32.mrb[95].mxu1 }
 0x55f   : > { %v10591_v4 = vld [vmem:[#allocation4 + $0x80] ss:$2 sm:$0xff]  ;;  %v5860_v20 = vmax.f32 %v13094_v27, 0.0  ;;  %v13096_v5 = vadd.f32 %v16285_v29, %v5720_v30 }
 0x560   : > { %v11452_v1 = vpack.c.bf16 %v10591_v4, %v10591_v4  ;;  %10603 = vst.msk [vmem:[%s16340_s25 + $0x10] sm:$0x3] %vm10566_vm6, %v11453_v10  ;;  %v5863_v55 = vmax.f32 %v13095_v62, 0.0  ;;  %v10116_v44 = vld [vmem:[#allocation3 + $0xf0] sm:$0xff]  ;;  %v10114_v14 = vld [vmem:[#allocation3 + $0xe0] sm:$0xff] }
 0x561   : > { %5911 = vst.msk [vmem:[#allocation3 + $0x110] sm:$0xff] %vm5876_vm5, %v5862_v53  ;;  %v10207_v22 = vld [vmem:[#allocation3 + $0xf1] sm:$0xff]  ;;  %5909 = vst.msk [vmem:[#allocation3 + $0x100] sm:$0xff] %vm5876_vm5, %v5860_v20  ;;  %v5861_v8 = vmax.f32 %v13096_v5, 0.0 }
 0x562   : > { %10602 = vst.msk [vmem:[%s16340_s25 + $0xc] sm:$0xf] %vm10564_vm7, %v11452_v1  ;;  %v10298_v38 = vmax.f32 %v10116_v44, %v10207_v22  ;;  %v10115_v9 = vld [vmem:[#allocation3 + $0xe8] sm:$0xff] }
 0x563   : > { %v10205_v48 = vld [vmem:[#allocation3 + $0xe1] sm:$0xff]  ;;  %v10206_v45 = vld [vmem:[#allocation3 + $0xe9] sm:$0xff]  ;;  %5912 = vst.msk [vmem:[#allocation3 + $0x118] sm:$0xff] %vm5876_vm5, %v5863_v55  ;;  %5910 = vst.msk [vmem:[#allocation3 + $0x108] sm:$0xff] %vm5876_vm5, %v5861_v8  ;;  %v12581_v23 = vpop.f32.mrb[96].mxu1 }
 0x564   : > { %v10296_v56 = vmax.f32 %v10114_v14, %v10205_v48  ;;  %v10297_v33 = vmax.f32 %v10115_v9, %v10206_v45  ;;  %v10397_v7 = vmax.f32 %v10294_v25, %v10298_v38  ;;  %v13097_v34 = vadd.f32 %v12581_v23, %v16285_v29  ;;  %v5733_v37 = vpop.f32.mrb[97].mxu1 }
 0x565   : > { %v13098_v52 = vadd.f32 %v16285_v29, %v5733_v37  ;;  %v12582_v15 = vpop.f32.mrb[98].mxu1 }
 0x566   : > { %v10395_v19 = vmax.f32 %v10292_v21, %v10296_v56  ;;  %v10396_v28 = vmax.f32 %v10293_v24, %v10297_v33  ;;  %10488 = vst.msk [vmem:[#allocation4 + $0xd0] sm:$0xff] %vm5876_vm5, %v10397_v7  ;;  %v5866_v16 = vmax.f32 %v13097_v34, 0.0  ;;  %v13099_v50 = vadd.f32 %v12582_v15, %v16285_v29  ;;  %v5736_v46 = vpop.f32.mrb[99].mxu1 }
 0x567   : > { %v5864_v32 = vmax.f32 %v13098_v52, 0.0  ;;  %v13100_v26 = vadd.f32 %v16285_v29, %v5736_v46 }
 0x568   : > { %10486 = vst.msk [vmem:[#allocation4 + $0xc0] sm:$0xff] %vm5876_vm5, %v10395_v19  ;;  %10487 = vst.msk [vmem:[#allocation4 + $0xc8] sm:$0xff] %vm5876_vm5, %v10396_v28  ;;  %v5867_v2 = vmax.f32 %v13099_v50, 0.0  ;;  %v10120_v42 = vld [vmem:[#allocation3 + $0x110] sm:$0xff]  ;;  %v10118_v18 = vld [vmem:[#allocation3 + $0x100] sm:$0xff] }
 0x569   : > { %5915 = vst.msk [vmem:[#allocation3 + $0x130] sm:$0xff] %vm5876_vm5, %v5866_v16  ;;  %5913 = vst.msk [vmem:[#allocation3 + $0x120] sm:$0xff] %vm5876_vm5, %v5864_v32  ;;  %v5865_v47 = vmax.f32 %v13100_v26, 0.0 }
 0x56a   : > { %v10211_v0 = vld [vmem:[#allocation3 + $0x111] sm:$0xff]  ;;  %v10119_v58 = vld [vmem:[#allocation3 + $0x108] sm:$0xff]  ;;  %5916 = vst.msk [vmem:[#allocation3 + $0x138] sm:$0xff] %vm5876_vm5, %v5867_v2 }
 0x56b   : > { %v10302_v49 = vmax.f32 %v10120_v42, %v10211_v0  ;;  %v10209_v57 = vld [vmem:[#allocation3 + $0x101] sm:$0xff]  ;;  %v10210_v11 = vld [vmem:[#allocation3 + $0x109] sm:$0xff]  ;;  %5914 = vst.msk [vmem:[#allocation3 + $0x128] sm:$0xff] %vm5876_vm5, %v5865_v47  ;;  %v12585_v61 = vpop.f32.mrb[100].mxu1 }
 0x56c   : > { %v10300_v6 = vmax.f32 %v10118_v18, %v10209_v57  ;;  %v10301_v39 = vmax.f32 %v10119_v58, %v10210_v11  ;;  %v13101_v17 = vadd.f32 %v12585_v61, %v16285_v29  ;;  %v5749_v41 = vpop.f32.mrb[101].mxu1 }
 0x56d   : > { %v10607_v35 = vld [vmem:[#allocation4 + $0xd0] ss:$2 sm:$0xf]  ;;  %v13102_v3 = vadd.f32 %v16285_v29, %v5749_v41  ;;  %v12586_v51 = vpop.f32.mrb[102].mxu1 }
 0x56e   : > { %v11455_v13 = vpack.c.bf16 %v10607_v35, %v10607_v35  ;;  %v5870_v54 = vmax.f32 %v13101_v17, 0.0  ;;  %v13103_v12 = vadd.f32 %v12586_v51, %v16285_v29  ;;  %v5752_v63 = vpop.f32.mrb[103].mxu1 }
 0x56f   : > { %v10605_v25 = vld [vmem:[#allocation4 + $0xc0] ss:$2 sm:$0xff]  ;;  %v5868_v24 = vmax.f32 %v13102_v3, 0.0  ;;  %v13104_v36 = vadd.f32 %v16285_v29, %v5752_v63 }
 0x570   : > { %v11454_v21 = vpack.c.bf16 %v10605_v25, %v10605_v25  ;;  %5919 = vst.msk [vmem:[#allocation3 + $0x150] sm:$0xff] %vm5876_vm5, %v5870_v54  ;;  %v5871_v59 = vmax.f32 %v13103_v12, 0.0  ;;  %v10124_v43 = vld [vmem:[#allocation3 + $0x130] sm:$0xff]  ;;  %v10122_v27 = vld [vmem:[#allocation3 + $0x120] sm:$0xff]  ;;  %v10616_v4 = vrot.slane %v11455_v13, 6 }
 0x571   : > { %v10215_v40 = vld [vmem:[#allocation3 + $0x131] sm:$0xff]  ;;  %5917 = vst.msk [vmem:[#allocation3 + $0x140] sm:$0xff] %vm5876_vm5, %v5868_v24  ;;  %v5869_v10 = vmax.f32 %v13104_v36, 0.0 }
 0x572   : > { %v10614_v31 = vrot.slane %v11454_v21, 6  ;;  %v10306_v53 = vmax.f32 %v10124_v43, %v10215_v40  ;;  %v10123_v62 = vld [vmem:[#allocation3 + $0x128] sm:$0xff]  ;;  %5920 = vst.msk [vmem:[#allocation3 + $0x158] sm:$0xff] %vm5876_vm5, %v5871_v59 }
 0x573   : > { %v10213_v30 = vld [vmem:[#allocation3 + $0x121] sm:$0xff]  ;;  %v10214_v1 = vld [vmem:[#allocation3 + $0x129] sm:$0xff]  ;;  %5918 = vst.msk [vmem:[#allocation3 + $0x148] sm:$0xff] %vm5876_vm5, %v5869_v10  ;;  %v12589_v44 = vpop.f32.mrb[104].mxu1 }
 0x574   : > { %v10615_v20 = vrot.slane %v10614_v31, 4  ;;  %10620 = vst.msk [vmem:[%s16340_s25 + $0x10] sm:$0xc] %vm10587_vm11, %v10614_v31  ;;  %v10304_v5 = vmax.f32 %v10122_v27, %v10213_v30  ;;  %v10305_v55 = vmax.f32 %v10123_v62, %v10214_v1  ;;  %v10405_v14 = vmax.f32 %v10302_v49, %v10306_v53  ;;  %v5765_v8 = vpop.f32.mrb[105].mxu1 }
 0x575   : > { %v13105_v22 = vadd.f32 %v12589_v44, %v16285_v29  ;;  %v13106_v45 = vadd.f32 %v16285_v29, %v5765_v8  ;;  %v12590_v56 = vpop.f32.mrb[106].mxu1 }
 0x576   : > { %v10617_v38 = vsel %vm16369_vm10, %v10615_v20, %v10616_v4  ;;  %v10403_v9 = vmax.f32 %v10300_v6, %v10304_v5  ;;  %v10404_v48 = vmax.f32 %v10301_v39, %v10305_v55  ;;  %10496 = vst.msk [vmem:[#allocation4 + $0x110] sm:$0xff] %vm5876_vm5, %v10405_v14  ;;  %v13107_v23 = vadd.f32 %v12590_v56, %v16285_v29  ;;  %v5768_v7 = vpop.f32.mrb[107].mxu1 }
 0x577   : > { %10621 = vst.msk [vmem:[%s16340_s25 + $0x14] sm:$0xf] %vm10564_vm7, %v10617_v38  ;;  %v5874_v33 = vmax.f32 %v13105_v22, 0.0  ;;  %v5872_v34 = vmax.f32 %v13106_v45, 0.0  ;;  %v13108_v37 = vadd.f32 %v16285_v29, %v5768_v7  ;;  %v10128_v28 = vld [vmem:[#allocation3 + $0x150] sm:$0xff] }
 0x578   : > { %10494 = vst.msk [vmem:[#allocation4 + $0x100] sm:$0xff] %vm5876_vm5, %v10403_v9  ;;  %10495 = vst.msk [vmem:[#allocation4 + $0x108] sm:$0xff] %vm5876_vm5, %v10404_v48  ;;  %v5875_v19 = vmax.f32 %v13107_v23, 0.0  ;;  %v10126_v52 = vld [vmem:[#allocation3 + $0x140] sm:$0xff] }
 0x579   : > { %5923 = vst.msk [vmem:[#allocation3 + $0x170] sm:$0xff] %vm5876_vm5, %v5874_v33  ;;  %v10219_v15 = vld [vmem:[#allocation3 + $0x151] sm:$0xff]  ;;  %5921 = vst.msk [vmem:[#allocation3 + $0x160] sm:$0xff] %vm5876_vm5, %v5872_v34  ;;  %v5873_v16 = vmax.f32 %v13108_v37, 0.0  ;;  %v16465_v34 = vld [vmem:[#allocation9] ss:$0 sm:$0xff] }
 0x57a   : > { %v10310_v50 = vmax.f32 %v10128_v28, %v10219_v15  ;;  %v10127_v46 = vld [vmem:[#allocation3 + $0x148] sm:$0xff]  ;;  %5924 = vst.msk [vmem:[#allocation3 + $0x178] sm:$0xff] %vm5876_vm5, %v5875_v19 }
 0x57b   : > { %v10217_v32 = vld [vmem:[#allocation3 + $0x141] sm:$0xff]  ;;  %v10218_v26 = vld [vmem:[#allocation3 + $0x149] sm:$0xff]  ;;  %5922 = vst.msk [vmem:[#allocation3 + $0x168] sm:$0xff] %vm5876_vm5, %v5873_v16  ;;  %v13013_v18 = vpop.f32.mrb[60].mxu0 }
 0x57c   : > { %v10308_v2 = vmax.f32 %v10126_v52, %v10217_v32  ;;  %v10309_v42 = vmax.f32 %v10127_v46, %v10218_v26  ;;  %v13109_v0 = vadd.f32 %v13013_v18, %v16285_v29  ;;  %v9751_v47 = vpop.f32.mrb[61].mxu0 }
 0x57d   : > { %v10625_v49 = vld [vmem:[#allocation4 + $0x110] ss:$2 sm:$0xf]  ;;  %v13110_v58 = vadd.f32 %v16285_v29, %v9751_v47  ;;  %v13014_v57 = vpop.f32.mrb[62].mxu0 }
 0x57e   : > { %v11457_v11 = vpack.c.bf16 %v10625_v49, %v10625_v49  ;;  %v9992_v39 = vmax.f32 %v13109_v0, 0.0  ;;  %v13111_v61 = vadd.f32 %v13014_v57, %v16285_v29  ;;  %v9754_v17 = vpop.f32.mrb[63].mxu0 }
 0x57f   : > { %v10623_v6 = vld [vmem:[#allocation4 + $0x100] ss:$2 sm:$0xff]  ;;  %v9990_v35 = vmax.f32 %v13110_v58, 0.0  ;;  %v13112_v3 = vadd.f32 %v16285_v29, %v9754_v17 }
 0x580   : > { %v11456_v41 = vpack.c.bf16 %v10623_v6, %v10623_v6  ;;  %10635 = vst.msk [vmem:[%s16340_s25 + $0x1c] sm:$0x3] %vm10566_vm6, %v11457_v11  ;;  %v9993_v51 = vmax.f32 %v13111_v61, 0.0  ;;  %v10132_v13 = vld [vmem:[#allocation3 + $0x170] sm:$0xff]  ;;  %v10130_v25 = vld [vmem:[#allocation3 + $0x160] sm:$0xff] }
 0x581   : > { %10040 = vst.msk [vmem:[#allocation3 + $0x190] sm:$0xff] %vm5876_vm5, %v9992_v39  ;;  %v10223_v54 = vld [vmem:[#allocation3 + $0x171] sm:$0xff]  ;;  %10038 = vst.msk [vmem:[#allocation3 + $0x180] sm:$0xff] %vm5876_vm5, %v9990_v35  ;;  %v9991_v12 = vmax.f32 %v13112_v3, 0.0 }
 0x582   : > { %10634 = vst.msk [vmem:[%s16340_s25 + $0x18] sm:$0xf] %vm10564_vm7, %v11456_v41  ;;  %v10314_v63 = vmax.f32 %v10132_v13, %v10223_v54  ;;  %v10131_v21 = vld [vmem:[#allocation3 + $0x168] sm:$0xff] }
 0x583   : > { %v10221_v24 = vld [vmem:[#allocation3 + $0x161] sm:$0xff]  ;;  %v10222_v36 = vld [vmem:[#allocation3 + $0x169] sm:$0xff]  ;;  %10041 = vst.msk [vmem:[#allocation3 + $0x198] sm:$0xff] %vm5876_vm5, %v9993_v51  ;;  %10039 = vst.msk [vmem:[#allocation3 + $0x188] sm:$0xff] %vm5876_vm5, %v9991_v12  ;;  %v13017_v43 = vpop.f32.mrb[64].mxu0 }
 0x584   : > { %v10312_v59 = vmax.f32 %v10130_v25, %v10221_v24  ;;  %v10313_v31 = vmax.f32 %v10131_v21, %v10222_v36  ;;  %v10413_v27 = vmax.f32 %v10310_v50, %v10314_v63  ;;  %v13113_v40 = vadd.f32 %v13017_v43, %v16285_v29  ;;  %v9767_v10 = vpop.f32.mrb[65].mxu0 }
 0x585   : > { %v13114_v62 = vadd.f32 %v16285_v29, %v9767_v10  ;;  %v13018_v30 = vpop.f32.mrb[66].mxu0 }
 0x586   : > { %v10411_v4 = vmax.f32 %v10308_v2, %v10312_v59  ;;  %v10412_v53 = vmax.f32 %v10309_v42, %v10313_v31  ;;  %10504 = vst.msk [vmem:[#allocation4 + $0x150] sm:$0xff] %vm5876_vm5, %v10413_v27  ;;  %v9996_v1 = vmax.f32 %v13113_v40, 0.0  ;;  %v13115_v20 = vadd.f32 %v13018_v30, %v16285_v29  ;;  %v9770_v5 = vpop.f32.mrb[67].mxu0 }
 0x587   : > { %v9994_v55 = vmax.f32 %v13114_v62, 0.0  ;;  %v13116_v44 = vadd.f32 %v16285_v29, %v9770_v5 }
 0x588   : > { %10502 = vst.msk [vmem:[#allocation4 + $0x140] sm:$0xff] %vm5876_vm5, %v10411_v4  ;;  %10503 = vst.msk [vmem:[#allocation4 + $0x148] sm:$0xff] %vm5876_vm5, %v10412_v53  ;;  %v9997_v14 = vmax.f32 %v13115_v20, 0.0  ;;  %v10136_v22 = vld [vmem:[#allocation3 + $0x190] sm:$0xff]  ;;  %v10134_v8 = vld [vmem:[#allocation3 + $0x180] sm:$0xff] }
 0x589   : > { %10044 = vst.msk [vmem:[#allocation3 + $0x1b0] sm:$0xff] %vm5876_vm5, %v9996_v1  ;;  %10042 = vst.msk [vmem:[#allocation3 + $0x1a0] sm:$0xff] %vm5876_vm5, %v9994_v55  ;;  %v9995_v9 = vmax.f32 %v13116_v44, 0.0 }
 0x58a   : > { %v10227_v38 = vld [vmem:[#allocation3 + $0x191] sm:$0xff]  ;;  %v10135_v45 = vld [vmem:[#allocation3 + $0x188] sm:$0xff]  ;;  %10045 = vst.msk [vmem:[#allocation3 + $0x1b8] sm:$0xff] %vm5876_vm5, %v9997_v14 }
 0x58b   : > { %v10318_v48 = vmax.f32 %v10136_v22, %v10227_v38  ;;  %v10225_v56 = vld [vmem:[#allocation3 + $0x181] sm:$0xff]  ;;  %v10226_v33 = vld [vmem:[#allocation3 + $0x189] sm:$0xff]  ;;  %10043 = vst.msk [vmem:[#allocation3 + $0x1a8] sm:$0xff] %vm5876_vm5, %v9995_v9  ;;  %v13021_v29 = vpop.f32.mrb[68].mxu0 }
 0x58c   : > { %v10316_v23 = vmax.f32 %v10134_v8, %v10225_v56  ;;  %v10317_v7 = vmax.f32 %v10135_v45, %v10226_v33  ;;  %v13117_v37 = vadd.f32 %v16465_v34, %v13021_v29  ;;  %v9783_v19 = vpop.f32.mrb[69].mxu0 }
 0x58d   : > { %v10639_v28 = vld [vmem:[#allocation4 + $0x150] ss:$2 sm:$0xf]  ;;  %v13118_v52 = vadd.f32 %v16465_v34, %v9783_v19  ;;  %v13022_v15 = vpop.f32.mrb[70].mxu0 }
 0x58e   : > { %v11459_v16 = vpack.c.bf16 %v10639_v28, %v10639_v28  ;;  %v10000_v46 = vmax.f32 %v13117_v37, 0.0  ;;  %v13119_v32 = vadd.f32 %v16465_v34, %v13022_v15  ;;  %v9786_v26 = vpop.f32.mrb[71].mxu0 }
 0x58f   : > { %v10637_v50 = vld [vmem:[#allocation4 + $0x140] ss:$2 sm:$0xff]  ;;  %v9998_v42 = vmax.f32 %v13118_v52, 0.0  ;;  %v13120_v18 = vadd.f32 %v16465_v34, %v9786_v26 }
 0x590   : > { %v11458_v2 = vpack.c.bf16 %v10637_v50, %v10637_v50  ;;  %10048 = vst.msk [vmem:[#allocation3 + $0x1d0] sm:$0xff] %vm5876_vm5, %v10000_v46  ;;  %v10001_v0 = vmax.f32 %v13119_v32, 0.0  ;;  %v10140_v49 = vld [vmem:[#allocation3 + $0x1b0] sm:$0xff]  ;;  %v10138_v58 = vld [vmem:[#allocation3 + $0x1a0] sm:$0xff]  ;;  %v10648_v6 = vrot.slane %v11459_v16, 6 }
 0x591   : > { %v10231_v57 = vld [vmem:[#allocation3 + $0x1b1] sm:$0xff]  ;;  %10046 = vst.msk [vmem:[#allocation3 + $0x1c0] sm:$0xff] %vm5876_vm5, %v9998_v42  ;;  %v9999_v11 = vmax.f32 %v13120_v18, 0.0 }
 0x592   : > { %v10646_v47 = vrot.slane %v11458_v2, 6  ;;  %v10322_v39 = vmax.f32 %v10140_v49, %v10231_v57  ;;  %v10139_v61 = vld [vmem:[#allocation3 + $0x1a8] sm:$0xff]  ;;  %10049 = vst.msk [vmem:[#allocation3 + $0x1d8] sm:$0xff] %vm5876_vm5, %v10001_v0 }
 0x593   : > { %v10229_v17 = vld [vmem:[#allocation3 + $0x1a1] sm:$0xff]  ;;  %v10230_v41 = vld [vmem:[#allocation3 + $0x1a9] sm:$0xff]  ;;  %10047 = vst.msk [vmem:[#allocation3 + $0x1c8] sm:$0xff] %vm5876_vm5, %v9999_v11  ;;  %v13025_v13 = vpop.f32.mrb[72].mxu0 }
 0x594   : > { %v10647_v35 = vrot.slane %v10646_v47, 4  ;;  %10652 = vst.msk [vmem:[%s16340_s25 + $0x1c] sm:$0xc] %vm10587_vm11, %v10646_v47  ;;  %v10320_v3 = vmax.f32 %v10138_v58, %v10229_v17  ;;  %v10321_v51 = vmax.f32 %v10139_v61, %v10230_v41  ;;  %v10421_v25 = vmax.f32 %v10318_v48, %v10322_v39  ;;  %v9799_v12 = vpop.f32.mrb[73].mxu0 }
 0x595   : > { %v13121_v54 = vadd.f32 %v16465_v34, %v13025_v13  ;;  %v13122_v36 = vadd.f32 %v16465_v34, %v9799_v12  ;;  %v13026_v59 = vpop.f32.mrb[74].mxu0 }
 0x596   : > { %v10649_v63 = vsel %vm16369_vm10, %v10647_v35, %v10648_v6  ;;  %v10419_v21 = vmax.f32 %v10316_v23, %v10320_v3  ;;  %v10420_v24 = vmax.f32 %v10317_v7, %v10321_v51  ;;  %10512 = vst.msk [vmem:[#allocation4 + $0x190] sm:$0xff] %vm5876_vm5, %v10421_v25  ;;  %v13123_v43 = vadd.f32 %v16465_v34, %v13026_v59  ;;  %v9802_v27 = vpop.f32.mrb[75].mxu0 }
 0x597   : > { %10653 = vst.msk [vmem:[%s16340_s25 + $0x20] sm:$0xf] %vm10564_vm7, %v10649_v63  ;;  %v10004_v31 = vmax.f32 %v13121_v54, 0.0  ;;  %v10002_v40 = vmax.f32 %v13122_v36, 0.0  ;;  %v13124_v10 = vadd.f32 %v16465_v34, %v9802_v27  ;;  %v10144_v53 = vld [vmem:[#allocation3 + $0x1d0] sm:$0xff] }
 0x598   : > { %10510 = vst.msk [vmem:[#allocation4 + $0x180] sm:$0xff] %vm5876_vm5, %v10419_v21  ;;  %10511 = vst.msk [vmem:[#allocation4 + $0x188] sm:$0xff] %vm5876_vm5, %v10420_v24  ;;  %v10005_v4 = vmax.f32 %v13123_v43, 0.0  ;;  %v10142_v62 = vld [vmem:[#allocation3 + $0x1c0] sm:$0xff] }
 0x599   : > { %10052 = vst.msk [vmem:[#allocation3 + $0x1f0] sm:$0xff] %vm5876_vm5, %v10004_v31  ;;  %v10235_v30 = vld [vmem:[#allocation3 + $0x1d1] sm:$0xff]  ;;  %10050 = vst.msk [vmem:[#allocation3 + $0x1e0] sm:$0xff] %vm5876_vm5, %v10002_v40  ;;  %v10003_v1 = vmax.f32 %v13124_v10, 0.0 }
 0x59a   : > { %v10326_v20 = vmax.f32 %v10144_v53, %v10235_v30  ;;  %v10143_v5 = vld [vmem:[#allocation3 + $0x1c8] sm:$0xff]  ;;  %10053 = vst.msk [vmem:[#allocation3 + $0x1f8] sm:$0xff] %vm5876_vm5, %v10005_v4 }
 0x59b   : > { %v10233_v55 = vld [vmem:[#allocation3 + $0x1c1] sm:$0xff]  ;;  %v10234_v44 = vld [vmem:[#allocation3 + $0x1c9] sm:$0xff]  ;;  %10051 = vst.msk [vmem:[#allocation3 + $0x1e8] sm:$0xff] %vm5876_vm5, %v10003_v1  ;;  %v13029_v8 = vpop.f32.mrb[76].mxu0 }
 0x59c   : > { %v10324_v14 = vmax.f32 %v10142_v62, %v10233_v55  ;;  %v10325_v22 = vmax.f32 %v10143_v5, %v10234_v44  ;;  %v13125_v38 = vadd.f32 %v16465_v34, %v13029_v8  ;;  %v9815_v9 = vpop.f32.mrb[77].mxu0 }
 0x59d   : > { %v10657_v48 = vld [vmem:[#allocation4 + $0x190] ss:$2 sm:$0xf]  ;;  %v13126_v45 = vadd.f32 %v16465_v34, %v9815_v9  ;;  %v13030_v56 = vpop.f32.mrb[78].mxu0 }
 0x59e   : > { %v11461_v33 = vpack.c.bf16 %v10657_v48, %v10657_v48  ;;  %v10008_v7 = vmax.f32 %v13125_v38, 0.0  ;;  %v13127_v29 = vadd.f32 %v16465_v34, %v13030_v56  ;;  %v9818_v37 = vpop.f32.mrb[79].mxu0 }
 0x59f   : > { %v10655_v23 = vld [vmem:[#allocation4 + $0x180] ss:$2 sm:$0xff]  ;;  %v10006_v28 = vmax.f32 %v13126_v45, 0.0  ;;  %v13128_v52 = vadd.f32 %v16465_v34, %v9818_v37 }
 0x5a0   : > { %v11460_v19 = vpack.c.bf16 %v10655_v23, %v10655_v23  ;;  %10667 = vst.msk [vmem:[%s16340_s25 + $0x28] sm:$0x3] %vm10566_vm6, %v11461_v33  ;;  %v10009_v15 = vmax.f32 %v13127_v29, 0.0  ;;  %v10148_v16 = vld [vmem:[#allocation3 + $0x1f0] sm:$0xff]  ;;  %v10146_v50 = vld [vmem:[#allocation3 + $0x1e0] sm:$0xff] }
 0x5a1   : > { %10056 = vst.msk [vmem:[#allocation3 + $0x210] sm:$0xff] %vm5876_vm5, %v10008_v7  ;;  %v10239_v46 = vld [vmem:[#allocation3 + $0x1f1] sm:$0xff]  ;;  %10054 = vst.msk [vmem:[#allocation3 + $0x200] sm:$0xff] %vm5876_vm5, %v10006_v28  ;;  %v10007_v32 = vmax.f32 %v13128_v52, 0.0 }
 0x5a2   : > { %10666 = vst.msk [vmem:[%s16340_s25 + $0x24] sm:$0xf] %vm10564_vm7, %v11460_v19  ;;  %v10330_v26 = vmax.f32 %v10148_v16, %v10239_v46  ;;  %v10147_v2 = vld [vmem:[#allocation3 + $0x1e8] sm:$0xff] }
 0x5a3   : > { %v10237_v42 = vld [vmem:[#allocation3 + $0x1e1] sm:$0xff]  ;;  %v10238_v18 = vld [vmem:[#allocation3 + $0x1e9] sm:$0xff]  ;;  %10057 = vst.msk [vmem:[#allocation3 + $0x218] sm:$0xff] %vm5876_vm5, %v10009_v15  ;;  %10055 = vst.msk [vmem:[#allocation3 + $0x208] sm:$0xff] %vm5876_vm5, %v10007_v32  ;;  %v13033_v49 = vpop.f32.mrb[80].mxu0 }
 0x5a4   : > { %v10328_v0 = vmax.f32 %v10146_v50, %v10237_v42  ;;  %v10329_v47 = vmax.f32 %v10147_v2, %v10238_v18  ;;  %v10429_v58 = vmax.f32 %v10326_v20, %v10330_v26  ;;  %v13129_v57 = vadd.f32 %v16465_v34, %v13033_v49  ;;  %v9831_v11 = vpop.f32.mrb[81].mxu0 }
 0x5a5   : > { %v13130_v61 = vadd.f32 %v16465_v34, %v9831_v11  ;;  %v13034_v17 = vpop.f32.mrb[82].mxu0 }
 0x5a6   : > { %v10427_v6 = vmax.f32 %v10324_v14, %v10328_v0  ;;  %v10428_v39 = vmax.f32 %v10325_v22, %v10329_v47  ;;  %10520 = vst.msk [vmem:[#allocation4 + $0x1d0] sm:$0xff] %vm5876_vm5, %v10429_v58  ;;  %v10012_v41 = vmax.f32 %v13129_v57, 0.0  ;;  %v13131_v35 = vadd.f32 %v16465_v34, %v13034_v17  ;;  %v9834_v3 = vpop.f32.mrb[83].mxu0 }
 0x5a7   : > { %v10010_v51 = vmax.f32 %v13130_v61, 0.0  ;;  %v13132_v13 = vadd.f32 %v16465_v34, %v9834_v3 }
 0x5a8   : > { %10518 = vst.msk [vmem:[#allocation4 + $0x1c0] sm:$0xff] %vm5876_vm5, %v10427_v6  ;;  %10519 = vst.msk [vmem:[#allocation4 + $0x1c8] sm:$0xff] %vm5876_vm5, %v10428_v39  ;;  %v10013_v25 = vmax.f32 %v13131_v35, 0.0  ;;  %v10152_v54 = vld [vmem:[#allocation3 + $0x210] sm:$0xff]  ;;  %v10150_v12 = vld [vmem:[#allocation3 + $0x200] sm:$0xff] }
 0x5a9   : > { %10060 = vst.msk [vmem:[#allocation3 + $0x230] sm:$0xff] %vm5876_vm5, %v10012_v41  ;;  %10058 = vst.msk [vmem:[#allocation3 + $0x220] sm:$0xff] %vm5876_vm5, %v10010_v51  ;;  %v10011_v21 = vmax.f32 %v13132_v13, 0.0 }
 0x5aa   : > { %v10243_v63 = vld [vmem:[#allocation3 + $0x211] sm:$0xff]  ;;  %v10151_v36 = vld [vmem:[#allocation3 + $0x208] sm:$0xff]  ;;  %10061 = vst.msk [vmem:[#allocation3 + $0x238] sm:$0xff] %vm5876_vm5, %v10013_v25 }
 0x5ab   : > { %v10334_v24 = vmax.f32 %v10152_v54, %v10243_v63  ;;  %v10241_v59 = vld [vmem:[#allocation3 + $0x201] sm:$0xff]  ;;  %v10242_v31 = vld [vmem:[#allocation3 + $0x209] sm:$0xff]  ;;  %10059 = vst.msk [vmem:[#allocation3 + $0x228] sm:$0xff] %vm5876_vm5, %v10011_v21  ;;  %v13037_v40 = vpop.f32.mrb[84].mxu0 }
 0x5ac   : > { %v10332_v43 = vmax.f32 %v10150_v12, %v10241_v59  ;;  %v10333_v27 = vmax.f32 %v10151_v36, %v10242_v31  ;;  %v13133_v10 = vadd.f32 %v16465_v34, %v13037_v40  ;;  %v9847_v4 = vpop.f32.mrb[85].mxu0 }
 0x5ad   : > { %v10671_v53 = vld [vmem:[#allocation4 + $0x1d0] ss:$2 sm:$0xf]  ;;  %v13134_v62 = vadd.f32 %v16465_v34, %v9847_v4  ;;  %v13038_v30 = vpop.f32.mrb[86].mxu0 }
 0x5ae   : > { %v11463_v1 = vpack.c.bf16 %v10671_v53, %v10671_v53  ;;  %v10016_v5 = vmax.f32 %v13133_v10, 0.0  ;;  %v13135_v55 = vadd.f32 %v16465_v34, %v13038_v30  ;;  %v9850_v44 = vpop.f32.mrb[87].mxu0 }
 0x5af   : > { %v10669_v20 = vld [vmem:[#allocation4 + $0x1c0] ss:$2 sm:$0xff]  ;;  %v10014_v22 = vmax.f32 %v13134_v62, 0.0  ;;  %v13136_v8 = vadd.f32 %v16465_v34, %v9850_v44 }
 0x5b0   : > { %v11462_v14 = vpack.c.bf16 %v10669_v20, %v10669_v20  ;;  %10064 = vst.msk [vmem:[#allocation3 + $0x250] sm:$0xff] %vm5876_vm5, %v10016_v5  ;;  %v10017_v38 = vmax.f32 %v13135_v55, 0.0  ;;  %v10156_v48 = vld [vmem:[#allocation3 + $0x230] sm:$0xff]  ;;  %v10154_v45 = vld [vmem:[#allocation3 + $0x220] sm:$0xff]  ;;  %v10680_v23 = vrot.slane %v11463_v1, 6 }
 0x5b1   : > { %v10247_v56 = vld [vmem:[#allocation3 + $0x231] sm:$0xff]  ;;  %10062 = vst.msk [vmem:[#allocation3 + $0x240] sm:$0xff] %vm5876_vm5, %v10014_v22  ;;  %v10015_v33 = vmax.f32 %v13136_v8, 0.0 }
 0x5b2   : > { %v10678_v9 = vrot.slane %v11462_v14, 6  ;;  %v10338_v7 = vmax.f32 %v10156_v48, %v10247_v56  ;;  %v10155_v29 = vld [vmem:[#allocation3 + $0x228] sm:$0xff]  ;;  %10065 = vst.msk [vmem:[#allocation3 + $0x258] sm:$0xff] %vm5876_vm5, %v10017_v38 }
 0x5b3   : > { %v10245_v37 = vld [vmem:[#allocation3 + $0x221] sm:$0xff]  ;;  %v10246_v19 = vld [vmem:[#allocation3 + $0x229] sm:$0xff]  ;;  %10063 = vst.msk [vmem:[#allocation3 + $0x248] sm:$0xff] %vm5876_vm5, %v10015_v33  ;;  %v13041_v16 = vpop.f32.mrb[88].mxu0 }
 0x5b4   : > { %v10679_v28 = vrot.slane %v10678_v9, 4  ;;  %10684 = vst.msk [vmem:[%s16340_s25 + $0x28] sm:$0xc] %vm10587_vm11, %v10678_v9  ;;  %v10336_v52 = vmax.f32 %v10154_v45, %v10245_v37  ;;  %v10337_v15 = vmax.f32 %v10155_v29, %v10246_v19  ;;  %v10437_v50 = vmax.f32 %v10334_v24, %v10338_v7  ;;  %v9863_v32 = vpop.f32.mrb[89].mxu0 }
 0x5b5   : > { %v13137_v46 = vadd.f32 %v16465_v34, %v13041_v16  ;;  %v13138_v18 = vadd.f32 %v16465_v34, %v9863_v32  ;;  %v13042_v0 = vpop.f32.mrb[90].mxu0 }
 0x5b6   : > { %v10681_v26 = vsel %vm16369_vm10, %v10679_v28, %v10680_v23  ;;  %v10435_v2 = vmax.f32 %v10332_v43, %v10336_v52  ;;  %v10436_v42 = vmax.f32 %v10333_v27, %v10337_v15  ;;  %10528 = vst.msk [vmem:[#allocation4 + $0x210] sm:$0xff] %vm5876_vm5, %v10437_v50  ;;  %v13139_v49 = vadd.f32 %v16465_v34, %v13042_v0  ;;  %v9866_v58 = vpop.f32.mrb[91].mxu0 }
 0x5b7   : > { %10685 = vst.msk [vmem:[%s16340_s25 + $0x2c] sm:$0xf] %vm10564_vm7, %v10681_v26  ;;  %v10020_v47 = vmax.f32 %v13137_v46, 0.0  ;;  %v10018_v57 = vmax.f32 %v13138_v18, 0.0  ;;  %v13140_v11 = vadd.f32 %v16465_v34, %v9866_v58  ;;  %v10160_v39 = vld [vmem:[#allocation3 + $0x250] sm:$0xff] }
 0x5b8   : > { %10526 = vst.msk [vmem:[#allocation4 + $0x200] sm:$0xff] %vm5876_vm5, %v10435_v2  ;;  %10527 = vst.msk [vmem:[#allocation4 + $0x208] sm:$0xff] %vm5876_vm5, %v10436_v42  ;;  %v10021_v6 = vmax.f32 %v13139_v49, 0.0  ;;  %v10158_v61 = vld [vmem:[#allocation3 + $0x240] sm:$0xff] }
 0x5b9   : > { %10068 = vst.msk [vmem:[#allocation3 + $0x270] sm:$0xff] %vm5876_vm5, %v10020_v47  ;;  %v10251_v17 = vld [vmem:[#allocation3 + $0x251] sm:$0xff]  ;;  %10066 = vst.msk [vmem:[#allocation3 + $0x260] sm:$0xff] %vm5876_vm5, %v10018_v57  ;;  %v10019_v41 = vmax.f32 %v13140_v11, 0.0 }
 0x5ba   : > { %v10342_v35 = vmax.f32 %v10160_v39, %v10251_v17  ;;  %v10159_v3 = vld [vmem:[#allocation3 + $0x248] sm:$0xff]  ;;  %10069 = vst.msk [vmem:[#allocation3 + $0x278] sm:$0xff] %vm5876_vm5, %v10021_v6 }
 0x5bb   : > { %v10249_v51 = vld [vmem:[#allocation3 + $0x241] sm:$0xff]  ;;  %v10250_v13 = vld [vmem:[#allocation3 + $0x249] sm:$0xff]  ;;  %10067 = vst.msk [vmem:[#allocation3 + $0x268] sm:$0xff] %vm5876_vm5, %v10019_v41  ;;  %v13045_v12 = vpop.f32.mrb[92].mxu0 }
 0x5bc   : > { %v10340_v25 = vmax.f32 %v10158_v61, %v10249_v51  ;;  %v10341_v54 = vmax.f32 %v10159_v3, %v10250_v13  ;;  %v13141_v63 = vadd.f32 %v16465_v34, %v13045_v12  ;;  %v9879_v21 = vpop.f32.mrb[93].mxu0 }
 0x5bd   : > { %v10689_v24 = vld [vmem:[#allocation4 + $0x210] ss:$2 sm:$0xf]  ;;  %v13142_v36 = vadd.f32 %v16465_v34, %v9879_v21  ;;  %v13046_v59 = vpop.f32.mrb[94].mxu0 }
 0x5be   : > { %v11465_v31 = vpack.c.bf16 %v10689_v24, %v10689_v24  ;;  %v10024_v27 = vmax.f32 %v13141_v63, 0.0  ;;  %v13143_v40 = vadd.f32 %v16465_v34, %v13046_v59  ;;  %v9882_v10 = vpop.f32.mrb[95].mxu0 }
 0x5bf   : > { %v10687_v43 = vld [vmem:[#allocation4 + $0x200] ss:$2 sm:$0xff]  ;;  %v10022_v53 = vmax.f32 %v13142_v36, 0.0  ;;  %v13144_v62 = vadd.f32 %v16465_v34, %v9882_v10 }
 0x5c0   : > { %v11464_v4 = vpack.c.bf16 %v10687_v43, %v10687_v43  ;;  %10699 = vst.msk [vmem:[%s16340_s25 + $0x34] sm:$0x3] %vm10566_vm6, %v11465_v31  ;;  %v10025_v30 = vmax.f32 %v13143_v40, 0.0  ;;  %v10164_v1 = vld [vmem:[#allocation3 + $0x270] sm:$0xff]  ;;  %v10162_v20 = vld [vmem:[#allocation3 + $0x260] sm:$0xff] }
 0x5c1   : > { %10072 = vst.msk [vmem:[#allocation3 + $0x290] sm:$0xff] %vm5876_vm5, %v10024_v27  ;;  %v10255_v5 = vld [vmem:[#allocation3 + $0x271] sm:$0xff]  ;;  %10070 = vst.msk [vmem:[#allocation3 + $0x280] sm:$0xff] %vm5876_vm5, %v10022_v53  ;;  %v10023_v55 = vmax.f32 %v13144_v62, 0.0 }
 0x5c2   : > { %10698 = vst.msk [vmem:[%s16340_s25 + $0x30] sm:$0xf] %vm10564_vm7, %v11464_v4  ;;  %v10346_v44 = vmax.f32 %v10164_v1, %v10255_v5  ;;  %v10163_v14 = vld [vmem:[#allocation3 + $0x268] sm:$0xff] }
 0x5c3   : > { %v10253_v22 = vld [vmem:[#allocation3 + $0x261] sm:$0xff]  ;;  %v10254_v8 = vld [vmem:[#allocation3 + $0x269] sm:$0xff]  ;;  %10073 = vst.msk [vmem:[#allocation3 + $0x298] sm:$0xff] %vm5876_vm5, %v10025_v30  ;;  %10071 = vst.msk [vmem:[#allocation3 + $0x288] sm:$0xff] %vm5876_vm5, %v10023_v55  ;;  %v13049_v48 = vpop.f32.mrb[96].mxu0 }
 0x5c4   : > { %v10344_v38 = vmax.f32 %v10162_v20, %v10253_v22  ;;  %v10345_v9 = vmax.f32 %v10163_v14, %v10254_v8  ;;  %v10445_v45 = vmax.f32 %v10342_v35, %v10346_v44  ;;  %v13145_v56 = vadd.f32 %v16465_v34, %v13049_v48  ;;  %v9895_v33 = vpop.f32.mrb[97].mxu0 }
 0x5c5   : > { %v13146_v29 = vadd.f32 %v16465_v34, %v9895_v33  ;;  %v13050_v37 = vpop.f32.mrb[98].mxu0 }
 0x5c6   : > { %v10443_v23 = vmax.f32 %v10340_v25, %v10344_v38  ;;  %v10444_v7 = vmax.f32 %v10341_v54, %v10345_v9  ;;  %10536 = vst.msk [vmem:[#allocation4 + $0x250] sm:$0xff] %vm5876_vm5, %v10445_v45  ;;  %v10028_v19 = vmax.f32 %v13145_v56, 0.0  ;;  %v13147_v28 = vadd.f32 %v16465_v34, %v13050_v37  ;;  %v9898_v52 = vpop.f32.mrb[99].mxu0 }
 0x5c7   : > { %v10026_v15 = vmax.f32 %v13146_v29, 0.0  ;;  %v13148_v16 = vadd.f32 %v16465_v34, %v9898_v52 }
 0x5c8   : > { %10534 = vst.msk [vmem:[#allocation4 + $0x240] sm:$0xff] %vm5876_vm5, %v10443_v23  ;;  %10535 = vst.msk [vmem:[#allocation4 + $0x248] sm:$0xff] %vm5876_vm5, %v10444_v7  ;;  %v10029_v50 = vmax.f32 %v13147_v28, 0.0  ;;  %v10168_v46 = vld [vmem:[#allocation3 + $0x290] sm:$0xff]  ;;  %v10166_v32 = vld [vmem:[#allocation3 + $0x280] sm:$0xff] }
 0x5c9   : > { %10076 = vst.msk [vmem:[#allocation3 + $0x2b0] sm:$0xff] %vm5876_vm5, %v10028_v19  ;;  %10074 = vst.msk [vmem:[#allocation3 + $0x2a0] sm:$0xff] %vm5876_vm5, %v10026_v15  ;;  %v10027_v2 = vmax.f32 %v13148_v16, 0.0 }
 0x5ca   : > { %v10259_v26 = vld [vmem:[#allocation3 + $0x291] sm:$0xff]  ;;  %v10167_v18 = vld [vmem:[#allocation3 + $0x288] sm:$0xff]  ;;  %10077 = vst.msk [vmem:[#allocation3 + $0x2b8] sm:$0xff] %vm5876_vm5, %v10029_v50 }
 0x5cb   : > { %v10350_v42 = vmax.f32 %v10168_v46, %v10259_v26  ;;  %v10257_v0 = vld [vmem:[#allocation3 + $0x281] sm:$0xff]  ;;  %v10258_v47 = vld [vmem:[#allocation3 + $0x289] sm:$0xff]  ;;  %10075 = vst.msk [vmem:[#allocation3 + $0x2a8] sm:$0xff] %vm5876_vm5, %v10027_v2  ;;  %v13053_v57 = vpop.f32.mrb[100].mxu0 }
 0x5cc   : > { %v10348_v49 = vmax.f32 %v10166_v32, %v10257_v0  ;;  %v10349_v58 = vmax.f32 %v10167_v18, %v10258_v47  ;;  %v13149_v11 = vadd.f32 %v16465_v34, %v13053_v57  ;;  %v9911_v6 = vpop.f32.mrb[101].mxu0 }
 0x5cd   : > { %v10703_v39 = vld [vmem:[#allocation4 + $0x250] ss:$2 sm:$0xf]  ;;  %v13150_v61 = vadd.f32 %v16465_v34, %v9911_v6  ;;  %v13054_v17 = vpop.f32.mrb[102].mxu0 }
 0x5ce   : > { %v11467_v41 = vpack.c.bf16 %v10703_v39, %v10703_v39  ;;  %v10032_v3 = vmax.f32 %v13149_v11, 0.0  ;;  %v13151_v51 = vadd.f32 %v16465_v34, %v13054_v17  ;;  %v9914_v13 = vpop.f32.mrb[103].mxu0 }
 0x5cf   : > { %v10701_v35 = vld [vmem:[#allocation4 + $0x240] ss:$2 sm:$0xff]  ;;  %v10030_v54 = vmax.f32 %v13150_v61, 0.0  ;;  %v13152_v12 = vadd.f32 %v16465_v34, %v9914_v13 }
 0x5d0   : > { %v11466_v25 = vpack.c.bf16 %v10701_v35, %v10701_v35  ;;  %10080 = vst.msk [vmem:[#allocation3 + $0x2d0] sm:$0xff] %vm5876_vm5, %v10032_v3  ;;  %v10033_v63 = vmax.f32 %v13151_v51, 0.0  ;;  %v10172_v24 = vld [vmem:[#allocation3 + $0x2b0] sm:$0xff]  ;;  %v10170_v36 = vld [vmem:[#allocation3 + $0x2a0] sm:$0xff]  ;;  %v10712_v43 = vrot.slane %v11467_v41, 6 }
 0x5d1   : > { %v10263_v59 = vld [vmem:[#allocation3 + $0x2b1] sm:$0xff]  ;;  %10078 = vst.msk [vmem:[#allocation3 + $0x2c0] sm:$0xff] %vm5876_vm5, %v10030_v54  ;;  %v10031_v31 = vmax.f32 %v13152_v12, 0.0 }
 0x5d2   : > { %v10710_v21 = vrot.slane %v11466_v25, 6  ;;  %v10354_v27 = vmax.f32 %v10172_v24, %v10263_v59  ;;  %v10171_v40 = vld [vmem:[#allocation3 + $0x2a8] sm:$0xff]  ;;  %10081 = vst.msk [vmem:[#allocation3 + $0x2d8] sm:$0xff] %vm5876_vm5, %v10033_v63 }
 0x5d3   : > { %v10261_v10 = vld [vmem:[#allocation3 + $0x2a1] sm:$0xff]  ;;  %v10262_v4 = vld [vmem:[#allocation3 + $0x2a9] sm:$0xff]  ;;  %10079 = vst.msk [vmem:[#allocation3 + $0x2c8] sm:$0xff] %vm5876_vm5, %v10031_v31  ;;  %v13057_v1 = vpop.f32.mrb[104].mxu0 }
 0x5d4   : > { %v10711_v53 = vrot.slane %v10710_v21, 4  ;;  %10716 = vst.msk [vmem:[%s16340_s25 + $0x34] sm:$0xc] %vm10587_vm11, %v10710_v21  ;;  %v10352_v62 = vmax.f32 %v10170_v36, %v10261_v10  ;;  %v10353_v30 = vmax.f32 %v10171_v40, %v10262_v4  ;;  %v10453_v20 = vmax.f32 %v10350_v42, %v10354_v27  ;;  %v9927_v55 = vpop.f32.mrb[105].mxu0 }
 0x5d5   : > { %v13153_v5 = vadd.f32 %v16465_v34, %v13057_v1  ;;  %v13154_v8 = vadd.f32 %v16465_v34, %v9927_v55  ;;  %v13058_v38 = vpop.f32.mrb[106].mxu0 }
 0x5d6   : > { %v10713_v44 = vsel %vm16369_vm10, %v10711_v53, %v10712_v43  ;;  %v10451_v14 = vmax.f32 %v10348_v49, %v10352_v62  ;;  %v10452_v22 = vmax.f32 %v10349_v58, %v10353_v30  ;;  %10544 = vst.msk [vmem:[#allocation4 + $0x290] sm:$0xff] %vm5876_vm5, %v10453_v20  ;;  %v13155_v48 = vadd.f32 %v16465_v34, %v13058_v38  ;;  %v9930_v45 = vpop.f32.mrb[107].mxu0 }
 0x5d7   : > { %10717 = vst.msk [vmem:[%s16340_s25 + $0x38] sm:$0xf] %vm10564_vm7, %v10713_v44  ;;  %v10036_v9 = vmax.f32 %v13153_v5, 0.0  ;;  %v10034_v56 = vmax.f32 %v13154_v8, 0.0  ;;  %v13156_v33 = vadd.f32 %v16465_v34, %v9930_v45  ;;  %v10176_v7 = vld [vmem:[#allocation3 + $0x2d0] sm:$0xff] }
 0x5d8   : > { %10542 = vst.msk [vmem:[#allocation4 + $0x280] sm:$0xff] %vm5876_vm5, %v10451_v14  ;;  %10543 = vst.msk [vmem:[#allocation4 + $0x288] sm:$0xff] %vm5876_vm5, %v10452_v22  ;;  %v10037_v23 = vmax.f32 %v13155_v48, 0.0  ;;  %v10174_v29 = vld [vmem:[#allocation3 + $0x2c0] sm:$0xff] }
 0x5d9   : > { %10084 = vst.msk [vmem:[#allocation3 + $0x2f0] sm:$0xff] %vm5876_vm5, %v10036_v9  ;;  %v10267_v37 = vld [vmem:[#allocation3 + $0x2d1] sm:$0xff]  ;;  %10082 = vst.msk [vmem:[#allocation3 + $0x2e0] sm:$0xff] %vm5876_vm5, %v10034_v56  ;;  %v10035_v19 = vmax.f32 %v13156_v33, 0.0 }
 0x5da   : > { %v10358_v28 = vmax.f32 %v10176_v7, %v10267_v37  ;;  %v10175_v52 = vld [vmem:[#allocation3 + $0x2c8] sm:$0xff]  ;;  %10085 = vst.msk [vmem:[#allocation3 + $0x2f8] sm:$0xff] %vm5876_vm5, %v10037_v23 }
 0x5db   : > { %v10265_v15 = vld [vmem:[#allocation3 + $0x2c1] sm:$0xff]  ;;  %v10266_v16 = vld [vmem:[#allocation3 + $0x2c9] sm:$0xff]  ;;  %10083 = vst.msk [vmem:[#allocation3 + $0x2e8] sm:$0xff] %vm5876_vm5, %v10035_v19 }
 0x5dc   : > { %v10356_v50 = vmax.f32 %v10174_v29, %v10265_v15  ;;  %v10357_v46 = vmax.f32 %v10175_v52, %v10266_v16 }
 0x5dd   : > { %v10721_v34 = vld [vmem:[#allocation4 + $0x290] ss:$2 sm:$0xf] }
 0x5de   : > { %v11469_v32 = vpack.c.bf16 %v10721_v34, %v10721_v34 }
 0x5df   : > { %v10719_v26 = vld [vmem:[#allocation4 + $0x280] ss:$2 sm:$0xff] }
 0x5e0   : > { %v11468_v2 = vpack.c.bf16 %v10719_v26, %v10719_v26  ;;  %10731 = vst.msk [vmem:[%s16340_s25 + $0x40] sm:$0x3] %vm10566_vm6, %v11469_v32  ;;  %v10362_v42 = vld [vmem:[#allocation3 + $0x2f0] sm:$0xff]  ;;  %v10360_v18 = vld [vmem:[#allocation3 + $0x2e0] sm:$0xff] }
 0x5e1   : > { %v10366_v0 = vld [vmem:[#allocation3 + $0x2f1] sm:$0xff] }
 0x5e2   : > { %10730 = vst.msk [vmem:[%s16340_s25 + $0x3c] sm:$0xf] %vm10564_vm7, %v11468_v2  ;;  %v10370_v47 = vmax.f32 %v10362_v42, %v10366_v0  ;;  %v10361_v49 = vld [vmem:[#allocation3 + $0x2e8] sm:$0xff] }
 0x5e3   : > { %v10364_v58 = vld [vmem:[#allocation3 + $0x2e1] sm:$0xff]  ;;  %v10365_v57 = vld [vmem:[#allocation3 + $0x2e9] sm:$0xff] }
 0x5e4   : > { %v10368_v11 = vmax.f32 %v10360_v18, %v10364_v58  ;;  %v10369_v6 = vmax.f32 %v10361_v49, %v10365_v57  ;;  %v10461_v39 = vmax.f32 %v10358_v28, %v10370_v47 }
 0x5e6   : > { %v10459_v61 = vmax.f32 %v10356_v50, %v10368_v11  ;;  %v10460_v17 = vmax.f32 %v10357_v46, %v10369_v6  ;;  %10552 = vst.msk [vmem:[#allocation4 + $0x2d0] sm:$0xff] %vm5876_vm5, %v10461_v39 }
 0x5e8   : > { %10550 = vst.msk [vmem:[#allocation4 + $0x2c0] sm:$0xff] %vm5876_vm5, %v10459_v61  ;;  %10551 = vst.msk [vmem:[#allocation4 + $0x2c8] sm:$0xff] %vm5876_vm5, %v10460_v17 }
 0x5ed   : > { %v10735_v41 = vld [vmem:[#allocation4 + $0x2d0] ss:$2 sm:$0xf] }
 0x5ee   : > { %v11471_v3 = vpack.c.bf16 %v10735_v41, %v10735_v41 }
 0x5ef   : > { %v10733_v35 = vld [vmem:[#allocation4 + $0x2c0] ss:$2 sm:$0xff] }
 0x5f0   : > { %v11470_v51 = vpack.c.bf16 %v10733_v35, %v10733_v35  ;;  %v10744_v25 = vrot.slane %v11471_v3, 6 }
 0x5f2   : > { %v10742_v13 = vrot.slane %v11470_v51, 6 }
 0x5f4   : > { %v10743_v54 = vrot.slane %v10742_v13, 4  ;;  %10748 = vst.msk [vmem:[%s16340_s25 + $0x40] sm:$0xc] %vm10587_vm11, %v10742_v13 }
 0x5f6   : > { %v10745_v12 = vsel %vm16369_vm10, %v10743_v54, %v10744_v25 }
 0x5f7   : > { %10749 = vst.msk [vmem:[%s16340_s25 + $0x44] sm:$0xf] %vm10564_vm7, %v10745_v12 }
 0x5f8 PF: > { %s16_s15 = sadd.s32 1, %s14147_s15  }
 0x5f9   : > { %p13_p10 = scmp.ge.s32.totalorder %s16_s15, 4  }
 0x5fb   :  { %15 = sbr.rel (!%p13_p10) target bundleno = 2 (0x2), region = 102 }
 0x602   :  { %10772 = vsyncpa [#allocation6], 1 }
 0x603   :  { %10774 = vsyncpa [#allocation6 + $0x1], 1 }
 0x604   :  { %10775 = vsyncpa [#allocation8], 1 }

</bundles_post_ra>
